<compile_context>
chip_gen: v6e
topology: v6e:2x2x1
jax: 0.10.0
libtpu: 0.0.40
codegen_flags: <defaults>
</compile_context>

<pallas_src>
import jax
import jax.numpy as jnp
from jax.experimental import pallas as pl
from jax.experimental.pallas import tpu as pltpu

jax.config.update("jax_default_matmul_precision", "highest")

NA = 5          # other-agent slots after the torch-side padding
D_BBA = 76      # ball/boost/agents feature width
D_OA = 62       # per-other-agent width after add_relative_components
LANE = 128      # TPU lane width: pad K dims and the action dim to this
BIG = 3.0e38    # finite stand-in for +inf in the combined_pool min/max trick


# ----------------------------------------------------------------------------------
# Plain-JAX glue: preprocessing identical to the PyTorch code
# ----------------------------------------------------------------------------------
def add_relative_components(bba, oa):
    forward = bba[..., 60:63][..., None, :]          # (..., 1, 3)
    up = bba[..., 63:66][..., None, :]               # (..., 1, 3)
    left = jnp.cross(up, forward)
    pitch = jnp.arctan2(forward[..., 2],
                        jnp.sqrt(forward[..., 0] ** 2 + forward[..., 1] ** 2))
    yaw = jnp.arctan2(forward[..., 1], forward[..., 0])
    roll = jnp.arctan2(left[..., 2], up[..., 2])
    pitch, yaw, roll = pitch[..., None], yaw[..., None], roll[..., None]
    cr, sr = jnp.cos(roll), jnp.sin(roll)
    cp, sp = jnp.cos(pitch), jnp.sin(pitch)
    cy, sy = jnp.cos(yaw), jnp.sin(yaw)
    vals = jnp.concatenate([oa[..., 1:7], oa[..., 10:16], oa[..., 19:22]], axis=-1)
    xs, ys, zs = vals[..., 0::3], vals[..., 1::3], vals[..., 2::3]
    frx = cy * xs - sy * ys
    fry = sy * xs + cy * ys
    frz = zs
    crx = cp * cy * xs + (sr * sp * cy - cr * sy) * ys - (cr * sp * cy + sr * sy) * zs
    cry = cp * sy * xs + (sr * sp * sy + cr * cy) * ys - (cr * sp * sy - sr * cy) * zs
    crz = sp * xs - cp * sr * ys + cp * cr * zs
    all_rows = jnp.concatenate([frx, fry, frz, crx, cry, crz], axis=-1)
    return jnp.concatenate([oa, all_rows], axis=-1)


def preprocess(inp):
    bba = inp[..., :76]
    oa = inp[..., 76:]
    oa = oa.reshape(oa.shape[:-1] + (-1, 31))
    n = oa.shape[-2]
    # F.pad(oa, (1, 0, 0, 5 - n)): one leading zero feature, pad agents up to 5
    pad = [(0, 0)] * (oa.ndim - 2) + [(0, NA - n), (1, 0)]
    oa = jnp.pad(oa, pad)
    nonzero = (oa != 0).any(axis=-1)                          # (..., 5) bool
    nz_cs = jnp.cumsum(nonzero, axis=-1)
    nz_s = nonzero.sum(axis=-1, keepdims=True)
    teammate_mask = nz_cs <= nz_s // 2
    oa = oa.at[..., 0].set(jnp.where(teammate_mask, 1.0, oa[..., 0]))
    x_oa = add_relative_components(bba, oa)                   # (..., 5, 62)
    mask = jnp.logical_not(nonzero).astype(jnp.float32)       # 1.0 = masked agent
    return bba, x_oa, mask


# ----------------------------------------------------------------------------------
# Pallas kernels
# ----------------------------------------------------------------------------------
def _relu(x):
    return jnp.maximum(x, 0.0)


def action_embed_kernel(act_ref, aw0, ab0, aw1, ab1, aw2, ab2, out_ref):
    """ControlsPredictorDot.net over the (padded) constant action table.

    Input independent, so it runs exactly once; the main kernel only consumes
    the precomputed (transposed) embedding."""
    f32 = jnp.float32
    a = act_ref[...]
    a = _relu(jnp.dot(a, aw0[...], preferred_element_type=f32) + ab0[...])
    a = _relu(jnp.dot(a, aw1[...], preferred_element_type=f32) + ab1[...])
    out_ref[...] = jnp.dot(a, aw2[...], preferred_element_type=f32) + ab2[...]


def bcnet_kernel(x_bba_ref, x_oa_ref, mask_ref,
                 bw0, bb0, bw1, bb1, bw2, bb2,        # pre_bba
                 ow0, ob0, ow1, ob1, ow2, ob2,        # pre_oa
                 hw0, hb0, hw1, hb1,                  # hidden layers
                 ew, eb,                              # emb_convertor
                 act_emb_t_ref,                       # precomputed (FEATURES, A_PAD)
                 out_ref):
    f32 = jnp.float32

    def lin(x, w_ref, b_ref):
        return jnp.dot(x, w_ref[...], preferred_element_type=f32) + b_ref[...]

    tb = x_bba_ref.shape[0]
    na = x_oa_ref.shape[0] // tb

    # ---- pre_bba MLP: (TB, 128 [=76 zero-padded]) -> (TB, FD) ----
    xb = _relu(lin(x_bba_ref[...], bw0, bb0))
    xb = _relu(lin(xb, bw1, bb1))
    xb = _relu(lin(xb, bw2, bb2))

    # ---- pre_oa MLP on all agents at once: (NA*TB, 128 [=62 padded]) -> (NA*TB, FD)
    xo = _relu(lin(x_oa_ref[...], ow0, ob0))
    xo = _relu(lin(xo, ow1, ob1))
    xo = _relu(lin(xo, ow2, ob2))

    # ---- combined (min, max, nanmean) masked pooling over the agent axis ----
    m = mask_ref[...]                        # (NA*TB, 1), 1.0 = padded/empty agent
    masked = m > 0.0
    xo_min = jnp.where(masked, BIG, xo)      # finite sentinel: no inf inside the kernel
    xo_max = jnp.where(masked, -BIG, xo)
    valid = 1.0 - m
    xo_sum = xo * valid

    pmin, pmax = xo_min[0:tb], xo_max[0:tb]
    psum, pcnt = xo_sum[0:tb], valid[0:tb]
    for i in range(1, na):                   # static loop; agent i is rows [i*tb, (i+1)*tb)
        lo = i * tb
        pmin = jnp.minimum(pmin, xo_min[lo:lo + tb])
        pmax = jnp.maximum(pmax, xo_max[lo:lo + tb])
        psum = psum + xo_sum[lo:lo + tb]
        pcnt = pcnt + valid[lo:lo + tb]
    pmean = psum / pcnt                      # NaN iff every agent masked (== torch nanmean)

    # ---- hidden layers: one lane-concat -> single K = 4*FD (=128) matmul ----
    h = jnp.concatenate([xb, pmin, pmax, pmean], axis=-1)
    h = _relu(lin(h, hw0, hb0))
    h = _relu(lin(h, hw1, hb1))

    # ---- ControlsPredictorDot: player embedding @ precomputed action embeddings ----
    player = lin(h, ew, eb)                                  # (TB, FEATURES)
    out_ref[...] = jnp.dot(player, act_emb_t_ref[...],       # (TB, A_PAD), lane dense
                           preferred_element_type=f32)


# ----------------------------------------------------------------------------------
# Wrappers
# ----------------------------------------------------------------------------------
def _pad_rows(w, n):
    return jnp.zeros((n, w.shape[1]), w.dtype).at[: w.shape[0]].set(w)


def compute_action_embedding(actions, act_net, a_pad=LANE):
    """One-shot Pallas kernel for the constant action-embedding branch."""
    (aw0, ab0), (aw1, ab1), (aw2, ab2) = act_net
    act_p = jnp.zeros((a_pad, actions.shape[1]), jnp.float32).at[: actions.shape[0]].set(actions)
    emb = pl.pallas_call(
        action_embed_kernel,
        out_shape=jax.ShapeDtypeStruct((a_pad, aw2.shape[1]), jnp.float32),
        in_specs=[pl.BlockSpec(memory_space=pltpu.MemorySpace.VMEM)] * 7,
        out_specs=pl.BlockSpec(memory_space=pltpu.MemorySpace.VMEM),
    )(act_p, aw0, ab0, aw1, ab1, aw2, ab2)
    return emb.T                             # (FEATURES, A_PAD): final op is a plain jnp.dot


def bcnet_pallas(x_bba, x_oa, mask, params, act_emb_t, *, tb=8):
    assert tb % 8 == 0
    B = x_bba.shape[0]
    na, d_oa = x_oa.shape[1], x_oa.shape[2]
    a_pad = act_emb_t.shape[1]
    bp = ((B + tb - 1) // tb) * tb
    n_tiles = bp // tb

    # Batch padding; padded rows get mask = 0 (all "valid") so pooling stays finite.
    xb_p = jnp.zeros((bp, LANE), jnp.float32).at[:B, : x_bba.shape[1]].set(x_bba)
    xo_p = jnp.zeros((bp, na, LANE), jnp.float32).at[:B, :, :d_oa].set(x_oa)
    mk_p = jnp.zeros((bp, na), jnp.float32).at[:B].set(mask)

    # Tile/agent-major layout: each grid step sees one contiguous (na*tb, 128) slab,
    # so the 3 pre_oa matmuls run once over all agents of the batch tile.
    xo_t = xo_p.reshape(n_tiles, tb, na, LANE).transpose(0, 2, 1, 3)
    xo_t = xo_t.reshape(n_tiles, na * tb, LANE)
    mk_t = mk_p.reshape(n_tiles, tb, na).transpose(0, 2, 1).reshape(n_tiles, na * tb, 1)

    # Flatten weights (K of the two first layers zero-padded to 128 lanes).
    wl = []
    w, b = params["pre_bba"][0]
    wl += [_pad_rows(w, LANE), b]
    for w, b in params["pre_bba"][1:]:
        wl += [w, b]
    w, b = params["pre_oa"][0]
    wl += [_pad_rows(w, LANE), b]
    for w, b in params["pre_oa"][1:]:
        wl += [w, b]
    for w, b in params["hidden"]:
        wl += [w, b]
    wl += [params["emb"][0], params["emb"][1]]

    const_spec = lambda arr: pl.BlockSpec(arr.shape, lambda t: (0, 0))  # stays VMEM-resident
    in_specs = (
        [pl.BlockSpec((tb, LANE), lambda t: (t, 0)),
         pl.BlockSpec((None, na * tb, LANE), lambda t: (t, 0, 0)),
         pl.BlockSpec((None, na * tb, 1), lambda t: (t, 0, 0))]
        + [const_spec(w) for w in wl]
        + [const_spec(act_emb_t)]
    )

    out = pl.pallas_call(
        bcnet_kernel,
        out_shape=jax.ShapeDtypeStruct((bp, a_pad), jnp.float32),
        grid=(n_tiles,),
        in_specs=in_specs,
        out_specs=pl.BlockSpec((tb, a_pad), lambda t: (t, 0)),
        compiler_params=pltpu.CompilerParams(dimension_semantics=("parallel",)),
    )(xb_p, xo_t, mk_t, *wl, act_emb_t)
    return out[:B]                           # caller slices the action dim to n_actions


# ----------------------------------------------------------------------------------
# Deterministic synthetic parameters (PyTorch-Linear-style uniform init)
# ----------------------------------------------------------------------------------
def _linear(key, in_f, out_f):
    k1, k2 = jax.random.split(key)
    bound = float(in_f) ** -0.5
    w = jax.random.uniform(k1, (in_f, out_f), jnp.float32, -bound, bound)
    b = jax.random.uniform(k2, (1, out_f), jnp.float32, -bound, bound)
    return w, b


def build_params(key, ff_dim=32, features=32, n_actions=90):
    keys = iter(jax.random.split(key, 20))
    p = {}
    p["pre_bba"] = [_linear(next(keys), D_BBA, ff_dim),
                    _linear(next(keys), ff_dim, ff_dim),
                    _linear(next(keys), ff_dim, ff_dim)]
    p["pre_oa"] = [_linear(next(keys), D_OA, ff_dim),
                   _linear(next(keys), ff_dim, ff_dim),
                   _linear(next(keys), ff_dim, ff_dim)]
    # hidden_layers = 3 -> [Linear(4*ff, ff), Linear(ff, ff)]
    p["hidden"] = [_linear(next(keys), 4 * ff_dim, ff_dim),
                   _linear(next(keys), ff_dim, ff_dim)]
    p["emb"] = _linear(next(keys), ff_dim, features)
    p["act_net"] = [_linear(next(keys), 8, 256),
                    _linear(next(keys), 256, 256),
                    _linear(next(keys), 256, features)]
    p["actions"] = jax.random.uniform(next(keys), (n_actions, 8), jnp.float32, -1.0, 1.0)
    return p


# ----------------------------------------------------------------------------------
# Pure-JAX reference (mirrors the torch forward) for a correctness check
# ----------------------------------------------------------------------------------
def bcnet_reference(x_bba, x_oa, mask, p):
    relu = lambda v: jnp.maximum(v, 0.0)
    h = x_bba
    for w, b in p["pre_bba"]:
        h = relu(h @ w + b)
    bba_out = h
    h = x_oa
    for w, b in p["pre_oa"]:
        h = relu(h @ w + b)                                   # (B, 5, FD)
    a = ((mask * 1e38) * 1e38)[..., None]
    pmin = jnp.min(h + a, axis=-2)
    pmax = jnp.max(h - a, axis=-2)
    hn = h + (a - a)
    valid = jnp.logical_not(jnp.isnan(hn))
    pmean = jnp.where(valid, hn, 0.0).sum(axis=-2) / valid.sum(axis=-2)
    x = jnp.concatenate([bba_out, pmin, pmax, pmean], axis=-1)
    for w, b in p["hidden"]:
        x = relu(x @ w + b)
    player_emb = x @ p["emb"][0] + p["emb"][1]
    ae = p["actions"]
    for i, (w, b) in enumerate(p["act_net"]):
        ae = ae @ w + b
        if i < 2:
            ae = relu(ae)
    return player_emb @ ae.T


# ----------------------------------------------------------------------------------
if __name__ == "__main__":
    B = 12
    INPUT_DIM = 76 + 31 * NA              # 231
    FF_DIM = 32
    FEATURES = 32
    N_ACTIONS = 90
    TB = 8

    key = jax.random.PRNGKey(0)
    k_inp, k_par = jax.random.split(key)

    inp = jax.random.normal(k_inp, (B, INPUT_DIM), jnp.float32)
    # zero out the last other-agent of batch element 0 to exercise the mask path
    inp = inp.at[0, 76 + 31 * 4:].set(0.0)

    params = build_params(k_par, ff_dim=FF_DIM, features=FEATURES, n_actions=N_ACTIONS)

    x_bba, x_oa, mask = preprocess(inp)

    act_emb_t = compute_action_embedding(params["actions"], params["act_net"])
    out_full = bcnet_pallas(x_bba, x_oa, mask, params, act_emb_t, tb=TB)
    out = out_full[:, :N_ACTIONS]
    out = jax.block_until_ready(out)

    ref = bcnet_reference(x_bba, x_oa, mask, params)
    assert out.shape == (B, N_ACTIONS), out.shape
    assert bool(jnp.isfinite(out).all()), "non-finite values in kernel output"
    max_err = float(jnp.max(jnp.abs(out - ref)))
    if not bool(jnp.allclose(out, ref, atol=2e-2, rtol=2e-2)):
        raise AssertionError(
            f"Pallas kernel output does not match JAX reference (max abs err {max_err:.3e})")
    print("KERNEL_OK")
</pallas_src>

<mosaic_0001>
module attributes {stable_mosaic.version = 11 : i64} {
  func.func @action_embed_kernel(%arg0: memref<128x8xf32, #tpu.memory_space<vmem>>, %arg1: memref<8x256xf32, #tpu.memory_space<vmem>>, %arg2: memref<1x256xf32, #tpu.memory_space<vmem>>, %arg3: memref<256x256xf32, #tpu.memory_space<vmem>>, %arg4: memref<1x256xf32, #tpu.memory_space<vmem>>, %arg5: memref<256x32xf32, #tpu.memory_space<vmem>>, %arg6: memref<1x32xf32, #tpu.memory_space<vmem>>, %arg7: memref<128x32xf32, #tpu.memory_space<vmem>>) attributes {dimension_semantics = [], scalar_prefetch = 0 : i64, scratch_operands = 0 : i64, tpu.core_type = #tpu.core_type<tc>} {
    %c0 = arith.constant 0 : index
    %c0_0 = arith.constant 0 : index
    %0 = vector.load %arg0[%c0, %c0_0] : memref<128x8xf32, #tpu.memory_space<vmem>>, vector<128x8xf32>
    %c0_1 = arith.constant 0 : index
    %c0_2 = arith.constant 0 : index
    %1 = vector.load %arg1[%c0_1, %c0_2] : memref<8x256xf32, #tpu.memory_space<vmem>>, vector<8x256xf32>
    %cst = arith.constant dense<0.000000e+00> : vector<128x256xf32>
    %2 = tpu.matmul %0, %1, %cst {dimension_numbers = #tpu.dot_dimension_numbers<[1], [0], [0], [1], [0, 0, 1, 1], [], []>, precision = #tpu.contract_precision<fp32>} : vector<128x8xf32>, vector<8x256xf32>, vector<128x256xf32> -> vector<128x256xf32>
    %c0_3 = arith.constant 0 : index
    %c0_4 = arith.constant 0 : index
    %3 = vector.load %arg2[%c0_3, %c0_4] : memref<1x256xf32, #tpu.memory_space<vmem>>, vector<1x256xf32>
    %4 = vector.broadcast %3 : vector<1x256xf32> to vector<128x256xf32>
    %5 = arith.addf %2, %4 : vector<128x256xf32>
    %cst_5 = arith.constant 0.000000e+00 : f32
    %6 = vector.broadcast %cst_5 : f32 to vector<128x256xf32>
    %7 = arith.maximumf %5, %6 : vector<128x256xf32>
    %c0_6 = arith.constant 0 : index
    %c0_7 = arith.constant 0 : index
    %8 = vector.load %arg3[%c0_6, %c0_7] : memref<256x256xf32, #tpu.memory_space<vmem>>, vector<256x256xf32>
    %cst_8 = arith.constant dense<0.000000e+00> : vector<128x256xf32>
    %9 = tpu.matmul %7, %8, %cst_8 {dimension_numbers = #tpu.dot_dimension_numbers<[1], [0], [0], [1], [0, 0, 1, 1], [], []>, precision = #tpu.contract_precision<fp32>} : vector<128x256xf32>, vector<256x256xf32>, vector<128x256xf32> -> vector<128x256xf32>
    %c0_9 = arith.constant 0 : index
    %c0_10 = arith.constant 0 : index
    %10 = vector.load %arg4[%c0_9, %c0_10] : memref<1x256xf32, #tpu.memory_space<vmem>>, vector<1x256xf32>
    %11 = vector.broadcast %10 : vector<1x256xf32> to vector<128x256xf32>
    %12 = arith.addf %9, %11 : vector<128x256xf32>
    %cst_11 = arith.constant 0.000000e+00 : f32
    %13 = vector.broadcast %cst_11 : f32 to vector<128x256xf32>
    %14 = arith.maximumf %12, %13 : vector<128x256xf32>
    %c0_12 = arith.constant 0 : index
    %c0_13 = arith.constant 0 : index
    %15 = vector.load %arg5[%c0_12, %c0_13] : memref<256x32xf32, #tpu.memory_space<vmem>>, vector<256x32xf32>
    %cst_14 = arith.constant dense<0.000000e+00> : vector<128x32xf32>
    %16 = tpu.matmul %14, %15, %cst_14 {dimension_numbers = #tpu.dot_dimension_numbers<[1], [0], [0], [1], [0, 0, 1, 1], [], []>, precision = #tpu.contract_precision<fp32>} : vector<128x256xf32>, vector<256x32xf32>, vector<128x32xf32> -> vector<128x32xf32>
    %c0_15 = arith.constant 0 : index
    %c0_16 = arith.constant 0 : index
    %17 = vector.load %arg6[%c0_15, %c0_16] : memref<1x32xf32, #tpu.memory_space<vmem>>, vector<1x32xf32>
    %18 = vector.broadcast %17 : vector<1x32xf32> to vector<128x32xf32>
    %19 = arith.addf %16, %18 : vector<128x32xf32>
    %c0_17 = arith.constant 0 : index
    %c0_18 = arith.constant 0 : index
    %20 = vector.load %arg7[%c0_17, %c0_18] : memref<128x32xf32, #tpu.memory_space<vmem>>, vector<128x32xf32>
    tpu.vector_store %arg7[%c0_17, %c0_18], %19 {strides = array<i32>} : memref<128x32xf32, #tpu.memory_space<vmem>>, vector<128x32xf32>,
    return
  }
}

</mosaic_0001>

<bundles_post_ra>
// kernel: tpu_custom_call.1
= control target key start
LH: loop header
LB: loop body
LE: loop exit
PB: predicated region body
PF: predicated region fallthrough
CT: control target
= control target key end

     0   :  { %12 = vsyncpa [#allocation3], 0  ;;  %s5943_s24 = smov [#allocation2]   ;;  %s10193_s0 = inlined_call_operand.vmem [shape: f32[128,8], index: 0, kind: input, shape index: {}]   ;;  %s10194_s1 = inlined_call_operand.vmem [shape: f32[8,256], index: 1, kind: input, shape index: {}]   ;;  %s10195_s2 = inlined_call_operand.vmem [shape: f32[1,256], index: 2, kind: input, shape index: {}]   ;;  %s10196_s3 = inlined_call_operand.hbm [shape: f32[256,256], index: 3, kind: input, shape index: {}]   ;;  %s10197_s4 = inlined_call_operand.vmem [shape: f32[1,256], index: 4, kind: input, shape index: {}]   ;;  %s10198_s5 = inlined_call_operand.vmem [shape: f32[256,32], index: 5, kind: input, shape index: {}]   ;;  %s10199_s6 = inlined_call_operand.vmem [shape: f32[1,32], index: 6, kind: input, shape index: {}]   ;;  %s10200_s7 = inlined_call_operand.vmem [shape: f32[128,32], index: 7, kind: output, shape index: {}]  }
   0x1   :  { %s24_s25 = sshll.u32 %s5943_s24, 4  ;;  %s25_s25 = int_to_ptr.vmem [resolvable:$true] %s24_s25 }
   0x2   :  { %s5929_s26 = scalar_lea.vmem %s25_s25, 8192  ;;  %p5934_p1 = scmp.lt.s32.totalorder %s25_s25, %s25_s25 }
   0x3   :  { %p5930_p0 = scmp.ne.s32.totalorder %s25_s25, %s5929_s26  ;;  %p5935_p2 = scmp.lt.s32.totalorder %s5929_s26, %s5929_s26 }
   0x5   :  { %p5936_p3 = por %p5935_p2, %p5934_p1 }
   0x7   :  { %p5937_p4 = pnand %p5936_p3, %p5930_p0 }
   0x9   :  { %5940 = shalt.err (!%p5937_p4)
}
   0xa   :  { %s5944_s27 = smov 256   ;;  %s5945_s28 = smov 16  }
   0xb   :  { %30 = dma.hbm_to_vmem [thread:$0]  %s10196_s3, 8192, %s25_s25, [#allocation3], %s5944_s27, %s5944_s27, %s5945_s28  }
   0xc   :  { %5941 = dma.done.wait [#allocation3], 8192  }
   0xd   :  { %5942 = vsyncadd [#allocation3], 4294959104  ;;  %v10223_v0 = vmov 0.0   ;;  %vm70_vm0 = vcmask 64512   ;;  %v57_v1 = vld [vmem:[%s10194_s1 + $0x8] sm:$0xff]  ;;  %v56_v2 = vld [vmem:[%s10194_s1] sm:$0xff] }
   0xe   :  { %185 = vmatprep.mubr.f32.mxu0 %v10223_v0  ;;  %436 = vmatprep.mubr.f32.mxu1 %v10223_v0  ;;  %v40_v3 = vld [vmem:[%s10193_s0] sm:$0xff]  ;;  %v6001_v4 = vand.u32 4294901760, %v57_v1  ;;  %v6003_v5 = vand.u32 4294901760, %v56_v2  ;;  %v41_v7 = vld [vmem:[%s10193_s0 + $0x8] sm:$0xff]  ;;  %v42_v8 = vld [vmem:[%s10193_s0 + $0x10] sm:$0xff]  ;;  %vm5414_vm1 = vcmask 261120  }
   0xf   :  { %v72_v6 = vsel %vm70_vm0, %v40_v3, 0  ;;  %v43_v9 = vld [vmem:[%s10193_s0 + $0x18] sm:$0xff]  ;;  %v75_v11 = vsel %vm70_vm0, %v41_v7, 0  ;;  %v78_v12 = vsel %vm70_vm0, %v42_v8, 0  ;;  %v44_v14 = vld [vmem:[%s10193_s0 + $0x20] sm:$0xff]  ;;  %v45_v22 = vld [vmem:[%s10193_s0 + $0x28] sm:$0xff] }
  0x10   :  { %v6015_v10 = vand.u32 4294901760, %v72_v6  ;;  %v81_v13 = vsel %vm70_vm0, %v43_v9, 0  ;;  %150 = vmatprep.subr.mxu0 %v6001_v4  ;;  %v393_v15 = vsub.f32 %v57_v1, %v6001_v4  ;;  %v6026_v16 = vsub.f32 %v56_v2, %v6003_v5  ;;  %v46_v40 = vld [vmem:[%s10193_s0 + $0x30] sm:$0xff]  ;;  %v47_v47 = vld [vmem:[%s10193_s0 + $0x38] sm:$0xff]  ;;  %v48_v54 = vld [vmem:[%s10193_s0 + $0x40] sm:$0xff] }
  0x11   :  { %v6028_v17 = vand.u32 4294901760, %v75_v11  ;;  %v6030_v18 = vand.u32 4294901760, %v78_v12  ;;  %152 = vmatpush1.msra.mxu0 %v6003_v5  ;;  %v6036_v20 = vand.u32 4294901760, %v81_v13  ;;  %v84_v21 = vsel %vm70_vm0, %v44_v14, 0  ;;  %v49_v61 = vld [vmem:[%s10193_s0 + $0x48] sm:$0xff]  ;;  %v51_v14 = vld [vmem:[%s10193_s0 + $0x58] sm:$0xff] }
  0x12   :  { %v6034_v19 = vsub.f32 %v72_v6, %v6015_v10  ;;  %v394_v23 = vand.u32 4294901760, %v393_v15  ;;  %581 = vmatprep.subr.mxu0 %v393_v15  ;;  %v400_v24 = vand.u32 4294901760, %v6026_v16  ;;  %v87_v31 = vsel %vm70_vm0, %v45_v22, 0 }
  0x13   :  { %v6044_v25 = vsub.f32 %v75_v11, %v6028_v17  ;;  %v6047_v26 = vsub.f32 %v78_v12, %v6030_v18  ;;  %v6060_v34 = vsub.f32 %v81_v13, %v6036_v20  ;;  %v6062_v35 = vand.u32 4294901760, %v84_v21 }
  0x14   :  { %v188_v27 = vand.u32 4294901760, %v6034_v19  ;;  %v395_v28 = vsub.f32 %v393_v15, %v394_v23  ;;  %v401_v29 = vsub.f32 %v6026_v16, %v400_v24  ;;  %v6070_v41 = vand.u32 4294901760, %v87_v31 }
  0x15   :  { %v199_v30 = vand.u32 4294901760, %v6044_v25  ;;  %v210_v33 = vand.u32 4294901760, %v6047_v26  ;;  %v221_v44 = vand.u32 4294901760, %v6060_v34  ;;  %v6077_v45 = vsub.f32 %v84_v21, %v6062_v35 }
  0x16   :  { %v189_v32 = vsub.f32 %v6034_v19, %v188_v27  ;;  %v396_v36 = vand.u32 4294901760, %v395_v28  ;;  %v402_v37 = vand.u32 4294901760, %v401_v29  ;;  %v90_v46 = vsel %vm70_vm0, %v46_v40, 0 }
  0x17   :  { %v200_v38 = vsub.f32 %v6044_v25, %v199_v30  ;;  %v211_v43 = vsub.f32 %v6047_v26, %v210_v33  ;;  %v6090_v48 = vsub.f32 %v87_v31, %v6070_v41  ;;  %v222_v50 = vsub.f32 %v6060_v34, %v221_v44  ;;  %v52_v31 = vld [vmem:[%s10193_s0 + $0x60] sm:$0xff] }
  0x18   :  { %v190_v39 = vand.u32 4294901760, %v189_v32  ;;  %397 = vmatprep.subr.mxu1 %v396_v36  ;;  %v232_v51 = vand.u32 4294901760, %v6077_v45  ;;  %v6096_v52 = vand.u32 4294901760, %v90_v46  ;;  %v93_v53 = vsel %vm70_vm0, %v47_v47, 0 }
  0x19   :  { %403 = vmatpush1.msra.mxu1 %v402_v37  ;;  %v201_v42 = vand.u32 4294901760, %v200_v38  ;;  %v212_v49 = vand.u32 4294901760, %v211_v43  ;;  %v243_v55 = vand.u32 4294901760, %v6090_v48  ;;  %v223_v56 = vand.u32 4294901760, %v222_v50 }
  0x1a   :  { %191 = vmatmul.mubr.f32.vlgmr.msra.gmra.mxu0 %v190_v39  ;;  %438 = vmatmul.mubr.f32.vlgmr.msra.gmra.mxu1 %v6015_v10  ;;  %v233_v57 = vsub.f32 %v6077_v45, %v232_v51  ;;  %v6111_v58 = vsub.f32 %v90_v46, %v6096_v52  ;;  %v6113_v59 = vand.u32 4294901760, %v93_v53  ;;  %v96_v60 = vsel %vm70_vm0, %v48_v54, 0  ;;  %v54_v54 = vld [vmem:[%s10193_s0 + $0x70] sm:$0xff] }
  0x1b   :  { %584 = vmatpush1.msra.mxu0 %v6026_v16  ;;  %777 = vmatprep.subr.mxu1 %v6001_v4  ;;  %v244_v62 = vsub.f32 %v6090_v48, %v243_v55  ;;  %v6129_v3 = vand.u32 4294901760, %v96_v60  ;;  %v99_v6 = vsel %vm70_vm0, %v49_v61, 0  ;;  %v105_v21 = vsel %vm70_vm0, %v51_v14, 0 }
  0x1c   :  { %196 = vmatprep.mubr.f32.mxu0 %v10223_v0  ;;  %779 = vmatpush1.msra.mxu1 %v6003_v5  ;;  %v234_v63 = vand.u32 4294901760, %v233_v57  ;;  %v254_v1 = vand.u32 4294901760, %v6111_v58  ;;  %v6127_v2 = vsub.f32 %v93_v53, %v6113_v59  ;;  %v6146_v13 = vand.u32 4294901760, %v99_v6 }
  0x1d   :  { %443 = vmatprep.mubr.f32.mxu1 %v10223_v0  ;;  %990 = vmatprep.subr.mxu0 %v394_v23  ;;  %v245_v7 = vand.u32 4294901760, %v244_v62  ;;  %v6144_v12 = vsub.f32 %v96_v60, %v6129_v3  ;;  %v6170_v32 = vand.u32 4294901760, %v105_v21  ;;  %v108_v36 = vsel %vm70_vm0, %v52_v31, 0 }
  0x1e   :  { %202 = vmatmul.mubr.f32.gmra.mxu0 %v201_v42  ;;  %445 = vmatmul.mubr.f32.gmra.mxu1 %v6028_v17  ;;  %v255_v9 = vsub.f32 %v6111_v58, %v254_v1  ;;  %v265_v11 = vand.u32 4294901760, %v6127_v2  ;;  %v6162_v29 = vsub.f32 %v99_v6, %v6146_v13  ;;  %v53_v42 = vld [vmem:[%s10193_s0 + $0x68] sm:$0xff]  ;;  %v6186_v43 = vand.u32 4294901760, %v108_v36 }
  0x1f   :  { %207 = vmatprep.mubr.f32.mxu0 %v10223_v0  ;;  %450 = vmatprep.mubr.f32.mxu1 %v10223_v0  ;;  %v276_v28 = vand.u32 4294901760, %v6144_v12  ;;  %v6193_v50 = vsub.f32 %v105_v21, %v6170_v32  ;;  %v111_v53 = vsel %vm70_vm0, %v53_v42, 0 }
  0x20   :  { %1171 = vmatprep.subr.mxu1 %v6001_v4  ;;  %v50_v4 = vld [vmem:[%s10193_s0 + $0x50] sm:$0xff]  ;;  %v256_v22 = vand.u32 4294901760, %v255_v9  ;;  %v266_v23 = vsub.f32 %v6127_v2, %v265_v11  ;;  %v287_v39 = vand.u32 4294901760, %v6162_v29  ;;  %v6209_v62 = vand.u32 4294901760, %v111_v53 }
  0x21   :  { %v102_v8 = vsel %vm70_vm0, %v50_v4, 0  ;;  %v277_v38 = vsub.f32 %v6144_v12, %v276_v28  ;;  %v309_v61 = vand.u32 4294901760, %v6193_v50  ;;  %v55_v4 = vld [vmem:[%s10193_s0 + $0x78] sm:$0xff] }
  0x22   :  { %213 = vmatmul.mubr.f32.gmra.mxu0 %v212_v49  ;;  %452 = vmatmul.mubr.f32.gmra.mxu1 %v6030_v18  ;;  %v6154_v15 = vand.u32 4294901760, %v102_v8  ;;  %v267_v37 = vand.u32 4294901760, %v266_v23  ;;  %v288_v47 = vsub.f32 %v6162_v29, %v287_v39  ;;  %v6223_v9 = vsub.f32 %v111_v53, %v6209_v62 }
  0x23   :  { %218 = vmatprep.mubr.f32.mxu0 %v10223_v0  ;;  %457 = vmatprep.mubr.f32.mxu1 %v10223_v0  ;;  %v278_v46 = vand.u32 4294901760, %v277_v38  ;;  %v117_v21 = vsel %vm70_vm0, %v55_v4, 0 }
  0x24   :  { %v6178_v40 = vsub.f32 %v102_v8, %v6154_v15  ;;  %v289_v57 = vand.u32 4294901760, %v288_v47  ;;  %v310_v8 = vsub.f32 %v6193_v50, %v309_v61  ;;  %v331_v31 = vand.u32 4294901760, %v6223_v9 }
  0x26   :  { %224 = vmatmul.mubr.f32.gmra.mxu0 %v223_v56  ;;  %459 = vmatmul.mubr.f32.gmra.mxu1 %v6036_v20  ;;  %v298_v49 = vand.u32 4294901760, %v6178_v40  ;;  %v6203_v56 = vsub.f32 %v108_v36, %v6186_v43  ;;  %v311_v23 = vand.u32 4294901760, %v310_v8  ;;  %v332_v42 = vsub.f32 %v6223_v9, %v331_v31 }
  0x27   :  { %229 = vmatprep.mubr.f32.mxu0 %v10223_v0  ;;  %464 = vmatprep.mubr.f32.mxu1 %v10223_v0 }
  0x28   :  { %v299_v60 = vsub.f32 %v6178_v40, %v298_v49  ;;  %v320_v6 = vand.u32 4294901760, %v6203_v56  ;;  %v333_v53 = vand.u32 4294901760, %v332_v42 }
  0x2a   :  { %235 = vmatmul.mubr.f32.gmra.mxu0 %v234_v63  ;;  %466 = vmatmul.mubr.f32.gmra.mxu1 %v6062_v35  ;;  %v114_v63 = vsel %vm70_vm0, %v54_v54, 0 }
  0x2b   :  { %240 = vmatprep.mubr.f32.mxu0 %v10223_v0  ;;  %471 = vmatprep.mubr.f32.mxu1 %v10223_v0  ;;  %v6225_v14 = vand.u32 4294901760, %v114_v63 }
  0x2d   :  { %v6236_v36 = vsub.f32 %v114_v63, %v6225_v14 }
  0x2e   :  { %246 = vmatmul.mubr.f32.gmra.mxu0 %v245_v7  ;;  %473 = vmatmul.mubr.f32.gmra.mxu1 %v6070_v41  ;;  %v300_v7 = vand.u32 4294901760, %v299_v60 }
  0x2f   :  { %251 = vmatprep.mubr.f32.mxu0 %v10223_v0  ;;  %478 = vmatprep.mubr.f32.mxu1 %v10223_v0 }
  0x32   :  { %257 = vmatmul.mubr.f32.gmra.mxu0 %v256_v22  ;;  %480 = vmatmul.mubr.f32.gmra.mxu1 %v6096_v52  ;;  %v321_v22 = vsub.f32 %v6203_v56, %v320_v6 }
  0x33   :  { %262 = vmatprep.mubr.f32.mxu0 %v10223_v0  ;;  %485 = vmatprep.mubr.f32.mxu1 %v10223_v0 }
  0x34   :  { %v322_v38 = vand.u32 4294901760, %v321_v22 }
  0x36   :  { %268 = vmatmul.mubr.f32.gmra.mxu0 %v267_v37  ;;  %487 = vmatmul.mubr.f32.gmra.mxu1 %v6113_v59  ;;  %v6238_v37 = vand.u32 4294901760, %v117_v21 }
  0x37   :  { %273 = vmatprep.mubr.f32.mxu0 %v10223_v0  ;;  %492 = vmatprep.mubr.f32.mxu1 %v10223_v0 }
  0x38   :  { %v6248_v47 = vsub.f32 %v117_v21, %v6238_v37 }
  0x3a   :  { %279 = vmatmul.mubr.f32.gmra.mxu0 %v278_v46  ;;  %494 = vmatmul.mubr.f32.gmra.mxu1 %v6129_v3  ;;  %v342_v46 = vand.u32 4294901760, %v6236_v36 }
  0x3b   :  { %284 = vmatprep.mubr.f32.mxu0 %v10223_v0  ;;  %499 = vmatprep.mubr.f32.mxu1 %v10223_v0 }
  0x3c   :  { %v343_v54 = vsub.f32 %v6236_v36, %v342_v46 }
  0x3e   :  { %290 = vmatmul.mubr.f32.gmra.mxu0 %v289_v57  ;;  %501 = vmatmul.mubr.f32.gmra.mxu1 %v6146_v13  ;;  %v353_v57 = vand.u32 4294901760, %v6248_v47  ;;  %v344_v60 = vand.u32 4294901760, %v343_v54 }
  0x3f   :  { %295 = vmatprep.mubr.f32.mxu0 %v10223_v0  ;;  %506 = vmatprep.mubr.f32.mxu1 %v10223_v0 }
  0x40   :  { %v354_v63 = vsub.f32 %v6248_v47, %v353_v57 }
  0x42   :  { %301 = vmatmul.mubr.f32.gmra.mxu0 %v300_v7  ;;  %508 = vmatmul.mubr.f32.gmra.mxu1 %v6154_v15  ;;  %v355_v4 = vand.u32 4294901760, %v354_v63 }
  0x43   :  { %306 = vmatprep.mubr.f32.mxu0 %v10223_v0  ;;  %513 = vmatprep.mubr.f32.mxu1 %v10223_v0 }
  0x46   :  { %312 = vmatmul.mubr.f32.gmra.mxu0 %v311_v23  ;;  %515 = vmatmul.mubr.f32.gmra.mxu1 %v6170_v32 }
  0x47   :  { %317 = vmatprep.mubr.f32.mxu0 %v10223_v0  ;;  %520 = vmatprep.mubr.f32.mxu1 %v10223_v0 }
  0x4a   :  { %323 = vmatmul.mubr.f32.gmra.mxu0 %v322_v38  ;;  %522 = vmatmul.mubr.f32.gmra.mxu1 %v6186_v43 }
  0x4b   :  { %328 = vmatprep.mubr.f32.mxu0 %v10223_v0  ;;  %527 = vmatprep.mubr.f32.mxu1 %v10223_v0 }
  0x4e   :  { %334 = vmatmul.mubr.f32.gmra.mxu0 %v333_v53  ;;  %529 = vmatmul.mubr.f32.gmra.mxu1 %v6209_v62  ;;  %v1371_v53 = vld [vmem:[#allocation2 + $0xa0] sm:$0xff] }
  0x4f   :  { %339 = vmatprep.mubr.f32.mxu0 %v10223_v0  ;;  %534 = vmatprep.mubr.f32.mxu1 %v10223_v0 }
  0x52   :  { %345 = vmatmul.mubr.f32.gmra.mxu0 %v344_v60  ;;  %536 = vmatmul.mubr.f32.gmra.mxu1 %v6225_v14 }
  0x53   :  { %350 = vmatprep.mubr.f32.mxu0 %v10223_v0  ;;  %541 = vmatprep.mubr.f32.mxu1 %v10223_v0 }
  0x56   :  { %356 = vmatmul.mubr.f32.gmra.mxu0 %v355_v4  ;;  %543 = vmatmul.mubr.f32.gmra.mxu1 %v6238_v37  ;;  %v1370_v4 = vld [vmem:[#allocation2 + $0x98] sm:$0xff] }
  0x57   :  { %617 = vmatprep.mubr.f32.mxu0 %v10223_v0  ;;  %812 = vmatprep.mubr.f32.mxu1 %v10223_v0 }
  0x5a   :  { %620 = vmatmul.mubr.f32.vlgmr.msra.gmra.mxu0 %v6034_v19  ;;  %816 = vmatmul.mubr.f32.vlgmr.msra.gmra.mxu1 %v188_v27  ;;  %v1381_v19 = vld [vmem:[#allocation2 + $0xf0] sm:$0xff] }
  0x5b   :  { %994 = vmatpush1.msra.mxu0 %v400_v24  ;;  %1173 = vmatpush1.msra.mxu1 %v6003_v5  ;;  %v1382_v5 = vld [vmem:[#allocation2 + $0xf8] sm:$0xff]  ;;  %v6361_v24 = vand.u32 4294901760, %v1381_v19 }
  0x5c   :  { %625 = vmatprep.mubr.f32.mxu0 %v10223_v0  ;;  %821 = vmatprep.mubr.f32.mxu1 %v10223_v0  ;;  %v6359_v16 = vand.u32 4294901760, %v1382_v5 }
  0x5d   :  { %10795 = vst [vmem:[#allocation6_spill] sm:$0xff] %v6361_v24 }
  0x5e   :  { %628 = vmatmul.mubr.f32.gmra.mxu0 %v6044_v25  ;;  %825 = vmatmul.mubr.f32.gmra.mxu1 %v199_v30  ;;  %10794 = vst [vmem:[#allocation5_spill] sm:$0xff] %v6359_v16  ;;  %v1380_v25 = vld [vmem:[#allocation2 + $0xe8] sm:$0xff]  ;;  %v1379_v30 = vld [vmem:[#allocation2 + $0xe0] sm:$0xff] }
  0x5f   :  { %633 = vmatprep.mubr.f32.mxu0 %v10223_v0  ;;  %830 = vmatprep.mubr.f32.mxu1 %v10223_v0  ;;  %v6367_v27 = vand.u32 4294901760, %v1380_v25 }
  0x60   :  { %1428 = vmatprep.subr.mxu0 %v6359_v16 }
  0x61   :  { %10797 = vst [vmem:[#allocation8_spill] sm:$0xff] %v6367_v27 }
  0x62   :  { %636 = vmatmul.mubr.f32.gmra.mxu0 %v6047_v26  ;;  %834 = vmatmul.mubr.f32.gmra.mxu1 %v210_v33  ;;  %v6365_v26 = vsub.f32 %v1382_v5, %v6359_v16  ;;  %v6375_v33 = vand.u32 4294901760, %v1379_v30 }
  0x63   :  { %641 = vmatprep.mubr.f32.mxu0 %v10223_v0  ;;  %839 = vmatprep.mubr.f32.mxu1 %v10223_v0 }
  0x64   :  { %10796 = vst [vmem:[#allocation7_spill] sm:$0xff] %v6365_v26  ;;  %10799 = vst [vmem:[#allocation10_spill] sm:$0xff] %v6375_v33 }
  0x66   :  { %644 = vmatmul.mubr.f32.gmra.mxu0 %v6060_v34  ;;  %843 = vmatmul.mubr.f32.gmra.mxu1 %v221_v44  ;;  %v1378_v34 = vld [vmem:[#allocation2 + $0xd8] sm:$0xff]  ;;  %v10214_v44 = vand.u32 4294901760, %v6365_v26 }
  0x67   :  { %649 = vmatprep.mubr.f32.mxu0 %v10223_v0  ;;  %848 = vmatprep.mubr.f32.mxu1 %v10223_v0 }
  0x6a   :  { %652 = vmatmul.mubr.f32.gmra.mxu0 %v6077_v45  ;;  %852 = vmatmul.mubr.f32.gmra.mxu1 %v232_v51  ;;  %v6380_v45 = vsub.f32 %v1380_v25, %v6367_v27  ;;  %v1377_v51 = vld [vmem:[#allocation2 + $0xd0] sm:$0xff] }
  0x6b   :  { %657 = vmatprep.mubr.f32.mxu0 %v10223_v0  ;;  %857 = vmatprep.mubr.f32.mxu1 %v10223_v0 }
  0x6c   :  { %10800 = vst [vmem:[#allocation11_spill] sm:$0xff] %v6380_v45 }
  0x6e   :  { %660 = vmatmul.mubr.f32.gmra.mxu0 %v6090_v48  ;;  %861 = vmatmul.mubr.f32.gmra.mxu1 %v243_v55  ;;  %v6382_v48 = vand.u32 4294901760, %v1378_v34 }
  0x6f   :  { %665 = vmatprep.mubr.f32.mxu0 %v10223_v0  ;;  %866 = vmatprep.mubr.f32.mxu1 %v10223_v0 }
  0x70   :  { %10801 = vst [vmem:[#allocation12_spill] sm:$0xff] %v6382_v48 }
  0x72   :  { %668 = vmatmul.mubr.f32.gmra.mxu0 %v6111_v58  ;;  %870 = vmatmul.mubr.f32.gmra.mxu1 %v254_v1  ;;  %v6387_v58 = vsub.f32 %v1379_v30, %v6375_v33  ;;  %v6389_v1 = vand.u32 4294901760, %v1377_v51  ;;  %v1369_v30 = vld [vmem:[#allocation2 + $0x90] sm:$0xff] }
  0x73   :  { %673 = vmatprep.mubr.f32.mxu0 %v10223_v0  ;;  %875 = vmatprep.mubr.f32.mxu1 %v10223_v0 }
  0x74   :  { %10802 = vst [vmem:[#allocation13_spill] sm:$0xff] %v6387_v58  ;;  %10803 = vst [vmem:[#allocation14_spill] sm:$0xff] %v6389_v1 }
  0x76   :  { %676 = vmatmul.mubr.f32.gmra.mxu0 %v6127_v2  ;;  %879 = vmatmul.mubr.f32.gmra.mxu1 %v265_v11  ;;  %v1376_v2 = vld [vmem:[#allocation2 + $0xc8] sm:$0xff]  ;;  %v1815_v11 = vsub.f32 %v6365_v26, %v10214_v44 }
  0x77   :  { %681 = vmatprep.mubr.f32.mxu0 %v10223_v0  ;;  %884 = vmatprep.mubr.f32.mxu1 %v10223_v0 }
  0x7a   :  { %684 = vmatmul.mubr.f32.gmra.mxu0 %v6144_v12  ;;  %888 = vmatmul.mubr.f32.gmra.mxu1 %v276_v28  ;;  %v10210_v12 = vand.u32 4294901760, %v6380_v45  ;;  %v6398_v28 = vsub.f32 %v1378_v34, %v6382_v48 }
  0x7b   :  { %689 = vmatprep.mubr.f32.mxu0 %v10223_v0  ;;  %893 = vmatprep.mubr.f32.mxu1 %v10223_v0 }
  0x7c   :  { %10804 = vst [vmem:[#allocation15_spill] sm:$0xff] %v6398_v28  ;;  %v10207_v7 = vand.u32 4294901760, %v6398_v28 }
  0x7e   :  { %692 = vmatmul.mubr.f32.gmra.mxu0 %v6162_v29  ;;  %897 = vmatmul.mubr.f32.gmra.mxu1 %v287_v39  ;;  %v6400_v29 = vand.u32 4294901760, %v1376_v2  ;;  %v1375_v39 = vld [vmem:[#allocation2 + $0xc0] sm:$0xff]  ;;  %v1839_v42 = vsub.f32 %v6398_v28, %v10207_v7 }
  0x7f   :  { %697 = vmatprep.mubr.f32.mxu0 %v10223_v0  ;;  %902 = vmatprep.mubr.f32.mxu1 %v10223_v0  ;;  %v1411_v28 = vld [vmem:[#allocation2 + $0x1e0] sm:$0xff] }
  0x80   :  { %10805 = vst [vmem:[#allocation16_spill] sm:$0xff] %v6400_v29  ;;  %v6419_v8 = vsub.f32 %v1376_v2, %v6400_v29  ;;  %v1840_v5 = vand.u32 4294901760, %v1839_v42  ;;  %v6476_v42 = vand.u32 4294901760, %v1369_v30 }
  0x82   :  { %700 = vmatmul.mubr.f32.gmra.mxu0 %v6178_v40  ;;  %906 = vmatmul.mubr.f32.gmra.mxu1 %v298_v49  ;;  %v10208_v49 = vand.u32 4294901760, %v6387_v58  ;;  %10808 = vst [vmem:[#allocation19_spill] sm:$0xff] %v6419_v8  ;;  %10819 = vst [vmem:[#allocation30_spill] sm:$0xff] %v6476_v42 }
  0x83   :  { %705 = vmatprep.mubr.f32.mxu0 %v10223_v0  ;;  %911 = vmatprep.mubr.f32.mxu1 %v10223_v0 }
  0x84   :  { %v1833_v22 = vsub.f32 %v6387_v58, %v10208_v49  ;;  %v1363_v49 = vld [vmem:[#allocation2 + $0x60] sm:$0xff] }
  0x86   :  { %708 = vmatmul.mubr.f32.gmra.mxu0 %v6193_v50  ;;  %915 = vmatmul.mubr.f32.gmra.mxu1 %v309_v61  ;;  %v6409_v50 = vsub.f32 %v1377_v51, %v6389_v1  ;;  %v1374_v61 = vld [vmem:[#allocation2 + $0xb8] sm:$0xff]  ;;  %v1834_v54 = vand.u32 4294901760, %v1833_v22 }
  0x87   :  { %713 = vmatprep.mubr.f32.mxu0 %v10223_v0  ;;  %920 = vmatprep.mubr.f32.mxu1 %v10223_v0 }
  0x88   :  { %10806 = vst [vmem:[#allocation17_spill] sm:$0xff] %v6409_v50  ;;  %v10205_v23 = vand.u32 4294901760, %v6409_v50 }
  0x8a   :  { %716 = vmatmul.mubr.f32.gmra.mxu0 %v6203_v56  ;;  %924 = vmatmul.mubr.f32.gmra.mxu1 %v320_v6  ;;  %v6411_v56 = vand.u32 4294901760, %v1375_v39  ;;  %v1816_v6 = vand.u32 4294901760, %v1815_v11  ;;  %v6460_v11 = vand.u32 4294901760, %v1371_v53 }
  0x8b   :  { %721 = vmatprep.mubr.f32.mxu0 %v10223_v0  ;;  %929 = vmatprep.mubr.f32.mxu1 %v10223_v0 }
  0x8c   :  { %10807 = vst [vmem:[#allocation18_spill] sm:$0xff] %v6411_v56  ;;  %1817 = vmatprep.subr.mxu1 %v1816_v6  ;;  %10815 = vst [vmem:[#allocation26_spill] sm:$0xff] %v6460_v11 }
  0x8e   :  { %724 = vmatmul.mubr.f32.gmra.mxu0 %v6223_v9  ;;  %933 = vmatmul.mubr.f32.gmra.mxu1 %v331_v31  ;;  %v1373_v9 = vld [vmem:[#allocation2 + $0xb0] sm:$0xff]  ;;  %v6427_v31 = vsub.f32 %v1375_v39, %v6411_v56  ;;  %v1368_v39 = vld [vmem:[#allocation2 + $0x88] sm:$0xff] }
  0x8f   :  { %729 = vmatprep.mubr.f32.mxu0 %v10223_v0  ;;  %938 = vmatprep.mubr.f32.mxu1 %v10223_v0  ;;  %v6443_v63 = vand.u32 4294901760, %v1373_v9 }
  0x90   :  { %10809 = vst [vmem:[#allocation20_spill] sm:$0xff] %v6427_v31  ;;  %v10203_v60 = vand.u32 4294901760, %v6427_v31 }
  0x91   :  { %10811 = vst [vmem:[#allocation22_spill] sm:$0xff] %v6443_v63  ;;  %v6458_v2 = vsub.f32 %v1373_v9, %v6443_v63 }
  0x92   :  { %732 = vmatmul.mubr.f32.gmra.mxu0 %v6236_v36  ;;  %942 = vmatmul.mubr.f32.gmra.mxu1 %v342_v46  ;;  %v1372_v36 = vld [vmem:[#allocation2 + $0xa8] sm:$0xff]  ;;  %v10204_v46 = vand.u32 4294901760, %v6419_v8  ;;  %v1857_v51 = vsub.f32 %v6427_v31, %v10203_v60 }
  0x93   :  { %737 = vmatprep.mubr.f32.mxu0 %v10223_v0  ;;  %947 = vmatprep.mubr.f32.mxu1 %v10223_v0  ;;  %v6452_v25 = vand.u32 4294901760, %v1372_v36  ;;  %10814 = vst [vmem:[#allocation25_spill] sm:$0xff] %v6458_v2  ;;  %v10202_v22 = vand.u32 4294901760, %v6458_v2 }
  0x94   :  { %v1858_v9 = vand.u32 4294901760, %v1857_v51 }
  0x95   :  { %10813 = vst [vmem:[#allocation24_spill] sm:$0xff] %v6452_v25  ;;  %v6466_v6 = vsub.f32 %v1372_v36, %v6452_v25 }
  0x96   :  { %740 = vmatmul.mubr.f32.gmra.mxu0 %v6248_v47  ;;  %951 = vmatmul.mubr.f32.gmra.mxu1 %v353_v57  ;;  %v6435_v47 = vand.u32 4294901760, %v1374_v61  ;;  %v1845_v57 = vsub.f32 %v6409_v50, %v10205_v23 }
  0x97   :  { %1027 = vmatprep.mubr.f32.mxu0 %v10223_v0  ;;  %1206 = vmatprep.mubr.f32.mxu1 %v10223_v0  ;;  %10816 = vst [vmem:[#allocation27_spill] sm:$0xff] %v6466_v6 }
  0x98   :  { %10810 = vst [vmem:[#allocation21_spill] sm:$0xff] %v6435_v47  ;;  %v1846_v34 = vand.u32 4294901760, %v1845_v57  ;;  %v6486_v57 = vand.u32 4294901760, %v1368_v39 }
  0x9a   :  { %1029 = vmatmul.mubr.f32.vlgmr.msra.gmra.mxu0 %v6015_v10  ;;  %1208 = vmatmul.mubr.f32.vlgmr.msra.gmra.mxu1 %v6015_v10  ;;  %v6373_v10 = vsub.f32 %v1381_v19, %v6361_v24  ;;  %v6450_v19 = vsub.f32 %v1374_v61, %v6435_v47  ;;  %10821 = vst [vmem:[#allocation32_spill] sm:$0xff] %v6486_v57 }
  0x9b   :  { %1034 = vmatprep.mubr.f32.mxu0 %v10223_v0  ;;  %1213 = vmatprep.mubr.f32.mxu1 %v10223_v0  ;;  %v6504_v60 = vsub.f32 %v1368_v39, %v6486_v57 }
  0x9c   :  { %10798 = vst [vmem:[#allocation9_spill] sm:$0xff] %v6373_v10  ;;  %1430 = vmatpush1.msra.mxu0 %v6361_v24  ;;  %v10212_v55 = vand.u32 4294901760, %v6373_v10  ;;  %10812 = vst [vmem:[#allocation23_spill] sm:$0xff] %v6450_v19  ;;  %v10201_v61 = vand.u32 4294901760, %v6450_v19 }
  0x9d   :  { %1432 = vmatprep.subr.mxu0 %v6367_v27  ;;  %10824 = vst [vmem:[#allocation35_spill] sm:$0xff] %v6504_v60 }
  0x9e   :  { %1036 = vmatmul.mubr.f32.gmra.mxu0 %v6028_v17  ;;  %1215 = vmatmul.mubr.f32.gmra.mxu1 %v6028_v17  ;;  %v1821_v40 = vsub.f32 %v6373_v10, %v10212_v55  ;;  %v1863_v36 = vsub.f32 %v6450_v19, %v10201_v61  ;;  %v1366_v61 = vld [vmem:[#allocation2 + $0x78] sm:$0xff]  ;;  %v6546_v17 = vand.u32 4294901760, %v1363_v49 }
  0x9f   :  { %1041 = vmatprep.mubr.f32.mxu0 %v10223_v0  ;;  %1220 = vmatprep.mubr.f32.mxu1 %v10223_v0  ;;  %v6520_v7 = vand.u32 4294901760, %v1366_v61 }
  0xa0   :  { %1434 = vmatpush1.msra.mxu0 %v6375_v33  ;;  %v1822_v21 = vand.u32 4294901760, %v1821_v40  ;;  %10831 = vst [vmem:[#allocation42_spill] sm:$0xff] %v6546_v17 }
  0xa1   :  { %1436 = vmatprep.subr.mxu0 %v6382_v48  ;;  %10826 = vst [vmem:[#allocation37_spill] sm:$0xff] %v6520_v7 }
  0xa2   :  { %1043 = vmatmul.mubr.f32.gmra.mxu0 %v6030_v18  ;;  %1222 = vmatmul.mubr.f32.gmra.mxu1 %v6030_v18  ;;  %v1827_v18 = vsub.f32 %v6380_v45, %v10210_v12  ;;  %v1362_v12 = vld [vmem:[#allocation2 + $0x58] sm:$0xff] }
  0xa3   :  { %1048 = vmatprep.mubr.f32.mxu0 %v10223_v0  ;;  %1227 = vmatprep.mubr.f32.mxu1 %v10223_v0 }
  0xa4   :  { %v1828_v38 = vand.u32 4294901760, %v1827_v18  ;;  %1823 = vmatpush1.msra.mxu1 %v1822_v21  ;;  %1438 = vmatpush1.msra.mxu0 %v6389_v1  ;;  %v6468_v18 = vand.u32 4294901760, %v1370_v4  ;;  %v1367_v21 = vld [vmem:[#allocation2 + $0x80] sm:$0xff] }
  0xa5   :  { %1440 = vmatprep.subr.mxu0 %v6400_v29  ;;  %v6496_v51 = vand.u32 4294901760, %v1367_v21 }
  0xa6   :  { %1050 = vmatmul.mubr.f32.gmra.mxu0 %v6036_v20  ;;  %1229 = vmatmul.mubr.f32.gmra.mxu1 %v6036_v20  ;;  %v1851_v20 = vsub.f32 %v6419_v8, %v10204_v46  ;;  %10817 = vst [vmem:[#allocation28_spill] sm:$0xff] %v6468_v18  ;;  %v1365_v46 = vld [vmem:[#allocation2 + $0x70] sm:$0xff] }
  0xa7   :  { %1055 = vmatprep.mubr.f32.mxu0 %v10223_v0  ;;  %1234 = vmatprep.mubr.f32.mxu1 %v10223_v0  ;;  %10823 = vst [vmem:[#allocation34_spill] sm:$0xff] %v6496_v51  ;;  %v6513_v23 = vsub.f32 %v1367_v21, %v6496_v51 }
  0xa8   :  { %1829 = vmatprep.subr.mxu1 %v1828_v38  ;;  %v1852_v40 = vand.u32 4294901760, %v1851_v20  ;;  %v6474_v38 = vsub.f32 %v1371_v53, %v6460_v11  ;;  %v1869_v53 = vsub.f32 %v6458_v2, %v10202_v22  ;;  %1442 = vmatpush1.msra.mxu0 %v6411_v56  ;;  %v1355_v2 = vld [vmem:[#allocation2 + $0x20] sm:$0xff] }
  0xa9   :  { %1835 = vmatpush1.msra.mxu1 %v1834_v54  ;;  %v10206_v54 = vand.u32 4294901760, %v6466_v6  ;;  %10825 = vst [vmem:[#allocation36_spill] sm:$0xff] %v6513_v23  ;;  %1444 = vmatprep.subr.mxu0 %v6435_v47  ;;  %v6627_v31 = vand.u32 4294901760, %v1355_v2  ;;  %v1403_v47 = vld [vmem:[#allocation2 + $0x1a0] sm:$0xff] }
  0xaa   :  { %1057 = vmatmul.mubr.f32.gmra.mxu0 %v6062_v35  ;;  %1236 = vmatmul.mubr.f32.gmra.mxu1 %v6062_v35  ;;  %10818 = vst [vmem:[#allocation29_spill] sm:$0xff] %v6474_v38  ;;  %v6484_v35 = vsub.f32 %v1370_v4, %v6468_v18  ;;  %v10209_v20 = vand.u32 4294901760, %v6474_v38  ;;  %v1864_v4 = vand.u32 4294901760, %v1863_v36 }
  0xab   :  { %1062 = vmatprep.mubr.f32.mxu0 %v10223_v0  ;;  %1241 = vmatprep.mubr.f32.mxu1 %v10223_v0  ;;  %10852 = vst [vmem:[#allocation59_spill] sm:$0xff] %v6627_v31 }
  0xac   :  { %1841 = vmatprep.subr.mxu1 %v1840_v5  ;;  %10820 = vst [vmem:[#allocation31_spill] sm:$0xff] %v6484_v35  ;;  %v6494_v5 = vsub.f32 %v1369_v30, %v6476_v42  ;;  %v10211_v22 = vand.u32 4294901760, %v6484_v35  ;;  %v1870_v30 = vand.u32 4294901760, %v1869_v53  ;;  %v10215_v53 = vand.u32 4294901760, %v6504_v60  ;;  %1446 = vmatpush1.msra.mxu0 %v6443_v63 }
  0xad   :  { %1847 = vmatpush1.msra.mxu1 %v1846_v34  ;;  %v1875_v34 = vsub.f32 %v6466_v6, %v10206_v54  ;;  %v1364_v54 = vld [vmem:[#allocation2 + $0x68] sm:$0xff]  ;;  %1448 = vmatprep.subr.mxu0 %v6452_v25  ;;  %v1410_v25 = vld [vmem:[#allocation2 + $0x1d8] sm:$0xff] }
  0xae   :  { %10822 = vst [vmem:[#allocation33_spill] sm:$0xff] %v6494_v5  ;;  %1064 = vmatmul.mubr.f32.gmra.mxu0 %v6070_v41  ;;  %1853 = vmatprep.subr.mxu1 %v1852_v40  ;;  %v1881_v40 = vsub.f32 %v6474_v38, %v10209_v20  ;;  %v10213_v36 = vand.u32 4294901760, %v6494_v5  ;;  %v6536_v55 = vand.u32 4294901760, %v1364_v54 }
  0xaf   :  { %1243 = vmatmul.mubr.f32.gmra.mxu1 %v6070_v41  ;;  %1069 = vmatprep.mubr.f32.mxu0 %v10223_v0  ;;  %v1876_v39 = vand.u32 4294901760, %v1875_v34  ;;  %v1887_v41 = vsub.f32 %v6484_v35, %v10211_v22  ;;  %v6527_v34 = vand.u32 4294901760, %v1365_v46 }
  0xb0   :  { %1248 = vmatprep.mubr.f32.mxu1 %v10223_v0  ;;  %1859 = vmatpush1.msra.mxu1 %v1858_v9  ;;  %v1882_v20 = vand.u32 4294901760, %v1881_v40  ;;  %v1893_v21 = vsub.f32 %v6494_v5, %v10213_v36  ;;  %v10220_v9 = vand.u32 4294901760, %v6513_v23  ;;  %v6534_v40 = vsub.f32 %v1366_v61, %v6520_v7  ;;  %10829 = vst [vmem:[#allocation40_spill] sm:$0xff] %v6536_v55  ;;  %v1361_v36 = vld [vmem:[#allocation2 + $0x50] sm:$0xff]  ;;  %v1359_v5 = vld [vmem:[#allocation2 + $0x40] sm:$0xff] }
  0xb1   :  { %1865 = vmatprep.subr.mxu1 %v1864_v4  ;;  %10827 = vst [vmem:[#allocation38_spill] sm:$0xff] %v6527_v34  ;;  %v1888_v22 = vand.u32 4294901760, %v1887_v41  ;;  %v1899_v4 = vsub.f32 %v6504_v60, %v10215_v53  ;;  %v6544_v41 = vsub.f32 %v1365_v46, %v6527_v34  ;;  %v1360_v53 = vld [vmem:[#allocation2 + $0x48] sm:$0xff]  ;;  %1450 = vmatpush1.msra.mxu0 %v6460_v11 }
  0xb2   :  { %1071 = vmatmul.mubr.f32.gmra.mxu0 %v6096_v52  ;;  %1871 = vmatpush1.msra.mxu1 %v1870_v30  ;;  %10828 = vst [vmem:[#allocation39_spill] sm:$0xff] %v6534_v40  ;;  %v1894_v44 = vand.u32 4294901760, %v1893_v21  ;;  %v1905_v30 = vsub.f32 %v6513_v23, %v10220_v9  ;;  %v10227_v60 = vand.u32 4294901760, %v6534_v40  ;;  %v6553_v21 = vand.u32 4294901760, %v1362_v12 }
  0xb3   :  { %1250 = vmatmul.mubr.f32.gmra.mxu1 %v6096_v52  ;;  %1076 = vmatprep.mubr.f32.mxu0 %v10223_v0  ;;  %10830 = vst [vmem:[#allocation41_spill] sm:$0xff] %v6544_v41  ;;  %v1900_v61 = vand.u32 4294901760, %v1899_v4  ;;  %v6551_v52 = vsub.f32 %v1364_v54, %v6536_v55  ;;  %v10232_v9 = vand.u32 4294901760, %v6544_v41  ;;  %v6558_v23 = vsub.f32 %v1363_v49, %v6546_v17 }
  0xb4   :  { %1255 = vmatprep.mubr.f32.mxu1 %v10223_v0  ;;  %1877 = vmatprep.subr.mxu1 %v1876_v39  ;;  %10833 = vst [vmem:[#allocation44_spill] sm:$0xff] %v6553_v21  ;;  %v1906_v46 = vand.u32 4294901760, %v1905_v30  ;;  %v6560_v0 = vand.u32 4294901760, %v1361_v36  ;;  %v1911_v54 = vsub.f32 %v6534_v40, %v10227_v60  ;;  %v6570_v4 = vand.u32 4294901760, %v1360_v53  ;;  %v1358_v39 = vld [vmem:[#allocation2 + $0x38] sm:$0xff] }
  0xb5   :  { %10832 = vst [vmem:[#allocation43_spill] sm:$0xff] %v6551_v52  ;;  %1883 = vmatpush1.msra.mxu1 %v1882_v20  ;;  %10834 = vst [vmem:[#allocation45_spill] sm:$0xff] %v6558_v23  ;;  %v6568_v20 = vsub.f32 %v1362_v12, %v6553_v21  ;;  %v10838_v49 = vmov 0.0   ;;  %v1917_v30 = vsub.f32 %v6544_v41, %v10232_v9  ;;  %v6581_v60 = vand.u32 4294901760, %v1359_v5  ;;  %1452 = vmatprep.subr.mxu0 %v6468_v18  ;;  %v1413_v18 = vld [vmem:[#allocation2 + $0x1f0] sm:$0xff] }
  0xb6   :  { %10835 = vst [vmem:[#allocation46_spill] sm:$0xff] %v6560_v0  ;;  %1078 = vmatmul.mubr.f32.gmra.mxu0 %v6113_v59  ;;  %1889 = vmatprep.subr.mxu1 %v1888_v22  ;;  %10837 = vst [vmem:[#allocation48_spill] sm:$0xff] %v6570_v4  ;;  %v6579_v35 = vsub.f32 %v1361_v36, %v6560_v0  ;;  %v1912_v12 = vand.u32 4294901760, %v1911_v54  ;;  %v6589_v9 = vsub.f32 %v1360_v53, %v6570_v4  ;;  %v1357_v22 = vld [vmem:[#allocation2 + $0x30] sm:$0xff] }
  0xb7   :  { %10836 = vst [vmem:[#allocation47_spill] sm:$0xff] %v6568_v20  ;;  %1257 = vmatmul.mubr.f32.gmra.mxu1 %v6113_v59  ;;  %1083 = vmatprep.mubr.f32.mxu0 %v10838_v49  ;;  %10840 = vst [vmem:[#allocation50_spill] sm:$0xff] %v6581_v60  ;;  %v10841_v59 = vand.u32 4294901760, %v6551_v52  ;;  %v10241_v38 = vand.u32 4294901760, %v6568_v20  ;;  %v1918_v36 = vand.u32 4294901760, %v1917_v30  ;;  %v10843_v41 = vand.u32 4294901760, %v6558_v23 }
  0xb8   :  { %10839 = vst [vmem:[#allocation49_spill] sm:$0xff] %v6579_v35  ;;  %1262 = vmatprep.mubr.f32.mxu1 %v10838_v49  ;;  %1895 = vmatpush1.msra.mxu1 %v1894_v44  ;;  %10842 = vst [vmem:[#allocation51_spill] sm:$0xff] %v6589_v9  ;;  %v10246_v44 = vand.u32 4294901760, %v6579_v35  ;;  %v6597_v54 = vsub.f32 %v1359_v5, %v6581_v60 }
  0xb9   :  { %v1923_v40 = vsub.f32 %v6551_v52, %v10841_v59  ;;  %1901 = vmatprep.subr.mxu1 %v1900_v61  ;;  %v1929_v6 = vsub.f32 %v6558_v23, %v10843_v41  ;;  %v1356_v59 = vld [vmem:[#allocation2 + $0x28] sm:$0xff]  ;;  %v1935_v61 = vsub.f32 %v6568_v20, %v10241_v38  ;;  %v6604_v52 = vand.u32 4294901760, %v1358_v39  ;;  %v1353_v23 = vld [vmem:[#allocation2 + $0x10] sm:$0xff]  ;;  %1454 = vmatpush1.msra.mxu0 %v6476_v42  ;;  %v6735_v42 = vld [vmem:[%s10195_s2] sm:$0x3] }
  0xba   :  { %10844 = vst [vmem:[#allocation52_spill] sm:$0xff] %v6597_v54  ;;  %1085 = vmatmul.mubr.f32.gmra.mxu0 %v6129_v3  ;;  %1907 = vmatpush1.msra.mxu1 %v1906_v46  ;;  %v1941_v5 = vsub.f32 %v6579_v35, %v10246_v44  ;;  %v6611_v41 = vand.u32 4294901760, %v1357_v22  ;;  %v10847_v46 = vlaneseq  ;;  %v6645_v50 = vand.u32 4294901760, %v1353_v23 }
  0xbb   :  { %v1924_v53 = vand.u32 4294901760, %v1923_v40  ;;  %10845 = vst [vmem:[#allocation53_spill] sm:$0xff] %v6604_v52  ;;  %1264 = vmatmul.mubr.f32.gmra.mxu1 %v6129_v3  ;;  %1090 = vmatprep.mubr.f32.mxu0 %v10838_v49  ;;  %v1354_v40 = vld [vmem:[#allocation2 + $0x18] sm:$0xff]  ;;  %v6619_v20 = vsub.f32 %v1358_v39, %v6604_v52  ;;  %v6621_v3 = vand.u32 4294901760, %v1356_v59  ;;  %v1930_v44 = vand.u32 4294901760, %v1929_v6 }
  0xbc   :  { %10846 = vst [vmem:[#allocation54_spill] sm:$0xff] %v6611_v41  ;;  %1269 = vmatprep.mubr.f32.mxu1 %v10838_v49  ;;  %v6615_v38 = vshrl.u32 %v10847_v46, 7  ;;  %1913 = vmatprep.subr.mxu1 %v1912_v12  ;;  %v1936_v35 = vand.u32 4294901760, %v1935_v61  ;;  %v6625_v19 = vsub.f32 %v1357_v22, %v6611_v41  ;;  %v1352_v46 = vld [vmem:[#allocation2 + $0x8] sm:$0xff]  ;;  %v10853_v39 = vand.u32 4294901760, %v6589_v9  ;;  %10857 = vst [vmem:[#allocation63_spill] sm:$0xff] %v6645_v50 }
  0xbd   :  { %10849 = vst [vmem:[#allocation56_spill] sm:$0xff] %v6619_v20  ;;  %10850 = vst [vmem:[#allocation57_spill] sm:$0xff] %v6621_v3  ;;  %1919 = vmatpush1.msra.mxu1 %v1918_v36  ;;  %v6635_v8 = vsub.f32 %v1356_v59, %v6621_v3  ;;  %v6637_v6 = vand.u32 4294901760, %v1354_v40  ;;  %v1351_v36 = vld [vmem:[#allocation2] sm:$0xff]  ;;  %v1942_v22 = vand.u32 4294901760, %v1941_v5  ;;  %v10858_v59 = vand.u32 4294901760, %v6597_v54  ;;  %1456 = vmatprep.subr.mxu0 %v6486_v57 }
  0xbe   :  { %10848 = vst [vmem:[#allocation55_spill] sm:$0xff] %v6615_v38  ;;  %10851 = vst [vmem:[#allocation58_spill] sm:$0xff] %v6625_v19  ;;  %1092 = vmatmul.mubr.f32.gmra.mxu0 %v6146_v13  ;;  %1925 = vmatprep.subr.mxu1 %v1924_v53  ;;  %v1947_v12 = vsub.f32 %v6589_v9, %v10853_v39  ;;  %v6643_v53 = vsub.f32 %v1355_v2, %v6627_v31  ;;  %v6656_v5 = vand.u32 4294901760, %v1352_v46 }
  0xbf   :  { %10854 = vst [vmem:[#allocation60_spill] sm:$0xff] %v6635_v8  ;;  %10855 = vst [vmem:[#allocation61_spill] sm:$0xff] %v6637_v6  ;;  %1271 = vmatmul.mubr.f32.gmra.mxu1 %v6146_v13  ;;  %1097 = vmatprep.mubr.f32.mxu0 %v10838_v49  ;;  %v1953_v39 = vsub.f32 %v6597_v54, %v10858_v59  ;;  %v6654_v30 = vsub.f32 %v1354_v40, %v6637_v6  ;;  %v10861_v2 = vand.u32 4294901760, %v6619_v20  ;;  %v1414_v40 = vld [vmem:[#allocation2 + $0x1f8] sm:$0xff] }
  0xc0   :  { %10856 = vst [vmem:[#allocation62_spill] sm:$0xff] %v6643_v53  ;;  %1276 = vmatprep.mubr.f32.mxu1 %v10838_v49  ;;  %10860 = vst [vmem:[#allocation65_spill] sm:$0xff] %v6656_v5  ;;  %1931 = vmatpush1.msra.mxu1 %v1930_v44  ;;  %v10862_v9 = vand.u32 4294901760, %v6625_v19  ;;  %v6668_v59 = vsub.f32 %v1353_v23, %v6645_v50  ;;  %v6670_v13 = vand.u32 4294901760, %v1351_v36  ;;  %v1948_v54 = vand.u32 4294901760, %v1947_v12 }
  0xc1   :  { %10859 = vst [vmem:[#allocation64_spill] sm:$0xff] %v6654_v30  ;;  %v1959_v61 = vsub.f32 %v6619_v20, %v10861_v2  ;;  %1937 = vmatprep.subr.mxu1 %v1936_v35  ;;  %v6674_v44 = vsub.f32 %v1352_v46, %v6656_v5  ;;  %v1412_v35 = vld [vmem:[#allocation2 + $0x1e8] sm:$0xff]  ;;  %v6691_v20 = vand.u32 4294901760, %v1414_v40  ;;  %v6717_v46 = vand.u32 4294901760, %v1411_v28  ;;  %1458 = vmatpush1.msra.mxu0 %v6496_v51 }
  0xc2   :  { %v6665_v11 = vsub.f32 %v6625_v19, %v10862_v9  ;;  %10863 = vst [vmem:[#allocation66_spill] sm:$0xff] %v6668_v59  ;;  %10864 = vst [vmem:[#allocation67_spill] sm:$0xff] %v6670_v13  ;;  %1099 = vmatmul.mubr.f32.gmra.mxu0 %v6154_v15  ;;  %v10866_v9 = vand.u32 4294901760, %v6635_v8  ;;  %v6685_v19 = vsub.f32 %v1351_v36, %v6670_v13  ;;  %1943 = vmatpush1.msra.mxu1 %v1942_v22  ;;  %v1409_v22 = vld [vmem:[#allocation2 + $0x1d0] sm:$0xff] }
  0xc3   :  { %10865 = vst [vmem:[#allocation68_spill] sm:$0xff] %v6674_v44  ;;  %1278 = vmatmul.mubr.f32.gmra.mxu1 %v6154_v15  ;;  %1104 = vmatprep.mubr.f32.mxu0 %v10838_v49  ;;  %v1954_v15 = vand.u32 4294901760, %v1953_v39  ;;  %10868 = vst [vmem:[#allocation70_spill] sm:$0xff] %v6691_v20  ;;  %v6702_v12 = vsub.f32 %v1414_v40, %v6691_v20  ;;  %v6704_v57 = vand.u32 4294901760, %v1412_v35  ;;  %v1408_v40 = vld [vmem:[#allocation2 + $0x1c8] sm:$0xff]  ;;  %v10878_v51 = vand.u32 4294901760, %v6668_v59 }
  0xc4   :  { %v6681_v23 = vsub.f32 %v6635_v8, %v10866_v9  ;;  %10867 = vst [vmem:[#allocation69_spill] sm:$0xff] %v6685_v19  ;;  %1283 = vmatprep.mubr.f32.mxu1 %v10838_v49  ;;  %v1960_v9 = vand.u32 4294901760, %v1959_v61  ;;  %v1966_v36 = vand.u32 4294901760, %v6665_v11  ;;  %v6696_v8 = vand.u32 4294901760, %v1413_v18  ;;  %1949 = vmatprep.subr.mxu1 %v1948_v54  ;;  %10874 = vst [vmem:[#allocation75_spill] sm:$0xff] %v6717_v46 }
  0xc5   :  { %10870 = vst [vmem:[#allocation72_spill] sm:$0xff] %v6702_v12  ;;  %10871 = vst [vmem:[#allocation73_spill] sm:$0xff] %v6704_v57  ;;  %v10872_v61 = vand.u32 4294901760, %v6643_v53  ;;  %1460 = vmatprep.subr.mxu0 %v6520_v7  ;;  %1955 = vmatpush1.msra.mxu1 %v1954_v15  ;;  %v10881_v58 = vand.u32 4294901760, %v6674_v44  ;;  %v10882_v15 = vand.u32 4294901760, %v6685_v19 }
  0xc6   :  { %10869 = vst [vmem:[#allocation71_spill] sm:$0xff] %v6696_v8  ;;  %1106 = vmatmul.mubr.f32.gmra.mxu0 %v6170_v32  ;;  %v1972_v11 = vand.u32 4294901760, %v6681_v23  ;;  %v6715_v39 = vsub.f32 %v1413_v18, %v6696_v8  ;;  %v1407_v18 = vld [vmem:[#allocation2 + $0x1c0] sm:$0xff]  ;;  %1961 = vmatprep.subr.mxu1 %v1960_v9  ;;  %v10885_v9 = vand.u32 4294901760, %v6702_v12 }
  0xc7   :  { %1285 = vmatmul.mubr.f32.gmra.mxu1 %v6170_v32  ;;  %1111 = vmatprep.mubr.f32.mxu0 %v10838_v49  ;;  %v6712_v54 = vsub.f32 %v6643_v53, %v10872_v61  ;;  %v10875_v32 = vand.u32 4294901760, %v6654_v30  ;;  %v6728_v61 = vsub.f32 %v1412_v35, %v6704_v57  ;;  %v6730_v53 = vand.u32 4294901760, %v1410_v25 }
  0xc8   :  { %10873 = vst [vmem:[#allocation74_spill] sm:$0xff] %v6715_v39  ;;  %1290 = vmatprep.mubr.f32.mxu1 %v10838_v49  ;;  %v6745_v35 = vsub.f32 %v1411_v28, %v6717_v46  ;;  %v6753_v7 = vsub.f32 %v6674_v44, %v10881_v58  ;;  %v6763_v28 = vand.u32 4294901760, %v1408_v40  ;;  %1462 = vmatpush1.msra.mxu0 %v6527_v34  ;;  %v10890_v45 = vand.u32 4294901760, %v6715_v39 }
  0xc9   :  { %v6724_v2 = vsub.f32 %v6654_v30, %v10875_v32  ;;  %10876 = vst [vmem:[#allocation76_spill] sm:$0xff] %v6728_v61  ;;  %10877 = vst [vmem:[#allocation77_spill] sm:$0xff] %v6730_v53  ;;  %v6741_v32 = vsub.f32 %v6668_v59, %v10878_v51  ;;  %v6747_v30 = vand.u32 4294901760, %v1409_v22  ;;  %v6758_v51 = vsub.f32 %v6685_v19, %v10882_v15 }
  0xca   :  { %10879 = vst [vmem:[#allocation78_spill] sm:$0xff] %v6745_v35  ;;  %1113 = vmatmul.mubr.f32.gmra.mxu0 %v6186_v43  ;;  %v6761_v23 = vsub.f32 %v1410_v25, %v6730_v53  ;;  %10884 = vst [vmem:[#allocation81_spill] sm:$0xff] %v6763_v28  ;;  %v6770_v59 = vsub.f32 %v6702_v12, %v10885_v9  ;;  %v6776_v15 = vand.u32 4294901760, %v1407_v18  ;;  %v1406_v25 = vld [vmem:[#allocation2 + $0x1b8] sm:$0xff]  ;;  %v10888_v19 = vsub.s32 0, %v6615_v38 }
  0xcb   :  { %10880 = vst [vmem:[#allocation79_spill] sm:$0xff] %v6747_v30  ;;  %1292 = vmatmul.mubr.f32.gmra.mxu1 %v6186_v43  ;;  %1118 = vmatprep.mubr.f32.mxu0 %v10838_v49  ;;  %v6774_v44 = vsub.f32 %v1409_v22, %v6747_v30  ;;  %v1978_v9 = vand.u32 4294901760, %v6712_v54  ;;  %v1984_v12 = vand.u32 4294901760, %v6724_v2  ;;  %v6788_v58 = vsub.f32 %v1408_v40, %v6763_v28  ;;  %v1405_v22 = vld [vmem:[#allocation2 + $0x1b0] sm:$0xff]  ;;  %v1404_v2 = vld [vmem:[#allocation2 + $0x1a8] sm:$0xff] }
  0xcc   :  { %10883 = vst [vmem:[#allocation80_spill] sm:$0xff] %v6761_v23  ;;  %10887 = vst [vmem:[#allocation83_spill] sm:$0xff] %v6776_v15  ;;  %1297 = vmatprep.mubr.f32.mxu1 %v10838_v49  ;;  %v6782_v43 = vrot.slane %v6735_v42, %v10888_v19  ;;  %1464 = vmatprep.subr.mxu0 %v6536_v55  ;;  %v1990_v63 = vand.u32 4294901760, %v6741_v32  ;;  %v6795_v19 = vsub.f32 %v6715_v39, %v10890_v45 }
  0xcd   :  { %10886 = vst [vmem:[#allocation82_spill] sm:$0xff] %v6774_v44  ;;  %10889 = vst [vmem:[#allocation84_spill] sm:$0xff] %v6788_v58  ;;  %1967 = vmatpush1.msra.mxu1 %v1966_v36  ;;  %v6799_v54 = vsub.f32 %v1407_v18, %v6776_v15  ;;  %v1996_v40 = vand.u32 4294901760, %v6753_v7  ;;  %v6805_v55 = vand.u32 4294901760, %v1406_v25  ;;  %v10893_v18 = vand.u32 4294901760, %v6728_v61  ;;  %v1402_v36 = vld [vmem:[#allocation2 + $0x198] sm:$0xff]  ;;  %1466 = vmatpush1.msra.mxu0 %v6546_v17 }
  0xce   :  { %1120 = vmatmul.mubr.f32.gmra.mxu0 %v6209_v62  ;;  %1973 = vmatprep.subr.mxu1 %v1972_v11  ;;  %v6816_v11 = vand.u32 4294901760, %v1405_v22  ;;  %v6825_v39 = vand.u32 4294901760, %v1404_v2  ;;  %v2014_v7 = vand.u32 4294901760, %v6795_v19  ;;  %v6837_v32 = vand.u32 4294901760, %v1403_v47 }
  0xcf   :  { %10891 = vst [vmem:[#allocation85_spill] sm:$0xff] %v6799_v54  ;;  %10892 = vst [vmem:[#allocation86_spill] sm:$0xff] %v6805_v55  ;;  %1299 = vmatmul.mubr.f32.gmra.mxu1 %v6209_v62  ;;  %1125 = vmatprep.mubr.f32.mxu0 %v10838_v49  ;;  %v6813_v34 = vsub.f32 %v6728_v61, %v10893_v18  ;;  %v6823_v45 = vsub.f32 %v1406_v25, %v6805_v55  ;;  %v1401_v18 = vld [vmem:[#allocation2 + $0x190] sm:$0xff]  ;;  %v10897_v61 = vand.u32 4294901760, %v6745_v35  ;;  %v1400_v25 = vld [vmem:[#allocation2 + $0x188] sm:$0xff] }
  0xd0   :  { %10894 = vst [vmem:[#allocation87_spill] sm:$0xff] %v6816_v11  ;;  %1304 = vmatprep.mubr.f32.mxu1 %v10838_v49  ;;  %10896 = vst [vmem:[#allocation89_spill] sm:$0xff] %v6825_v39  ;;  %1468 = vmatprep.subr.mxu0 %v6553_v21  ;;  %v6835_v62 = vsub.f32 %v1405_v22, %v6816_v11  ;;  %v10900_v17 = vand.u32 4294901760, %v6761_v23  ;;  %v6847_v21 = vsub.f32 %v1404_v2, %v6825_v39  ;;  %v1399_v22 = vld [vmem:[#allocation2 + $0x180] sm:$0xff] }
  0xd1   :  { %10895 = vst [vmem:[#allocation88_spill] sm:$0xff] %v6823_v45  ;;  %1979 = vmatpush1.msra.mxu1 %v1978_v9  ;;  %v6832_v10 = vsub.f32 %v6745_v35, %v10897_v61  ;;  %10899 = vst [vmem:[#allocation91_spill] sm:$0xff] %v6837_v32  ;;  %v6849_v61 = vand.u32 4294901760, %v1402_v36  ;;  %v10903_v35 = vand.u32 4294901760, %v6774_v44  ;;  %v6862_v19 = vand.u32 4294901760, %v1401_v18  ;;  %1470 = vmatpush1.msra.mxu0 %v6560_v0 }
  0xd2   :  { %10898 = vst [vmem:[#allocation90_spill] sm:$0xff] %v6835_v62  ;;  %1127 = vmatmul.mubr.f32.gmra.mxu0 %v6225_v14  ;;  %1985 = vmatprep.subr.mxu1 %v1984_v12  ;;  %v6843_v9 = vsub.f32 %v6761_v23, %v10900_v17  ;;  %10901 = vst [vmem:[#allocation92_spill] sm:$0xff] %v6847_v21  ;;  %v6860_v23 = vsub.f32 %v1403_v47, %v6837_v32  ;;  %v10907_v56 = vand.u32 4294901760, %v6799_v54 }
  0xd3   :  { %10902 = vst [vmem:[#allocation93_spill] sm:$0xff] %v6849_v61  ;;  %1306 = vmatmul.mubr.f32.gmra.mxu1 %v6225_v14  ;;  %1132 = vmatprep.mubr.f32.mxu0 %v10838_v49  ;;  %v6856_v12 = vsub.f32 %v6774_v44, %v10903_v35  ;;  %10905 = vst [vmem:[#allocation95_spill] sm:$0xff] %v6862_v19  ;;  %v10906_v14 = vand.u32 4294901760, %v6788_v58  ;;  %v6877_v17 = vsub.f32 %v1402_v36, %v6849_v61 }
  0xd4   :  { %10904 = vst [vmem:[#allocation94_spill] sm:$0xff] %v6860_v23  ;;  %1311 = vmatprep.mubr.f32.mxu1 %v10838_v49  ;;  %v6874_v35 = vsub.f32 %v6799_v54, %v10907_v56  ;;  %v6879_v47 = vand.u32 4294901760, %v1400_v25  ;;  %1472 = vmatprep.subr.mxu0 %v6570_v4  ;;  %v10910_v49 = vand.u32 4294901760, %v6823_v45  ;;  %v6891_v56 = vand.u32 4294901760, %v1399_v22  ;;  %v1398_v54 = vld [vmem:[#allocation2 + $0x178] sm:$0xff]  ;;  %v1396_v4 = vld [vmem:[#allocation2 + $0x168] sm:$0xff] }
  0xd5   :  { %v6869_v2 = vsub.f32 %v6788_v58, %v10906_v14  ;;  %10908 = vst [vmem:[#allocation96_spill] sm:$0xff] %v6877_v17  ;;  %1991 = vmatpush1.msra.mxu1 %v1990_v63  ;;  %v6889_v58 = vsub.f32 %v1401_v18, %v6862_v19  ;;  %v2020_v36 = vand.u32 4294901760, %v6813_v34  ;;  %v2026_v63 = vand.u32 4294901760, %v6832_v10  ;;  %1474 = vmatpush1.msra.mxu0 %v6581_v60 }
  0xd6   :  { %10909 = vst [vmem:[#allocation97_spill] sm:$0xff] %v6879_v47  ;;  %v6885_v44 = vsub.f32 %v6823_v45, %v10910_v49  ;;  %10912 = vst [vmem:[#allocation99_spill] sm:$0xff] %v6891_v56  ;;  %1134 = vmatmul.mubr.f32.gmra.mxu0 %v6238_v37  ;;  %1997 = vmatprep.subr.mxu1 %v1996_v40  ;;  %v6898_v49 = vsub.f32 %v1400_v25, %v6879_v47  ;;  %v1397_v45 = vld [vmem:[#allocation2 + $0x170] sm:$0xff]  ;;  %v2032_v18 = vand.u32 4294901760, %v6843_v9 }
  0xd7   :  { %10911 = vst [vmem:[#allocation98_spill] sm:$0xff] %v6889_v58  ;;  %1313 = vmatmul.mubr.f32.gmra.mxu1 %v6238_v37  ;;  %v2038_v14 = vand.u32 4294901760, %v6856_v12  ;;  %v10914_v40 = vand.u32 4294901760, %v6835_v62  ;;  %1476 = vmatprep.subr.mxu0 %v6604_v52  ;;  %v10915_v25 = vand.u32 4294901760, %v6758_v51  ;;  %v2044_v37 = vand.u32 4294901760, %v6869_v2 }
  0xd8   :  { %10913 = vst [vmem:[#allocation100_spill] sm:$0xff] %v6898_v49  ;;  %v2050_v60 = vand.u32 4294901760, %v6874_v35  ;;  %v6916_v9 = vsub.f32 %v1399_v22, %v6891_v56  ;;  %v6918_v12 = vand.u32 4294901760, %v1398_v54  ;;  %1478 = vmatpush1.msra.mxu0 %v6611_v41  ;;  %v2056_v10 = vand.u32 4294901760, %v6885_v44  ;;  %v1395_v22 = vld [vmem:[#allocation2 + $0x160] sm:$0xff] }
  0xd9   :  { %v6907_v34 = vsub.f32 %v6835_v62, %v10914_v40  ;;  %2003 = vmatpush1.msra.mxu1 %v10915_v25  ;;  %v10918_v40 = vand.u32 4294901760, %v6770_v59  ;;  %v10919_v62 = vand.u32 4294901760, %v6847_v21  ;;  %v6930_v35 = vand.u32 4294901760, %v1397_v45  ;;  %1480 = vmatprep.subr.mxu0 %v6621_v3 }
  0xda   :  { %10916 = vst [vmem:[#allocation101_spill] sm:$0xff] %v6916_v9  ;;  %10917 = vst [vmem:[#allocation102_spill] sm:$0xff] %v6918_v12  ;;  %v192_v25 = vpop.f32.mrf.mxu0  ;;  %v10921_v41 = vand.u32 4294901760, %v6860_v23  ;;  %1482 = vmatpush1.msra.mxu0 %v6627_v31  ;;  %v10924_v3 = vand.u32 4294901760, %v6877_v17  ;;  %v6963_v31 = vand.u32 4294901760, %v1395_v22 }
  0xdb   :  { %2009 = vmatprep.subr.mxu1 %v10918_v40  ;;  %v6927_v51 = vsub.f32 %v6847_v21, %v10919_v62  ;;  %10920 = vst [vmem:[#allocation103_spill] sm:$0xff] %v6930_v35  ;;  %v6940_v40 = vsub.f32 %v1398_v54, %v6918_v12  ;;  %v6942_v62 = vand.u32 4294901760, %v1396_v4  ;;  %v193_v2 = vadd.f32 %v192_v25, %v6782_v43  ;;  %v439_v21 = vpop.f32.mrf.mxu1  ;;  %v1394_v54 = vld [vmem:[#allocation2 + $0x158] sm:$0xff] }
  0xdc   :  { %2015 = vmatpush2.msra.mxu1 %v2014_v7  ;;  %v6936_v59 = vsub.f32 %v6860_v23, %v10921_v41  ;;  %v2062_v7 = vand.u32 4294901760, %v6907_v34  ;;  %v6950_v41 = vsub.f32 %v6877_v17, %v10924_v3  ;;  %v6953_v44 = vsub.f32 %v1397_v45, %v6930_v35  ;;  %v6955_v23 = vpop.f32.mrf.mxu0  ;;  %1484 = vmatprep.subr.mxu0 %v6637_v6  ;;  %v1393_v3 = vld [vmem:[#allocation2 + $0x150] sm:$0xff] }
  0xdd   :  { %10922 = vst [vmem:[#allocation104_spill] sm:$0xff] %v6940_v40  ;;  %10923 = vst [vmem:[#allocation105_spill] sm:$0xff] %v6942_v62  ;;  %2021 = vmatprep.subr.mxu1 %v2020_v36  ;;  %v6961_v34 = vsub.f32 %v1396_v4, %v6942_v62  ;;  %v6965_v17 = vadd.f32 %v439_v21, %v193_v2  ;;  %v6967_v45 = vpop.f32.mrf.mxu1  ;;  %1486 = vmatpush1.msra.mxu0 %v6645_v50  ;;  %v2068_v6 = vand.u32 4294901760, %v6927_v51 }
  0xde   :  { %10925 = vst [vmem:[#allocation106_spill] sm:$0xff] %v6953_v44  ;;  %2027 = vmatpush2.msra.mxu1 %v2026_v63  ;;  %10927 = vst [vmem:[#allocation108_spill] sm:$0xff] %v6963_v31  ;;  %v10928_v63 = vand.u32 4294901760, %v6889_v58  ;;  %v203_v36 = vpop.f32.mrf.mxu0  ;;  %1488 = vmatprep.subr.mxu0 %v6656_v5  ;;  %v10929_v21 = vand.u32 4294901760, %v6898_v49  ;;  %v6985_v51 = vsub.f32 %v1395_v22, %v6963_v31  ;;  %v6987_v50 = vand.u32 4294901760, %v1394_v54 }
  0xdf   :  { %10926 = vst [vmem:[#allocation107_spill] sm:$0xff] %v6961_v34  ;;  %2033 = vmatprep.subr.mxu1 %v2032_v18  ;;  %1490 = vmatpush1.msra.mxu0 %v6670_v13  ;;  %v2080_v4 = vand.u32 4294901760, %v6950_v41  ;;  %v6993_v5 = vand.u32 4294901760, %v1393_v3  ;;  %v10933_v22 = vand.u32 4294901760, %v6916_v9  ;;  %v10934_v18 = vand.u32 4294901760, %v6940_v40  ;;  %v1391_v13 = vld [vmem:[#allocation2 + $0x140] sm:$0xff] }
  0xe0   :  { %v6974_v25 = vsub.f32 %v6889_v58, %v10928_v63  ;;  %2039 = vmatpush2.msra.mxu1 %v2038_v14  ;;  %v6981_v2 = vsub.f32 %v6898_v49, %v10929_v21  ;;  %10930 = vst [vmem:[#allocation109_spill] sm:$0xff] %v6985_v51  ;;  %10931 = vst [vmem:[#allocation110_spill] sm:$0xff] %v6987_v50  ;;  %v204_v63 = vadd.f32 %v203_v36, %v6782_v43  ;;  %v446_v58 = vpop.f32.mrf.mxu1  ;;  %v1392_v21 = vld [vmem:[#allocation2 + $0x148] sm:$0xff]  ;;  %v6995_v49 = vpop.f32.mrf.mxu0 }
  0xe1   :  { %2045 = vmatprep.subr.mxu1 %v2044_v37  ;;  %v2074_v14 = vand.u32 4294901760, %v6936_v59  ;;  %10932 = vst [vmem:[#allocation111_spill] sm:$0xff] %v6993_v5  ;;  %1492 = vmatprep.subr.mxu0 %v6691_v20  ;;  %v2097_v36 = vsub.f32 %v6916_v9, %v10933_v22  ;;  %v7004_v37 = vsub.f32 %v6940_v40, %v10934_v18  ;;  %v10936_v22 = vand.u32 4294901760, %v6953_v44 }
  0xe2   :  { %2051 = vmatpush2.msra.mxu1 %v2050_v60  ;;  %v7008_v41 = vsub.f32 %v1394_v54, %v6987_v50  ;;  %v7010_v52 = vadd.f32 %v446_v58, %v204_v63  ;;  %v7012_v0 = vpop.f32.mrf.mxu1  ;;  %1494 = vmatpush2.msra.mxu0 %v6696_v8  ;;  %v2086_v60 = vand.u32 4294901760, %v6974_v25  ;;  %v7022_v59 = vsub.f32 %v1393_v3, %v6993_v5  ;;  %v1390_v54 = vld [vmem:[#allocation2 + $0x138] sm:$0xff]  ;;  %v214_v40 = vpop.f32.mrf.mxu0 }
  0xe3   :  { %2057 = vmatprep.subr.mxu1 %v2056_v10  ;;  %v7019_v18 = vsub.f32 %v6953_v44, %v10936_v22  ;;  %1496 = vmatprep.subr.mxu0 %v6704_v57  ;;  %v2092_v58 = vand.u32 4294901760, %v6981_v2  ;;  %v10938_v63 = vand.u32 4294901760, %v6961_v34  ;;  %v7032_v9 = vand.u32 4294901760, %v1392_v21  ;;  %v1389_v22 = vld [vmem:[#allocation2 + $0x130] sm:$0xff] }
  0xe4   :  { %10935 = vst [vmem:[#allocation112_spill] sm:$0xff] %v7008_v41  ;;  %10937 = vst [vmem:[#allocation113_spill] sm:$0xff] %v7022_v59  ;;  %2063 = vmatpush2.msra.mxu1 %v2062_v7  ;;  %v215_v3 = vadd.f32 %v214_v40, %v6782_v43  ;;  %v453_v44 = vpop.f32.mrf.mxu1  ;;  %1498 = vmatpush2.msra.mxu0 %v6717_v46  ;;  %v10940_v7 = vand.u32 4294901760, %v6985_v51  ;;  %v2098_v25 = vand.u32 4294901760, %v2097_v36  ;;  %v2104_v40 = vand.u32 4294901760, %v7004_v37  ;;  %v1388_v37 = vld [vmem:[#allocation2 + $0x128] sm:$0xff] }
  0xe5   :  { %v7029_v10 = vsub.f32 %v6961_v34, %v10938_v63  ;;  %10939 = vst [vmem:[#allocation114_spill] sm:$0xff] %v7032_v9  ;;  %2069 = vmatprep.subr.mxu1 %v2068_v6  ;;  %v7042_v63 = vand.u32 4294901760, %v1391_v13  ;;  %v7044_v34 = vpop.f32.mrf.mxu0  ;;  %1500 = vmatprep.subr.mxu0 %v6730_v53  ;;  %v7049_v46 = vsub.f32 %v1392_v21, %v7032_v9  ;;  %v7051_v6 = vand.u32 4294901760, %v1390_v54 }
  0xe6   :  { %v7039_v2 = vsub.f32 %v6985_v51, %v10940_v7  ;;  %2075 = vmatpush2.msra.mxu1 %v2074_v14  ;;  %v7053_v8 = vadd.f32 %v453_v44, %v215_v3  ;;  %v7055_v7 = vpop.f32.mrf.mxu1  ;;  %1502 = vmatpush2.msra.mxu0 %v6747_v30  ;;  %v2110_v57 = vand.u32 4294901760, %v7019_v18  ;;  %v10944_v51 = vand.u32 4294901760, %v7008_v41 }
  0xe7   :  { %10941 = vst [vmem:[#allocation115_spill] sm:$0xff] %v7042_v63  ;;  %10942 = vst [vmem:[#allocation116_spill] sm:$0xff] %v7049_v46  ;;  %2081 = vmatprep.subr.mxu1 %v2080_v4  ;;  %v7062_v36 = vand.u32 4294901760, %v1389_v22  ;;  %v225_v21 = vpop.f32.mrf.mxu0  ;;  %1504 = vmatprep.subr.mxu0 %v6763_v28  ;;  %v10946_v44 = vand.u32 4294901760, %v7022_v59  ;;  %v7070_v4 = vsub.f32 %v1391_v13, %v7042_v63  ;;  %v10950_v13 = vand.u32 4294901760, %v7049_v46 }
  0xe8   :  { %10943 = vst [vmem:[#allocation117_spill] sm:$0xff] %v7051_v6  ;;  %v2127_v14 = vsub.f32 %v7008_v41, %v10944_v51  ;;  %2087 = vmatpush2.msra.mxu1 %v2086_v60  ;;  %v7073_v18 = vsub.f32 %v1390_v54, %v7051_v6  ;;  %v1387_v51 = vld [vmem:[#allocation2 + $0x120] sm:$0xff]  ;;  %v226_v41 = vadd.f32 %v225_v21, %v6782_v43  ;;  %v460_v53 = vpop.f32.mrf.mxu1  ;;  %v2116_v60 = vand.u32 4294901760, %v7029_v10  ;;  %v1386_v10 = vld [vmem:[#allocation2 + $0x118] sm:$0xff] }
  0xe9   :  { %10945 = vst [vmem:[#allocation118_spill] sm:$0xff] %v7062_v36  ;;  %v2133_v3 = vsub.f32 %v7022_v59, %v10946_v44  ;;  %10947 = vst [vmem:[#allocation119_spill] sm:$0xff] %v7070_v4  ;;  %1506 = vmatpush2.msra.mxu0 %v6776_v15  ;;  %2093 = vmatprep.subr.mxu1 %v2092_v58  ;;  %v2122_v28 = vand.u32 4294901760, %v7039_v2  ;;  %v7080_v44 = vsub.f32 %v1389_v22, %v7062_v36  ;;  %v7082_v30 = vpop.f32.mrf.mxu0 }
  0xea   :  { %10948 = vst [vmem:[#allocation120_spill] sm:$0xff] %v7073_v18  ;;  %1508 = vmatprep.subr.mxu0 %v6805_v55  ;;  %2099 = vmatpush2.msra.mxu1 %v2098_v25  ;;  %v2139_v54 = vsub.f32 %v7049_v46, %v10950_v13  ;;  %v10401_v21 = vand.u32 4294901760, %v7070_v4  ;;  %v7090_v59 = vand.u32 4294901760, %v1388_v37  ;;  %v7092_v2 = vadd.f32 %v460_v53, %v226_v41  ;;  %v7094_v22 = vpop.f32.mrf.mxu1 }
  0xeb   :  { %10949 = vst [vmem:[#allocation121_spill] sm:$0xff] %v7080_v44  ;;  %1510 = vmatpush2.msra.mxu0 %v6816_v11  ;;  %2105 = vmatprep.subr.mxu1 %v2104_v40  ;;  %v2128_v55 = vand.u32 4294901760, %v2127_v14  ;;  %v7098_v15 = vand.u32 4294901760, %v1387_v51  ;;  %v236_v13 = vpop.f32.mrf.mxu0  ;;  %v2134_v58 = vand.u32 4294901760, %v2133_v3  ;;  %v10953_v41 = vand.u32 4294901760, %v7073_v18 }
  0xec   :  { %10951 = vst [vmem:[#allocation122_spill] sm:$0xff] %v7090_v59  ;;  %1512 = vmatprep.subr.mxu0 %v6825_v39  ;;  %2111 = vmatpush2.msra.mxu1 %v2110_v57  ;;  %v2145_v53 = vsub.f32 %v7070_v4, %v10401_v21  ;;  %v7108_v40 = vsub.f32 %v1388_v37, %v7090_v59  ;;  %v467_v25 = vpop.f32.mrf.mxu1  ;;  %v2140_v39 = vand.u32 4294901760, %v2139_v54  ;;  %v10955_v57 = vand.u32 4294901760, %v7080_v44  ;;  %v1385_v21 = vld [vmem:[#allocation2 + $0x110] sm:$0xff]  ;;  %v1384_v4 = vld [vmem:[#allocation2 + $0x108] sm:$0xff] }
  0xed   :  { %10952 = vst [vmem:[#allocation123_spill] sm:$0xff] %v7098_v15  ;;  %v2151_v46 = vsub.f32 %v7073_v18, %v10953_v41  ;;  %v237_v14 = vadd.f32 %v236_v13, %v6782_v43  ;;  %1514 = vmatpush2.msra.mxu0 %v6837_v32  ;;  %2117 = vmatprep.subr.mxu1 %v2116_v60  ;;  %v7115_v11 = vand.u32 4294901760, %v1386_v10  ;;  %v7117_v20 = vpop.f32.mrf.mxu0  ;;  %v1383_v60 = vld [vmem:[#allocation2 + $0x100] sm:$0xff] }
  0xee   :  { %10954 = vst [vmem:[#allocation124_spill] sm:$0xff] %v7108_v40  ;;  %v2157_v3 = vsub.f32 %v7080_v44, %v10955_v57  ;;  %1516 = vmatprep.subr.mxu0 %v6849_v61  ;;  %2123 = vmatpush2.msra.mxu1 %v2122_v28  ;;  %v2146_v37 = vand.u32 4294901760, %v2145_v53  ;;  %v10412_v13 = vand.u32 4294901760, %v7108_v40  ;;  %v7122_v41 = vsub.f32 %v1387_v51, %v7098_v15  ;;  %v7126_v18 = vpop.f32.mrf.mxu1 }
  0xef   :  { %10956 = vst [vmem:[#allocation125_spill] sm:$0xff] %v7115_v11  ;;  %v7124_v54 = vadd.f32 %v467_v25, %v237_v14  ;;  %1518 = vmatpush2.msra.mxu0 %v6862_v19  ;;  %2129 = vmatprep.subr.mxu1 %v2128_v55  ;;  %v2152_v57 = vand.u32 4294901760, %v2151_v46  ;;  %v7130_v32 = vsub.f32 %v1386_v10, %v7115_v11  ;;  %v247_v28 = vpop.f32.mrf.mxu0  ;;  %v7137_v53 = vand.u32 4294901760, %v1385_v21 }
  0xf0   :  { %10957 = vst [vmem:[#allocation126_spill] sm:$0xff] %v7122_v41  ;;  %v2158_v44 = vand.u32 4294901760, %v2157_v3  ;;  %1520 = vmatprep.subr.mxu0 %v6879_v47  ;;  %2135 = vmatpush2.msra.mxu1 %v2134_v58  ;;  %v2163_v51 = vsub.f32 %v7108_v40, %v10412_v13  ;;  %v10419_v25 = vand.u32 4294901760, %v7122_v41  ;;  %v7139_v14 = vand.u32 4294901760, %v1384_v4  ;;  %v474_v46 = vpop.f32.mrf.mxu1 }
  0xf1   :  { %10958 = vst [vmem:[#allocation127_spill] sm:$0xff] %v7130_v32  ;;  %10959 = vst [vmem:[#allocation128_spill] sm:$0xff] %v7137_v53  ;;  %v248_v55 = vadd.f32 %v247_v28, %v6782_v43  ;;  %1522 = vmatpush2.msra.mxu0 %v6891_v56  ;;  %2141 = vmatprep.subr.mxu1 %v2140_v39  ;;  %v7144_v3 = vand.u32 4294901760, %v1383_v60  ;;  %v7146_v58 = vpop.f32.mrf.mxu0  ;;  %v7153_v28 = vsub.f32 %v1385_v21, %v7137_v53 }
  0xf2   :  { %10960 = vst [vmem:[#allocation129_spill] sm:$0xff] %v7139_v14  ;;  %1524 = vmatprep.subr.mxu0 %v6918_v12  ;;  %2147 = vmatpush2.msra.mxu1 %v2146_v37  ;;  %v2164_v13 = vand.u32 4294901760, %v2163_v51  ;;  %v2169_v40 = vsub.f32 %v7122_v41, %v10419_v25  ;;  %v7156_v56 = vsub.f32 %v1384_v4, %v7139_v14  ;;  %v7160_v10 = vpop.f32.mrf.mxu1  ;;  %v10964_v37 = vand.u32 4294901760, %v7130_v32 }
  0xf3   :  { %10961 = vst [vmem:[#allocation130_spill] sm:$0xff] %v7144_v3  ;;  %10962 = vst [vmem:[#allocation131_spill] sm:$0xff] %v7153_v28  ;;  %v7158_v39 = vadd.f32 %v474_v46, %v248_v55  ;;  %1526 = vmatpush2.msra.mxu0 %v6930_v35  ;;  %2153 = vmatprep.subr.mxu1 %v2152_v57  ;;  %v258_v12 = vpop.f32.mrf.mxu0  ;;  %v10424_v25 = vand.u32 4294901760, %v7153_v28  ;;  %v7170_v55 = vsub.f32 %v1383_v60, %v7144_v3 }
  0xf4   :  { %10963 = vst [vmem:[#allocation132_spill] sm:$0xff] %v7156_v56  ;;  %v2175_v51 = vsub.f32 %v7130_v32, %v10964_v37  ;;  %1528 = vmatprep.subr.mxu0 %v6942_v62  ;;  %2159 = vmatpush2.msra.mxu1 %v2158_v44  ;;  %v2170_v21 = vand.u32 4294901760, %v2169_v40  ;;  %v10425_v4 = vand.u32 4294901760, %v7156_v56  ;;  %v259_v46 = vadd.f32 %v258_v12, %v6782_v43  ;;  %v481_v41 = vpop.f32.mrf.mxu1 }
  0xf5   :  { %10965 = vst [vmem:[#allocation133_spill] sm:$0xff] %v7170_v55  ;;  %1530 = vmatpush2.msra.mxu0 %v6963_v31  ;;  %2165 = vmatprep.subr.mxu1 %v2164_v13  ;;  %v7174_v37 = vpop.f32.mrf.mxu0  ;;  %v2181_v44 = vsub.f32 %v7153_v28, %v10424_v25  ;;  %v10430_v12 = vand.u32 4294901760, %v7170_v55 }
  0xf6   :  { %v2176_v57 = vand.u32 4294901760, %v2175_v51  ;;  %1532 = vmatprep.subr.mxu0 %v6987_v50  ;;  %2171 = vmatpush2.msra.mxu1 %v2170_v21  ;;  %v2187_v40 = vsub.f32 %v7156_v56, %v10425_v4  ;;  %v7184_v60 = vadd.f32 %v481_v41, %v259_v46  ;;  %v7186_v32 = vpop.f32.mrf.mxu1 }
  0xf7   :  { %1534 = vmatpush2.msra.mxu0 %v6993_v5  ;;  %v269_v13 = vpop.f32.mrf.mxu0  ;;  %v2182_v51 = vand.u32 4294901760, %v2181_v44  ;;  %v2193_v25 = vsub.f32 %v7170_v55, %v10430_v12 }
  0xf8   :  { %2177 = vmatprep.subr.mxu1 %v2176_v57  ;;  %1536 = vmatprep.subr.mxu0 %v7032_v9  ;;  %v2188_v21 = vand.u32 4294901760, %v2187_v40  ;;  %v270_v4 = vadd.f32 %v269_v13, %v6782_v43  ;;  %v488_v56 = vpop.f32.mrf.mxu1 }
  0xf9   :  { %1538 = vmatpush2.msra.mxu0 %v7042_v63  ;;  %v7195_v41 = vpop.f32.mrf.mxu0  ;;  %2183 = vmatpush2.msra.mxu1 %v2182_v51  ;;  %v2194_v46 = vand.u32 4294901760, %v2193_v25 }
  0xfa   :  { %1540 = vmatprep.subr.mxu0 %v7051_v6  ;;  %v7198_v57 = vadd.f32 %v488_v56, %v270_v4  ;;  %v7200_v28 = vpop.f32.mrf.mxu1  ;;  %2189 = vmatprep.subr.mxu1 %v2188_v21 }
  0xfb   :  { %1542 = vmatpush2.msra.mxu0 %v7062_v36  ;;  %v280_v44 = vpop.f32.mrf.mxu0  ;;  %2195 = vmatpush2.msra.mxu1 %v2194_v46 }
  0xfc   :  { %1544 = vmatprep.subr.mxu0 %v7090_v59  ;;  %v281_v40 = vadd.f32 %v280_v44, %v6782_v43  ;;  %v495_v13 = vpop.f32.mrf.mxu1  ;;  %2679 = vmatprep.subr.mxu1 %v6359_v16 }
  0xfd   :  { %1546 = vmatpush2.msra.mxu0 %v7098_v15  ;;  %v7207_v51 = vpop.f32.mrf.mxu0 }
  0xfe   :  { %1548 = vmatprep.subr.mxu0 %v7115_v11  ;;  %v7210_v56 = vadd.f32 %v495_v13, %v281_v40  ;;  %v7212_v25 = vpop.f32.mrf.mxu1 }
  0xff   :  { %1550 = vmatpush2.msra.mxu0 %v7137_v53  ;;  %v291_v4 = vpop.f32.mrf.mxu0 }
 0x100   :  { %1552 = vmatprep.subr.mxu0 %v7139_v14  ;;  %v292_v21 = vadd.f32 %v291_v4, %v6782_v43  ;;  %v502_v46 = vpop.f32.mrf.mxu1 }
 0x101   :  { %1554 = vmatpush2.msra.mxu0 %v7144_v3  ;;  %v7218_v44 = vpop.f32.mrf.mxu0 }
 0x102   :  { %2327 = vmatprep.subr.mxu0 %v6365_v26  ;;  %v7221_v12 = vadd.f32 %v502_v46, %v292_v21  ;;  %v7223_v40 = vpop.f32.mrf.mxu1 }
 0x103   :  { %10966 = vst [vmem:[#allocation134_spill] sm:$0xff] %v7223_v40  ;;  %v302_v13 = vpop.f32.mrf.mxu0 }
 0x104   :  { %v303_v55 = vadd.f32 %v302_v13, %v6782_v43  ;;  %v509_v16 = vpop.f32.mrf.mxu1 }
 0x105   :  { %v7226_v53 = vpop.f32.mrf.mxu0 }
 0x106   :  { %10967 = vst [vmem:[#allocation135_spill] sm:$0xff] %v7226_v53  ;;  %v7228_v14 = vadd.f32 %v509_v16, %v303_v55  ;;  %v7230_v4 = vpop.f32.mrf.mxu1 }
 0x107   :  { %10968 = vst [vmem:[#allocation136_spill] sm:$0xff] %v7230_v4  ;;  %v313_v11 = vpop.f32.mrf.mxu0 }
 0x108   :  { %v314_v3 = vadd.f32 %v313_v11, %v6782_v43  ;;  %v516_v15 = vpop.f32.mrf.mxu1 }
 0x109   :  { %v7233_v59 = vpop.f32.mrf.mxu0 }
 0x10a   :  { %10969 = vst [vmem:[#allocation137_spill] sm:$0xff] %v7233_v59  ;;  %v7235_v21 = vadd.f32 %v516_v15, %v314_v3  ;;  %v7237_v46 = vpop.f32.mrf.mxu1 }
 0x10b   :  { %10970 = vst [vmem:[#allocation138_spill] sm:$0xff] %v7237_v46  ;;  %v324_v26 = vpop.f32.mrf.mxu0 }
 0x10c   :  { %v325_v13 = vadd.f32 %v324_v26, %v6782_v43  ;;  %v523_v36 = vpop.f32.mrf.mxu1 }
 0x10d   :  { %v7240_v6 = vpop.f32.mrf.mxu0 }
 0x10e   :  { %10971 = vst [vmem:[#allocation139_spill] sm:$0xff] %v7240_v6  ;;  %v7242_v16 = vadd.f32 %v523_v36, %v325_v13  ;;  %v7244_v55 = vpop.f32.mrf.mxu1 }
 0x10f   :  { %10972 = vst [vmem:[#allocation140_spill] sm:$0xff] %v7244_v55  ;;  %v335_v63 = vpop.f32.mrf.mxu0 }
 0x110   :  { %v336_v11 = vadd.f32 %v335_v63, %v6782_v43  ;;  %v530_v9 = vpop.f32.mrf.mxu1 }
 0x111   :  { %v7247_v5 = vpop.f32.mrf.mxu0 }
 0x112   :  { %10973 = vst [vmem:[#allocation141_spill] sm:$0xff] %v7247_v5  ;;  %v7249_v15 = vadd.f32 %v530_v9, %v336_v11  ;;  %v7251_v3 = vpop.f32.mrf.mxu1 }
 0x113   :  { %10974 = vst [vmem:[#allocation142_spill] sm:$0xff] %v7251_v3  ;;  %v346_v50 = vpop.f32.mrf.mxu0 }
 0x114   :  { %v347_v26 = vadd.f32 %v346_v50, %v6782_v43  ;;  %v537_v31 = vpop.f32.mrf.mxu1 }
 0x115   :  { %v7254_v62 = vpop.f32.mrf.mxu0 }
 0x116   :  { %10975 = vst [vmem:[#allocation143_spill] sm:$0xff] %v7254_v62  ;;  %v7256_v36 = vadd.f32 %v537_v31, %v347_v26  ;;  %v7258_v13 = vpop.f32.mrf.mxu1 }
 0x117   :  { %10976 = vst [vmem:[#allocation144_spill] sm:$0xff] %v7258_v13  ;;  %v357_v35 = vpop.f32.mrf.mxu0 }
 0x118   :  { %v358_v63 = vadd.f32 %v357_v35, %v6782_v43  ;;  %v544_v47 = vpop.f32.mrf.mxu1 }
 0x119   :  { %v7261_v19 = vpop.f32.mrf.mxu0 }
 0x11a   :  { %10977 = vst [vmem:[#allocation145_spill] sm:$0xff] %v7261_v19  ;;  %v7263_v9 = vadd.f32 %v544_v47, %v358_v63  ;;  %v7265_v11 = vpop.f32.mrf.mxu1 }
 0x11b   :  { %10978 = vst [vmem:[#allocation146_spill] sm:$0xff] %v7265_v11  ;;  %v7267_v61 = vpop.f32.mrf.mxu0 }
 0x11c   :  { %v7269_v50 = vpop.f32.mrf.mxu1 }
 0x11d   :  { %v7271_v3 = vpop.f32.mrf.mxu0 }
 0x11e   :  { %v7273_v31 = vpop.f32.mrf.mxu1 }
 0x11f   :  { %v7275_v26 = vpop.f32.mrf.mxu0 }
 0x120   :  { %v7277_v13 = vpop.f32.mrf.mxu1 }
 0x121   :  { %v7279_v43 = vpop.f32.mrf.mxu0 }
 0x122   :  { %v7281_v35 = vpop.f32.mrf.mxu1 }
 0x123   :  { %v637_v47 = vpop.f32.mrf.mxu0 }
 0x124   :  { %v638_v63 = vadd.f32 %v637_v47, %v7053_v8  ;;  %v835_v11 = vpop.f32.mrf.mxu1 }
 0x125   :  { %v7284_v19 = vpop.f32.mrf.mxu0 }
 0x126   :  { %v7286_v62 = vadd.f32 %v835_v11, %v638_v63  ;;  %v7288_v5 = vpop.f32.mrf.mxu1 }
 0x127   :  { %v645_v55 = vpop.f32.mrf.mxu0 }
 0x128   :  { %v646_v6 = vadd.f32 %v645_v55, %v7092_v2  ;;  %v844_v46 = vpop.f32.mrf.mxu1 }
 0x129   :  { %v7291_v59 = vpop.f32.mrf.mxu0 }
 0x12a   :  { %v7293_v4 = vadd.f32 %v844_v46, %v646_v6  ;;  %v7295_v53 = vpop.f32.mrf.mxu1 }
 0x12b   :  { %v653_v40 = vpop.f32.mrf.mxu0 }
 0x12c   :  { %10979 = vst [vmem:[#allocation147_spill] sm:$0xff] %v7293_v4  ;;  %v654_v8 = vadd.f32 %v653_v40, %v7124_v54  ;;  %v853_v47 = vpop.f32.mrf.mxu1 }
 0x12d   :  { %v7298_v29 = vpop.f32.mrf.mxu0 }
 0x12e   :  { %v7300_v11 = vadd.f32 %v853_v47, %v654_v8  ;;  %v7302_v63 = vpop.f32.mrf.mxu1 }
 0x12f   :  { %v661_v1 = vpop.f32.mrf.mxu0 }
 0x130   :  { %10980 = vst [vmem:[#allocation148_spill] sm:$0xff] %v7300_v11  ;;  %v662_v2 = vadd.f32 %v661_v1, %v7158_v39  ;;  %v862_v55 = vpop.f32.mrf.mxu1 }
 0x131   :  { %v7305_v48 = vpop.f32.mrf.mxu0 }
 0x132   :  { %v7307_v6 = vadd.f32 %v862_v55, %v662_v2  ;;  %v7309_v46 = vpop.f32.mrf.mxu1 }
 0x133   :  { %v669_v33 = vpop.f32.mrf.mxu0 }
 0x134   :  { %10981 = vst [vmem:[#allocation149_spill] sm:$0xff] %v7307_v6  ;;  %v670_v54 = vadd.f32 %v669_v33, %v7184_v60  ;;  %v871_v40 = vpop.f32.mrf.mxu1 }
 0x135   :  { %v7312_v27 = vpop.f32.mrf.mxu0 }
 0x136   :  { %v7314_v8 = vadd.f32 %v871_v40, %v670_v54  ;;  %v7316_v47 = vpop.f32.mrf.mxu1 }
 0x137   :  { %10983 = vst [vmem:[#allocation151_spill] sm:$0xff] %v7316_v47  ;;  %v677_v11 = vpop.f32.mrf.mxu0 }
 0x138   :  { %10982 = vst [vmem:[#allocation150_spill] sm:$0xff] %v7314_v8  ;;  %v678_v1 = vadd.f32 %v677_v11, %v7198_v57  ;;  %v880_v39 = vpop.f32.mrf.mxu1 }
 0x139   :  { %v7319_v24 = vpop.f32.mrf.mxu0 }
 0x13a   :  { %v7321_v2 = vadd.f32 %v880_v39, %v678_v1  ;;  %v7323_v55 = vpop.f32.mrf.mxu1 }
 0x13b   :  { %10985 = vst [vmem:[#allocation153_spill] sm:$0xff] %v7323_v55  ;;  %v685_v6 = vpop.f32.mrf.mxu0 }
 0x13c   :  { %10984 = vst [vmem:[#allocation152_spill] sm:$0xff] %v7321_v2  ;;  %v686_v33 = vadd.f32 %v685_v6, %v7210_v56  ;;  %v889_v60 = vpop.f32.mrf.mxu1 }
 0x13d   :  { %v7326_v4 = vpop.f32.mrf.mxu0 }
 0x13e   :  { %v7328_v54 = vadd.f32 %v889_v60, %v686_v33  ;;  %v7330_v40 = vpop.f32.mrf.mxu1 }
 0x13f   :  { %10987 = vst [vmem:[#allocation155_spill] sm:$0xff] %v7330_v40  ;;  %v693_v8 = vpop.f32.mrf.mxu0 }
 0x140   :  { %10986 = vst [vmem:[#allocation154_spill] sm:$0xff] %v7328_v54  ;;  %v694_v57 = vadd.f32 %v693_v8, %v7221_v12  ;;  %v898_v11 = vpop.f32.mrf.mxu1 }
 0x141   :  { %v7333_v47 = vpop.f32.mrf.mxu0 }
 0x142   :  { %v7335_v1 = vadd.f32 %v898_v11, %v694_v57  ;;  %v7337_v39 = vpop.f32.mrf.mxu1  ;;  %v10485_v57 = vsub.s32 1, %v6615_v38 }
 0x143   :  { %v701_v2 = vpop.f32.mrf.mxu0 }
 0x144   :  { %10988 = vst [vmem:[#allocation156_spill] sm:$0xff] %v7335_v1  ;;  %v702_v56 = vadd.f32 %v701_v2, %v7228_v14  ;;  %v907_v6 = vpop.f32.mrf.mxu1 }
 0x145   :  { %v7340_v55 = vpop.f32.mrf.mxu0 }
 0x146   :  { %10989 = vst [vmem:[#allocation157_spill] sm:$0xff] %v7340_v55  ;;  %v7342_v33 = vadd.f32 %v907_v6, %v702_v56  ;;  %v7344_v60 = vpop.f32.mrf.mxu1  ;;  %v7360_v6 = vrot.slane %v6735_v42, %v10485_v57 }
 0x147   :  { %v709_v54 = vpop.f32.mrf.mxu0 }
 0x148   :  { %10990 = vst [vmem:[#allocation158_spill] sm:$0xff] %v7342_v33  ;;  %v710_v12 = vadd.f32 %v709_v54, %v7235_v21  ;;  %v916_v8 = vpop.f32.mrf.mxu1 }
 0x149   :  { %v7347_v40 = vpop.f32.mrf.mxu0 }
 0x14a   :  { %v7350_v11 = vadd.f32 %v916_v8, %v710_v12  ;;  %v7352_v1 = vpop.f32.mrf.mxu1 }
 0x14b   :  { %v717_v14 = vpop.f32.mrf.mxu0 }
 0x14c   :  { %10991 = vst [vmem:[#allocation159_spill] sm:$0xff] %v7350_v11  ;;  %v718_v2 = vadd.f32 %v717_v14, %v7242_v16  ;;  %v925_v55 = vpop.f32.mrf.mxu1  ;;  %v195_v16 = vadd.f32 %v6955_v23, %v7360_v6 }
 0x14d   :  { %v7355_v56 = vpop.f32.mrf.mxu0 }
 0x14e   :  { %10992 = vst [vmem:[#allocation160_spill] sm:$0xff] %v7355_v56  ;;  %v7362_v21 = vadd.f32 %v925_v55, %v718_v2  ;;  %v7364_v54 = vpop.f32.mrf.mxu1  ;;  %v442_v57 = vadd.f32 %v6967_v45, %v195_v16 }
 0x14f   :  { %v725_v33 = vpop.f32.mrf.mxu0 }
 0x150   :  { %10993 = vst [vmem:[#allocation161_spill] sm:$0xff] %v7362_v21  ;;  %v726_v12 = vadd.f32 %v725_v33, %v7249_v15  ;;  %v934_v8 = vpop.f32.mrf.mxu1  ;;  %v206_v15 = vadd.f32 %v6995_v49, %v7360_v6  ;;  %v622_v33 = vadd.f32 %v7267_v61, %v6965_v17  ;;  %v630_v49 = vadd.f32 %v7275_v26, %v7010_v52 }
 0x151   :  { %v7367_v11 = vpop.f32.mrf.mxu0  ;;  %v250_v26 = vadd.f32 %v7146_v58, %v7360_v6 }
 0x152   :  { %v7371_v14 = vadd.f32 %v934_v8, %v726_v12  ;;  %v7373_v56 = vpop.f32.mrf.mxu1  ;;  %v624_v8 = vadd.f32 %v7271_v3, %v442_v57  ;;  %v449_v45 = vadd.f32 %v7012_v0, %v206_v15  ;;  %v818_v16 = vadd.f32 %v7269_v50, %v622_v33 }
 0x153   :  { %v733_v38 = vpop.f32.mrf.mxu0  ;;  %v228_v3 = vadd.f32 %v7082_v30, %v7360_v6  ;;  %v261_v15 = vadd.f32 %v7174_v37, %v7360_v6  ;;  %v827_v33 = vadd.f32 %v7277_v13, %v630_v49  ;;  %v477_v13 = vadd.f32 %v7160_v10, %v250_v26 }
 0x154   :  { %10994 = vst [vmem:[#allocation162_spill] sm:$0xff] %v7371_v14  ;;  %v734_v42 = vadd.f32 %v733_v38, %v7256_v36  ;;  %v943_v55 = vpop.f32.mrf.mxu1  ;;  %v820_v0 = vadd.f32 %v7273_v31, %v624_v8  ;;  %v632_v50 = vadd.f32 %v7279_v43, %v449_v45  ;;  %v272_v8 = vadd.f32 %v7195_v41, %v7360_v6 }
 0x155   :  { %v7376_v2 = vpop.f32.mrf.mxu0  ;;  %v463_v31 = vadd.f32 %v7094_v22, %v228_v3  ;;  %v7420_v49 = vadd.f32 %v7186_v32, %v261_v15 }
 0x156   :  { %v7383_v21 = vadd.f32 %v943_v55, %v734_v42  ;;  %v7385_v23 = vpop.f32.mrf.mxu1  ;;  %v217_v42 = vadd.f32 %v7044_v34, %v7360_v6  ;;  %v829_v58 = vadd.f32 %v7281_v35, %v632_v50  ;;  %v664_v50 = vadd.f32 %v7305_v48, %v477_v13 }
 0x157   :  { %v741_v12 = vpop.f32.mrf.mxu0  ;;  %v648_v10 = vadd.f32 %v7291_v59, %v463_v31 }
 0x158   :  { %v742_v38 = vadd.f32 %v741_v12, %v7263_v9  ;;  %v952_v36 = vpop.f32.mrf.mxu1  ;;  %v239_v9 = vadd.f32 %v7117_v20, %v7360_v6  ;;  %v456_v20 = vadd.f32 %v7055_v7, %v217_v42  ;;  %v283_v7 = vadd.f32 %v7207_v51, %v7360_v6 }
 0x159   :  { %v7389_v14 = vpop.f32.mrf.mxu0 }
 0x15a   :  { %v7395_v61 = vadd.f32 %v952_v36, %v742_v38  ;;  %v7397_v17 = vpop.f32.mrf.mxu1  ;;  %v470_v43 = vadd.f32 %v7126_v18, %v239_v9  ;;  %v640_v18 = vadd.f32 %v7284_v19, %v456_v20 }
 0x15b   :  { %v1030_v57 = vpop.f32.mrf.mxu0 }
 0x15c   :  { %v1031_v55 = vadd.f32 %v1030_v57, %v818_v16  ;;  %v1209_v52 = vpop.f32.mrf.mxu1  ;;  %v656_v32 = vadd.f32 %v7298_v29, %v470_v43  ;;  %v838_v29 = vadd.f32 %v7288_v5, %v640_v18 }
 0x15d   :  { %v1032_v34 = vpop.f32.mrf.mxu0 }
 0x15e   :  { %v1210_v30 = vadd.f32 %v1209_v52, %v1031_v55  ;;  %v1033_v12 = vadd.f32 %v1032_v34, %v820_v0  ;;  %v1211_v38 = vpop.f32.mrf.mxu1  ;;  %v7428_v0 = vadd.f32 %v7200_v28, %v272_v8  ;;  %v7439_v34 = vadd.f32 %v7212_v25, %v283_v7  ;;  %v11001_v7 = vld [vmem:[#allocation8_spill] sm:$0xff] }
 0x15f   :  { %v1037_v36 = vpop.f32.mrf.mxu0  ;;  %v7443_v28 = vadd.f32 %v7218_v44, %v7360_v6  ;;  %v847_v25 = vadd.f32 %v7295_v53, %v648_v10  ;;  %v856_v44 = vadd.f32 %v7302_v63, %v656_v32 }
 0x160   :  { %v1319_v45 = vmax.f32 %v1210_v30, 0.0  ;;  %v1212_v37 = vadd.f32 %v1211_v38, %v1033_v12  ;;  %v1038_v16 = vadd.f32 %v1037_v36, %v827_v33  ;;  %v1216_v57 = vpop.f32.mrf.mxu1 }
 0x161   :  { %v1039_v22 = vpop.f32.mrf.mxu0 }
 0x162   :  { %v7425_v42 = vand.u32 4294901760, %v1319_v45  ;;  %v1320_v41 = vmax.f32 %v1212_v37, 0.0  ;;  %v1217_v3 = vadd.f32 %v1216_v57, %v1038_v16  ;;  %v1040_v35 = vadd.f32 %v1039_v22, %v829_v58  ;;  %v1218_v9 = vpop.f32.mrf.mxu1  ;;  %v10999_v58 = vld [vmem:[#allocation147_spill] sm:$0xff]  ;;  %v11000_v16 = vld [vmem:[#allocation6_spill] sm:$0xff] }
 0x163   :  { %v1044_v55 = vpop.f32.mrf.mxu0 }
 0x164   :  { %10995 = vst [vmem:[#allocation163_spill] sm:$0xff] %v7425_v42  ;;  %v7434_v51 = vsub.f32 %v1319_v45, %v7425_v42  ;;  %v7436_v19 = vand.u32 4294901760, %v1320_v41  ;;  %v1321_v52 = vmax.f32 %v1217_v3, 0.0  ;;  %v1219_v26 = vadd.f32 %v1218_v9, %v1040_v35  ;;  %v1223_v15 = vpop.f32.mrf.mxu1  ;;  %v11002_v35 = vld [vmem:[#allocation10_spill] sm:$0xff] }
 0x165   :  { %v1045_v48 = vadd.f32 %v1044_v55, %v7286_v62  ;;  %v1046_v59 = vpop.f32.mrf.mxu0  ;;  %v7458_v62 = vadd.f32 %v7309_v46, %v664_v50  ;;  %v11004_v50 = vld [vmem:[#allocation12_spill] sm:$0xff] }
 0x166   :  { %10996 = vst [vmem:[#allocation164_spill] sm:$0xff] %v7436_v19  ;;  %v10488_v33 = vand.u32 4294901760, %v7434_v51  ;;  %v7449_v30 = vsub.f32 %v1320_v41, %v7436_v19  ;;  %v7451_v12 = vand.u32 4294901760, %v1321_v52  ;;  %v1322_v38 = vmax.f32 %v1219_v26, 0.0  ;;  %v1225_v20 = vpop.f32.mrf.mxu1  ;;  %2197 = vmatprep.mubr.f32.mxu1 %v7436_v19 }
 0x167   :  { %v1224_v31 = vadd.f32 %v1223_v15, %v1045_v48  ;;  %v1047_v5 = vadd.f32 %v1046_v59, %v838_v29  ;;  %v1051_v43 = vpop.f32.mrf.mxu0  ;;  %2199 = vmatmul.mubr.f32.vlgmr.msra.gmra.mxu1 %v7425_v42  ;;  %v11005_v29 = vld [vmem:[#allocation148_spill] sm:$0xff] }
 0x168   :  { %10997 = vst [vmem:[#allocation165_spill] sm:$0xff] %v7451_v12  ;;  %v7461_v8 = vsub.f32 %v1321_v52, %v7451_v12  ;;  %v7463_v36 = vand.u32 4294901760, %v1322_v38  ;;  %v1052_v45 = vadd.f32 %v1051_v43, %v10999_v58  ;;  %v1230_v37 = vpop.f32.mrf.mxu1  ;;  %2681 = vmatpush1.msra.mxu1 %v11000_v16  ;;  %v1564_v53 = vsub.f32 %v7434_v51, %v10488_v33  ;;  %v11008_v58 = vld [vmem:[#allocation16_spill] sm:$0xff] }
 0x169   :  { %v1323_v63 = vmax.f32 %v1224_v31, 0.0  ;;  %v1226_v57 = vadd.f32 %v1225_v20, %v1047_v5  ;;  %v1053_v13 = vpop.f32.mrf.mxu0  ;;  %2683 = vmatprep.subr.mxu1 %v11001_v7  ;;  %v10489_v46 = vand.u32 4294901760, %v7449_v30  ;;  %v11019_v33 = vld [vmem:[#allocation24_spill] sm:$0xff] }
 0x16a   :  { %10998 = vst [vmem:[#allocation166_spill] sm:$0xff] %v7463_v36  ;;  %v7473_v18 = vsub.f32 %v1322_v38, %v7463_v36  ;;  %v7475_v22 = vadd.f32 %v1230_v37, %v1052_v45  ;;  %v1054_v41 = vadd.f32 %v1053_v13, %v847_v25  ;;  %v1232_v3 = vpop.f32.mrf.mxu1  ;;  %2205 = vmatprep.mubr.f32.mxu1 %v7463_v36  ;;  %v10486_v52 = vand.u32 4294901760, %v7461_v8  ;;  %v11006_v38 = vld [vmem:[#allocation14_spill] sm:$0xff] }
 0x16b   :  { %2685 = vmatpush1.msra.mxu1 %v11002_v35  ;;  %v7479_v9 = vand.u32 4294901760, %v1323_v63  ;;  %v1324_v10 = vmax.f32 %v1226_v57, 0.0  ;;  %v1058_v32 = vpop.f32.mrf.mxu0  ;;  %v1558_v55 = vsub.f32 %v7449_v30, %v10489_v46  ;;  %v672_v25 = vadd.f32 %v7312_v27, %v7420_v49  ;;  %v11015_v46 = vld [vmem:[#allocation151_spill] sm:$0xff]  ;;  %v11026_v36 = vld [vmem:[#allocation150_spill] sm:$0xff] }
 0x16c   :  { %2207 = vmatmul.mubr.f32.gmra.mxu1 %v7451_v12  ;;  %2687 = vmatprep.subr.mxu1 %v11004_v50  ;;  %v1325_v26 = vmax.f32 %v7475_v22, 0.0  ;;  %v1233_v15 = vadd.f32 %v1232_v3, %v1054_v41  ;;  %v1059_v48 = vadd.f32 %v1058_v32, %v11005_v29  ;;  %v1237_v59 = vpop.f32.mrf.mxu1  ;;  %v10487_v20 = vand.u32 4294901760, %v7473_v18  ;;  %v11009_v3 = vld [vmem:[#allocation18_spill] sm:$0xff] }
 0x16d   :  { %11003 = vst [vmem:[#allocation147_spill] sm:$0xff] %v7479_v9  ;;  %2689 = vmatpush1.msra.mxu1 %v11006_v38  ;;  %v7494_v31 = vsub.f32 %v1323_v63, %v7479_v9  ;;  %v7496_v5 = vand.u32 4294901760, %v1324_v10  ;;  %v1060_v43 = vpop.f32.mrf.mxu0  ;;  %v1559_v45 = vand.u32 4294901760, %v1558_v55  ;;  %v1565_v37 = vand.u32 4294901760, %v1564_v53 }
 0x16e   :  { %2691 = vmatprep.subr.mxu1 %v11008_v58  ;;  %v1326_v57 = vmax.f32 %v1233_v15, 0.0  ;;  %v7499_v13 = vadd.f32 %v1237_v59, %v1059_v48  ;;  %v1061_v22 = vadd.f32 %v1060_v43, %v856_v44  ;;  %v1239_v41 = vpop.f32.mrf.mxu1  ;;  %v1574_v49 = vsub.f32 %v7473_v18, %v10487_v20  ;;  %v11012_v48 = vld [vmem:[#allocation149_spill] sm:$0xff]  ;;  %v11017_v15 = vld [vmem:[#allocation22_spill] sm:$0xff] }
 0x16f   :  { %11007 = vst [vmem:[#allocation6_spill] sm:$0xff] %v7496_v5  ;;  %2693 = vmatpush1.msra.mxu1 %v11009_v3  ;;  %v7503_v32 = vsub.f32 %v1324_v10, %v7496_v5  ;;  %1560 = vmatprep.mubr.f32.mxu0 %v1559_v45  ;;  %v1065_v27 = vpop.f32.mrf.mxu0  ;;  %v1580_v53 = vsub.f32 %v7461_v8, %v10486_v52  ;;  %v7512_v63 = vand.u32 4294901760, %v1325_v26  ;;  %v11013_v43 = vld [vmem:[#allocation9_spill] sm:$0xff] }
 0x170   :  { %2213 = vmatprep.mubr.f32.mxu1 %v7496_v5  ;;  %v7514_v44 = vand.u32 4294901760, %v1326_v57  ;;  %v1240_v55 = vadd.f32 %v1239_v41, %v1061_v22  ;;  %1566 = vmatmul.mubr.f32.vlgmr.msra.gmra.mxu0 %v1565_v37  ;;  %v1244_v10 = vpop.f32.mrf.mxu1  ;;  %v1327_v29 = vmax.f32 %v7499_v13, 0.0  ;;  %v1066_v59 = vadd.f32 %v1065_v27, %v11012_v48  ;;  %v11014_v45 = vld [vmem:[#allocation21_spill] sm:$0xff] }
 0x171   :  { %11010 = vst [vmem:[#allocation8_spill] sm:$0xff] %v7512_v63  ;;  %2215 = vmatmul.mubr.f32.gmra.mxu1 %v7479_v9  ;;  %2330 = vmatpush1.msra.mxu0 %v11013_v43  ;;  %v1067_v52 = vpop.f32.mrf.mxu0  ;;  %v1575_v20 = vand.u32 4294901760, %v1574_v49  ;;  %v874_v22 = vadd.f32 %v11015_v46, %v672_v25  ;;  %v11016_v9 = vld [vmem:[#allocation11_spill] sm:$0xff]  ;;  %v680_v48 = vadd.f32 %v7319_v24, %v7428_v0  ;;  %v11018_v49 = vld [vmem:[#allocation13_spill] sm:$0xff]  ;;  %v11020_v25 = vand.u32 4294901760, %v7503_v32 }
 0x172   :  { %11011 = vst [vmem:[#allocation10_spill] sm:$0xff] %v7514_v44  ;;  %2695 = vmatprep.subr.mxu1 %v11014_v45  ;;  %v7525_v37 = vsub.f32 %v1326_v57, %v7514_v44  ;;  %v1328_v41 = vmax.f32 %v1240_v55, 0.0  ;;  %2333 = vmatprep.subr.mxu0 %v11016_v9  ;;  %v1068_v13 = vadd.f32 %v1067_v52, %v7458_v62  ;;  %v1246_v27 = vpop.f32.mrf.mxu1  ;;  %v1581_v24 = vand.u32 4294901760, %v1580_v53 }
 0x173   :  { %2697 = vmatpush1.msra.mxu1 %v11017_v15  ;;  %v7532_v5 = vadd.f32 %v1244_v10, %v1066_v59  ;;  %2336 = vmatpush1.msra.mxu0 %v11018_v49  ;;  %v1072_v46 = vpop.f32.mrf.mxu0  ;;  %v1590_v57 = vsub.f32 %v7503_v32, %v11020_v25  ;;  %v7540_v55 = vsub.f32 %v1325_v26, %v7512_v63  ;;  %v7545_v52 = vand.u32 4294901760, %v1327_v29  ;;  %v11024_v10 = vld [vmem:[#allocation15_spill] sm:$0xff]  ;;  %v11025_v59 = vld [vmem:[#allocation26_spill] sm:$0xff] }
 0x174   :  { %2699 = vmatprep.subr.mxu1 %v11019_v33  ;;  %v7542_v12 = vand.u32 4294901760, %v1328_v41  ;;  %v1247_v62 = vadd.f32 %v1246_v27, %v1068_v13  ;;  %1576 = vmatprep.mubr.f32.mxu0 %v1575_v20  ;;  %v1251_v0 = vpop.f32.mrf.mxu1  ;;  %v1073_v42 = vadd.f32 %v1072_v46, %v11026_v36  ;;  %v11027_v26 = vand.u32 4294901760, %v7494_v31 }
 0x175   :  { %11021 = vst [vmem:[#allocation12_spill] sm:$0xff] %v7540_v55  ;;  %2221 = vmatprep.mubr.f32.mxu1 %v7514_v44  ;;  %11023 = vst [vmem:[#allocation14_spill] sm:$0xff] %v7545_v52  ;;  %2339 = vmatprep.subr.mxu0 %v11024_v10  ;;  %v1074_v25 = vpop.f32.mrf.mxu0  ;;  %v1591_v10 = vand.u32 4294901760, %v1590_v57  ;;  %v688_v36 = vadd.f32 %v7326_v4, %v7439_v34  ;;  %v1329_v46 = vmax.f32 %v7532_v5, 0.0  ;;  %v11034_v57 = vand.u32 4294901760, %v7525_v37  ;;  %v11035_v5 = vld [vmem:[#allocation153_spill] sm:$0xff] }
 0x176   :  { %11022 = vst [vmem:[#allocation148_spill] sm:$0xff] %v7542_v12  ;;  %2701 = vmatpush1.msra.mxu1 %v11025_v59  ;;  %v1596_v19 = vsub.f32 %v7494_v31, %v11027_v26  ;;  %v7555_v20 = vsub.f32 %v1328_v41, %v7542_v12  ;;  %v1330_v53 = vmax.f32 %v1247_v62, 0.0  ;;  %1582 = vmatmul.mubr.f32.gmra.mxu0 %v1581_v24  ;;  %v1253_v44 = vpop.f32.mrf.mxu1  ;;  %v11029_v59 = vld [vmem:[#allocation17_spill] sm:$0xff]  ;;  %v11030_v26 = vld [vmem:[#allocation28_spill] sm:$0xff]  ;;  %v11032_v41 = vld [vmem:[#allocation19_spill] sm:$0xff] }
 0x177   :  { %2223 = vmatmul.mubr.f32.gmra.mxu1 %v7512_v63  ;;  %v1075_v27 = vadd.f32 %v1074_v25, %v874_v22  ;;  %2342 = vmatpush1.msra.mxu0 %v11029_v59  ;;  %v1079_v13 = vpop.f32.mrf.mxu0  ;;  %v11033_v62 = vld [vmem:[#allocation30_spill] sm:$0xff]  ;;  %v1606_v4 = vsub.f32 %v7525_v37, %v11034_v57  ;;  %v883_v25 = vadd.f32 %v11035_v5, %v680_v48  ;;  %v11037_v59 = vld [vmem:[#allocation20_spill] sm:$0xff]  ;;  %v7588_v5 = vand.u32 4294901760, %v1329_v46  ;;  %v11042_v34 = vld [vmem:[#allocation23_spill] sm:$0xff] }
 0x178   :  { %11028 = vst [vmem:[#allocation16_spill] sm:$0xff] %v7555_v20  ;;  %2703 = vmatprep.subr.mxu1 %v11030_v26  ;;  %v7563_v33 = vand.u32 4294901760, %v1330_v53  ;;  %2345 = vmatprep.subr.mxu0 %v11032_v41  ;;  %v1258_v22 = vpop.f32.mrf.mxu1  ;;  %v7575_v63 = vsub.f32 %v1327_v29, %v7545_v52  ;;  %v7577_v26 = vadd.f32 %v1251_v0, %v1073_v42  ;;  %v11038_v41 = vld [vmem:[#allocation32_spill] sm:$0xff]  ;;  %v1597_v57 = vand.u32 4294901760, %v1596_v19  ;;  %v11040_v42 = vld [vmem:[#allocation135_spill] sm:$0xff] }
 0x179   :  { %2705 = vmatpush1.msra.mxu1 %v11033_v62  ;;  %v7567_v24 = vadd.f32 %v1253_v44, %v1075_v27  ;;  %2348 = vmatpush1.msra.mxu0 %v11037_v59  ;;  %v1081_v44 = vpop.f32.mrf.mxu0  ;;  %v11039_v27 = vld [vmem:[#allocation134_spill] sm:$0xff]  ;;  %v305_v0 = vadd.f32 %v11040_v42, %v7360_v6  ;;  %11041 = vst [vmem:[#allocation9_spill] sm:$0xff] %v7588_v5  ;;  %v11044_v59 = vld [vmem:[#allocation152_spill] sm:$0xff]  ;;  %v1607_v29 = vand.u32 4294901760, %v1606_v4  ;;  %v11047_v42 = vand.u32 4294901760, %v7540_v55  ;;  %v11051_v4 = vld [vmem:[#allocation27_spill] sm:$0xff] }
 0x17a   :  { %11031 = vst [vmem:[#allocation18_spill] sm:$0xff] %v7563_v33  ;;  %11036 = vst [vmem:[#allocation149_spill] sm:$0xff] %v7575_v63  ;;  %2707 = vmatprep.subr.mxu1 %v11038_v41  ;;  %v505_v62 = vadd.f32 %v11039_v27, %v7443_v28  ;;  %1592 = vmatprep.mubr.f32.mxu0 %v1591_v10  ;;  %v1260_v48 = vpop.f32.mrf.mxu1  ;;  %v11043_v41 = vld [vmem:[#allocation34_spill] sm:$0xff]  ;;  %v1080_v28 = vadd.f32 %v1079_v13, %v11044_v59  ;;  %v11045_v10 = vld [vmem:[#allocation155_spill] sm:$0xff]  ;;  %v1331_v59 = vmax.f32 %v7577_v26, 0.0 }
 0x17b   :  { %v1332_v49 = vmax.f32 %v7567_v24, 0.0  ;;  %2229 = vmatprep.mubr.f32.mxu1 %v7542_v12  ;;  %2351 = vmatprep.subr.mxu0 %v11042_v34  ;;  %v1082_v27 = vadd.f32 %v1081_v44, %v883_v25  ;;  %v1086_v24 = vpop.f32.mrf.mxu0  ;;  %v892_v15 = vadd.f32 %v11045_v10, %v688_v36  ;;  %v7595_v19 = vsub.f32 %v1330_v53, %v7563_v33  ;;  %v11048_v13 = vld [vmem:[#allocation25_spill] sm:$0xff]  ;;  %v11052_v10 = vld [vmem:[#allocation38_spill] sm:$0xff]  ;;  %v11056_v44 = vld [vmem:[#allocation40_spill] sm:$0xff] }
 0x17c   :  { %2709 = vmatpush1.msra.mxu1 %v11043_v41  ;;  %1598 = vmatmul.mubr.f32.gmra.mxu0 %v1597_v57  ;;  %v1612_v12 = vsub.f32 %v7540_v55, %v11047_v42  ;;  %v1265_v34 = vpop.f32.mrf.mxu1  ;;  %v696_v41 = vadd.f32 %v7333_v47, %v505_v62  ;;  %v11049_v25 = vld [vmem:[#allocation37_spill] sm:$0xff]  ;;  %v11053_v47 = vand.u32 4294901760, %v7555_v20  ;;  %v7616_v62 = vsub.f32 %v1329_v46, %v7588_v5  ;;  %v11063_v46 = vld [vmem:[#allocation154_spill] sm:$0xff] }
 0x17d   :  { %11046 = vst [vmem:[#allocation21_spill] sm:$0xff] %v7595_v19  ;;  %2231 = vmatmul.mubr.f32.gmra.mxu1 %v7545_v52  ;;  %2354 = vmatpush1.msra.mxu0 %v11048_v13  ;;  %v7605_v36 = vadd.f32 %v1260_v48, %v1082_v27  ;;  %v1088_v53 = vpop.f32.mrf.mxu0  ;;  %v7608_v57 = vand.u32 4294901760, %v1332_v49  ;;  %v7618_v48 = vadd.f32 %v1258_v22, %v1080_v28  ;;  %v11055_v27 = vld [vmem:[#allocation29_spill] sm:$0xff]  ;;  %v11057_v13 = vld [vmem:[#allocation136_spill] sm:$0xff] }
 0x17e   :  { %2711 = vmatprep.subr.mxu1 %v11049_v25  ;;  %2357 = vmatprep.subr.mxu0 %v11051_v4  ;;  %v1089_v42 = vadd.f32 %v1088_v53, %v892_v15  ;;  %v1267_v52 = vpop.f32.mrf.mxu1  ;;  %v1622_v26 = vsub.f32 %v7555_v20, %v11053_v47  ;;  %11054 = vst [vmem:[#allocation150_spill] sm:$0xff] %v7616_v62  ;;  %v1613_v15 = vand.u32 4294901760, %v1612_v12  ;;  %v11058_v22 = vld [vmem:[#allocation137_spill] sm:$0xff] }
 0x17f   :  { %11050 = vst [vmem:[#allocation151_spill] sm:$0xff] %v7608_v57  ;;  %2713 = vmatpush1.msra.mxu1 %v11052_v10  ;;  %2360 = vmatpush1.msra.mxu0 %v11055_v27  ;;  %v1093_v25 = vpop.f32.mrf.mxu0  ;;  %v512_v4 = vadd.f32 %v11057_v13, %v305_v0  ;;  %v1334_v10 = vmax.f32 %v7605_v36, 0.0  ;;  %v316_v28 = vadd.f32 %v11058_v22, %v7360_v6  ;;  %v7631_v27 = vand.u32 4294901760, %v1331_v59  ;;  %v11061_v0 = vld [vmem:[#allocation42_spill] sm:$0xff]  ;;  %v11065_v55 = vld [vmem:[#allocation33_spill] sm:$0xff] }
 0x180   :  { %2715 = vmatprep.subr.mxu1 %v11056_v44  ;;  %1608 = vmatprep.mubr.f32.mxu0 %v1607_v29  ;;  %v7625_v53 = vpop.f32.mrf.mxu1  ;;  %v901_v47 = vadd.f32 %v7337_v39, %v696_v41  ;;  %v11060_v44 = vld [vmem:[#allocation31_spill] sm:$0xff]  ;;  %v11062_v29 = vand.u32 4294901760, %v7575_v63  ;;  %v7639_v36 = vsub.f32 %v1332_v49, %v7608_v57  ;;  %v7643_v39 = vadd.f32 %v1267_v52, %v1089_v42  ;;  %v11073_v49 = vld [vmem:[#allocation48_spill] sm:$0xff] }
 0x181   :  { %2237 = vmatprep.mubr.f32.mxu1 %v7563_v33  ;;  %11059 = vst [vmem:[#allocation153_spill] sm:$0xff] %v7631_v27  ;;  %2363 = vmatprep.subr.mxu0 %v11060_v44  ;;  %v1095_v12 = vpop.f32.mrf.mxu0  ;;  %v1087_v33 = vadd.f32 %v1086_v24, %v11063_v46  ;;  %v1623_v41 = vand.u32 4294901760, %v1622_v26  ;;  %v11064_v44 = vld [vmem:[#allocation157_spill] sm:$0xff]  ;;  %v7650_v9 = vand.u32 4294901760, %v1334_v10  ;;  %v11068_v24 = vld [vmem:[#allocation35_spill] sm:$0xff]  ;;  %v11070_v42 = vand.u32 4294901760, %v7595_v19 }
 0x182   :  { %2717 = vmatpush1.msra.mxu1 %v11061_v0  ;;  %v1628_v13 = vsub.f32 %v7575_v63, %v11062_v29  ;;  %1614 = vmatmul.mubr.f32.gmra.mxu0 %v1613_v15  ;;  %v1274_v22 = vpop.f32.mrf.mxu1  ;;  %v704_v20 = vadd.f32 %v11064_v44, %v512_v4  ;;  %v1333_v0 = vmax.f32 %v7618_v48, 0.0  ;;  %v11066_v29 = vld [vmem:[#allocation44_spill] sm:$0xff]  ;;  %v11069_v15 = vld [vmem:[#allocation46_spill] sm:$0xff]  ;;  %v1096_v52 = vadd.f32 %v1095_v12, %v901_v47 }
 0x183   :  { %2239 = vmatmul.mubr.f32.gmra.mxu1 %v7588_v5  ;;  %2366 = vmatpush1.msra.mxu0 %v11065_v55  ;;  %v1100_v63 = vpop.f32.mrf.mxu0  ;;  %11067 = vst [vmem:[#allocation134_spill] sm:$0xff] %v7650_v9  ;;  %v1638_v44 = vsub.f32 %v7595_v19, %v11070_v42  ;;  %v11071_v26 = vld [vmem:[#allocation138_spill] sm:$0xff]  ;;  %v7661_v46 = vsub.f32 %v1331_v59, %v7631_v27  ;;  %v11072_v5 = vld [vmem:[#allocation36_spill] sm:$0xff]  ;;  %v1336_v47 = vmax.f32 %v7643_v39, 0.0  ;;  %v11089_v19 = vld [vmem:[#allocation57_spill] sm:$0xff] }
 0x184   :  { %2719 = vmatprep.subr.mxu1 %v11066_v29  ;;  %2369 = vmatprep.subr.mxu0 %v11068_v24  ;;  %v7657_v4 = vpop.f32.mrf.mxu1  ;;  %v519_v48 = vadd.f32 %v11071_v26, %v316_v28  ;;  %v7665_v24 = vadd.f32 %v1265_v34, %v1087_v33  ;;  %v1629_v12 = vand.u32 4294901760, %v1628_v13  ;;  %v11074_v28 = vld [vmem:[#allocation139_spill] sm:$0xff]  ;;  %v910_v26 = vadd.f32 %v7344_v60, %v704_v20  ;;  %v11077_v33 = vld [vmem:[#allocation50_spill] sm:$0xff] }
 0x185   :  { %2721 = vmatpush1.msra.mxu1 %v11069_v15  ;;  %2372 = vmatpush1.msra.mxu0 %v11072_v5  ;;  %v1102_v29 = vpop.f32.mrf.mxu0  ;;  %v327_v59 = vadd.f32 %v11074_v28, %v7360_v6  ;;  %v7673_v5 = vand.u32 4294901760, %v1333_v0  ;;  %v11078_v34 = vand.u32 4294901760, %v7616_v62  ;;  %v7683_v13 = vsub.f32 %v1334_v10, %v7650_v9  ;;  %v11079_v15 = vld [vmem:[#allocation156_spill] sm:$0xff] }
 0x186   :  { %2723 = vmatprep.subr.mxu1 %v11073_v49  ;;  %1624 = vmatprep.mubr.f32.mxu0 %v1623_v41  ;;  %v1281_v42 = vpop.f32.mrf.mxu1  ;;  %v11076_v49 = vld [vmem:[#allocation39_spill] sm:$0xff]  ;;  %v7687_v60 = vadd.f32 %v1274_v22, %v1096_v52  ;;  %v1639_v20 = vand.u32 4294901760, %v1638_v44  ;;  %v11084_v22 = vld [vmem:[#allocation54_spill] sm:$0xff]  ;;  %v1103_v52 = vadd.f32 %v1102_v29, %v910_v26  ;;  %v11085_v44 = vand.u32 4294901760, %v7639_v36 }
 0x187   :  { %2245 = vmatprep.mubr.f32.mxu1 %v7608_v57  ;;  %11075 = vst [vmem:[#allocation135_spill] sm:$0xff] %v7673_v5  ;;  %2375 = vmatprep.subr.mxu0 %v11076_v49  ;;  %v1644_v39 = vsub.f32 %v7616_v62, %v11078_v34  ;;  %v7680_v41 = vpop.f32.mrf.mxu0  ;;  %v1094_v57 = vadd.f32 %v1093_v25, %v11079_v15  ;;  %v11080_v49 = vld [vmem:[#allocation41_spill] sm:$0xff]  ;;  %v1335_v62 = vmax.f32 %v7665_v24, 0.0  ;;  %v7696_v25 = vand.u32 4294901760, %v1336_v47  ;;  %v11083_v15 = vld [vmem:[#allocation43_spill] sm:$0xff] }
 0x188   :  { %2725 = vmatpush1.msra.mxu1 %v11077_v33  ;;  %1630 = vmatmul.mubr.f32.gmra.mxu0 %v1629_v12  ;;  %v7689_v28 = vpop.f32.mrf.mxu1  ;;  %v712_v33 = vadd.f32 %v7347_v40, %v519_v48  ;;  %v11081_v34 = vld [vmem:[#allocation53_spill] sm:$0xff]  ;;  %v1654_v40 = vsub.f32 %v7639_v36, %v11085_v44  ;;  %v11086_v12 = vld [vmem:[#allocation140_spill] sm:$0xff]  ;;  %v1338_v26 = vmax.f32 %v7687_v60, 0.0  ;;  %v11090_v44 = vld [vmem:[#allocation47_spill] sm:$0xff] }
 0x189   :  { %2247 = vmatmul.mubr.f32.gmra.mxu1 %v7631_v27  ;;  %2378 = vmatpush1.msra.mxu0 %v11080_v49  ;;  %v1109_v10 = vpop.f32.mrf.mxu0  ;;  %11082 = vst [vmem:[#allocation152_spill] sm:$0xff] %v7696_v25  ;;  %v526_v27 = vadd.f32 %v11086_v12, %v327_v59  ;;  %v7707_v49 = vsub.f32 %v1333_v0, %v7673_v5  ;;  %v11088_v24 = vld [vmem:[#allocation45_spill] sm:$0xff]  ;;  %v1645_v59 = vand.u32 4294901760, %v1644_v39  ;;  %v11091_v12 = vld [vmem:[#allocation59_spill] sm:$0xff] }
 0x18a   :  { %2727 = vmatprep.subr.mxu1 %v11081_v34  ;;  %2381 = vmatprep.subr.mxu0 %v11083_v15  ;;  %v1288_v48 = vpop.f32.mrf.mxu1  ;;  %v11087_v34 = vld [vmem:[#allocation141_spill] sm:$0xff]  ;;  %v7714_v29 = vadd.f32 %v7625_v53, %v1094_v57  ;;  %v919_v0 = vadd.f32 %v7352_v1, %v712_v33  ;;  %v7731_v39 = vsub.f32 %v1336_v47, %v7696_v25  ;;  %v1655_v33 = vand.u32 4294901760, %v1654_v40  ;;  %v11099_v47 = vld [vmem:[#allocation51_spill] sm:$0xff] }
 0x18b   :  { %2729 = vmatpush1.msra.mxu1 %v11084_v22  ;;  %v338_v55 = vadd.f32 %v11087_v34, %v7360_v6  ;;  %2384 = vmatpush1.msra.mxu0 %v11088_v24  ;;  %v7711_v15 = vpop.f32.mrf.mxu0  ;;  %v11093_v22 = vand.u32 4294901760, %v7661_v46  ;;  %v7734_v1 = vadd.f32 %v1281_v42, %v1103_v52  ;;  %v11095_v34 = vld [vmem:[#allocation160_spill] sm:$0xff]  ;;  %v11101_v42 = vand.u32 4294901760, %v7683_v13 }
 0x18c   :  { %2731 = vmatprep.subr.mxu1 %v11089_v19  ;;  %1640 = vmatprep.mubr.f32.mxu0 %v1639_v20  ;;  %v11092_v19 = vld [vmem:[#allocation158_spill] sm:$0xff]  ;;  %v7726_v53 = vpop.f32.mrf.mxu1  ;;  %v7728_v20 = vand.u32 4294901760, %v1335_v62 }
 0x18d   :  { %2253 = vmatprep.mubr.f32.mxu1 %v7650_v9  ;;  %2387 = vmatprep.subr.mxu0 %v11090_v44  ;;  %v1101_v24 = vadd.f32 %v1100_v63, %v11092_v19  ;;  %v1660_v57 = vsub.f32 %v7661_v46, %v11093_v22  ;;  %v1116_v60 = vpop.f32.mrf.mxu0  ;;  %v720_v63 = vadd.f32 %v11095_v34, %v526_v27  ;;  %v11096_v19 = vld [vmem:[#allocation49_spill] sm:$0xff]  ;;  %v7741_v44 = vand.u32 4294901760, %v1338_v26  ;;  %v11102_v27 = vld [vmem:[#allocation142_spill] sm:$0xff] }
 0x18e   :  { %2733 = vmatpush1.msra.mxu1 %v11091_v12  ;;  %11094 = vst [vmem:[#allocation155_spill] sm:$0xff] %v7728_v20  ;;  %1646 = vmatmul.mubr.f32.gmra.mxu0 %v1645_v59  ;;  %v11097_v9 = vld [vmem:[#allocation61_spill] sm:$0xff]  ;;  %v1337_v12 = vmax.f32 %v7714_v29, 0.0  ;;  %v11100_v59 = vld [vmem:[#allocation63_spill] sm:$0xff]  ;;  %v1670_v52 = vsub.f32 %v7683_v13, %v11101_v42  ;;  %v533_v40 = vadd.f32 %v11102_v27, %v338_v55  ;;  %v1295_v29 = vpop.f32.mrf.mxu1 }
 0x18f   :  { %2255 = vmatmul.mubr.f32.gmra.mxu1 %v7673_v5  ;;  %2390 = vmatpush1.msra.mxu0 %v11096_v19  ;;  %11098 = vst [vmem:[#allocation136_spill] sm:$0xff] %v7741_v44  ;;  %v1110_v5 = vadd.f32 %v1109_v10, %v919_v0  ;;  %v7750_v34 = vadd.f32 %v7657_v4, %v1101_v24  ;;  %v11104_v22 = vld [vmem:[#allocation65_spill] sm:$0xff]  ;;  %v7754_v19 = vpop.f32.mrf.mxu0  ;;  %v1340_v10 = vmax.f32 %v7734_v1, 0.0  ;;  %v1661_v0 = vand.u32 4294901760, %v1660_v57  ;;  %v11105_v24 = vld [vmem:[#allocation56_spill] sm:$0xff]  ;;  %v11106_v42 = vld [vmem:[#allocation67_spill] sm:$0xff] }
 0x190   :  { %2735 = vmatprep.subr.mxu1 %v11097_v9  ;;  %2393 = vmatprep.subr.mxu0 %v11099_v47  ;;  %v11103_v9 = vld [vmem:[#allocation52_spill] sm:$0xff]  ;;  %v7757_v47 = vsub.f32 %v1335_v62, %v7728_v20  ;;  %v928_v4 = vadd.f32 %v7364_v54, %v720_v63  ;;  %v11107_v27 = vld [vmem:[#allocation159_spill] sm:$0xff]  ;;  %v11108_v62 = vand.u32 4294901760, %v7707_v49  ;;  %v7770_v1 = vand.u32 4294901760, %v1337_v12 }
 0x191   :  { %2737 = vmatpush1.msra.mxu1 %v11100_v59  ;;  %2396 = vmatpush1.msra.mxu0 %v11103_v9  ;;  %v7776_v54 = vadd.f32 %v1288_v48, %v1110_v5  ;;  %v1671_v57 = vand.u32 4294901760, %v1670_v52  ;;  %v11110_v63 = vld [vmem:[#allocation143_spill] sm:$0xff]  ;;  %v11114_v5 = vld [vmem:[#allocation60_spill] sm:$0xff] }
 0x192   :  { %2739 = vmatprep.subr.mxu1 %v11104_v22  ;;  %1656 = vmatprep.mubr.f32.mxu0 %v1655_v33  ;;  %v1108_v22 = vadd.f32 %v7680_v41, %v11107_v27  ;;  %v1676_v9 = vsub.f32 %v7707_v49, %v11108_v62  ;;  %11109 = vst [vmem:[#allocation137_spill] sm:$0xff] %v7770_v1  ;;  %v1339_v27 = vmax.f32 %v7750_v34, 0.0  ;;  %v11112_v62 = vld [vmem:[#allocation70_spill] sm:$0xff]  ;;  %v11115_v48 = vld [vmem:[#allocation71_spill] sm:$0xff] }
 0x193   :  { %2261 = vmatprep.mubr.f32.mxu1 %v7696_v25  ;;  %2399 = vmatprep.subr.mxu0 %v11105_v24  ;;  %v7773_v33 = vsub.f32 %v1338_v26, %v7741_v44  ;;  %v349_v55 = vadd.f32 %v11110_v63, %v7360_v6  ;;  %v728_v41 = vadd.f32 %v7367_v11, %v533_v40  ;;  %v11111_v25 = vld [vmem:[#allocation58_spill] sm:$0xff]  ;;  %v1123_v26 = vpop.f32.mrf.mxu0  ;;  %v11116_v11 = vand.u32 4294901760, %v7731_v39 }
 0x194   :  { %2741 = vmatpush1.msra.mxu1 %v11106_v42  ;;  %1662 = vmatmul.mubr.f32.gmra.mxu0 %v1661_v0  ;;  %v7784_v42 = vpop.f32.mrf.mxu1  ;;  %v1117_v52 = vadd.f32 %v1116_v60, %v928_v4  ;;  %v7795_v34 = vadd.f32 %v7689_v28, %v1108_v22  ;;  %v11117_v63 = vld [vmem:[#allocation62_spill] sm:$0xff]  ;;  %v7800_v0 = vsub.f32 %v1337_v12, %v7770_v1  ;;  %v1677_v60 = vand.u32 4294901760, %v1676_v9  ;;  %v11123_v12 = vld [vmem:[#allocation161_spill] sm:$0xff] }
 0x195   :  { %2263 = vmatmul.mubr.f32.gmra.mxu1 %v7728_v20  ;;  %2402 = vmatpush1.msra.mxu0 %v11111_v25  ;;  %v7787_v20 = vand.u32 4294901760, %v1340_v10  ;;  %v1686_v40 = vsub.f32 %v7731_v39, %v11116_v11  ;;  %v1342_v25 = vmax.f32 %v7776_v54, 0.0  ;;  %v937_v28 = vadd.f32 %v7373_v56, %v728_v41 }
 0x196   :  { %2743 = vmatprep.subr.mxu1 %v11112_v62  ;;  %2405 = vmatprep.subr.mxu0 %v11114_v5  ;;  %v11118_v62 = vld [vmem:[#allocation73_spill] sm:$0xff]  ;;  %v7807_v22 = vand.u32 4294901760, %v1339_v27  ;;  %v1115_v5 = vadd.f32 %v7711_v15, %v11123_v12  ;;  %v1302_v54 = vpop.f32.mrf.mxu1  ;;  %v11124_v9 = vand.u32 4294901760, %v7757_v47  ;;  %v7822_v56 = vadd.f32 %v1295_v29, %v1117_v52  ;;  %v11130_v29 = vld [vmem:[#allocation79_spill] sm:$0xff] }
 0x197   :  { %11113 = vst [vmem:[#allocation154_spill] sm:$0xff] %v7787_v20  ;;  %2745 = vmatpush2.msra.mxu1 %v11115_v48  ;;  %2408 = vmatpush1.msra.mxu0 %v11117_v63  ;;  %v11119_v48 = vld [vmem:[#allocation144_spill] sm:$0xff]  ;;  %v1687_v41 = vand.u32 4294901760, %v1686_v40  ;;  %v1341_v12 = vmax.f32 %v7795_v34, 0.0  ;;  %v1124_v52 = vadd.f32 %v1123_v26, %v937_v28  ;;  %v11131_v40 = vand.u32 4294901760, %v7773_v33 }
 0x198   :  { %2747 = vmatprep.subr.mxu1 %v11118_v62  ;;  %1672 = vmatprep.mubr.f32.mxu0 %v1671_v57  ;;  %v540_v11 = vadd.f32 %v11119_v48, %v349_v55  ;;  %11120 = vst [vmem:[#allocation157_spill] sm:$0xff] %v7807_v22  ;;  %v11121_v63 = vld [vmem:[#allocation64_spill] sm:$0xff]  ;;  %v11122_v62 = vld [vmem:[#allocation75_spill] sm:$0xff]  ;;  %v7813_v57 = vpop.f32.mrf.mxu0  ;;  %v1692_v4 = vsub.f32 %v7757_v47, %v11124_v9  ;;  %v11125_v48 = vld [vmem:[#allocation145_spill] sm:$0xff]  ;;  %v7831_v9 = vand.u32 4294901760, %v1342_v25 }
 0x199   :  { %2269 = vmatprep.mubr.f32.mxu1 %v7741_v44  ;;  %2411 = vmatprep.subr.mxu0 %v11121_v63  ;;  %v7819_v55 = vsub.f32 %v1340_v10, %v7787_v20  ;;  %v360_v44 = vadd.f32 %v11125_v48, %v7360_v6  ;;  %v11127_v63 = vld [vmem:[#allocation77_spill] sm:$0xff]  ;;  %v1702_v6 = vsub.f32 %v7773_v33, %v11131_v40  ;;  %v7846_v10 = vpop.f32.mrf.mxu1 }
 0x19a   :  { %2749 = vmatpush2.msra.mxu1 %v11122_v62  ;;  %1678 = vmatmul.mubr.f32.gmra.mxu0 %v1677_v60  ;;  %v736_v15 = vadd.f32 %v7376_v2, %v540_v11  ;;  %v11126_v62 = vld [vmem:[#allocation66_spill] sm:$0xff]  ;;  %11128 = vst [vmem:[#allocation138_spill] sm:$0xff] %v7831_v9  ;;  %v11129_v60 = vld [vmem:[#allocation68_spill] sm:$0xff]  ;;  %v7839_v2 = vsub.f32 %v1339_v27, %v7807_v22  ;;  %v11132_v11 = vld [vmem:[#allocation69_spill] sm:$0xff]  ;;  %v1693_v26 = vand.u32 4294901760, %v1692_v4 }
 0x19b   :  { %2271 = vmatmul.mubr.f32.gmra.mxu1 %v7770_v1  ;;  %2414 = vmatpush1.msra.mxu0 %v11126_v62  ;;  %v7842_v34 = vadd.f32 %v7726_v53, %v1115_v5  ;;  %v11133_v48 = vld [vmem:[#allocation81_spill] sm:$0xff]  ;;  %v1130_v1 = vpop.f32.mrf.mxu0  ;;  %v11134_v27 = vld [vmem:[#allocation146_spill] sm:$0xff]  ;;  %v7853_v5 = vand.u32 4294901760, %v1341_v12  ;;  %v7863_v4 = vsub.f32 %v1342_v25, %v7831_v9  ;;  %v11143_v25 = vld [vmem:[#allocation76_spill] sm:$0xff] }
 0x19c   :  { %2751 = vmatprep.subr.mxu1 %v11127_v63  ;;  %2417 = vmatprep.subr.mxu0 %v11129_v60  ;;  %v547_v40 = vadd.f32 %v11134_v27, %v360_v44  ;;  %v946_v53 = vadd.f32 %v7385_v23, %v736_v15  ;;  %v11138_v60 = vld [vmem:[#allocation162_spill] sm:$0xff]  ;;  %v1303_v23 = vadd.f32 %v1302_v54, %v1124_v52  ;;  %v1703_v44 = vand.u32 4294901760, %v1702_v6  ;;  %v11147_v27 = vld [vmem:[#allocation89_spill] sm:$0xff] }
 0x19d   :  { %2753 = vmatpush2.msra.mxu1 %v11130_v29  ;;  %2420 = vmatpush1.msra.mxu0 %v11132_v11  ;;  %v1344_v29 = vmax.f32 %v7822_v56, 0.0  ;;  %11135 = vst [vmem:[#allocation139_spill] sm:$0xff] %v7853_v5  ;;  %v11136_v11 = vld [vmem:[#allocation72_spill] sm:$0xff]  ;;  %v1122_v63 = vadd.f32 %v7754_v19, %v11138_v60  ;;  %v11139_v56 = vand.u32 4294901760, %v7800_v0  ;;  %v1343_v28 = vmax.f32 %v7842_v34, 0.0  ;;  %v11141_v19 = vld [vmem:[#allocation86_spill] sm:$0xff]  ;;  %v1309_v60 = vpop.f32.mrf.mxu1 }
 0x19e   :  { %2755 = vmatprep.subr.mxu1 %v11133_v48  ;;  %1688 = vmatprep.mubr.f32.mxu0 %v1687_v41  ;;  %v11137_v48 = vld [vmem:[#allocation83_spill] sm:$0xff]  ;;  %v744_v15 = vadd.f32 %v7389_v14, %v547_v40  ;;  %v1131_v54 = vadd.f32 %v1130_v1, %v946_v53  ;;  %v11145_v52 = vand.u32 4294901760, %v7819_v55  ;;  %v7879_v6 = vsub.f32 %v1341_v12, %v7853_v5  ;;  %v11146_v40 = vld [vmem:[#allocation78_spill] sm:$0xff] }
 0x19f   :  { %2277 = vmatprep.mubr.f32.mxu1 %v7787_v20  ;;  %2423 = vmatprep.subr.mxu0 %v11136_v11  ;;  %v1708_v41 = vsub.f32 %v7800_v0, %v11139_v56  ;;  %v11140_v20 = vld [vmem:[#allocation74_spill] sm:$0xff]  ;;  %v1135_v56 = vpop.f32.mrf.mxu0  ;;  %v1301_v34 = vadd.f32 %v7784_v42, %v1122_v63  ;;  %v11150_v42 = vld [vmem:[#allocation80_spill] sm:$0xff]  ;;  %v11151_v63 = vld [vmem:[#allocation91_spill] sm:$0xff] }
 0x1a0   :  { %2757 = vmatpush2.msra.mxu1 %v11137_v48  ;;  %1694 = vmatmul.mubr.f32.gmra.mxu0 %v1693_v26  ;;  %v7871_v48 = vand.u32 4294901760, %v1344_v29  ;;  %v11144_v26 = vld [vmem:[#allocation87_spill] sm:$0xff]  ;;  %v1718_v14 = vsub.f32 %v7819_v55, %v11145_v52  ;;  %v955_v53 = vadd.f32 %v7397_v17, %v744_v15  ;;  %v11148_v52 = vand.u32 4294901760, %v7839_v2 }
 0x1a1   :  { %2279 = vmatmul.mubr.f32.gmra.mxu1 %v7807_v22  ;;  %2426 = vmatpush2.msra.mxu0 %v11140_v20  ;;  %v1346_v22 = vmax.f32 %v1303_v23, 0.0  ;;  %v1137_v23 = vpop.f32.mrf.mxu0  ;;  %v1310_v17 = vadd.f32 %v1309_v60, %v1131_v54  ;;  %v1345_v1 = vmax.f32 %v1301_v34, 0.0  ;;  %v11158_v60 = vld [vmem:[#allocation85_spill] sm:$0xff] }
 0x1a2   :  { %2759 = vmatprep.subr.mxu1 %v11141_v19  ;;  %11142 = vst [vmem:[#allocation156_spill] sm:$0xff] %v7871_v48  ;;  %2429 = vmatprep.subr.mxu0 %v11143_v25  ;;  %v1709_v25 = vand.u32 4294901760, %v1708_v41  ;;  %v1724_v12 = vsub.f32 %v7839_v2, %v11148_v52  ;;  %v1129_v41 = vadd.f32 %v7813_v57, %v7383_v21  ;;  %v1719_v15 = vand.u32 4294901760, %v1718_v14 }
 0x1a3   :  { %2761 = vmatpush2.msra.mxu1 %v11144_v26  ;;  %2432 = vmatpush2.msra.mxu0 %v11146_v40  ;;  %v7890_v26 = vand.u32 4294901760, %v1343_v28  ;;  %v11155_v40 = vld [vmem:[#allocation84_spill] sm:$0xff]  ;;  %v1138_v19 = vadd.f32 %v1137_v23, %v955_v53  ;;  %v11157_v21 = vand.u32 4294901760, %v7863_v4  ;;  %v11160_v23 = vand.u32 4294901760, %v7879_v6  ;;  %v11165_v53 = vld [vmem:[#allocation102_spill] sm:$0xff] }
 0x1a4   :  { %2763 = vmatprep.subr.mxu1 %v11147_v27  ;;  %1704 = vmatprep.mubr.f32.mxu0 %v1703_v44  ;;  %v1314_v27 = vpop.f32.mrf.mxu1  ;;  %v7895_v44 = vsub.f32 %v1344_v29, %v7871_v48  ;;  %v11156_v29 = vld [vmem:[#allocation95_spill] sm:$0xff]  ;;  %v1725_v54 = vand.u32 4294901760, %v1724_v12  ;;  %v1308_v52 = vadd.f32 %v7846_v10, %v1129_v41  ;;  %v1136_v10 = vadd.f32 %v1135_v56, %v7395_v61 }
 0x1a5   :  { %2285 = vmatprep.mubr.f32.mxu1 %v7831_v9  ;;  %11149 = vst [vmem:[#allocation140_spill] sm:$0xff] %v7890_v26  ;;  %2435 = vmatprep.subr.mxu0 %v11150_v42  ;;  %v11152_v9 = vld [vmem:[#allocation82_spill] sm:$0xff]  ;;  %v11153_v42 = vld [vmem:[#allocation93_spill] sm:$0xff]  ;;  %v1734_v57 = vsub.f32 %v7863_v4, %v11157_v21  ;;  %v7913_v34 = vsub.f32 %v1343_v28, %v7890_v26  ;;  %v11163_v12 = vld [vmem:[#allocation99_spill] sm:$0xff] }
 0x1a6   :  { %2765 = vmatpush2.msra.mxu1 %v11151_v63  ;;  %1710 = vmatmul.mubr.f32.gmra.mxu0 %v1709_v25  ;;  %v7903_v63 = vand.u32 4294901760, %v1346_v22  ;;  %v11159_v25 = vld [vmem:[#allocation97_spill] sm:$0xff]  ;;  %v1316_v14 = vpop.f32.mrf.mxu1  ;;  %v1740_v21 = vsub.f32 %v7879_v6, %v11160_v23  ;;  %v11169_v61 = vand.u32 4294901760, %v7895_v44  ;;  %v1315_v23 = vadd.f32 %v1314_v27, %v1136_v10  ;;  %v11177_v10 = vld [vmem:[#allocation110_spill] sm:$0xff] }
 0x1a7   :  { %2287 = vmatmul.mubr.f32.gmra.mxu1 %v7853_v5  ;;  %2438 = vmatpush2.msra.mxu0 %v11152_v9  ;;  %v1348_v5 = vmax.f32 %v1310_v17, 0.0  ;;  %v1317_v41 = vadd.f32 %v1316_v14, %v1138_v19  ;;  %v1735_v17 = vand.u32 4294901760, %v1734_v57  ;;  %v11171_v19 = vld [vmem:[#allocation105_spill] sm:$0xff] }
 0x1a8   :  { %2767 = vmatprep.subr.mxu1 %v11153_v42  ;;  %11154 = vst [vmem:[#allocation141_spill] sm:$0xff] %v7903_v63  ;;  %2441 = vmatprep.subr.mxu0 %v11155_v40  ;;  %v7926_v28 = vsub.f32 %v1346_v22, %v7903_v63  ;;  %v11168_v22 = vld [vmem:[#allocation103_spill] sm:$0xff]  ;;  %v1750_v56 = vsub.f32 %v7895_v44, %v11169_v61  ;;  %v1741_v57 = vand.u32 4294901760, %v1740_v21  ;;  %v11174_v61 = vand.u32 4294901760, %v7913_v34  ;;  %v11176_v21 = vld [vmem:[#allocation98_spill] sm:$0xff] }
 0x1a9   :  { %2769 = vmatpush2.msra.mxu1 %v11156_v29  ;;  %2444 = vmatpush2.msra.mxu0 %v11158_v60  ;;  %v7921_v60 = vand.u32 4294901760, %v1345_v1 }
 0x1aa   :  { %2771 = vmatprep.subr.mxu1 %v11159_v25  ;;  %1720 = vmatprep.mubr.f32.mxu0 %v1719_v15  ;;  %v11162_v25 = vld [vmem:[#allocation88_spill] sm:$0xff]  ;;  %v11164_v15 = vld [vmem:[#allocation90_spill] sm:$0xff]  ;;  %v1751_v27 = vand.u32 4294901760, %v1750_v56 }
 0x1ab   :  { %2293 = vmatprep.mubr.f32.mxu1 %v7871_v48  ;;  %11161 = vst [vmem:[#allocation158_spill] sm:$0xff] %v7921_v60  ;;  %2447 = vmatprep.subr.mxu0 %v11162_v25  ;;  %v1347_v48 = vmax.f32 %v1308_v52, 0.0  ;;  %v7933_v25 = vand.u32 4294901760, %v1348_v5  ;;  %v7943_v14 = vsub.f32 %v1345_v1, %v7921_v60  ;;  %v1350_v52 = vmax.f32 %v1317_v41, 0.0  ;;  %v11183_v56 = vld [vmem:[#allocation114_spill] sm:$0xff]  ;;  %v11201_v41 = vld [vmem:[#allocation128_spill] sm:$0xff] }
 0x1ac   :  { %2773 = vmatpush2.msra.mxu1 %v11163_v12  ;;  %1726 = vmatmul.mubr.f32.gmra.mxu0 %v1725_v54  ;;  %v11167_v12 = vld [vmem:[#allocation92_spill] sm:$0xff]  ;;  %v11170_v54 = vld [vmem:[#allocation94_spill] sm:$0xff] }
 0x1ad   :  { %2295 = vmatmul.mubr.f32.gmra.mxu1 %v7890_v26  ;;  %2450 = vmatpush2.msra.mxu0 %v11164_v15  ;;  %11166 = vst [vmem:[#allocation160_spill] sm:$0xff] %v7933_v25  ;;  %v7955_v1 = vsub.f32 %v1348_v5, %v7933_v25  ;;  %v7961_v26 = vand.u32 4294901760, %v1350_v52  ;;  %v11181_v5 = vand.u32 4294901760, %v7926_v28 }
 0x1ae   :  { %2775 = vmatprep.subr.mxu1 %v11165_v53  ;;  %2453 = vmatprep.subr.mxu0 %v11167_v12  ;;  %v11173_v12 = vld [vmem:[#allocation108_spill] sm:$0xff] }
 0x1af   :  { %2777 = vmatpush2.msra.mxu1 %v11168_v22  ;;  %2456 = vmatpush2.msra.mxu0 %v11170_v54  ;;  %v11172_v22 = vld [vmem:[#allocation96_spill] sm:$0xff]  ;;  %v1756_v54 = vsub.f32 %v7913_v34, %v11174_v61  ;;  %11178 = vst [vmem:[#allocation142_spill] sm:$0xff] %v7961_v26  ;;  %v11180_v61 = vld [vmem:[#allocation111_spill] sm:$0xff] }
 0x1b0   :  { %2779 = vmatprep.subr.mxu1 %v11171_v19  ;;  %1736 = vmatprep.mubr.f32.mxu0 %v1735_v17  ;;  %v7952_v19 = vand.u32 4294901760, %v1347_v48  ;;  %v1349_v17 = vmax.f32 %v1315_v23, 0.0 }
 0x1b1   :  { %2301 = vmatprep.mubr.f32.mxu1 %v7903_v63  ;;  %2459 = vmatprep.subr.mxu0 %v11172_v22  ;;  %v11179_v63 = vld [vmem:[#allocation100_spill] sm:$0xff]  ;;  %v1757_v23 = vand.u32 4294901760, %v1756_v54  ;;  %v11188_v54 = vld [vmem:[#allocation106_spill] sm:$0xff] }
 0x1b2   :  { %2781 = vmatpush2.msra.mxu1 %v11173_v12  ;;  %11175 = vst [vmem:[#allocation63_spill] sm:$0xff] %v7952_v19  ;;  %1742 = vmatmul.mubr.f32.gmra.mxu0 %v1741_v57  ;;  %v1766_v57 = vsub.f32 %v7926_v28, %v11181_v5  ;;  %v11182_v12 = vld [vmem:[#allocation101_spill] sm:$0xff] }
 0x1b3   :  { %2303 = vmatmul.mubr.f32.gmra.mxu1 %v7921_v60  ;;  %2462 = vmatpush2.msra.mxu0 %v11176_v21  ;;  %v7971_v60 = vsub.f32 %v1347_v48, %v7952_v19 }
 0x1b4   :  { %2783 = vmatprep.subr.mxu1 %v11177_v10  ;;  %2465 = vmatprep.subr.mxu0 %v11179_v63  ;;  %v11184_v63 = vld [vmem:[#allocation104_spill] sm:$0xff]  ;;  %v11186_v10 = vand.u32 4294901760, %v7943_v14  ;;  %v1767_v48 = vand.u32 4294901760, %v1766_v57 }
 0x1b5   :  { %2785 = vmatpush2.msra.mxu1 %v11180_v61  ;;  %2468 = vmatpush2.msra.mxu0 %v11182_v12  ;;  %v11185_v61 = vld [vmem:[#allocation115_spill] sm:$0xff]  ;;  %v7980_v12 = vand.u32 4294901760, %v1349_v17 }
 0x1b6   :  { %2787 = vmatprep.subr.mxu1 %v11183_v56  ;;  %1752 = vmatprep.mubr.f32.mxu0 %v1751_v27  ;;  %v1772_v5 = vsub.f32 %v7943_v14, %v11186_v10  ;;  %v7983_v56 = vsub.f32 %v1350_v52, %v7961_v26  ;;  %v11189_v27 = vld [vmem:[#allocation117_spill] sm:$0xff]  ;;  %v11192_v10 = vand.u32 4294901760, %v7955_v1 }
 0x1b7   :  { %2309 = vmatprep.mubr.f32.mxu1 %v7933_v25  ;;  %2471 = vmatprep.subr.mxu0 %v11184_v63  ;;  %11187 = vst [vmem:[#allocation56_spill] sm:$0xff] %v7980_v12  ;;  %v11190_v25 = vld [vmem:[#allocation107_spill] sm:$0xff]  ;;  %v11193_v52 = vld [vmem:[#allocation109_spill] sm:$0xff]  ;;  %v7997_v57 = vsub.f32 %v1349_v17, %v7980_v12 }
 0x1b8   :  { %2789 = vmatpush2.msra.mxu1 %v11185_v61  ;;  %1758 = vmatmul.mubr.f32.gmra.mxu0 %v1757_v23  ;;  %v11191_v61 = vld [vmem:[#allocation118_spill] sm:$0xff]  ;;  %v1782_v63 = vsub.f32 %v7955_v1, %v11192_v10  ;;  %v11198_v17 = vld [vmem:[#allocation113_spill] sm:$0xff] }
 0x1b9   :  { %2311 = vmatmul.mubr.f32.gmra.mxu1 %v7952_v19  ;;  %2474 = vmatpush2.msra.mxu0 %v11188_v54  ;;  %v11194_v23 = vld [vmem:[#allocation122_spill] sm:$0xff]  ;;  %v1773_v19 = vand.u32 4294901760, %v1772_v5 }
 0x1ba   :  { %2791 = vmatprep.subr.mxu1 %v11189_v27  ;;  %2477 = vmatprep.subr.mxu0 %v11190_v25  ;;  %v11195_v25 = vld [vmem:[#allocation112_spill] sm:$0xff]  ;;  %v11197_v27 = vand.u32 4294901760, %v7971_v60  ;;  %v11207_v5 = vld [vmem:[#allocation130_spill] sm:$0xff] }
 0x1bb   :  { %2793 = vmatpush2.msra.mxu1 %v11191_v61  ;;  %2480 = vmatpush2.msra.mxu0 %v11193_v52  ;;  %v11196_v61 = vld [vmem:[#allocation123_spill] sm:$0xff] }
 0x1bc   :  { %2795 = vmatprep.subr.mxu1 %v11194_v23  ;;  %1768 = vmatprep.mubr.f32.mxu0 %v1767_v48  ;;  %v1788_v10 = vsub.f32 %v7971_v60, %v11197_v27  ;;  %v1783_v23 = vand.u32 4294901760, %v1782_v63  ;;  %v11199_v48 = vld [vmem:[#allocation125_spill] sm:$0xff]  ;;  %v11203_v27 = vand.u32 4294901760, %v7449_v30 }
 0x1bd   :  { %2317 = vmatprep.mubr.f32.mxu1 %v7961_v26  ;;  %2483 = vmatprep.subr.mxu0 %v11195_v25  ;;  %v11200_v26 = vld [vmem:[#allocation116_spill] sm:$0xff]  ;;  %v11205_v63 = vld [vmem:[#allocation129_spill] sm:$0xff] }
 0x1be   :  { %2797 = vmatpush2.msra.mxu1 %v11196_v61  ;;  %1774 = vmatmul.mubr.f32.gmra.mxu0 %v1773_v19  ;;  %v11202_v61 = vand.u32 4294901760, %v7983_v56  ;;  %v11204_v19 = vld [vmem:[#allocation119_spill] sm:$0xff] }
 0x1bf   :  { %2319 = vmatmul.mubr.f32.gmra.mxu1 %v7980_v12  ;;  %2486 = vmatpush2.msra.mxu0 %v11198_v17  ;;  %v1789_v12 = vand.u32 4294901760, %v1788_v10  ;;  %v11214_v10 = vld [vmem:[#allocation126_spill] sm:$0xff] }
 0x1c0   :  { %2799 = vmatprep.subr.mxu1 %v11199_v48  ;;  %2489 = vmatprep.subr.mxu0 %v11200_v26  ;;  %v1798_v25 = vsub.f32 %v7983_v56, %v11202_v61  ;;  %v11206_v48 = vld [vmem:[#allocation120_spill] sm:$0xff]  ;;  %v11208_v26 = vand.u32 4294901760, %v7997_v57  ;;  %v11209_v61 = vand.u32 4294901760, %v7434_v51 }
 0x1c1   :  { %2801 = vmatpush2.msra.mxu1 %v11201_v41  ;;  %2809 = vmatprep.mubr.f32.mxu1 %v11203_v27  ;;  %v11210_v27 = vld [vmem:[#allocation121_spill] sm:$0xff] }
 0x1c2   :  { %2492 = vmatpush2.msra.mxu0 %v11204_v19  ;;  %2803 = vmatprep.subr.mxu1 %v11205_v63  ;;  %v1804_v41 = vsub.f32 %v7997_v57, %v11208_v26  ;;  %v1799_v17 = vand.u32 4294901760, %v1798_v25  ;;  %v11211_v19 = vld [vmem:[#allocation5_spill] sm:$0xff]  ;;  %v11212_v63 = vld [vmem:[#allocation124_spill] sm:$0xff]  ;;  %v11216_v25 = vand.u32 4294901760, %v7461_v8 }
 0x1c3   :  { %1784 = vmatprep.mubr.f32.mxu0 %v1783_v23  ;;  %2495 = vmatprep.subr.mxu0 %v11206_v48  ;;  %v11213_v23 = vand.u32 4294901760, %v7473_v18 }
 0x1c4   :  { %2805 = vmatpush2.msra.mxu1 %v11207_v5  ;;  %1790 = vmatmul.mubr.f32.gmra.mxu0 %v1789_v12  ;;  %v1805_v26 = vand.u32 4294901760, %v1804_v41  ;;  %v11215_v12 = vld [vmem:[#allocation127_spill] sm:$0xff] }
 0x1c5   :  { %2813 = vmatmul.mubr.f32.vlgmr.msra.gmra.mxu1 %v11209_v61  ;;  %2498 = vmatpush2.msra.mxu0 %v11210_v27  ;;  %v11218_v61 = vld [vmem:[#allocation132_spill] sm:$0xff] }
 0x1c6   :  { %3385 = vmatprep.subr.mxu1 %v11211_v19  ;;  %2501 = vmatprep.subr.mxu0 %v11212_v63  ;;  %v11217_v19 = vld [vmem:[#allocation131_spill] sm:$0xff] }
 0x1c7   :  { %2821 = vmatprep.mubr.f32.mxu1 %v11213_v23  ;;  %3387 = vmatpush1.msra.mxu1 %v11000_v16  ;;  %v11219_v16 = vand.u32 4294901760, %v7503_v32  ;;  %v11228_v23 = vld [vmem:[#allocation22_spill] sm:$0xff] }
 0x1c8   :  { %2504 = vmatpush2.msra.mxu0 %v11214_v10  ;;  %3389 = vmatprep.subr.mxu1 %v11001_v7  ;;  %v11220_v7 = vld [vmem:[#allocation133_spill] sm:$0xff] }
 0x1c9   :  { %1800 = vmatprep.mubr.f32.mxu0 %v1799_v17  ;;  %2507 = vmatprep.subr.mxu0 %v11215_v12 }
 0x1ca   :  { %3391 = vmatpush1.msra.mxu1 %v11002_v35  ;;  %1806 = vmatmul.mubr.f32.gmra.mxu0 %v1805_v26  ;;  %v11221_v35 = vld [vmem:[#allocation7_spill] sm:$0xff]  ;;  %v11231_v26 = vld [vmem:[#allocation24_spill] sm:$0xff] }
 0x1cb   :  { %2825 = vmatmul.mubr.f32.gmra.mxu1 %v11216_v25  ;;  %2510 = vmatpush2.msra.mxu0 %v11217_v19  ;;  %v11222_v41 = vand.u32 4294901760, %v11221_v35  ;;  %v11232_v25 = vld [vmem:[#allocation15_spill] sm:$0xff]  ;;  %v11237_v35 = vld [vmem:[#allocation17_spill] sm:$0xff] }
 0x1cc   :  { %3393 = vmatprep.subr.mxu1 %v11004_v50  ;;  %2513 = vmatprep.subr.mxu0 %v11218_v61  ;;  %v11223_v50 = vand.u32 4294901760, %v7494_v31 }
 0x1cd   :  { %2519 = vmatprep.mubr.f32.mxu0 %v7449_v30  ;;  %2833 = vmatprep.mubr.f32.mxu1 %v11219_v16  ;;  %v11224_v30 = vand.u32 4294901760, %v11013_v43  ;;  %v11233_v43 = vand.u32 4294901760, %v11232_v25  ;;  %v11234_v16 = vld [vmem:[#allocation26_spill] sm:$0xff] }
 0x1ce   :  { %3395 = vmatpush1.msra.mxu1 %v11006_v38  ;;  %2516 = vmatpush2.msra.mxu0 %v11220_v7  ;;  %v11225_v38 = vand.u32 4294901760, %v7525_v37 }
 0x1cf   :  { %3397 = vmatprep.subr.mxu1 %v11008_v58  ;;  %3002 = vmatprep.subr.mxu0 %v11222_v41  ;;  %v11226_v58 = vld [vmem:[#allocation11_spill] sm:$0xff]  ;;  %v11238_v41 = vand.u32 4294901760, %v11237_v35 }
 0x1d0   :  { %3399 = vmatpush1.msra.mxu1 %v11009_v3  ;;  %2522 = vmatmul.mubr.f32.vlgmr.msra.gmra.mxu0 %v7434_v51  ;;  %v11227_v17 = vand.u32 4294901760, %v11226_v58  ;;  %v11229_v3 = vld [vmem:[#allocation13_spill] sm:$0xff]  ;;  %v11242_v58 = vld [vmem:[#allocation19_spill] sm:$0xff] }
 0x1d1   :  { %2837 = vmatmul.mubr.f32.gmra.mxu1 %v11223_v50  ;;  %3006 = vmatpush1.msra.mxu0 %v11224_v30  ;;  %v11230_v51 = vand.u32 4294901760, %v11229_v3  ;;  %v11239_v50 = vld [vmem:[#allocation28_spill] sm:$0xff] }
 0x1d2   :  { %3401 = vmatprep.subr.mxu1 %v11014_v45  ;;  %2529 = vmatprep.mubr.f32.mxu0 %v7473_v18  ;;  %v11235_v18 = vld [vmem:[#allocation12_spill] sm:$0xff] }
 0x1d3   :  { %2845 = vmatprep.mubr.f32.mxu1 %v11225_v38  ;;  %3010 = vmatprep.subr.mxu0 %v11227_v17  ;;  %v11236_v45 = vand.u32 4294901760, %v11235_v18  ;;  %v11240_v30 = vld [vmem:[#allocation16_spill] sm:$0xff]  ;;  %v11243_v17 = vand.u32 4294901760, %v11242_v58  ;;  %v11258_v58 = vld [vmem:[#allocation27_spill] sm:$0xff] }
 0x1d4   :  { %3403 = vmatpush1.msra.mxu1 %v11228_v23  ;;  %3014 = vmatpush1.msra.mxu0 %v11230_v51  ;;  %v11241_v38 = vand.u32 4294901760, %v11240_v30  ;;  %v11244_v23 = vld [vmem:[#allocation30_spill] sm:$0xff]  ;;  %v11245_v3 = vld [vmem:[#allocation20_spill] sm:$0xff] }
 0x1d5   :  { %3405 = vmatprep.subr.mxu1 %v11231_v26  ;;  %3018 = vmatprep.subr.mxu0 %v11233_v43  ;;  %v11247_v51 = vld [vmem:[#allocation32_spill] sm:$0xff]  ;;  %v11248_v26 = vld [vmem:[#allocation23_spill] sm:$0xff]  ;;  %v11250_v43 = vld [vmem:[#allocation34_spill] sm:$0xff] }
 0x1d6   :  { %3407 = vmatpush1.msra.mxu1 %v11234_v16  ;;  %2532 = vmatmul.mubr.f32.gmra.mxu0 %v7461_v8  ;;  %v11246_v8 = vand.u32 4294901760, %v11245_v3  ;;  %v11249_v25 = vand.u32 4294901760, %v11248_v26  ;;  %v11261_v3 = vld [vmem:[#allocation29_spill] sm:$0xff] }
 0x1d7   :  { %2849 = vmatmul.mubr.f32.gmra.mxu1 %v11236_v45  ;;  %3022 = vmatpush1.msra.mxu0 %v11238_v41  ;;  %v11253_v45 = vld [vmem:[#allocation25_spill] sm:$0xff] }
 0x1d8   :  { %3409 = vmatprep.subr.mxu1 %v11239_v50  ;;  %2539 = vmatprep.mubr.f32.mxu0 %v7503_v32  ;;  %v11251_v32 = vld [vmem:[#allocation149_spill] sm:$0xff]  ;;  %v11254_v35 = vand.u32 4294901760, %v11253_v45 }
 0x1d9   :  { %2857 = vmatprep.mubr.f32.mxu1 %v11241_v38  ;;  %3026 = vmatprep.subr.mxu0 %v11243_v17  ;;  %v11252_v16 = vand.u32 4294901760, %v11251_v32  ;;  %v11255_v41 = vld [vmem:[#allocation37_spill] sm:$0xff]  ;;  %v11259_v17 = vand.u32 4294901760, %v11258_v58 }
 0x1da   :  { %3411 = vmatpush1.msra.mxu1 %v11244_v23  ;;  %3030 = vmatpush1.msra.mxu0 %v11246_v8  ;;  %v11256_v50 = vld [vmem:[#allocation21_spill] sm:$0xff]  ;;  %v11260_v23 = vld [vmem:[#allocation38_spill] sm:$0xff]  ;;  %v11263_v8 = vld [vmem:[#allocation40_spill] sm:$0xff] }
 0x1db   :  { %3413 = vmatprep.subr.mxu1 %v11247_v51  ;;  %3034 = vmatprep.subr.mxu0 %v11249_v25  ;;  %v11257_v38 = vand.u32 4294901760, %v11256_v50  ;;  %v11264_v51 = vld [vmem:[#allocation31_spill] sm:$0xff]  ;;  %v11266_v25 = vld [vmem:[#allocation42_spill] sm:$0xff] }
 0x1dc   :  { %3415 = vmatpush1.msra.mxu1 %v11250_v43  ;;  %2542 = vmatmul.mubr.f32.gmra.mxu0 %v7494_v31  ;;  %v11262_v31 = vand.u32 4294901760, %v11261_v3  ;;  %v11265_v26 = vand.u32 4294901760, %v11264_v51  ;;  %v11278_v3 = vld [vmem:[#allocation48_spill] sm:$0xff]  ;;  %v11281_v51 = vld [vmem:[#allocation50_spill] sm:$0xff] }
 0x1dd   :  { %2861 = vmatmul.mubr.f32.gmra.mxu1 %v11252_v16  ;;  %3038 = vmatpush1.msra.mxu0 %v11254_v35  ;;  %v11269_v16 = vld [vmem:[#allocation33_spill] sm:$0xff]  ;;  %v11271_v35 = vld [vmem:[#allocation44_spill] sm:$0xff] }
 0x1de   :  { %3417 = vmatprep.subr.mxu1 %v11255_v41  ;;  %2549 = vmatprep.mubr.f32.mxu0 %v7525_v37  ;;  %v11267_v37 = vld [vmem:[#allocation150_spill] sm:$0xff]  ;;  %v11270_v45 = vand.u32 4294901760, %v11269_v16  ;;  %v11272_v41 = vand.u32 4294901760, %v7639_v36  ;;  %v11286_v16 = vand.u32 4294901760, %v7683_v13 }
 0x1df   :  { %2869 = vmatprep.mubr.f32.mxu1 %v11257_v38  ;;  %3042 = vmatprep.subr.mxu0 %v11259_v17  ;;  %v11268_v43 = vand.u32 4294901760, %v11267_v37  ;;  %v11273_v38 = vld [vmem:[#allocation35_spill] sm:$0xff]  ;;  %v11275_v17 = vld [vmem:[#allocation46_spill] sm:$0xff] }
 0x1e0   :  { %3419 = vmatpush1.msra.mxu1 %v11260_v23  ;;  %3046 = vmatpush1.msra.mxu0 %v11262_v31  ;;  %v11274_v58 = vand.u32 4294901760, %v11273_v38  ;;  %v11276_v23 = vld [vmem:[#allocation36_spill] sm:$0xff]  ;;  %v11279_v31 = vld [vmem:[#allocation39_spill] sm:$0xff]  ;;  %v11290_v38 = vld [vmem:[#allocation45_spill] sm:$0xff] }
 0x1e1   :  { %3421 = vmatprep.subr.mxu1 %v11263_v8  ;;  %3050 = vmatprep.subr.mxu0 %v11265_v26  ;;  %v11280_v8 = vand.u32 4294901760, %v11279_v31  ;;  %v11283_v26 = vld [vmem:[#allocation41_spill] sm:$0xff] }
 0x1e2   :  { %3423 = vmatpush1.msra.mxu1 %v11266_v25  ;;  %2552 = vmatmul.mubr.f32.gmra.mxu0 %v11235_v18  ;;  %v11277_v18 = vand.u32 4294901760, %v11276_v23  ;;  %v11284_v25 = vand.u32 4294901760, %v11283_v26 }
 0x1e3   :  { %2873 = vmatmul.mubr.f32.gmra.mxu1 %v11268_v43  ;;  %3054 = vmatpush1.msra.mxu0 %v11270_v45  ;;  %v11285_v43 = vld [vmem:[#allocation53_spill] sm:$0xff]  ;;  %v11287_v45 = vld [vmem:[#allocation43_spill] sm:$0xff] }
 0x1e4   :  { %3425 = vmatprep.subr.mxu1 %v11271_v35  ;;  %2559 = vmatprep.mubr.f32.mxu0 %v11240_v30  ;;  %v11282_v30 = vand.u32 4294901760, %v7661_v46  ;;  %v11288_v35 = vand.u32 4294901760, %v11287_v45  ;;  %v11307_v45 = vld [vmem:[#allocation67_spill] sm:$0xff] }
 0x1e5   :  { %2881 = vmatprep.mubr.f32.mxu1 %v11272_v41  ;;  %3058 = vmatprep.subr.mxu0 %v11274_v58  ;;  %v11289_v41 = vld [vmem:[#allocation54_spill] sm:$0xff]  ;;  %v11292_v58 = vld [vmem:[#allocation57_spill] sm:$0xff] }
 0x1e6   :  { %3427 = vmatpush1.msra.mxu1 %v11275_v17  ;;  %3062 = vmatpush1.msra.mxu0 %v11277_v18  ;;  %v11293_v17 = vld [vmem:[#allocation47_spill] sm:$0xff] }
 0x1e7   :  { %3429 = vmatprep.subr.mxu1 %v11278_v3  ;;  %3066 = vmatprep.subr.mxu0 %v11280_v8  ;;  %v11294_v23 = vand.u32 4294901760, %v11293_v17  ;;  %v11295_v18 = vld [vmem:[#allocation59_spill] sm:$0xff]  ;;  %v11297_v3 = vld [vmem:[#allocation49_spill] sm:$0xff]  ;;  %v11316_v17 = vld [vmem:[#allocation62_spill] sm:$0xff] }
 0x1e8   :  { %3431 = vmatpush1.msra.mxu1 %v11281_v51  ;;  %2562 = vmatmul.mubr.f32.gmra.mxu0 %v11251_v32  ;;  %v11291_v32 = vand.u32 4294901760, %v11290_v38  ;;  %v11298_v31 = vand.u32 4294901760, %v11297_v3  ;;  %v11299_v8 = vld [vmem:[#allocation61_spill] sm:$0xff]  ;;  %v11300_v51 = vand.u32 4294901760, %v7731_v39  ;;  %v11311_v38 = vld [vmem:[#allocation70_spill] sm:$0xff]  ;;  %v11321_v3 = vld [vmem:[#allocation75_spill] sm:$0xff] }
 0x1e9   :  { %2885 = vmatmul.mubr.f32.gmra.mxu1 %v11282_v30  ;;  %3070 = vmatpush1.msra.mxu0 %v11284_v25  ;;  %v11301_v30 = vld [vmem:[#allocation51_spill] sm:$0xff]  ;;  %v11303_v25 = vld [vmem:[#allocation52_spill] sm:$0xff] }
 0x1ea   :  { %3433 = vmatprep.subr.mxu1 %v11285_v43  ;;  %2569 = vmatprep.mubr.f32.mxu0 %v11256_v50  ;;  %v11296_v50 = vand.u32 4294901760, %v7707_v49  ;;  %v11302_v26 = vand.u32 4294901760, %v11301_v30  ;;  %v11305_v43 = vld [vmem:[#allocation65_spill] sm:$0xff]  ;;  %v11326_v30 = vld [vmem:[#allocation68_spill] sm:$0xff] }
 0x1eb   :  { %2893 = vmatprep.mubr.f32.mxu1 %v11286_v16  ;;  %3074 = vmatprep.subr.mxu0 %v11288_v35  ;;  %v11306_v16 = vand.u32 4294901760, %v11105_v24  ;;  %v11309_v35 = vld [vmem:[#allocation58_spill] sm:$0xff] }
 0x1ec   :  { %3435 = vmatpush1.msra.mxu1 %v11289_v41  ;;  %3078 = vmatpush1.msra.mxu0 %v11291_v32  ;;  %v11310_v41 = vand.u32 4294901760, %v11309_v35  ;;  %v11313_v32 = vld [vmem:[#allocation60_spill] sm:$0xff]  ;;  %v11337_v35 = vand.u32 4294901760, %v7863_v4 }
 0x1ed   :  { %3437 = vmatprep.subr.mxu1 %v11292_v58  ;;  %3082 = vmatprep.subr.mxu0 %v11294_v23  ;;  %v11314_v24 = vand.u32 4294901760, %v11313_v32  ;;  %v11315_v58 = vld [vmem:[#allocation71_spill] sm:$0xff]  ;;  %v11318_v23 = vld [vmem:[#allocation73_spill] sm:$0xff] }
 0x1ee   :  { %3439 = vmatpush1.msra.mxu1 %v11295_v18  ;;  %2572 = vmatmul.mubr.f32.gmra.mxu0 %v11267_v37  ;;  %v11304_v37 = vand.u32 4294901760, %v11303_v25  ;;  %v11319_v18 = vld [vmem:[#allocation64_spill] sm:$0xff]  ;;  %v11328_v25 = vld [vmem:[#allocation79_spill] sm:$0xff]  ;;  %v11343_v32 = vld [vmem:[#allocation89_spill] sm:$0xff] }
 0x1ef   :  { %2897 = vmatmul.mubr.f32.gmra.mxu1 %v11296_v50  ;;  %3086 = vmatpush1.msra.mxu0 %v11298_v31  ;;  %v11320_v50 = vand.u32 4294901760, %v11319_v18  ;;  %v11323_v31 = vand.u32 4294901760, %v11126_v62  ;;  %v11332_v62 = vand.u32 4294901760, %v11136_v11  ;;  %v11351_v18 = vld [vmem:[#allocation85_spill] sm:$0xff] }
 0x1f0   :  { %3441 = vmatprep.subr.mxu1 %v11299_v8  ;;  %2579 = vmatprep.mubr.f32.mxu0 %v7639_v36  ;;  %v11308_v36 = vand.u32 4294901760, %v7757_v47  ;;  %v11324_v8 = vld [vmem:[#allocation77_spill] sm:$0xff] }
 0x1f1   :  { %2905 = vmatprep.mubr.f32.mxu1 %v11300_v51  ;;  %3090 = vmatprep.subr.mxu0 %v11302_v26  ;;  %v11325_v51 = vand.u32 4294901760, %v7819_v55  ;;  %v11327_v26 = vand.u32 4294901760, %v11326_v30  ;;  %v11365_v30 = vld [vmem:[#allocation105_spill] sm:$0xff] }
 0x1f2   :  { %3443 = vmatpush1.msra.mxu1 %v11100_v59  ;;  %3094 = vmatpush1.msra.mxu0 %v11304_v37  ;;  %v11312_v59 = vand.u32 4294901760, %v7773_v33  ;;  %v11329_v37 = vld [vmem:[#allocation69_spill] sm:$0xff] }
 0x1f3   :  { %3445 = vmatprep.subr.mxu1 %v11305_v43  ;;  %3098 = vmatprep.subr.mxu0 %v11306_v16  ;;  %v11331_v43 = vld [vmem:[#allocation81_spill] sm:$0xff]  ;;  %v11333_v16 = vld [vmem:[#allocation83_spill] sm:$0xff] }
 0x1f4   :  { %3447 = vmatpush1.msra.mxu1 %v11307_v45  ;;  %2582 = vmatmul.mubr.f32.gmra.mxu0 %v7661_v46  ;;  %v11317_v46 = vand.u32 4294901760, %v11316_v17  ;;  %v11335_v45 = vand.u32 4294901760, %v11140_v20  ;;  %v11348_v17 = vand.u32 4294901760, %v11152_v9 }
 0x1f5   :  { %2909 = vmatmul.mubr.f32.gmra.mxu1 %v11308_v36  ;;  %3102 = vmatpush1.msra.mxu0 %v11310_v41  ;;  %v11336_v36 = vld [vmem:[#allocation86_spill] sm:$0xff]  ;;  %v11338_v41 = vld [vmem:[#allocation76_spill] sm:$0xff] }
 0x1f6   :  { %3449 = vmatprep.subr.mxu1 %v11311_v38  ;;  %2589 = vmatprep.mubr.f32.mxu0 %v7683_v13  ;;  %v11322_v13 = vand.u32 4294901760, %v7800_v0  ;;  %v11339_v11 = vand.u32 4294901760, %v11338_v41  ;;  %v11340_v38 = vld [vmem:[#allocation87_spill] sm:$0xff]  ;;  %v11384_v41 = vand.u32 4294901760, %v7983_v56 }
 0x1f7   :  { %2917 = vmatprep.mubr.f32.mxu1 %v11312_v59  ;;  %3106 = vmatprep.subr.mxu0 %v11314_v24  ;;  %v11341_v59 = vld [vmem:[#allocation78_spill] sm:$0xff]  ;;  %v11344_v24 = vld [vmem:[#allocation80_spill] sm:$0xff] }
 0x1f8   :  { %3451 = vmatpush2.msra.mxu1 %v11315_v58  ;;  %3110 = vmatpush1.msra.mxu0 %v11317_v46  ;;  %v11345_v20 = vand.u32 4294901760, %v11344_v24  ;;  %v11346_v58 = vld [vmem:[#allocation91_spill] sm:$0xff]  ;;  %v11349_v46 = vand.u32 4294901760, %v7895_v44 }
 0x1f9   :  { %3453 = vmatprep.subr.mxu1 %v11318_v23  ;;  %3114 = vmatprep.subr.mxu0 %v11320_v50  ;;  %v11350_v23 = vand.u32 4294901760, %v11155_v40  ;;  %v11353_v50 = vld [vmem:[#allocation97_spill] sm:$0xff]  ;;  %v11358_v40 = vand.u32 4294901760, %v11164_v15  ;;  %v11366_v15 = vand.u32 4294901760, %v11172_v22  ;;  %v11392_v24 = vld [vmem:[#allocation123_spill] sm:$0xff] }
 0x1fa   :  { %3455 = vmatpush2.msra.mxu1 %v11321_v3  ;;  %2592 = vmatmul.mubr.f32.gmra.mxu0 %v7707_v49  ;;  %v11330_v49 = vand.u32 4294901760, %v11329_v37  ;;  %v11354_v3 = vld [vmem:[#allocation88_spill] sm:$0xff]  ;;  %v11371_v37 = vand.u32 4294901760, %v7955_v1 }
 0x1fb   :  { %2921 = vmatmul.mubr.f32.gmra.mxu1 %v11322_v13  ;;  %3118 = vmatpush1.msra.mxu0 %v11323_v31  ;;  %v11355_v9 = vand.u32 4294901760, %v11354_v3  ;;  %v11356_v13 = vld [vmem:[#allocation99_spill] sm:$0xff]  ;;  %v11406_v3 = vand.u32 4294901760, %v11210_v27  ;;  %v11412_v27 = vld [vmem:[#allocation165_spill] sm:$0xff] }
 0x1fc   :  { %3457 = vmatprep.subr.mxu1 %v11324_v8  ;;  %2599 = vmatprep.mubr.f32.mxu0 %v7731_v39  ;;  %v11334_v39 = vand.u32 4294901760, %v7839_v2  ;;  %v11362_v8 = vld [vmem:[#allocation103_spill] sm:$0xff] }
 0x1fd   :  { %2929 = vmatprep.mubr.f32.mxu1 %v11325_v51  ;;  %3122 = vmatprep.subr.mxu0 %v11327_v26  ;;  %v11363_v51 = vld [vmem:[#allocation94_spill] sm:$0xff]  ;;  %v11367_v26 = vld [vmem:[#allocation108_spill] sm:$0xff] }
 0x1fe   :  { %3459 = vmatpush2.msra.mxu1 %v11328_v25  ;;  %3126 = vmatpush1.msra.mxu0 %v11330_v49  ;;  %v11370_v25 = vld [vmem:[#allocation110_spill] sm:$0xff]  ;;  %v11372_v49 = vld [vmem:[#allocation100_spill] sm:$0xff] }
 0x1ff   :  { %3461 = vmatprep.subr.mxu1 %v11331_v43  ;;  %3130 = vmatprep.subr.mxu0 %v11332_v62  ;;  %v11373_v22 = vand.u32 4294901760, %v11372_v49  ;;  %v11374_v43 = vld [vmem:[#allocation111_spill] sm:$0xff]  ;;  %v11375_v62 = vld [vmem:[#allocation101_spill] sm:$0xff] }
 0x200   :  { %3463 = vmatpush2.msra.mxu1 %v11333_v16  ;;  %2602 = vmatmul.mubr.f32.gmra.mxu0 %v7757_v47  ;;  %v11342_v47 = vand.u32 4294901760, %v11341_v59  ;;  %v11377_v16 = vld [vmem:[#allocation114_spill] sm:$0xff]  ;;  %v3703_v49 = vld [vmem:[%s10198_s5 + $0xf0] sm:$0xff] }
 0x201   :  { %2933 = vmatmul.mubr.f32.gmra.mxu1 %v11334_v39  ;;  %3134 = vmatpush2.msra.mxu0 %v11335_v45  ;;  %v11378_v39 = vld [vmem:[#allocation104_spill] sm:$0xff]  ;;  %v11380_v45 = vld [vmem:[#allocation115_spill] sm:$0xff]  ;;  %v11387_v59 = vld [vmem:[#allocation118_spill] sm:$0xff] }
 0x202   :  { %3465 = vmatprep.subr.mxu1 %v11336_v36  ;;  %2609 = vmatprep.mubr.f32.mxu0 %v7773_v33  ;;  %v11347_v33 = vand.u32 4294901760, %v7879_v6  ;;  %v11382_v36 = vand.u32 4294901760, %v11188_v54 }
 0x203   :  { %2941 = vmatprep.mubr.f32.mxu1 %v11337_v35  ;;  %3138 = vmatprep.subr.mxu0 %v11339_v11  ;;  %v11383_v35 = vld [vmem:[#allocation117_spill] sm:$0xff]  ;;  %v11385_v11 = vld [vmem:[#allocation107_spill] sm:$0xff] }
 0x204   :  { %3467 = vmatpush2.msra.mxu1 %v11340_v38  ;;  %3142 = vmatpush2.msra.mxu0 %v11342_v47  ;;  %v11386_v38 = vand.u32 4294901760, %v11385_v11  ;;  %v11389_v47 = vld [vmem:[#allocation122_spill] sm:$0xff] }
 0x205   :  { %3469 = vmatprep.subr.mxu1 %v11343_v32  ;;  %3146 = vmatprep.subr.mxu0 %v11345_v20  ;;  %v11390_v32 = vld [vmem:[#allocation112_spill] sm:$0xff]  ;;  %v11394_v20 = vld [vmem:[#allocation113_spill] sm:$0xff]  ;;  %v11429_v11 = vld [vmem:[#allocation18_spill] sm:$0xff] }
 0x206   :  { %3471 = vmatpush2.msra.mxu1 %v11346_v58  ;;  %2612 = vmatmul.mubr.f32.gmra.mxu0 %v7800_v0  ;;  %v11352_v0 = vand.u32 4294901760, %v11351_v18  ;;  %v11391_v54 = vand.u32 4294901760, %v11390_v32  ;;  %v11395_v58 = vand.u32 4294901760, %v11394_v20  ;;  %v11401_v18 = vld [vmem:[#allocation119_spill] sm:$0xff] }
 0x207   :  { %2945 = vmatmul.mubr.f32.gmra.mxu1 %v11347_v33  ;;  %3150 = vmatpush2.msra.mxu0 %v11348_v17  ;;  %v11396_v33 = vld [vmem:[#allocation125_spill] sm:$0xff] }
 0x208   :  { %3473 = vmatprep.subr.mxu1 %v11153_v42  ;;  %2619 = vmatprep.mubr.f32.mxu0 %v7819_v55  ;;  %v11357_v55 = vand.u32 4294901760, %v7913_v34  ;;  %v11359_v42 = vand.u32 4294901760, %v7926_v28 }
 0x209   :  { %2953 = vmatprep.mubr.f32.mxu1 %v11349_v46  ;;  %3154 = vmatprep.subr.mxu0 %v11350_v23  ;;  %v11399_v46 = vld [vmem:[#allocation128_spill] sm:$0xff] }
 0x20a   :  { %3475 = vmatpush2.msra.mxu1 %v11156_v29  ;;  %3158 = vmatpush2.msra.mxu0 %v11352_v0  ;;  %v11360_v29 = vld [vmem:[#allocation92_spill] sm:$0xff]  ;;  %v11402_v0 = vand.u32 4294901760, %v11401_v18  ;;  %v11434_v18 = vld [vmem:[#allocation151_spill] sm:$0xff] }
 0x20b   :  { %3477 = vmatprep.subr.mxu1 %v11353_v50  ;;  %3162 = vmatprep.subr.mxu0 %v11355_v9  ;;  %v11361_v31 = vand.u32 4294901760, %v11360_v29  ;;  %v11400_v23 = vld [vmem:[#allocation164_spill] sm:$0xff]  ;;  %v11404_v50 = vand.u32 4294901760, %v11206_v48  ;;  %v11407_v9 = vand.u32 4294901760, %v11212_v63  ;;  %v11413_v63 = vand.u32 4294901760, %v11218_v61 }
 0x20c   :  { %3479 = vmatpush2.msra.mxu1 %v11356_v13  ;;  %2622 = vmatmul.mubr.f32.gmra.mxu0 %v7839_v2  ;;  %v11364_v2 = vand.u32 4294901760, %v11363_v51  ;;  %v11408_v13 = vld [vmem:[#allocation166_spill] sm:$0xff] }
 0x20d   :  { %2957 = vmatmul.mubr.f32.gmra.mxu1 %v11357_v55  ;;  %3166 = vmatpush2.msra.mxu0 %v11358_v40  ;;  %v11409_v55 = vand.u32 4294901760, %v11214_v10  ;;  %v8325_v10 = vld [vmem:[%s10197_s4] sm:$0x3]  ;;  %v3704_v40 = vld [vmem:[%s10198_s5 + $0xf8] sm:$0xff]  ;;  %v11420_v51 = vld [vmem:[#allocation10_spill] sm:$0xff] }
 0x20e   :  { %3481 = vmatprep.subr.mxu1 %v11165_v53  ;;  %2629 = vmatprep.mubr.f32.mxu0 %v7863_v4  ;;  %v11368_v4 = vand.u32 4294901760, %v7943_v14  ;;  %v11369_v53 = vand.u32 4294901760, %v11176_v21  ;;  %v11379_v21 = vand.u32 4294901760, %v11378_v39  ;;  %v8334_v61 = vand.u32 4294901760, %v3704_v40 }
 0x20f   :  { %2965 = vmatprep.mubr.f32.mxu1 %v11359_v42  ;;  %3170 = vmatprep.subr.mxu0 %v11361_v31  ;;  %v11417_v42 = vld [vmem:[#allocation147_spill] sm:$0xff] }
 0x210   :  { %3483 = vmatpush2.msra.mxu1 %v11362_v8  ;;  %3174 = vmatpush2.msra.mxu0 %v11364_v2  ;;  %11416 = vst [vmem:[#allocation159_spill] sm:$0xff] %v8334_v61  ;;  %v11418_v31 = vld [vmem:[#allocation55_spill] sm:$0xff]  ;;  %v3688_v2 = vld [vmem:[%s10198_s5 + $0x78] sm:$0xff] }
 0x211   :  { %3485 = vmatprep.subr.mxu1 %v11365_v30  ;;  %3178 = vmatprep.subr.mxu0 %v11366_v15  ;;  %v11419_v8 = vsub.s32 0, %v11418_v31  ;;  %v8351_v30 = vsub.f32 %v3704_v40, %v8334_v61 }
 0x212   :  { %3487 = vmatpush2.msra.mxu1 %v11367_v26  ;;  %2632 = vmatmul.mubr.f32.gmra.mxu0 %v7879_v6  ;;  %v11376_v6 = vand.u32 4294901760, %v11375_v62 }
 0x213   :  { %2969 = vmatmul.mubr.f32.gmra.mxu1 %v11368_v4  ;;  %3182 = vmatpush2.msra.mxu0 %v11369_v53  ;;  %11421 = vst [vmem:[#allocation143_spill] sm:$0xff] %v8351_v30  ;;  %v8356_v4 = vand.u32 4294901760, %v3688_v2  ;;  %v11423_v53 = vld [vmem:[#allocation8_spill] sm:$0xff] }
 0x214   :  { %3489 = vmatprep.subr.mxu1 %v11370_v25  ;;  %2639 = vmatprep.mubr.f32.mxu0 %v7895_v44  ;;  %v11381_v44 = vand.u32 4294901760, %v7971_v60 }
 0x215   :  { %2977 = vmatprep.mubr.f32.mxu1 %v11371_v37  ;;  %3186 = vmatprep.subr.mxu0 %v11373_v22  ;;  %11422 = vst [vmem:[#allocation144_spill] sm:$0xff] %v8356_v4  ;;  %v10573_v37 = vand.u32 4294901760, %v8351_v30  ;;  %v11424_v22 = vld [vmem:[#allocation148_spill] sm:$0xff] }
 0x216   :  { %3491 = vmatpush2.msra.mxu1 %v11374_v43  ;;  %3190 = vmatpush2.msra.mxu0 %v11376_v6  ;;  %v8372_v6 = vsub.f32 %v3688_v2, %v8356_v4 }
 0x217   :  { %3493 = vmatprep.subr.mxu1 %v11377_v16  ;;  %3194 = vmatprep.subr.mxu0 %v11379_v21  ;;  %v8374_v16 = vand.u32 4294901760, %v3703_v49  ;;  %v4165_v21 = vsub.f32 %v8351_v30, %v10573_v37  ;;  %v3682_v37 = vld [vmem:[%s10198_s5 + $0x48] sm:$0xff] }
 0x218   :  { %3495 = vmatpush2.msra.mxu1 %v11380_v45  ;;  %2642 = vmatmul.mubr.f32.gmra.mxu0 %v7913_v34  ;;  %v11388_v34 = vand.u32 4294901760, %v11193_v52  ;;  %v11397_v52 = vld [vmem:[#allocation116_spill] sm:$0xff]  ;;  %11425 = vst [vmem:[#allocation161_spill] sm:$0xff] %v8372_v6  ;;  %v10572_v45 = vand.u32 4294901760, %v8372_v6 }
 0x219   :  { %2981 = vmatmul.mubr.f32.gmra.mxu1 %v11381_v44  ;;  %3198 = vmatpush2.msra.mxu0 %v11382_v36  ;;  %v11398_v17 = vand.u32 4294901760, %v11397_v52  ;;  %11426 = vst [vmem:[#allocation145_spill] sm:$0xff] %v8374_v16  ;;  %v11427_v44 = vld [vmem:[#allocation14_spill] sm:$0xff]  ;;  %v4166_v36 = vand.u32 4294901760, %v4165_v21 }
 0x21a   :  { %3497 = vmatprep.subr.mxu1 %v11383_v35  ;;  %2649 = vmatprep.mubr.f32.mxu0 %v7926_v28  ;;  %v11393_v28 = vand.u32 4294901760, %v7997_v57  ;;  %v3687_v35 = vld [vmem:[%s10198_s5 + $0x70] sm:$0xff] }
 0x21b   :  { %2989 = vmatprep.mubr.f32.mxu1 %v11384_v41  ;;  %3202 = vmatprep.subr.mxu0 %v11386_v38  ;;  %v8390_v41 = vsub.f32 %v3703_v49, %v8374_v16  ;;  %v11443_v49 = vld [vmem:[#allocation152_spill] sm:$0xff] }
 0x21c   :  { %3499 = vmatpush2.msra.mxu1 %v11387_v59  ;;  %3206 = vmatpush2.msra.mxu0 %v11388_v34  ;;  %v4053_v34 = vsub.f32 %v8372_v6, %v10572_v45  ;;  %v11462_v45 = vld [vmem:[#allocation156_spill] sm:$0xff] }
 0x21d   :  { %3501 = vmatprep.subr.mxu1 %v11389_v47  ;;  %3210 = vmatprep.subr.mxu0 %v11391_v54  ;;  %11428 = vst [vmem:[#allocation66_spill] sm:$0xff] %v8390_v41  ;;  %v8398_v47 = vand.u32 4294901760, %v3687_v35  ;;  %v10571_v54 = vand.u32 4294901760, %v8390_v41 }
 0x21e   :  { %3503 = vmatpush2.msra.mxu1 %v11392_v24  ;;  %2652 = vmatmul.mubr.f32.gmra.mxu0 %v7943_v14  ;;  %v11403_v14 = vld [vmem:[#allocation129_spill] sm:$0xff]  ;;  %v3702_v24 = vld [vmem:[%s10198_s5 + $0xe8] sm:$0xff] }
 0x21f   :  { %2993 = vmatmul.mubr.f32.gmra.mxu1 %v11393_v28  ;;  %3214 = vmatpush2.msra.mxu0 %v11395_v58  ;;  %11430 = vst [vmem:[#allocation146_spill] sm:$0xff] %v8398_v47  ;;  %v4054_v58 = vand.u32 4294901760, %v4053_v34  ;;  %v8413_v52 = vand.u32 4294901760, %v3702_v24 }
 0x220   :  { %3505 = vmatprep.subr.mxu1 %v11396_v33  ;;  %2659 = vmatprep.mubr.f32.mxu0 %v7955_v1  ;;  %v11405_v1 = vld [vmem:[#allocation163_spill] sm:$0xff]  ;;  %v8411_v33 = vsub.f32 %v3687_v35, %v8398_v47 }
 0x221   :  { %3218 = vmatprep.subr.mxu0 %v11398_v17  ;;  %3507 = vmatpush2.msra.mxu1 %v11399_v46  ;;  %11432 = vst [vmem:[#allocation162_spill] sm:$0xff] %v8413_v52  ;;  %v11433_v17 = vld [vmem:[#allocation9_spill] sm:$0xff] }
 0x222   :  { %3513 = vmatprep.mubr.f32.mxu1 %v11400_v23  ;;  %3222 = vmatpush2.msra.mxu0 %v11402_v0  ;;  %11431 = vst [vmem:[#allocation72_spill] sm:$0xff] %v8411_v33  ;;  %v10570_v0 = vand.u32 4294901760, %v8411_v33 }
 0x223   :  { %3509 = vmatprep.subr.mxu1 %v11403_v14  ;;  %3226 = vmatprep.subr.mxu0 %v11404_v50  ;;  %v3686_v50 = vld [vmem:[%s10198_s5 + $0x68] sm:$0xff] }
 0x224   :  { %3511 = vmatpush2.msra.mxu1 %v11207_v5  ;;  %2662 = vmatmul.mubr.f32.gmra.mxu0 %v7971_v60  ;;  %v11410_v5 = vand.u32 4294901760, %v11215_v12  ;;  %v11411_v60 = vand.u32 4294901760, %v11217_v19  ;;  %v11414_v12 = vld [vmem:[#allocation6_spill] sm:$0xff] }
 0x225   :  { %3515 = vmatmul.mubr.f32.vlgmr.msra.gmra.mxu1 %v11405_v1  ;;  %3230 = vmatpush2.msra.mxu0 %v11406_v3 }
 0x226   :  { %2669 = vmatprep.mubr.f32.mxu0 %v7983_v56  ;;  %3234 = vmatprep.subr.mxu0 %v11407_v9 }
 0x227   :  { %3521 = vmatprep.mubr.f32.mxu1 %v11408_v13  ;;  %3238 = vmatpush2.msra.mxu0 %v11409_v55  ;;  %v2200_v48 = vpop.f32.mrf.mxu1  ;;  %v8438_v55 = vand.u32 4294901760, %v3686_v50 }
 0x228   :  { %3242 = vmatprep.subr.mxu0 %v11410_v5  ;;  %2672 = vmatmul.mubr.f32.gmra.mxu0 %v7997_v57  ;;  %v11415_v57 = vand.u32 4294901760, %v11220_v7  ;;  %v8343_v7 = vrot.slane %v8325_v10, %v11419_v8 }
 0x229   :  { %3246 = vmatpush2.msra.mxu0 %v11411_v60  ;;  %3523 = vmatmul.mubr.f32.gmra.mxu1 %v11412_v27  ;;  %v8317_v56 = vpop.f32.mrf.mxu1  ;;  %11436 = vst [vmem:[#allocation82_spill] sm:$0xff] %v8438_v55  ;;  %v8453_v40 = vsub.f32 %v3686_v50, %v8438_v55  ;;  %v11448_v50 = vld [vmem:[#allocation136_spill] sm:$0xff] }
 0x22a   :  { %3250 = vmatprep.subr.mxu0 %v11413_v63  ;;  %3256 = vmatprep.mubr.f32.mxu0 %v11400_v23  ;;  %v4172_v23 = vsub.f32 %v8390_v41, %v10571_v54  ;;  %v11438_v63 = vld [vmem:[#allocation134_spill] sm:$0xff] }
 0x22b   :  { %3529 = vmatprep.mubr.f32.mxu1 %v11414_v12  ;;  %3254 = vmatpush2.msra.mxu0 %v11415_v57  ;;  %11439 = vst [vmem:[#allocation93_spill] sm:$0xff] %v8453_v40  ;;  %v10567_v2 = vand.u32 4294901760, %v8453_v40 }
 0x22c   :  { %v2208_v19 = vpop.f32.mrf.mxu1  ;;  %3258 = vmatmul.mubr.f32.vlgmr.msra.gmra.mxu0 %v11405_v1  ;;  %5437 = vmatprep.subr.mxu0 %v8334_v61  ;;  %v4173_v14 = vand.u32 4294901760, %v4172_v23  ;;  %v8429_v1 = vsub.f32 %v3702_v24, %v8413_v52  ;;  %v11447_v23 = vld [vmem:[#allocation155_spill] sm:$0xff] }
 0x22d   :  { %3531 = vmatmul.mubr.f32.gmra.mxu1 %v11417_v42  ;;  %3264 = vmatprep.mubr.f32.mxu0 %v11408_v13  ;;  %v4060_v13 = vsub.f32 %v8411_v33, %v10570_v0 }
 0x22e   :  { %v8338_v29 = vpop.f32.mrf.mxu1  ;;  %3537 = vmatprep.mubr.f32.mxu1 %v11420_v51  ;;  %5438 = vmatpush3.msra.mxu0 %v8356_v4  ;;  %11435 = vst [vmem:[#allocation74_spill] sm:$0xff] %v8429_v1  ;;  %v10568_v60 = vand.u32 4294901760, %v8429_v1 }
 0x22f   :  { %5439 = vmatprep.subr.mxu0 %v8374_v16  ;;  %5517 = vmatprep.subr.mxu1 %v4166_v36 }
 0x230   :  { %3266 = vmatmul.mubr.f32.gmra.mxu0 %v11412_v27  ;;  %v1567_v15 = vpop.f32.mrf.mxu0  ;;  %5518 = vmatpush3.msra.mxu1 %v4054_v58  ;;  %v3701_v27 = vld [vmem:[%s10198_s5 + $0xe0] sm:$0xff] }
 0x231   :  { %v8354_v26 = vpop.f32.mrf.mxu1  ;;  %3539 = vmatmul.mubr.f32.gmra.mxu1 %v11423_v53  ;;  %3272 = vmatprep.mubr.f32.mxu0 %v11414_v12  ;;  %v1568_v25 = vadd.f32 %v1567_v15, %v8343_v7  ;;  %v11441_v15 = vld [vmem:[#allocation135_spill] sm:$0xff] }
 0x232   :  { %3545 = vmatprep.mubr.f32.mxu1 %v11424_v22  ;;  %v8366_v43 = vpop.f32.mrf.mxu0  ;;  %5440 = vmatpush3.msra.mxu0 %v8398_v47 }
 0x233   :  { %v8368_v62 = vpop.f32.mrf.mxu1  ;;  %v8376_v39 = vadd.f32 %v2200_v48, %v1568_v25  ;;  %5441 = vmatprep.subr.mxu0 %v8413_v52  ;;  %v11437_v48 = vld [vmem:[#allocation153_spill] sm:$0xff]  ;;  %5519 = vmatprep.subr.mxu1 %v4173_v14 }
 0x234   :  { %3274 = vmatmul.mubr.f32.gmra.mxu0 %v11417_v42  ;;  %v8455_v42 = vand.u32 4294901760, %v3701_v27 }
 0x235   :  { %3547 = vmatmul.mubr.f32.gmra.mxu1 %v11427_v44  ;;  %3280 = vmatprep.mubr.f32.mxu0 %v11420_v51  ;;  %v4179_v51 = vsub.f32 %v8429_v1, %v10568_v60  ;;  %v3680_v1 = vld [vmem:[%s10198_s5 + $0x38] sm:$0xff] }
 0x236   :  { %3553 = vmatprep.mubr.f32.mxu1 %v11429_v11  ;;  %v1583_v38 = vpop.f32.mrf.mxu0  ;;  %11440 = vst [vmem:[#allocation84_spill] sm:$0xff] %v8455_v42  ;;  %5442 = vmatpush3.msra.mxu0 %v8438_v55  ;;  %v8472_v25 = vsub.f32 %v3701_v27, %v8455_v42 }
 0x237   :  { %v8393_v59 = vpop.f32.mrf.mxu1  ;;  %v1584_v32 = vadd.f32 %v1583_v38, %v8343_v7  ;;  %5443 = vmatprep.subr.mxu0 %v8455_v42  ;;  %v3700_v38 = vld [vmem:[%s10198_s5 + $0xd8] sm:$0xff] }
 0x238   :  { %3282 = vmatmul.mubr.f32.gmra.mxu0 %v11423_v53  ;;  %v8406_v28 = vpop.f32.mrf.mxu0  ;;  %v4180_v53 = vand.u32 4294901760, %v4179_v51  ;;  %11442 = vst [vmem:[#allocation95_spill] sm:$0xff] %v8472_v25  ;;  %v11451_v51 = vld [vmem:[#allocation137_spill] sm:$0xff] }
 0x239   :  { %v8408_v20 = vpop.f32.mrf.mxu1  ;;  %3555 = vmatmul.mubr.f32.gmra.mxu1 %v11433_v17  ;;  %3288 = vmatprep.mubr.f32.mxu0 %v11424_v22  ;;  %v8417_v46 = vadd.f32 %v2208_v19, %v1584_v32  ;;  %v4061_v19 = vand.u32 4294901760, %v4060_v13 }
 0x23a   :  { %3561 = vmatprep.mubr.f32.mxu1 %v11434_v18 }
 0x23b   :  { %5520 = vmatpush3.msra.mxu1 %v4061_v19 }
 0x23c   :  { %3290 = vmatmul.mubr.f32.gmra.mxu0 %v11427_v44  ;;  %v1599_v3 = vpop.f32.mrf.mxu0  ;;  %v4067_v44 = vsub.f32 %v8453_v40, %v10567_v2  ;;  %5521 = vmatprep.subr.mxu1 %v4180_v53  ;;  %v11476_v40 = vld [vmem:[#allocation142_spill] sm:$0xff] }
 0x23d   :  { %v8432_v9 = vpop.f32.mrf.mxu1  ;;  %3563 = vmatmul.mubr.f32.gmra.mxu1 %v11437_v48  ;;  %3296 = vmatprep.mubr.f32.mxu0 %v11429_v11  ;;  %v1600_v5 = vadd.f32 %v1599_v3, %v8343_v7  ;;  %v10566_v11 = vand.u32 4294901760, %v8472_v25 }
 0x23e   :  { %3569 = vmatprep.mubr.f32.mxu1 %v11438_v63  ;;  %v8448_v12 = vpop.f32.mrf.mxu0  ;;  %v4068_v24 = vand.u32 4294901760, %v4067_v44 }
 0x23f   :  { %v8450_v57 = vpop.f32.mrf.mxu1  ;;  %v8458_v8 = vadd.f32 %v8354_v26, %v1600_v5  ;;  %v3685_v26 = vld [vmem:[%s10198_s5 + $0x60] sm:$0xff]  ;;  %v4186_v14 = vsub.f32 %v8472_v25, %v10566_v11 }
 0x240   :  { %3298 = vmatmul.mubr.f32.gmra.mxu0 %v11433_v17  ;;  %v8481_v36 = vand.u32 4294901760, %v3685_v26  ;;  %v8496_v17 = vand.u32 4294901760, %v3700_v38  ;;  %5522 = vmatpush3.msra.mxu1 %v4068_v24 }
 0x241   :  { %3571 = vmatmul.mubr.f32.gmra.mxu1 %v11441_v15  ;;  %3304 = vmatprep.mubr.f32.mxu0 %v11434_v18  ;;  %v4187_v13 = vand.u32 4294901760, %v4186_v14 }
 0x242   :  { %3577 = vmatprep.mubr.f32.mxu1 %v11443_v49  ;;  %v1615_v22 = vpop.f32.mrf.mxu0  ;;  %11444 = vst [vmem:[#allocation90_spill] sm:$0xff] %v8481_v36  ;;  %v8494_v58 = vsub.f32 %v3685_v26, %v8481_v36  ;;  %11446 = vst [vmem:[#allocation96_spill] sm:$0xff] %v8496_v17  ;;  %5444 = vmatpush3.msra.mxu0 %v8481_v36  ;;  %v8513_v5 = vsub.f32 %v3700_v38, %v8496_v17 }
 0x243   :  { %v8475_v21 = vpop.f32.mrf.mxu1  ;;  %v1616_v35 = vadd.f32 %v1615_v22, %v8343_v7  ;;  %5445 = vmatprep.subr.mxu0 %v8496_v17  ;;  %v11452_v22 = vld [vmem:[#allocation154_spill] sm:$0xff]  ;;  %5523 = vmatprep.subr.mxu1 %v4187_v13 }
 0x244   :  { %3306 = vmatmul.mubr.f32.gmra.mxu0 %v11437_v48  ;;  %v8489_v34 = vpop.f32.mrf.mxu0  ;;  %11445 = vst [vmem:[#allocation102_spill] sm:$0xff] %v8494_v58  ;;  %v10564_v3 = vand.u32 4294901760, %v8494_v58  ;;  %v3684_v48 = vld [vmem:[%s10198_s5 + $0x58] sm:$0xff]  ;;  %11449 = vst [vmem:[#allocation98_spill] sm:$0xff] %v8513_v5  ;;  %v10565_v26 = vand.u32 4294901760, %v8513_v5 }
 0x245   :  { %v8491_v32 = vpop.f32.mrf.mxu1  ;;  %3579 = vmatmul.mubr.f32.gmra.mxu1 %v11447_v23  ;;  %3312 = vmatprep.mubr.f32.mxu0 %v11438_v63  ;;  %v8501_v18 = vadd.f32 %v8393_v59, %v1616_v35  ;;  %v8522_v19 = vand.u32 4294901760, %v3684_v48 }
 0x246   :  { %3585 = vmatprep.mubr.f32.mxu1 %v11448_v50  ;;  %v4074_v63 = vsub.f32 %v8494_v58, %v10564_v3  ;;  %v11457_v3 = vld [vmem:[#allocation138_spill] sm:$0xff] }
 0x247   :  { %11450 = vst [vmem:[#allocation106_spill] sm:$0xff] %v8522_v19  ;;  %v8537_v24 = vsub.f32 %v3684_v48, %v8522_v19  ;;  %5446 = vmatpush3.msra.mxu0 %v8522_v19 }
 0x248   :  { %3314 = vmatmul.mubr.f32.gmra.mxu0 %v11441_v15  ;;  %v1631_v59 = vpop.f32.mrf.mxu0  ;;  %v3699_v15 = vld [vmem:[%s10198_s5 + $0xd0] sm:$0xff]  ;;  %v4075_v38 = vand.u32 4294901760, %v4074_v63  ;;  %v11455_v63 = vld [vmem:[#allocation157_spill] sm:$0xff] }
 0x249   :  { %v8516_v27 = vpop.f32.mrf.mxu1  ;;  %3587 = vmatmul.mubr.f32.gmra.mxu1 %v11451_v51  ;;  %3320 = vmatprep.mubr.f32.mxu0 %v11443_v49  ;;  %v1632_v53 = vadd.f32 %v1631_v59, %v8343_v7  ;;  %11453 = vst [vmem:[#allocation109_spill] sm:$0xff] %v8537_v24  ;;  %v8539_v49 = vand.u32 4294901760, %v3699_v15  ;;  %v4193_v59 = vsub.f32 %v8513_v5, %v10565_v26  ;;  %v10569_v13 = vand.u32 4294901760, %v8537_v24 }
 0x24a   :  { %3593 = vmatprep.mubr.f32.mxu1 %v11452_v22  ;;  %v8532_v44 = vpop.f32.mrf.mxu0  ;;  %5524 = vmatpush3.msra.mxu1 %v4075_v38 }
 0x24b   :  { %v8534_v35 = vpop.f32.mrf.mxu1  ;;  %11454 = vst [vmem:[#allocation120_spill] sm:$0xff] %v8539_v49  ;;  %v8542_v14 = vadd.f32 %v8432_v9, %v1632_v53  ;;  %v4194_v48 = vand.u32 4294901760, %v4193_v59  ;;  %v3683_v9 = vld [vmem:[%s10198_s5 + $0x50] sm:$0xff]  ;;  %v8556_v53 = vsub.f32 %v3699_v15, %v8539_v49  ;;  %5447 = vmatprep.subr.mxu0 %v8539_v49  ;;  %v3698_v15 = vld [vmem:[%s10198_s5 + $0xc8] sm:$0xff] }
 0x24c   :  { %3322 = vmatmul.mubr.f32.gmra.mxu0 %v11447_v23  ;;  %v4081_v23 = vsub.f32 %v8537_v24, %v10569_v13  ;;  %v8580_v54 = vand.u32 4294901760, %v3698_v15  ;;  %v11466_v24 = vld [vmem:[#allocation141_spill] sm:$0xff] }
 0x24d   :  { %3595 = vmatmul.mubr.f32.gmra.mxu1 %v11455_v63  ;;  %3328 = vmatprep.mubr.f32.mxu0 %v11448_v50  ;;  %11456 = vst [vmem:[#allocation130_spill] sm:$0xff] %v8556_v53  ;;  %v8565_v50 = vand.u32 4294901760, %v3683_v9  ;;  %v10574_v59 = vand.u32 4294901760, %v8556_v53 }
 0x24e   :  { %3601 = vmatprep.mubr.f32.mxu1 %v11457_v3  ;;  %v1647_v26 = vpop.f32.mrf.mxu0  ;;  %5525 = vmatprep.subr.mxu1 %v4194_v48  ;;  %v4082_v13 = vand.u32 4294901760, %v4081_v23  ;;  %11460 = vst [vmem:[#allocation124_spill] sm:$0xff] %v8580_v54 }
 0x24f   :  { %v8559_v11 = vpop.f32.mrf.mxu1  ;;  %11458 = vst [vmem:[#allocation121_spill] sm:$0xff] %v8565_v50  ;;  %v1648_v38 = vadd.f32 %v1647_v26, %v8343_v7  ;;  %v8578_v0 = vsub.f32 %v3683_v9, %v8565_v50  ;;  %v11461_v26 = vld [vmem:[#allocation139_spill] sm:$0xff]  ;;  %5448 = vmatpush3.msra.mxu0 %v8565_v50 }
 0x250   :  { %3330 = vmatmul.mubr.f32.gmra.mxu0 %v11451_v51  ;;  %v8573_v2 = vpop.f32.mrf.mxu0  ;;  %v4200_v51 = vsub.f32 %v8556_v53, %v10574_v59  ;;  %5526 = vmatpush3.msra.mxu1 %v4082_v13  ;;  %v8606_v59 = vand.u32 4294901760, %v3682_v37 }
 0x251   :  { %v8575_v60 = vpop.f32.mrf.mxu1  ;;  %11459 = vst [vmem:[#allocation5_spill] sm:$0xff] %v8578_v0  ;;  %3603 = vmatmul.mubr.f32.gmra.mxu1 %v11461_v26  ;;  %3336 = vmatprep.mubr.f32.mxu0 %v11452_v22  ;;  %v8585_v48 = vadd.f32 %v8475_v21, %v1648_v38  ;;  %v10581_v23 = vand.u32 4294901760, %v8578_v0  ;;  %v8597_v22 = vsub.f32 %v3698_v15, %v8580_v54 }
 0x252   :  { %3609 = vmatprep.mubr.f32.mxu1 %v11462_v45  ;;  %v4201_v9 = vand.u32 4294901760, %v4200_v51  ;;  %5449 = vmatprep.subr.mxu0 %v8580_v54  ;;  %11464 = vst [vmem:[#allocation127_spill] sm:$0xff] %v8606_v59  ;;  %v11465_v51 = vld [vmem:[#allocation140_spill] sm:$0xff]  ;;  %v8621_v54 = vsub.f32 %v3682_v37, %v8606_v59 }
 0x253   :  { %11463 = vst [vmem:[#allocation126_spill] sm:$0xff] %v8597_v22  ;;  %v4088_v13 = vsub.f32 %v8578_v0, %v10581_v23  ;;  %v10590_v53 = vand.u32 4294901760, %v8597_v22  ;;  %5450 = vmatpush3.msra.mxu0 %v8606_v59  ;;  %v11471_v59 = vld [vmem:[#allocation160_spill] sm:$0xff] }
 0x254   :  { %3338 = vmatmul.mubr.f32.gmra.mxu0 %v11455_v63  ;;  %v1663_v21 = vpop.f32.mrf.mxu0  ;;  %v3697_v63 = vld [vmem:[%s10198_s5 + $0xc0] sm:$0xff]  ;;  %5527 = vmatprep.subr.mxu1 %v4201_v9  ;;  %11467 = vst [vmem:[#allocation131_spill] sm:$0xff] %v8621_v54  ;;  %v10597_v9 = vand.u32 4294901760, %v8621_v54 }
 0x255   :  { %v8600_v38 = vpop.f32.mrf.mxu1  ;;  %3611 = vmatmul.mubr.f32.gmra.mxu1 %v11465_v51  ;;  %3344 = vmatprep.mubr.f32.mxu0 %v11457_v3  ;;  %v1664_v15 = vadd.f32 %v1663_v21, %v8343_v7  ;;  %v4089_v0 = vand.u32 4294901760, %v4088_v13  ;;  %v8623_v3 = vand.u32 4294901760, %v3697_v63  ;;  %v4207_v58 = vsub.f32 %v8597_v22, %v10590_v53  ;;  %v11469_v13 = vld [vmem:[#allocation158_spill] sm:$0xff] }
 0x256   :  { %3617 = vmatprep.mubr.f32.mxu1 %v11466_v24  ;;  %v8616_v5 = vpop.f32.mrf.mxu0 }
 0x257   :  { %v8618_v23 = vpop.f32.mrf.mxu1  ;;  %11468 = vst [vmem:[#allocation132_spill] sm:$0xff] %v8623_v3  ;;  %v8626_v21 = vadd.f32 %v8516_v27, %v1664_v15  ;;  %5528 = vmatpush3.msra.mxu1 %v4089_v0  ;;  %v4208_v37 = vand.u32 4294901760, %v4207_v58  ;;  %v3681_v27 = vld [vmem:[%s10198_s5 + $0x40] sm:$0xff]  ;;  %v8640_v15 = vsub.f32 %v3697_v63, %v8623_v3  ;;  %v4095_v0 = vsub.f32 %v8621_v54, %v10597_v9  ;;  %v3696_v63 = vld [vmem:[%s10198_s5 + $0xb8] sm:$0xff] }
 0x258   :  { %3346 = vmatmul.mubr.f32.gmra.mxu0 %v11461_v26  ;;  %5451 = vmatprep.subr.mxu0 %v8623_v3  ;;  %v8664_v3 = vand.u32 4294901760, %v3696_v63 }
 0x259   :  { %3619 = vmatmul.mubr.f32.gmra.mxu1 %v11469_v13  ;;  %3352 = vmatprep.mubr.f32.mxu0 %v11462_v45  ;;  %11470 = vst [vmem:[#allocation133_spill] sm:$0xff] %v8640_v15  ;;  %v8649_v45 = vand.u32 4294901760, %v3681_v27  ;;  %v10606_v26 = vand.u32 4294901760, %v8640_v15  ;;  %v4096_v9 = vand.u32 4294901760, %v4095_v0 }
 0x25a   :  { %3625 = vmatprep.mubr.f32.mxu1 %v11471_v59  ;;  %v1679_v53 = vpop.f32.mrf.mxu0  ;;  %5529 = vmatprep.subr.mxu1 %v4208_v37  ;;  %11474 = vst [vmem:[#allocation22_spill] sm:$0xff] %v8664_v3 }
 0x25b   :  { %v8643_v22 = vpop.f32.mrf.mxu1  ;;  %11472 = vst [vmem:[#allocation7_spill] sm:$0xff] %v8649_v45  ;;  %v1680_v58 = vadd.f32 %v1679_v53, %v8343_v7  ;;  %v8662_v54 = vsub.f32 %v3681_v27, %v8649_v45  ;;  %v11475_v53 = vld [vmem:[#allocation63_spill] sm:$0xff]  ;;  %5530 = vmatpush3.msra.mxu1 %v4096_v9  ;;  %5452 = vmatpush3.msra.mxu0 %v8649_v45 }
 0x25c   :  { %3354 = vmatmul.mubr.f32.gmra.mxu0 %v11465_v51  ;;  %v8657_v50 = vpop.f32.mrf.mxu0  ;;  %v4214_v51 = vsub.f32 %v8640_v15, %v10606_v26  ;;  %5453 = vmatprep.subr.mxu0 %v8664_v3  ;;  %v8690_v26 = vand.u32 4294901760, %v3680_v1 }
 0x25d   :  { %v8659_v25 = vpop.f32.mrf.mxu1  ;;  %11473 = vst [vmem:[#allocation11_spill] sm:$0xff] %v8662_v54  ;;  %3627 = vmatmul.mubr.f32.gmra.mxu1 %v11475_v53  ;;  %3360 = vmatprep.mubr.f32.mxu0 %v11466_v24  ;;  %v8669_v37 = vadd.f32 %v8559_v11, %v1680_v58  ;;  %v10613_v0 = vand.u32 4294901760, %v8662_v54  ;;  %v8681_v24 = vsub.f32 %v3696_v63, %v8664_v3 }
 0x25e   :  { %3633 = vmatprep.mubr.f32.mxu1 %v11476_v40  ;;  %v4215_v27 = vand.u32 4294901760, %v4214_v51  ;;  %11478 = vst [vmem:[#allocation24_spill] sm:$0xff] %v8690_v26  ;;  %v11479_v51 = vld [vmem:[#allocation56_spill] sm:$0xff]  ;;  %5454 = vmatpush3.msra.mxu0 %v8690_v26 }
 0x25f   :  { %11477 = vst [vmem:[#allocation13_spill] sm:$0xff] %v8681_v24  ;;  %v4102_v9 = vsub.f32 %v8662_v54, %v10613_v0  ;;  %v8705_v54 = vsub.f32 %v3680_v1, %v8690_v26  ;;  %v11482_v3 = vand.u32 4294901760, %v8681_v24  ;;  %v3694_v1 = vld [vmem:[%s10198_s5 + $0xa8] sm:$0xff] }
 0x260   :  { %3362 = vmatmul.mubr.f32.gmra.mxu0 %v11469_v13  ;;  %v1695_v11 = vpop.f32.mrf.mxu0  ;;  %v3695_v13 = vld [vmem:[%s10198_s5 + $0xb0] sm:$0xff]  ;;  %5531 = vmatprep.subr.mxu1 %v4215_v27 }
 0x261   :  { %v8684_v58 = vpop.f32.mrf.mxu1  ;;  %3635 = vmatmul.mubr.f32.gmra.mxu1 %v11479_v51  ;;  %3368 = vmatprep.mubr.f32.mxu0 %v11471_v59  ;;  %v1696_v63 = vadd.f32 %v1695_v11, %v8343_v7  ;;  %v4103_v0 = vand.u32 4294901760, %v4102_v9  ;;  %11480 = vst [vmem:[#allocation15_spill] sm:$0xff] %v8705_v54  ;;  %v8707_v59 = vand.u32 4294901760, %v3695_v13  ;;  %v3679_v11 = vld [vmem:[%s10198_s5 + $0x30] sm:$0xff]  ;;  %v4221_v33 = vsub.f32 %v8681_v24, %v11482_v3  ;;  %v3678_v3 = vld [vmem:[%s10198_s5 + $0x28] sm:$0xff] }
 0x262   :  { %v8699_v45 = vpop.f32.mrf.mxu0  ;;  %v8718_v27 = vand.u32 4294901760, %v3679_v11  ;;  %v11488_v19 = vand.u32 4294901760, %v8705_v54 }
 0x263   :  { %v8701_v49 = vpop.f32.mrf.mxu1  ;;  %11481 = vst [vmem:[#allocation26_spill] sm:$0xff] %v8707_v59  ;;  %v8713_v15 = vadd.f32 %v8600_v38, %v1696_v63  ;;  %5532 = vmatpush3.msra.mxu1 %v4103_v0  ;;  %v8726_v26 = vsub.f32 %v3695_v13, %v8707_v59  ;;  %v8728_v38 = vand.u32 4294901760, %v3694_v1  ;;  %v4222_v63 = vand.u32 4294901760, %v4221_v33  ;;  %5455 = vmatprep.subr.mxu0 %v8707_v59  ;;  %v3693_v0 = vld [vmem:[%s10198_s5 + $0xa0] sm:$0xff] }
 0x264   :  { %11483 = vst [vmem:[#allocation12_spill] sm:$0xff] %v8718_v27  ;;  %3370 = vmatmul.mubr.f32.gmra.mxu0 %v11475_v53  ;;  %v8736_v24 = vsub.f32 %v3679_v11, %v8718_v27  ;;  %v8738_v53 = vand.u32 4294901760, %v3678_v3  ;;  %v4109_v41 = vsub.f32 %v8705_v54, %v11488_v19  ;;  %v8753_v11 = vand.u32 4294901760, %v3693_v0  ;;  %v3677_v59 = vld [vmem:[%s10198_s5 + $0x20] sm:$0xff] }
 0x265   :  { %11484 = vst [vmem:[#allocation17_spill] sm:$0xff] %v8726_v26  ;;  %11485 = vst [vmem:[#allocation28_spill] sm:$0xff] %v8728_v38  ;;  %3376 = vmatprep.mubr.f32.mxu0 %v11476_v40  ;;  %5456 = vmatpush3.msra.mxu0 %v8718_v27  ;;  %v8751_v40 = vsub.f32 %v3694_v1, %v8728_v38  ;;  %v8764_v33 = vand.u32 4294901760, %v3677_v59  ;;  %v11494_v36 = vand.u32 4294901760, %v8726_v26 }
 0x266   :  { %11486 = vst [vmem:[#allocation16_spill] sm:$0xff] %v8736_v24  ;;  %11487 = vst [vmem:[#allocation19_spill] sm:$0xff] %v8738_v53  ;;  %v1711_v13 = vpop.f32.mrf.mxu0  ;;  %5533 = vmatprep.subr.mxu1 %v4222_v63  ;;  %5457 = vmatprep.subr.mxu0 %v8728_v38  ;;  %v8762_v19 = vsub.f32 %v3678_v3, %v8738_v53  ;;  %v4110_v27 = vand.u32 4294901760, %v4109_v41  ;;  %v8776_v6 = vsub.f32 %v3693_v0, %v8753_v11  ;;  %v3692_v3 = vld [vmem:[%s10198_s5 + $0x98] sm:$0xff] }
 0x267   :  { %v8743_v9 = vpop.f32.mrf.mxu1  ;;  %11489 = vst [vmem:[#allocation30_spill] sm:$0xff] %v8751_v40  ;;  %11490 = vst [vmem:[#allocation20_spill] sm:$0xff] %v8753_v11  ;;  %v1712_v17 = vadd.f32 %v1711_v13, %v8343_v7  ;;  %v4228_v63 = vsub.f32 %v8726_v26, %v11494_v36  ;;  %v11496_v38 = vand.u32 4294901760, %v8736_v24  ;;  %5458 = vmatpush3.msra.mxu0 %v8738_v53  ;;  %v3676_v0 = vld [vmem:[%s10198_s5 + $0x18] sm:$0xff]  ;;  %v11497_v26 = vand.u32 4294901760, %v8751_v40 }
 0x268   :  { %11491 = vst [vmem:[#allocation32_spill] sm:$0xff] %v8762_v19  ;;  %11492 = vst [vmem:[#allocation23_spill] sm:$0xff] %v8764_v33  ;;  %3378 = vmatmul.mubr.f32.gmra.mxu0 %v11479_v51  ;;  %v8767_v1 = vpop.f32.mrf.mxu0  ;;  %5534 = vmatpush3.msra.mxu1 %v4110_v27  ;;  %v11499_v53 = vand.u32 4294901760, %v8762_v19 }
 0x269   :  { %v8769_v54 = vpop.f32.mrf.mxu1  ;;  %11495 = vst [vmem:[#allocation149_spill] sm:$0xff] %v8776_v6  ;;  %v8782_v51 = vadd.f32 %v8643_v22, %v1712_v17  ;;  %v4116_v41 = vsub.f32 %v8736_v24, %v11496_v38  ;;  %v4229_v13 = vand.u32 4294901760, %v4228_v63  ;;  %v4235_v42 = vsub.f32 %v8751_v40, %v11497_v26  ;;  %5459 = vmatprep.subr.mxu0 %v8753_v11  ;;  %v3691_v38 = vld [vmem:[%s10198_s5 + $0x90] sm:$0xff] }
 0x26a   :  { %11493 = vst [vmem:[#allocation34_spill] sm:$0xff] %v8769_v54  ;;  %v8797_v17 = vsub.f32 %v3677_v59, %v8764_v33  ;;  %v4123_v27 = vsub.f32 %v8762_v19, %v11499_v53  ;;  %5460 = vmatpush3.msra.mxu0 %v8764_v33  ;;  %v8807_v63 = vand.u32 4294901760, %v3692_v3  ;;  %v3675_v26 = vld [vmem:[%s10198_s5 + $0x10] sm:$0xff]  ;;  %v11501_v40 = vand.u32 4294901760, %v8776_v6 }
 0x26b   :  { %v4117_v36 = vand.u32 4294901760, %v4116_v41  ;;  %5535 = vmatprep.subr.mxu1 %v4229_v13  ;;  %v4236_v22 = vand.u32 4294901760, %v4235_v42  ;;  %v8818_v53 = vand.u32 4294901760, %v3676_v0  ;;  %v8825_v52 = vand.u32 4294901760, %v3691_v38  ;;  %v3690_v42 = vld [vmem:[%s10198_s5 + $0x88] sm:$0xff] }
 0x26c   :  { %11498 = vst [vmem:[#allocation25_spill] sm:$0xff] %v8797_v17  ;;  %11500 = vst [vmem:[#allocation37_spill] sm:$0xff] %v8807_v63  ;;  %v1727_v59 = vpop.f32.mrf.mxu0  ;;  %v4242_v41 = vsub.f32 %v8776_v6, %v11501_v40  ;;  %v4124_v19 = vand.u32 4294901760, %v4123_v27  ;;  %5461 = vmatprep.subr.mxu0 %v8807_v63  ;;  %v8823_v55 = vsub.f32 %v3692_v3, %v8807_v63  ;;  %v3674_v63 = vld [vmem:[%s10198_s5 + $0x8] sm:$0xff] }
 0x26d   :  { %v8812_v11 = vpop.f32.mrf.mxu1  ;;  %11502 = vst [vmem:[#allocation21_spill] sm:$0xff] %v8818_v53  ;;  %v1728_v33 = vadd.f32 %v1727_v59, %v8343_v7  ;;  %5536 = vmatpush3.msra.mxu1 %v4117_v36  ;;  %11504 = vst [vmem:[#allocation38_spill] sm:$0xff] %v8825_v52  ;;  %v11506_v36 = vand.u32 4294901760, %v8797_v17  ;;  %5462 = vmatpush3.msra.mxu0 %v8818_v53  ;;  %v8839_v3 = vsub.f32 %v3676_v0, %v8818_v53  ;;  %v3689_v0 = vld [vmem:[%s10198_s5 + $0x80] sm:$0xff] }
 0x26e   :  { %11503 = vst [vmem:[#allocation27_spill] sm:$0xff] %v8823_v55  ;;  %v8830_v40 = vpop.f32.mrf.mxu0  ;;  %5537 = vmatprep.subr.mxu1 %v4236_v22  ;;  %v4243_v24 = vand.u32 4294901760, %v4242_v41  ;;  %v8841_v59 = vand.u32 4294901760, %v3675_v26  ;;  %v10676_v22 = vand.u32 4294901760, %v8823_v55  ;;  %v8851_v41 = vsub.f32 %v3691_v38, %v8825_v52  ;;  %5463 = vmatprep.subr.mxu0 %v8825_v52 }
 0x26f   :  { %v8832_v13 = vpop.f32.mrf.mxu1  ;;  %v4130_v27 = vsub.f32 %v8797_v17, %v11506_v36  ;;  %11507 = vst [vmem:[#allocation40_spill] sm:$0xff] %v8839_v3  ;;  %v8847_v6 = vadd.f32 %v8684_v58, %v1728_v33  ;;  %5538 = vmatpush3.msra.mxu1 %v4124_v19  ;;  %v10681_v53 = vand.u32 4294901760, %v8839_v3  ;;  %v8862_v58 = vand.u32 4294901760, %v3690_v42 }
 0x270   :  { %11505 = vst [vmem:[#allocation29_spill] sm:$0xff] %v8832_v13  ;;  %11508 = vst [vmem:[#allocation31_spill] sm:$0xff] %v8841_v59  ;;  %5539 = vmatprep.subr.mxu1 %v4243_v24  ;;  %v8859_v17 = vsub.f32 %v3675_v26, %v8841_v59  ;;  %5464 = vmatpush3.msra.mxu0 %v8841_v59  ;;  %v4249_v33 = vsub.f32 %v8823_v55, %v10676_v22  ;;  %v8868_v38 = vand.u32 4294901760, %v3674_v63 }
 0x271   :  { %11509 = vst [vmem:[#allocation42_spill] sm:$0xff] %v8851_v41  ;;  %v4131_v36 = vand.u32 4294901760, %v4130_v27  ;;  %11511 = vst [vmem:[#allocation33_spill] sm:$0xff] %v8862_v58  ;;  %v4137_v26 = vsub.f32 %v8839_v3, %v10681_v53  ;;  %v8875_v59 = vsub.f32 %v3690_v42, %v8862_v58  ;;  %v8877_v47 = vand.u32 4294901760, %v3689_v0  ;;  %5465 = vmatprep.subr.mxu0 %v8862_v58  ;;  %v3673_v53 = vld [vmem:[%s10198_s5] sm:$0xff] }
 0x272   :  { %11510 = vst [vmem:[#allocation150_spill] sm:$0xff] %v8859_v17  ;;  %11512 = vst [vmem:[#allocation44_spill] sm:$0xff] %v8868_v38  ;;  %v1743_v52 = vpop.f32.mrf.mxu0  ;;  %v4250_v19 = vand.u32 4294901760, %v4249_v33  ;;  %v11515_v55 = vand.u32 4294901760, %v8851_v41  ;;  %v8885_v16 = vsub.f32 %v3674_v63, %v8868_v38  ;;  %5466 = vmatpush3.msra.mxu0 %v8868_v38  ;;  %v8911_v4 = vand.u32 4294901760, %v3673_v53 }
 0x273   :  { %v2304_v24 = vpop.f32.mrf.mxu1  ;;  %5540 = vmatpush3.msra.mxu1 %v4131_v36  ;;  %11513 = vst [vmem:[#allocation35_spill] sm:$0xff] %v8875_v59  ;;  %11514 = vst [vmem:[#allocation46_spill] sm:$0xff] %v8877_v47  ;;  %v1744_v22 = vadd.f32 %v1743_v52, %v8343_v7  ;;  %v4138_v58 = vand.u32 4294901760, %v4137_v26  ;;  %v11518_v52 = vand.u32 4294901760, %v8859_v17  ;;  %v8900_v63 = vsub.f32 %v3689_v0, %v8877_v47 }
 0x274   :  { %v4256_v36 = vsub.f32 %v8851_v41, %v11515_v55  ;;  %11516 = vst [vmem:[#allocation36_spill] sm:$0xff] %v8885_v16  ;;  %v8891_v42 = vpop.f32.mrf.mxu0  ;;  %v10694_v55 = vand.u32 4294901760, %v8875_v59  ;;  %5467 = vmatprep.subr.mxu0 %v8877_v47  ;;  %5541 = vmatprep.subr.mxu1 %v4250_v19  ;;  %v10695_v3 = vand.u32 4294901760, %v8885_v16  ;;  %11520 = vst [vmem:[#allocation50_spill] sm:$0xff] %v8911_v4 }
 0x275   :  { %v8893_v27 = vpop.f32.mrf.mxu1  ;;  %v4144_v33 = vsub.f32 %v8859_v17, %v11518_v52  ;;  %11519 = vst [vmem:[#allocation39_spill] sm:$0xff] %v8900_v63  ;;  %v8904_v41 = vadd.f32 %v8743_v9, %v1744_v22  ;;  %5542 = vmatpush3.msra.mxu1 %v4138_v58  ;;  %v10696_v17 = vand.u32 4294901760, %v8900_v63  ;;  %5468 = vmatpush3.msra.mxu0 %v8911_v4 }
 0x276   :  { %11517 = vst [vmem:[#allocation48_spill] sm:$0xff] %v8893_v27  ;;  %v4257_v38 = vand.u32 4294901760, %v4256_v36  ;;  %v4263_v52 = vsub.f32 %v8875_v59, %v10694_v55  ;;  %v4151_v9 = vsub.f32 %v8885_v16, %v10695_v3  ;;  %v8920_v36 = vsub.f32 %v3673_v53, %v8911_v4  ;;  %5597 = vmatprep.subr.mxu0 %v8351_v30 }
 0x277   :  { %v4145_v26 = vand.u32 4294901760, %v4144_v33  ;;  %v4270_v58 = vsub.f32 %v8900_v63, %v10696_v17 }
 0x278   :  { %5543 = vmatprep.subr.mxu1 %v4257_v38  ;;  %v1759_v22 = vpop.f32.mrf.mxu0  ;;  %v4264_v19 = vand.u32 4294901760, %v4263_v52  ;;  %11521 = vst [vmem:[#allocation41_spill] sm:$0xff] %v8920_v36  ;;  %v4152_v38 = vand.u32 4294901760, %v4151_v9  ;;  %v10702_v52 = vand.u32 4294901760, %v8920_v36 }
 0x279   :  { %v2312_v0 = vpop.f32.mrf.mxu1  ;;  %5544 = vmatpush3.msra.mxu1 %v4145_v26  ;;  %v1760_v33 = vadd.f32 %v1759_v22, %v8343_v7  ;;  %v4271_v26 = vand.u32 4294901760, %v4270_v58 }
 0x27a   :  { %v8925_v55 = vpop.f32.mrf.mxu0  ;;  %5545 = vmatprep.subr.mxu1 %v4264_v19  ;;  %v4158_v53 = vsub.f32 %v8920_v36, %v10702_v52 }
 0x27b   :  { %v8927_v3 = vpop.f32.mrf.mxu1  ;;  %v8931_v17 = vadd.f32 %v8812_v11, %v1760_v33  ;;  %5546 = vmatpush3.msra.mxu1 %v4152_v38 }
 0x27c   :  { %11522 = vst [vmem:[#allocation53_spill] sm:$0xff] %v8927_v3  ;;  %5547 = vmatprep.subr.mxu1 %v4271_v26  ;;  %v4159_v30 = vand.u32 4294901760, %v4158_v53 }
 0x27e   :  { %v1775_v9 = vpop.f32.mrf.mxu0  ;;  %5548 = vmatpush3.msra.mxu1 %v4159_v30 }
 0x27f   :  { %v2320_v22 = vpop.f32.mrf.mxu1  ;;  %v1776_v63 = vadd.f32 %v1775_v9, %v8343_v7  ;;  %5677 = vmatprep.subr.mxu1 %v8334_v61 }
 0x280   :  { %v8937_v16 = vpop.f32.mrf.mxu0 }
 0x281   :  { %v8939_v19 = vpop.f32.mrf.mxu1  ;;  %v8941_v58 = vadd.f32 %v2304_v24, %v1776_v63 }
 0x282   :  { %11523 = vst [vmem:[#allocation43_spill] sm:$0xff] %v8939_v19 }
 0x284   :  { %v1791_v11 = vpop.f32.mrf.mxu0 }
 0x285   :  { %v8944_v33 = vpop.f32.mrf.mxu1  ;;  %v1792_v38 = vadd.f32 %v1791_v11, %v8343_v7 }
 0x286   :  { %11524 = vst [vmem:[#allocation54_spill] sm:$0xff] %v8944_v33  ;;  %v8947_v26 = vpop.f32.mrf.mxu0 }
 0x287   :  { %v8949_v52 = vpop.f32.mrf.mxu1  ;;  %v8951_v53 = vadd.f32 %v2312_v0, %v1792_v38 }
 0x288   :  { %11525 = vst [vmem:[#allocation45_spill] sm:$0xff] %v8949_v52 }
 0x28a   :  { %v1807_v9 = vpop.f32.mrf.mxu0 }
 0x28b   :  { %v8953_v36 = vpop.f32.mrf.mxu1  ;;  %v1808_v30 = vadd.f32 %v1807_v9, %v8343_v7 }
 0x28c   :  { %11526 = vst [vmem:[#allocation57_spill] sm:$0xff] %v8953_v36  ;;  %v8956_v24 = vpop.f32.mrf.mxu0 }
 0x28d   :  { %v8958_v63 = vpop.f32.mrf.mxu1  ;;  %v8960_v61 = vadd.f32 %v2320_v22, %v1808_v30 }
 0x28e   :  { %11527 = vst [vmem:[#allocation47_spill] sm:$0xff] %v8958_v63 }
 0x290   :  { %v8962_v4 = vpop.f32.mrf.mxu0 }
 0x291   :  { %v2838_v11 = vpop.f32.mrf.mxu1 }
 0x292   :  { %v8964_v47 = vpop.f32.mrf.mxu0 }
 0x293   :  { %v8966_v59 = vpop.f32.mrf.mxu1 }
 0x294   :  { %11528 = vst [vmem:[#allocation59_spill] sm:$0xff] %v8966_v59 }
 0x296   :  { %v8968_v0 = vpop.f32.mrf.mxu0 }
 0x297   :  { %v2850_v38 = vpop.f32.mrf.mxu1 }
 0x298   :  { %v8970_v52 = vpop.f32.mrf.mxu0 }
 0x299   :  { %11529 = vst [vmem:[#allocation49_spill] sm:$0xff] %v8970_v52  ;;  %v8972_v36 = vpop.f32.mrf.mxu1 }
 0x29a   :  { %11530 = vst [vmem:[#allocation61_spill] sm:$0xff] %v8972_v36 }
 0x29c   :  { %v2543_v7 = vpop.f32.mrf.mxu0 }
 0x29d   :  { %v2862_v9 = vpop.f32.mrf.mxu1  ;;  %v2544_v63 = vadd.f32 %v2543_v7, %v8458_v8 }
 0x29e   :  { %v8975_v22 = vpop.f32.mrf.mxu0 }
 0x29f   :  { %11531 = vst [vmem:[#allocation51_spill] sm:$0xff] %v8975_v22  ;;  %v8977_v30 = vpop.f32.mrf.mxu1  ;;  %v8979_v19 = vadd.f32 %v2838_v11, %v2544_v63 }
 0x2a0   :  { %11532 = vst [vmem:[#allocation52_spill] sm:$0xff] %v8977_v30 }
 0x2a1   :  { %11533 = vst [vmem:[#allocation65_spill] sm:$0xff] %v8979_v19 }
 0x2a2   :  { %v2553_v3 = vpop.f32.mrf.mxu0 }
 0x2a3   :  { %v2874_v27 = vpop.f32.mrf.mxu1  ;;  %v2554_v59 = vadd.f32 %v2553_v3, %v8501_v18 }
 0x2a4   :  { %v8982_v33 = vpop.f32.mrf.mxu0 }
 0x2a5   :  { %v8984_v13 = vpop.f32.mrf.mxu1  ;;  %v8986_v54 = vadd.f32 %v2850_v38, %v2554_v59 }
 0x2a6   :  { %11534 = vst [vmem:[#allocation67_spill] sm:$0xff] %v8984_v13 }
 0x2a7   :  { %11535 = vst [vmem:[#allocation58_spill] sm:$0xff] %v8986_v54 }
 0x2a8   :  { %v2563_v36 = vpop.f32.mrf.mxu0 }
 0x2a9   :  { %v2886_v52 = vpop.f32.mrf.mxu1  ;;  %v2564_v8 = vadd.f32 %v2563_v36, %v8542_v14 }
 0x2aa   :  { %v8989_v7 = vpop.f32.mrf.mxu0 }
 0x2ab   :  { %v8991_v22 = vpop.f32.mrf.mxu1  ;;  %v8993_v63 = vadd.f32 %v2862_v9, %v2564_v8 }
 0x2ac   :  { %11536 = vst [vmem:[#allocation70_spill] sm:$0xff] %v8991_v22 }
 0x2ad   :  { %11537 = vst [vmem:[#allocation60_spill] sm:$0xff] %v8993_v63 }
 0x2ae   :  { %v2573_v11 = vpop.f32.mrf.mxu0 }
 0x2af   :  { %v2898_v19 = vpop.f32.mrf.mxu1  ;;  %v2574_v18 = vadd.f32 %v2573_v11, %v8585_v48 }
 0x2b0   :  { %v8996_v3 = vpop.f32.mrf.mxu0 }
 0x2b1   :  { %v8998_v30 = vpop.f32.mrf.mxu1  ;;  %v9000_v59 = vadd.f32 %v2874_v27, %v2574_v18 }
 0x2b2   :  { %11538 = vst [vmem:[#allocation71_spill] sm:$0xff] %v8998_v30 }
 0x2b3   :  { %11539 = vst [vmem:[#allocation62_spill] sm:$0xff] %v9000_v59 }
 0x2b4   :  { %v2583_v38 = vpop.f32.mrf.mxu0 }
 0x2b5   :  { %v2910_v54 = vpop.f32.mrf.mxu1  ;;  %v2584_v14 = vadd.f32 %v2583_v38, %v8626_v21 }
 0x2b6   :  { %v9003_v36 = vpop.f32.mrf.mxu0 }
 0x2b7   :  { %v9005_v13 = vpop.f32.mrf.mxu1  ;;  %v9007_v9 = vadd.f32 %v2886_v52, %v2584_v14 }
 0x2b8   :  { %11540 = vst [vmem:[#allocation73_spill] sm:$0xff] %v9005_v13 }
 0x2b9   :  { %11541 = vst [vmem:[#allocation64_spill] sm:$0xff] %v9007_v9 }
 0x2ba   :  { %v2593_v8 = vpop.f32.mrf.mxu0 }
 0x2bb   :  { %v2922_v63 = vpop.f32.mrf.mxu1  ;;  %v2594_v48 = vadd.f32 %v2593_v8, %v8669_v37 }
 0x2bc   :  { %v9010_v11 = vpop.f32.mrf.mxu0 }
 0x2bd   :  { %v9012_v22 = vpop.f32.mrf.mxu1  ;;  %v9014_v27 = vadd.f32 %v2898_v19, %v2594_v48 }
 0x2be   :  { %11542 = vst [vmem:[#allocation75_spill] sm:$0xff] %v9012_v22 }
 0x2bf   :  { %11543 = vst [vmem:[#allocation77_spill] sm:$0xff] %v9014_v27 }
 0x2c0   :  { %v2603_v18 = vpop.f32.mrf.mxu0 }
 0x2c1   :  { %v2934_v59 = vpop.f32.mrf.mxu1  ;;  %v2604_v21 = vadd.f32 %v2603_v18, %v8713_v15 }
 0x2c2   :  { %v9017_v38 = vpop.f32.mrf.mxu0 }
 0x2c3   :  { %v9019_v30 = vpop.f32.mrf.mxu1  ;;  %v9021_v52 = vadd.f32 %v2910_v54, %v2604_v21 }
 0x2c4   :  { %11544 = vst [vmem:[#allocation68_spill] sm:$0xff] %v9019_v30 }
 0x2c5   :  { %11545 = vst [vmem:[#allocation79_spill] sm:$0xff] %v9021_v52 }
 0x2c6   :  { %v2613_v14 = vpop.f32.mrf.mxu0 }
 0x2c7   :  { %v2946_v9 = vpop.f32.mrf.mxu1  ;;  %v2614_v37 = vadd.f32 %v2613_v14, %v8782_v51 }
 0x2c8   :  { %v9024_v8 = vpop.f32.mrf.mxu0 }
 0x2c9   :  { %v9026_v13 = vpop.f32.mrf.mxu1  ;;  %v9028_v19 = vadd.f32 %v2922_v63, %v2614_v37 }
 0x2ca   :  { %11546 = vst [vmem:[#allocation69_spill] sm:$0xff] %v9026_v13 }
 0x2cb   :  { %11547 = vst [vmem:[#allocation81_spill] sm:$0xff] %v9028_v19 }
 0x2cc   :  { %v2623_v48 = vpop.f32.mrf.mxu0 }
 0x2cd   :  { %v2958_v27 = vpop.f32.mrf.mxu1  ;;  %v2624_v15 = vadd.f32 %v2623_v48, %v8847_v6 }
 0x2ce   :  { %v9031_v18 = vpop.f32.mrf.mxu0 }
 0x2cf   :  { %v9033_v22 = vpop.f32.mrf.mxu1  ;;  %v9035_v54 = vadd.f32 %v2934_v59, %v2624_v15  ;;  %v11552_v15 = vsub.s32 1, %v11418_v31 }
 0x2d1   :  { %11548 = vst [vmem:[#allocation83_spill] sm:$0xff] %v9035_v54 }
 0x2d2   :  { %v2633_v21 = vpop.f32.mrf.mxu0 }
 0x2d3   :  { %v2970_v52 = vpop.f32.mrf.mxu1  ;;  %v2634_v51 = vadd.f32 %v2633_v21, %v8904_v41  ;;  %v1424_v41 = vrot.slane %v8325_v10, %v11552_v15 }
 0x2d4   :  { %v9038_v14 = vpop.f32.mrf.mxu0 }
 0x2d5   :  { %v9040_v30 = vpop.f32.mrf.mxu1  ;;  %v9042_v63 = vadd.f32 %v2946_v9, %v2634_v51  ;;  %v1570_v9 = vadd.f32 %v8366_v43, %v1424_v41  ;;  %v1586_v51 = vadd.f32 %v8406_v28, %v1424_v41  ;;  %v1634_v10 = vadd.f32 %v8532_v44, %v1424_v41 }
 0x2d6   :  { %11549 = vst [vmem:[#allocation86_spill] sm:$0xff] %v9040_v30  ;;  %v1650_v31 = vadd.f32 %v8573_v2, %v1424_v41  ;;  %v1682_v43 = vadd.f32 %v8657_v50, %v1424_v41  ;;  %v1698_v28 = vadd.f32 %v8699_v45, %v1424_v41  ;;  %v1714_v15 = vadd.f32 %v8767_v1, %v1424_v41 }
 0x2d7   :  { %11550 = vst [vmem:[#allocation76_spill] sm:$0xff] %v9042_v63  ;;  %v1746_v50 = vadd.f32 %v8891_v42, %v1424_v41  ;;  %v1762_v45 = vadd.f32 %v8925_v55, %v1424_v41  ;;  %v2235_v1 = vadd.f32 %v8450_v57, %v1634_v10  ;;  %v1778_v42 = vadd.f32 %v8937_v16, %v1424_v41  ;;  %v11553_v16 = vld [vmem:[#allocation49_spill] sm:$0xff]  ;;  %v11556_v10 = vld [vmem:[#allocation51_spill] sm:$0xff] }
 0x2d8   :  { %v2643_v37 = vpop.f32.mrf.mxu0  ;;  %v1794_v55 = vadd.f32 %v8947_v26, %v1424_v41  ;;  %v2267_v57 = vadd.f32 %v8618_v23, %v1698_v28  ;;  %v11554_v26 = vld [vmem:[#allocation34_spill] sm:$0xff]  ;;  %v11555_v23 = vld [vmem:[#allocation29_spill] sm:$0xff] }
 0x2d9   :  { %v2982_v19 = vpop.f32.mrf.mxu1  ;;  %v2644_v6 = vadd.f32 %v2643_v37, %v8931_v17  ;;  %v1602_v37 = vadd.f32 %v8448_v12, %v1424_v41  ;;  %v2211_v12 = vadd.f32 %v8338_v29, %v1586_v51  ;;  %v11559_v28 = vld [vmem:[#allocation53_spill] sm:$0xff] }
 0x2da   :  { %v9045_v48 = vpop.f32.mrf.mxu0 }
 0x2db   :  { %v9047_v13 = vpop.f32.mrf.mxu1  ;;  %v9049_v59 = vadd.f32 %v2958_v27, %v2644_v6  ;;  %v1618_v27 = vadd.f32 %v8489_v34, %v1424_v41  ;;  %v2219_v44 = vadd.f32 %v8368_v62, %v1602_v37  ;;  %v2291_v37 = vadd.f32 %v11554_v26, %v1746_v50 }
 0x2dd   :  { %11551 = vst [vmem:[#allocation87_spill] sm:$0xff] %v9049_v59  ;;  %v2227_v2 = vadd.f32 %v8408_v20, %v1618_v27  ;;  %v2259_v20 = vadd.f32 %v8575_v60, %v1682_v43  ;;  %v2299_v27 = vadd.f32 %v11555_v23, %v1762_v45  ;;  %v2606_v45 = vadd.f32 %v9017_v38, %v2267_v57  ;;  %v11567_v57 = vld [vmem:[#allocation67_spill] sm:$0xff] }
 0x2de   :  { %v2653_v21 = vpop.f32.mrf.mxu0 }
 0x2df   :  { %v2994_v54 = vpop.f32.mrf.mxu1  ;;  %v2654_v30 = vadd.f32 %v2653_v21, %v8941_v58  ;;  %v1666_v58 = vadd.f32 %v8616_v5, %v1424_v41  ;;  %v2203_v21 = vadd.f32 %v8317_v56, %v1570_v9  ;;  %v2243_v56 = vadd.f32 %v8491_v32, %v1650_v31 }
 0x2e0   :  { %v9057_v63 = vpop.f32.mrf.mxu0  ;;  %v2275_v32 = vadd.f32 %v8659_v25, %v1714_v15  ;;  %v2546_v31 = vadd.f32 %v11556_v10, %v2219_v44  ;;  %v2315_v15 = vadd.f32 %v11559_v28, %v1794_v55  ;;  %v11568_v10 = vld [vmem:[#allocation70_spill] sm:$0xff] }
 0x2e1   :  { %v9059_v17 = vpop.f32.mrf.mxu1  ;;  %v9063_v6 = vadd.f32 %v2970_v52, %v2654_v30  ;;  %v1730_v30 = vadd.f32 %v8830_v40, %v1424_v41  ;;  %v2524_v40 = vadd.f32 %v8962_v4, %v8376_v39  ;;  %v2251_v62 = vadd.f32 %v8534_v35, %v1666_v58 }
 0x2e2   :  { %v2526_v51 = vadd.f32 %v8964_v47, %v2203_v21  ;;  %v2534_v35 = vadd.f32 %v8968_v0, %v8417_v46  ;;  %v2576_v46 = vadd.f32 %v8996_v3, %v2243_v56  ;;  %v11558_v0 = vld [vmem:[#allocation48_spill] sm:$0xff]  ;;  %v11563_v56 = vld [vmem:[#allocation47_spill] sm:$0xff] }
 0x2e3   :  { %v2283_v4 = vadd.f32 %v8701_v49, %v1730_v30  ;;  %v2307_v43 = vadd.f32 %v11558_v0, %v1778_v42  ;;  %v11560_v30 = vld [vmem:[#allocation43_spill] sm:$0xff] }
 0x2e4   :  { %v2663_v59 = vpop.f32.mrf.mxu0 }
 0x2e5   :  { %v3516_v34 = vpop.f32.mrf.mxu1  ;;  %v2664_v5 = vadd.f32 %v2663_v59, %v8951_v53  ;;  %v1810_v59 = vadd.f32 %v8956_v24, %v1424_v41  ;;  %v2556_v24 = vadd.f32 %v8982_v33, %v2227_v2  ;;  %v11557_v41 = vld [vmem:[#allocation54_spill] sm:$0xff]  ;;  %v11561_v2 = vld [vmem:[#allocation45_spill] sm:$0xff] }
 0x2e6   :  { %v9081_v52 = vpop.f32.mrf.mxu0  ;;  %v2815_v49 = vadd.f32 %v11557_v41, %v2524_v40  ;;  %v2817_v50 = vadd.f32 %v11561_v2, %v2526_v51  ;;  %v2626_v51 = vadd.f32 %v9031_v18, %v2283_v4  ;;  %v11569_v18 = vld [vmem:[#allocation71_spill] sm:$0xff]  ;;  %v11570_v41 = vld [vmem:[#allocation73_spill] sm:$0xff] }
 0x2e7   :  { %v3518_v29 = vpop.f32.mrf.mxu1  ;;  %v9087_v9 = vadd.f32 %v2982_v19, %v2664_v5  ;;  %v2536_v19 = vadd.f32 %v11553_v16, %v2211_v12  ;;  %v2586_v12 = vadd.f32 %v9003_v36, %v2251_v62  ;;  %v2323_v44 = vadd.f32 %v11560_v30, %v1810_v59  ;;  %v11565_v62 = vld [vmem:[#allocation61_spill] sm:$0xff] }
 0x2e8   :  { %v2673_v53 = vpop.f32.mrf.mxu0  ;;  %v9120_v59 = vadd.f32 %v11565_v62, %v2556_v24  ;;  %v2616_v16 = vadd.f32 %v9024_v8, %v2275_v32  ;;  %v2636_v24 = vadd.f32 %v9038_v14, %v2291_v37  ;;  %v2646_v8 = vadd.f32 %v9045_v48, %v2299_v27  ;;  %v11572_v37 = vld [vmem:[#allocation75_spill] sm:$0xff]  ;;  %v11573_v27 = vld [vmem:[#allocation68_spill] sm:$0xff] }
 0x2e9   :  { %v2674_v39 = vadd.f32 %v2673_v53, %v8960_v61  ;;  %v3524_v60 = vpop.f32.mrf.mxu1  ;;  %v2566_v61 = vadd.f32 %v8989_v7, %v2235_v1  ;;  %v11562_v1 = vld [vmem:[#allocation57_spill] sm:$0xff]  ;;  %v2829_v40 = vadd.f32 %v11563_v56, %v2536_v19  ;;  %v9149_v30 = vadd.f32 %v11573_v27, %v2626_v51 }
 0x2ea   :  { %v2675_v25 = vpop.f32.mrf.mxu0  ;;  %v2827_v3 = vadd.f32 %v11562_v1, %v2534_v35  ;;  %v9128_v35 = vadd.f32 %v11567_v57, %v2576_v46  ;;  %v9146_v48 = vadd.f32 %v11572_v37, %v2616_v16  ;;  %v9161_v1 = vadd.f32 %v9033_v22, %v2646_v8  ;;  %v11581_v57 = vld [vmem:[#allocation144_spill] sm:$0xff] }
 0x2eb   :  { %v3526_v47 = vpop.f32.mrf.mxu1  ;;  %v9105_v58 = vadd.f32 %v2994_v54, %v2674_v39  ;;  %v2596_v54 = vadd.f32 %v9010_v11, %v2259_v20  ;;  %v11564_v39 = vld [vmem:[#allocation59_spill] sm:$0xff]  ;;  %v11566_v20 = vld [vmem:[#allocation52_spill] sm:$0xff] }
 0x2ec   :  { %v3259_v21 = vpop.f32.mrf.mxu0  ;;  %v2841_v36 = vadd.f32 %v11564_v39, %v2546_v31  ;;  %v9125_v38 = vadd.f32 %v11566_v20, %v2566_v61  ;;  %v9131_v31 = vadd.f32 %v11568_v10, %v2586_v12  ;;  %v2666_v12 = vadd.f32 %v9081_v52, %v2315_v15  ;;  %v11576_v52 = vld [vmem:[#allocation69_spill] sm:$0xff]  ;;  %v11578_v39 = vld [vmem:[#allocation86_spill] sm:$0xff]  ;;  %v11586_v37 = vld [vmem:[#allocation60_spill] sm:$0xff] }
 0x2ed   :  { %v3260_v5 = vadd.f32 %v3259_v21, %v2815_v49  ;;  %v3532_v33 = vpop.f32.mrf.mxu1  ;;  %v9136_v4 = vadd.f32 %v11569_v18, %v2596_v54  ;;  %v9139_v49 = vadd.f32 %v11570_v41, %v2606_v45  ;;  %v2656_v21 = vadd.f32 %v9057_v63, %v2307_v43  ;;  %v11582_v10 = vld [vmem:[#allocation145_spill] sm:$0xff] }
 0x2ee   :  { %v3261_v7 = vpop.f32.mrf.mxu0  ;;  %v2676_v45 = vadd.f32 %v2675_v25, %v2323_v44  ;;  %v9158_v15 = vadd.f32 %v11576_v52, %v2636_v24  ;;  %v9175_v22 = vadd.f32 %v9047_v13, %v2666_v12 }
 0x2ef   :  { %v3517_v42 = vadd.f32 %v3516_v34, %v3260_v5  ;;  %v3262_v55 = vadd.f32 %v3261_v7, %v2817_v50  ;;  %v3534_v53 = vpop.f32.mrf.mxu1  ;;  %v11575_v7 = vld [vmem:[#allocation65_spill] sm:$0xff]  ;;  %v9172_v62 = vadd.f32 %v11578_v39, %v2656_v21 }
 0x2f0   :  { %v3267_v11 = vpop.f32.mrf.mxu0  ;;  %v9192_v24 = vadd.f32 %v9059_v17, %v2676_v45  ;;  %v11587_v45 = vld [vmem:[#allocation82_spill] sm:$0xff] }
 0x2f1   :  { %v3641_v19 = vmax.f32 %v3517_v42, 0.0  ;;  %v3519_v34 = vadd.f32 %v3518_v29, %v3262_v55  ;;  %v3268_v26 = vadd.f32 %v3267_v11, %v2827_v3  ;;  %v3540_v23 = vpop.f32.mrf.mxu1 }
 0x2f2   :  { %v3269_v32 = vpop.f32.mrf.mxu0 }
 0x2f3   :  { %v9141_v61 = vand.u32 4294901760, %v3641_v19  ;;  %v3642_v46 = vmax.f32 %v3519_v34, 0.0  ;;  %v3525_v29 = vadd.f32 %v3524_v60, %v3268_v26  ;;  %v3270_v0 = vadd.f32 %v3269_v32, %v2829_v40  ;;  %v3542_v28 = vpop.f32.mrf.mxu1 }
 0x2f4   :  { %v3275_v14 = vpop.f32.mrf.mxu0 }
 0x2f5   :  { %11571 = vst [vmem:[#allocation78_spill] sm:$0xff] %v9141_v61  ;;  %v9152_v5 = vsub.f32 %v3641_v19, %v9141_v61  ;;  %v9154_v2 = vand.u32 4294901760, %v3642_v46  ;;  %v3643_v50 = vmax.f32 %v3525_v29, 0.0  ;;  %v3527_v60 = vadd.f32 %v3526_v47, %v3270_v0  ;;  %v3548_v54 = vpop.f32.mrf.mxu1 }
 0x2f6   :  { %v3276_v63 = vadd.f32 %v3275_v14, %v11575_v7  ;;  %v3277_v43 = vpop.f32.mrf.mxu0  ;;  %v11585_v14 = vld [vmem:[#allocation162_spill] sm:$0xff] }
 0x2f7   :  { %11574 = vst [vmem:[#allocation89_spill] sm:$0xff] %v9154_v2  ;;  %v10715_v3 = vand.u32 4294901760, %v9152_v5  ;;  %v9165_v56 = vsub.f32 %v3642_v46, %v9154_v2  ;;  %v9167_v40 = vand.u32 4294901760, %v3643_v50  ;;  %v3644_v42 = vmax.f32 %v3527_v60, 0.0  ;;  %v3550_v47 = vpop.f32.mrf.mxu1  ;;  %4274 = vmatprep.mubr.f32.mxu1 %v9154_v2 }
 0x2f8   :  { %v3533_v25 = vadd.f32 %v3532_v33, %v3276_v63  ;;  %v3278_v44 = vadd.f32 %v3277_v43, %v2841_v36  ;;  %v3283_v55 = vpop.f32.mrf.mxu0  ;;  %4276 = vmatmul.mubr.f32.vlgmr.msra.gmra.mxu1 %v9141_v61  ;;  %v11580_v33 = vld [vmem:[#allocation58_spill] sm:$0xff] }
 0x2f9   :  { %11577 = vst [vmem:[#allocation80_spill] sm:$0xff] %v9167_v40  ;;  %v3817_v16 = vsub.f32 %v9152_v5, %v10715_v3  ;;  %v9181_v51 = vsub.f32 %v3643_v50, %v9167_v40  ;;  %v9183_v11 = vand.u32 4294901760, %v3644_v42  ;;  %v3284_v36 = vadd.f32 %v3283_v55, %v11580_v33  ;;  %v9186_v20 = vpop.f32.mrf.mxu1  ;;  %5678 = vmatpush3.msra.mxu1 %v11581_v57 }
 0x2fa   :  { %v3645_v19 = vmax.f32 %v3533_v25, 0.0  ;;  %v3535_v34 = vadd.f32 %v3534_v53, %v3278_v44  ;;  %v3285_v26 = vpop.f32.mrf.mxu0  ;;  %v10716_v13 = vand.u32 4294901760, %v9165_v56  ;;  %5679 = vmatprep.subr.mxu1 %v11582_v10  ;;  %v11583_v53 = vld [vmem:[#allocation146_spill] sm:$0xff]  ;;  %v11589_v25 = vld [vmem:[#allocation84_spill] sm:$0xff] }
 0x2fb   :  { %11579 = vst [vmem:[#allocation91_spill] sm:$0xff] %v9183_v11  ;;  %v3818_v8 = vand.u32 4294901760, %v3817_v16  ;;  %v10712_v32 = vand.u32 4294901760, %v9181_v51  ;;  %v9196_v18 = vsub.f32 %v3644_v42, %v9183_v11  ;;  %v3541_v41 = vadd.f32 %v3540_v23, %v3284_v36  ;;  %v9198_v46 = vpop.f32.mrf.mxu1  ;;  %4281 = vmatprep.mubr.f32.mxu1 %v9183_v11  ;;  %5680 = vmatpush3.msra.mxu1 %v11583_v53  ;;  %v11591_v36 = vld [vmem:[#allocation90_spill] sm:$0xff]  ;;  %v11609_v11 = vld [vmem:[#allocation77_spill] sm:$0xff] }
 0x2fc   :  { %v9202_v29 = vand.u32 4294901760, %v3645_v19  ;;  %v3646_v0 = vmax.f32 %v3535_v34, 0.0  ;;  %v3286_v21 = vadd.f32 %v3285_v26, %v9120_v59  ;;  %v3291_v17 = vpop.f32.mrf.mxu0  ;;  %4283 = vmatmul.mubr.f32.gmra.mxu1 %v9167_v40  ;;  %v3811_v12 = vsub.f32 %v9165_v56, %v10716_v13  ;;  %5681 = vmatprep.subr.mxu1 %v11585_v14 }
 0x2fd   :  { %v3647_v23 = vmax.f32 %v3541_v41, 0.0  ;;  %v3292_v27 = vadd.f32 %v3291_v17, %v11586_v37  ;;  %v9211_v50 = vpop.f32.mrf.mxu1  ;;  %v10714_v60 = vand.u32 4294901760, %v9196_v18  ;;  %v3832_v59 = vsub.f32 %v9181_v51, %v10712_v32  ;;  %5682 = vmatpush3.msra.mxu1 %v11587_v45  ;;  %v11592_v17 = vld [vmem:[#allocation62_spill] sm:$0xff] }
 0x2fe   :  { %11584 = vst [vmem:[#allocation85_spill] sm:$0xff] %v9202_v29  ;;  %v9219_v7 = vsub.f32 %v3645_v19, %v9202_v29  ;;  %v9221_v63 = vand.u32 4294901760, %v3646_v0  ;;  %v3543_v43 = vadd.f32 %v3542_v28, %v3286_v21  ;;  %v3293_v52 = vpop.f32.mrf.mxu0  ;;  %v3812_v42 = vand.u32 4294901760, %v3811_v12  ;;  %5683 = vmatprep.subr.mxu1 %v11589_v25 }
 0x2ff   :  { %v9224_v44 = vand.u32 4294901760, %v3647_v23  ;;  %v3549_v55 = vadd.f32 %v3548_v54, %v3292_v27  ;;  %v3294_v39 = vadd.f32 %v3293_v52, %v9125_v38  ;;  %v9227_v16 = vpop.f32.mrf.mxu1  ;;  %v3826_v33 = vsub.f32 %v9196_v18, %v10714_v60  ;;  %5684 = vmatpush3.msra.mxu1 %v11591_v36  ;;  %v11594_v27 = vld [vmem:[#allocation161_spill] sm:$0xff] }
 0x300   :  { %11588 = vst [vmem:[#allocation97_spill] sm:$0xff] %v9221_v63  ;;  %v10713_v19 = vand.u32 4294901760, %v9219_v7  ;;  %v9235_v28 = vsub.f32 %v3646_v0, %v9221_v63  ;;  %v3648_v34 = vmax.f32 %v3543_v43, 0.0  ;;  %3813 = vmatprep.mubr.f32.mxu0 %v3812_v42  ;;  %4288 = vmatprep.mubr.f32.mxu1 %v9221_v63  ;;  %v3299_v54 = vpop.f32.mrf.mxu0  ;;  %v3833_v26 = vand.u32 4294901760, %v3832_v59  ;;  %v11600_v42 = vld [vmem:[#allocation64_spill] sm:$0xff]  ;;  %v11606_v63 = vld [vmem:[#allocation93_spill] sm:$0xff] }
 0x301   :  { %11590 = vst [vmem:[#allocation88_spill] sm:$0xff] %v9224_v44  ;;  %v9239_v38 = vsub.f32 %v3647_v23, %v9224_v44  ;;  %v3649_v41 = vmax.f32 %v3549_v55, 0.0  ;;  %v3551_v21 = vadd.f32 %v3550_v47, %v3294_v39  ;;  %v3300_v12 = vadd.f32 %v3299_v54, %v11592_v17  ;;  %v9242_v37 = vpop.f32.mrf.mxu1  ;;  %3819 = vmatmul.mubr.f32.vlgmr.msra.gmra.mxu0 %v3818_v8  ;;  %v11595_v47 = vld [vmem:[#allocation96_spill] sm:$0xff]  ;;  %v11597_v17 = vld [vmem:[#allocation66_spill] sm:$0xff] }
 0x302   :  { %4290 = vmatmul.mubr.f32.gmra.mxu1 %v9202_v29  ;;  %v9245_v0 = vand.u32 4294901760, %v3648_v34  ;;  %5598 = vmatpush3.msra.mxu0 %v11594_v27  ;;  %v3301_v43 = vpop.f32.mrf.mxu0  ;;  %v3827_v52 = vand.u32 4294901760, %v3826_v33  ;;  %v10719_v59 = vand.u32 4294901760, %v9235_v28  ;;  %v3847_v23 = vsub.f32 %v9219_v7, %v10713_v19  ;;  %v11598_v33 = vld [vmem:[#allocation106_spill] sm:$0xff] }
 0x303   :  { %5685 = vmatprep.subr.mxu1 %v11595_v47  ;;  %v9254_v55 = vand.u32 4294901760, %v3649_v41  ;;  %v3650_v8 = vmax.f32 %v3551_v21, 0.0  ;;  %v3557_v39 = vadd.f32 %v9186_v20, %v3300_v12  ;;  %v9257_v54 = vpop.f32.mrf.mxu1  ;;  %5599 = vmatprep.subr.mxu0 %v11597_v17  ;;  %v3302_v19 = vadd.f32 %v3301_v43, %v9128_v35  ;;  %v11601_v43 = vld [vmem:[#allocation72_spill] sm:$0xff] }
 0x304   :  { %11593 = vst [vmem:[#allocation99_spill] sm:$0xff] %v9245_v0  ;;  %5686 = vmatpush3.msra.mxu1 %v11598_v33  ;;  %v9262_v32 = vsub.f32 %v3648_v34, %v9245_v0  ;;  %3828 = vmatprep.mubr.f32.mxu0 %v3827_v52  ;;  %v3307_v60 = vpop.f32.mrf.mxu0  ;;  %v3841_v21 = vsub.f32 %v9235_v28, %v10719_v59  ;;  %v3848_v20 = vand.u32 4294901760, %v3847_v23 }
 0x305   :  { %11596 = vst [vmem:[#allocation92_spill] sm:$0xff] %v9254_v55  ;;  %4295 = vmatprep.mubr.f32.mxu1 %v9245_v0  ;;  %v9270_v12 = vsub.f32 %v3649_v41, %v9254_v55  ;;  %v9272_v3 = vand.u32 4294901760, %v3650_v8  ;;  %v3651_v13 = vmax.f32 %v3557_v39, 0.0  ;;  %v3308_v34 = vadd.f32 %v3307_v60, %v11600_v42  ;;  %v9275_v29 = vpop.f32.mrf.mxu1  ;;  %3834 = vmatmul.mubr.f32.gmra.mxu0 %v3833_v26  ;;  %v11603_v39 = vld [vmem:[#allocation120_spill] sm:$0xff] }
 0x306   :  { %4297 = vmatmul.mubr.f32.gmra.mxu1 %v9224_v44  ;;  %v3559_v35 = vadd.f32 %v9198_v46, %v3302_v19  ;;  %5600 = vmatpush3.msra.mxu0 %v11601_v43  ;;  %v3309_v52 = vpop.f32.mrf.mxu0  ;;  %v3842_v59 = vand.u32 4294901760, %v3841_v21  ;;  %v11602_v41 = vand.u32 4294901760, %v9239_v38  ;;  %v11605_v21 = vld [vmem:[#allocation74_spill] sm:$0xff] }
 0x307   :  { %11599 = vst [vmem:[#allocation103_spill] sm:$0xff] %v9272_v3  ;;  %5687 = vmatprep.subr.mxu1 %v11603_v39  ;;  %v9287_v26 = vsub.f32 %v3650_v8, %v9272_v3  ;;  %v9289_v42 = vand.u32 4294901760, %v3651_v13  ;;  %v3565_v46 = vadd.f32 %v9211_v50, %v3308_v34  ;;  %v9292_v19 = vpop.f32.mrf.mxu1  ;;  %4302 = vmatprep.mubr.f32.mxu1 %v9272_v3  ;;  %v11607_v8 = vand.u32 4294901760, %v9262_v32 }
 0x308   :  { %v3862_v0 = vsub.f32 %v9239_v38, %v11602_v41  ;;  %5601 = vmatprep.subr.mxu0 %v11605_v21  ;;  %v3652_v23 = vmax.f32 %v3559_v35, 0.0  ;;  %v3310_v41 = vadd.f32 %v3309_v52, %v9131_v31  ;;  %3843 = vmatprep.mubr.f32.mxu0 %v3842_v59  ;;  %v3315_v44 = vpop.f32.mrf.mxu0 }
 0x309   :  { %11604 = vst [vmem:[#allocation94_spill] sm:$0xff] %v9289_v42  ;;  %5602 = vmatpush3.msra.mxu0 %v11606_v63  ;;  %v3856_v60 = vsub.f32 %v9262_v32, %v11607_v8  ;;  %v9302_v50 = vsub.f32 %v3651_v13, %v9289_v42  ;;  %v3653_v34 = vmax.f32 %v3565_v46, 0.0  ;;  %v3316_v3 = vadd.f32 %v3315_v44, %v11609_v11  ;;  %v9305_v61 = vpop.f32.mrf.mxu1  ;;  %v11613_v11 = vld [vmem:[#allocation121_spill] sm:$0xff] }
 0x30a   :  { %v3863_v40 = vand.u32 4294901760, %v3862_v0  ;;  %3849 = vmatmul.mubr.f32.gmra.mxu0 %v3848_v20  ;;  %4304 = vmatmul.mubr.f32.gmra.mxu1 %v9254_v55  ;;  %v9309_v59 = vand.u32 4294901760, %v3652_v23  ;;  %v3567_v35 = vadd.f32 %v9227_v16, %v3310_v41  ;;  %v3317_v52 = vpop.f32.mrf.mxu0  ;;  %v11611_v0 = vld [vmem:[#allocation95_spill] sm:$0xff]  ;;  %v11612_v13 = vand.u32 4294901760, %v9270_v12  ;;  %v11615_v16 = vld [vmem:[#allocation102_spill] sm:$0xff] }
 0x30b   :  { %11608 = vst [vmem:[#allocation105_spill] sm:$0xff] %v9302_v50  ;;  %v3857_v8 = vand.u32 4294901760, %v3856_v60  ;;  %5603 = vmatprep.subr.mxu0 %v11611_v0  ;;  %5688 = vmatpush3.msra.mxu1 %v11613_v11  ;;  %v9318_v20 = vand.u32 4294901760, %v3653_v34  ;;  %v3573_v31 = vadd.f32 %v9242_v37, %v3316_v3  ;;  %v3318_v55 = vadd.f32 %v3317_v52, %v9136_v4  ;;  %v9322_v2 = vpop.f32.mrf.mxu1  ;;  %v11616_v60 = vld [vmem:[#allocation124_spill] sm:$0xff] }
 0x30c   :  { %11610 = vst [vmem:[#allocation108_spill] sm:$0xff] %v9309_v59  ;;  %v3877_v46 = vsub.f32 %v9270_v12, %v11612_v13  ;;  %5604 = vmatpush3.msra.mxu0 %v11615_v16  ;;  %5689 = vmatprep.subr.mxu1 %v11616_v60  ;;  %v9327_v41 = vsub.f32 %v3652_v23, %v9309_v59  ;;  %v3654_v13 = vmax.f32 %v3567_v35, 0.0  ;;  %v3323_v44 = vpop.f32.mrf.mxu0  ;;  %v11617_v11 = vand.u32 4294901760, %v9287_v26  ;;  %v11619_v60 = vld [vmem:[#allocation79_spill] sm:$0xff]  ;;  %v11621_v16 = vld [vmem:[#allocation98_spill] sm:$0xff] }
 0x30d   :  { %11614 = vst [vmem:[#allocation110_spill] sm:$0xff] %v9318_v20  ;;  %3858 = vmatprep.mubr.f32.mxu0 %v3857_v8  ;;  %4309 = vmatprep.mubr.f32.mxu1 %v9309_v59  ;;  %v9334_v4 = vsub.f32 %v3653_v34, %v9318_v20  ;;  %v3655_v52 = vmax.f32 %v3573_v31, 0.0  ;;  %v3575_v39 = vadd.f32 %v9257_v54, %v3318_v55  ;;  %v9338_v23 = vpop.f32.mrf.mxu1  ;;  %v11622_v34 = vand.u32 4294901760, %v9302_v50  ;;  %v11623_v55 = vld [vmem:[#allocation127_spill] sm:$0xff] }
 0x30e   :  { %v3871_v3 = vsub.f32 %v9287_v26, %v11617_v11  ;;  %v3878_v37 = vand.u32 4294901760, %v3877_v46  ;;  %v3324_v33 = vadd.f32 %v3323_v44, %v11619_v60  ;;  %3864 = vmatmul.mubr.f32.gmra.mxu0 %v3863_v40  ;;  %4311 = vmatmul.mubr.f32.gmra.mxu1 %v9289_v42  ;;  %v9341_v35 = vand.u32 4294901760, %v3654_v13  ;;  %v3325_v8 = vpop.f32.mrf.mxu0  ;;  %v11626_v42 = vld [vmem:[#allocation132_spill] sm:$0xff] }
 0x30f   :  { %11618 = vst [vmem:[#allocation100_spill] sm:$0xff] %v9334_v4  ;;  %5605 = vmatprep.subr.mxu0 %v11621_v16  ;;  %v3892_v31 = vsub.f32 %v9302_v50, %v11622_v34  ;;  %5690 = vmatpush3.msra.mxu1 %v11623_v55  ;;  %v9350_v11 = vand.u32 4294901760, %v3655_v52  ;;  %v3656_v40 = vmax.f32 %v3575_v39, 0.0  ;;  %v9353_v60 = vpop.f32.mrf.mxu1  ;;  %v3326_v34 = vadd.f32 %v3325_v8, %v9139_v49  ;;  %v11630_v16 = vld [vmem:[#allocation81_spill] sm:$0xff] }
 0x310   :  { %11620 = vst [vmem:[#allocation111_spill] sm:$0xff] %v9341_v35  ;;  %v3872_v59 = vand.u32 4294901760, %v3871_v3  ;;  %v3581_v44 = vadd.f32 %v9275_v29, %v3324_v33  ;;  %v11625_v3 = vld [vmem:[#allocation109_spill] sm:$0xff]  ;;  %5691 = vmatprep.subr.mxu1 %v11626_v42  ;;  %v9358_v46 = vsub.f32 %v3654_v13, %v9341_v35  ;;  %4316 = vmatprep.mubr.f32.mxu1 %v9341_v35  ;;  %v3331_v54 = vpop.f32.mrf.mxu0  ;;  %v11627_v55 = vand.u32 4294901760, %v9327_v41  ;;  %v11631_v35 = vld [vmem:[#allocation130_spill] sm:$0xff] }
 0x311   :  { %11624 = vst [vmem:[#allocation101_spill] sm:$0xff] %v9350_v11  ;;  %5606 = vmatpush3.msra.mxu0 %v11625_v3  ;;  %v3893_v29 = vand.u32 4294901760, %v3892_v31  ;;  %v9366_v33 = vsub.f32 %v3655_v52, %v9350_v11  ;;  %v9368_v3 = vand.u32 4294901760, %v3656_v40  ;;  %v3332_v13 = vadd.f32 %v3331_v54, %v11630_v16  ;;  %v9371_v50 = vpop.f32.mrf.mxu1 }
 0x312   :  { %3873 = vmatprep.mubr.f32.mxu0 %v3872_v59  ;;  %v3886_v39 = vsub.f32 %v9327_v41, %v11627_v55  ;;  %v3657_v42 = vmax.f32 %v3581_v44, 0.0  ;;  %4318 = vmatmul.mubr.f32.gmra.mxu1 %v9318_v20  ;;  %v3583_v49 = vadd.f32 %v9292_v19, %v3326_v34  ;;  %v3333_v59 = vpop.f32.mrf.mxu0  ;;  %v11632_v52 = vand.u32 4294901760, %v9334_v4  ;;  %v11633_v44 = vld [vmem:[#allocation7_spill] sm:$0xff] }
 0x313   :  { %11628 = vst [vmem:[#allocation114_spill] sm:$0xff] %v9366_v33  ;;  %11629 = vst [vmem:[#allocation104_spill] sm:$0xff] %v9368_v3  ;;  %3879 = vmatmul.mubr.f32.gmra.mxu0 %v3878_v37  ;;  %5607 = vmatprep.subr.mxu0 %v11631_v35  ;;  %v9383_v37 = vsub.f32 %v3656_v40, %v9368_v3  ;;  %v3589_v19 = vadd.f32 %v9305_v61, %v3332_v13  ;;  %v9388_v34 = vpop.f32.mrf.mxu1  ;;  %v11636_v16 = vand.u32 4294901760, %v9358_v46 }
 0x314   :  { %v3887_v8 = vand.u32 4294901760, %v3886_v39  ;;  %v3907_v55 = vsub.f32 %v9334_v4, %v11632_v52  ;;  %5692 = vmatpush3.msra.mxu1 %v11633_v44  ;;  %v9385_v54 = vand.u32 4294901760, %v3657_v42  ;;  %4323 = vmatprep.mubr.f32.mxu1 %v9368_v3  ;;  %v11635_v39 = vld [vmem:[#allocation5_spill] sm:$0xff]  ;;  %v3658_v31 = vmax.f32 %v3583_v49, 0.0  ;;  %v3339_v20 = vpop.f32.mrf.mxu0  ;;  %v11637_v44 = vld [vmem:[#allocation126_spill] sm:$0xff]  ;;  %v11639_v4 = vld [vmem:[#allocation83_spill] sm:$0xff] }
 0x315   :  { %5608 = vmatpush3.msra.mxu0 %v11635_v39  ;;  %v3334_v52 = vadd.f32 %v3333_v59, %v9146_v48  ;;  %v3901_v40 = vsub.f32 %v9358_v46, %v11636_v16  ;;  %v3659_v13 = vmax.f32 %v3589_v19, 0.0  ;;  %v3340_v3 = vadd.f32 %v3339_v20, %v11639_v4  ;;  %v9401_v47 = vpop.f32.mrf.mxu1  ;;  %v11643_v20 = vld [vmem:[#allocation22_spill] sm:$0xff] }
 0x316   :  { %11634 = vst [vmem:[#allocation115_spill] sm:$0xff] %v9385_v54  ;;  %3888 = vmatprep.mubr.f32.mxu0 %v3887_v8  ;;  %5609 = vmatprep.subr.mxu0 %v11637_v44  ;;  %v3908_v35 = vand.u32 4294901760, %v3907_v55  ;;  %v9398_v61 = vsub.f32 %v3657_v42, %v9385_v54  ;;  %v9405_v49 = vand.u32 4294901760, %v3658_v31  ;;  %v3341_v8 = vpop.f32.mrf.mxu0  ;;  %v11641_v55 = vld [vmem:[#allocation131_spill] sm:$0xff]  ;;  %v11642_v42 = vand.u32 4294901760, %v9366_v33 }
 0x317   :  { %3894 = vmatmul.mubr.f32.gmra.mxu0 %v3893_v29  ;;  %4325 = vmatmul.mubr.f32.gmra.mxu1 %v9350_v11  ;;  %v3591_v59 = vadd.f32 %v9322_v2, %v3334_v52  ;;  %v3902_v16 = vand.u32 4294901760, %v3901_v40  ;;  %v9414_v29 = vand.u32 4294901760, %v3659_v13  ;;  %v3597_v48 = vadd.f32 %v9338_v23, %v3340_v3  ;;  %v9418_v44 = vpop.f32.mrf.mxu1  ;;  %v11645_v2 = vld [vmem:[#allocation133_spill] sm:$0xff]  ;;  %v11646_v52 = vld [vmem:[#allocation24_spill] sm:$0xff] }
 0x318   :  { %11638 = vst [vmem:[#allocation117_spill] sm:$0xff] %v9398_v61  ;;  %11640 = vst [vmem:[#allocation107_spill] sm:$0xff] %v9405_v49  ;;  %5610 = vmatpush3.msra.mxu0 %v11641_v55  ;;  %v3922_v19 = vsub.f32 %v9366_v33, %v11642_v42  ;;  %5693 = vmatprep.subr.mxu1 %v11643_v20  ;;  %v3342_v11 = vadd.f32 %v3341_v8, %v9149_v30  ;;  %v3347_v4 = vpop.f32.mrf.mxu0  ;;  %v11647_v20 = vand.u32 4294901760, %v9383_v37  ;;  %v11650_v33 = vld [vmem:[#allocation11_spill] sm:$0xff] }
 0x319   :  { %11644 = vst [vmem:[#allocation118_spill] sm:$0xff] %v9414_v29  ;;  %5611 = vmatprep.subr.mxu0 %v11645_v2  ;;  %5694 = vmatpush3.msra.mxu1 %v11646_v52  ;;  %v9423_v40 = vsub.f32 %v3658_v31, %v9405_v49  ;;  %v3660_v42 = vmax.f32 %v3591_v59, 0.0  ;;  %v9430_v30 = vsub.f32 %v3659_v13, %v9414_v29  ;;  %v3661_v8 = vmax.f32 %v3597_v48, 0.0  ;;  %v11648_v52 = vld [vmem:[#allocation76_spill] sm:$0xff]  ;;  %v9434_v31 = vpop.f32.mrf.mxu1 }
 0x31a   :  { %3903 = vmatprep.mubr.f32.mxu0 %v3902_v16  ;;  %4330 = vmatprep.mubr.f32.mxu1 %v9405_v49  ;;  %v3916_v23 = vsub.f32 %v9383_v37, %v11647_v20  ;;  %v3923_v3 = vand.u32 4294901760, %v3922_v19  ;;  %v3599_v2 = vadd.f32 %v9353_v60, %v3342_v11  ;;  %v3348_v55 = vadd.f32 %v3347_v4, %v11648_v52  ;;  %v3349_v16 = vpop.f32.mrf.mxu0  ;;  %v11652_v11 = vld [vmem:[#allocation26_spill] sm:$0xff]  ;;  %v11654_v52 = vld [vmem:[#allocation13_spill] sm:$0xff] }
 0x31b   :  { %3909 = vmatmul.mubr.f32.gmra.mxu0 %v3908_v35  ;;  %4332 = vmatmul.mubr.f32.gmra.mxu1 %v9385_v54  ;;  %v9437_v59 = vand.u32 4294901760, %v3660_v42  ;;  %v11651_v13 = vand.u32 4294901760, %v9398_v61  ;;  %v9446_v20 = vand.u32 4294901760, %v3661_v8  ;;  %v3350_v19 = vadd.f32 %v3349_v16, %v9158_v15 }
 0x31c   :  { %v3917_v49 = vand.u32 4294901760, %v3916_v23  ;;  %5612 = vmatpush3.msra.mxu0 %v11650_v33  ;;  %5695 = vmatprep.subr.mxu1 %v11652_v11  ;;  %v3662_v35 = vmax.f32 %v3599_v2, 0.0  ;;  %v3605_v4 = vadd.f32 %v9371_v50, %v3348_v55  ;;  %v11655_v23 = vld [vmem:[#allocation12_spill] sm:$0xff]  ;;  %v11656_v60 = vand.u32 4294901760, %v9423_v40 }
 0x31d   :  { %11649 = vst [vmem:[#allocation122_spill] sm:$0xff] %v9437_v59  ;;  %v3937_v48 = vsub.f32 %v9398_v61, %v11651_v13  ;;  %11653 = vst [vmem:[#allocation112_spill] sm:$0xff] %v9446_v20  ;;  %5613 = vmatprep.subr.mxu0 %v11654_v52  ;;  %5696 = vmatpush3.msra.mxu1 %v11655_v23  ;;  %v9452_v54 = vsub.f32 %v3660_v42, %v9437_v59  ;;  %v3355_v13 = vpop.f32.mrf.mxu0  ;;  %v3622_v52 = vpop.f32.mrf.mxu1  ;;  %v11658_v42 = vld [vmem:[#allocation87_spill] sm:$0xff]  ;;  %v11661_v61 = vld [vmem:[#allocation28_spill] sm:$0xff] }
 0x31e   :  { %3918 = vmatprep.mubr.f32.mxu0 %v3917_v49  ;;  %4337 = vmatprep.mubr.f32.mxu1 %v9437_v59  ;;  %v3931_v11 = vsub.f32 %v9423_v40, %v11656_v60  ;;  %v9460_v50 = vsub.f32 %v3661_v8, %v9446_v20  ;;  %v9462_v55 = vand.u32 4294901760, %v3662_v35  ;;  %v3663_v23 = vmax.f32 %v3605_v4, 0.0  ;;  %v11659_v59 = vld [vmem:[#allocation15_spill] sm:$0xff] }
 0x31f   :  { %v3938_v2 = vand.u32 4294901760, %v3937_v48  ;;  %v3356_v33 = vadd.f32 %v3355_v13, %v11658_v42  ;;  %3924 = vmatmul.mubr.f32.gmra.mxu0 %v3923_v3  ;;  %4339 = vmatmul.mubr.f32.gmra.mxu1 %v9414_v29  ;;  %v3607_v15 = vadd.f32 %v9388_v34, %v3350_v19  ;;  %v3357_v49 = vpop.f32.mrf.mxu0  ;;  %v10768_v48 = vand.u32 4294901760, %v9452_v54  ;;  %v11663_v19 = vld [vmem:[#allocation17_spill] sm:$0xff] }
 0x320   :  { %11657 = vst [vmem:[#allocation123_spill] sm:$0xff] %v9462_v55  ;;  %v3932_v16 = vand.u32 4294901760, %v3931_v11  ;;  %5614 = vmatpush3.msra.mxu0 %v11659_v59  ;;  %v11660_v8 = vand.u32 4294901760, %v9430_v30  ;;  %5697 = vmatprep.subr.mxu1 %v11661_v61  ;;  %v9475_v3 = vsub.f32 %v3662_v35, %v9462_v55  ;;  %v9477_v13 = vand.u32 4294901760, %v3663_v23  ;;  %v11664_v35 = vld [vmem:[#allocation16_spill] sm:$0xff] }
 0x321   :  { %v3613_v34 = vadd.f32 %v9401_v47, %v3356_v33  ;;  %4344 = vmatprep.mubr.f32.mxu1 %v9462_v55  ;;  %5615 = vmatprep.subr.mxu0 %v11663_v19  ;;  %v3664_v11 = vmax.f32 %v3607_v15, 0.0  ;;  %v3358_v42 = vadd.f32 %v3357_v49, %v9161_v1  ;;  %v3946_v4 = vsub.f32 %v9452_v54, %v10768_v48  ;;  %v3628_v33 = vpop.f32.mrf.mxu1  ;;  %v11666_v48 = vld [vmem:[#allocation30_spill] sm:$0xff] }
 0x322   :  { %v3952_v60 = vsub.f32 %v9430_v30, %v11660_v8  ;;  %11662 = vst [vmem:[#allocation113_spill] sm:$0xff] %v9477_v13  ;;  %3933 = vmatprep.mubr.f32.mxu0 %v3932_v16  ;;  %v3363_v8 = vpop.f32.mrf.mxu0  ;;  %5616 = vmatpush3.msra.mxu0 %v11664_v35  ;;  %v9488_v61 = vsub.f32 %v3663_v23, %v9477_v13  ;;  %v11667_v23 = vand.u32 4294901760, %v9460_v50  ;;  %v11668_v35 = vld [vmem:[#allocation19_spill] sm:$0xff] }
 0x323   :  { %v3665_v47 = vmax.f32 %v3613_v34, 0.0  ;;  %v3364_v55 = vadd.f32 %v3363_v8, %v9063_v6  ;;  %3939 = vmatmul.mubr.f32.gmra.mxu0 %v3938_v2  ;;  %4346 = vmatmul.mubr.f32.gmra.mxu1 %v9446_v20  ;;  %v9493_v15 = vand.u32 4294901760, %v3664_v11  ;;  %v3615_v49 = vadd.f32 %v9418_v44, %v3358_v42  ;;  %v11670_v20 = vld [vmem:[#allocation32_spill] sm:$0xff] }
 0x324   :  { %v3953_v29 = vand.u32 4294901760, %v3952_v60  ;;  %v3365_v16 = vpop.f32.mrf.mxu0  ;;  %v3947_v60 = vand.u32 4294901760, %v3946_v4  ;;  %5617 = vmatprep.subr.mxu0 %v11666_v48  ;;  %v3967_v34 = vsub.f32 %v9460_v50, %v11667_v23  ;;  %5698 = vmatpush3.msra.mxu1 %v11668_v35  ;;  %v11671_v44 = vld [vmem:[#allocation20_spill] sm:$0xff]  ;;  %v11672_v6 = vand.u32 4294901760, %v9475_v3 }
 0x325   :  { %11665 = vst [vmem:[#allocation125_spill] sm:$0xff] %v9493_v15  ;;  %v9502_v2 = vand.u32 4294901760, %v3665_v47  ;;  %v3621_v8 = vadd.f32 %v9434_v31, %v3364_v55  ;;  %v3366_v1 = vadd.f32 %v3365_v16, %v9172_v62  ;;  %5618 = vmatpush3.msra.mxu0 %v11670_v20  ;;  %5699 = vmatprep.subr.mxu1 %v11671_v44  ;;  %v3666_v42 = vmax.f32 %v3615_v49, 0.0  ;;  %v3630_v62 = vpop.f32.mrf.mxu1  ;;  %v11674_v44 = vld [vmem:[#allocation149_spill] sm:$0xff] }
 0x326   :  { %v9509_v4 = vsub.f32 %v3664_v11, %v9493_v15  ;;  %3948 = vmatprep.mubr.f32.mxu0 %v3947_v60  ;;  %4351 = vmatprep.mubr.f32.mxu1 %v9493_v15  ;;  %v3371_v23 = vpop.f32.mrf.mxu0  ;;  %v3961_v48 = vsub.f32 %v9475_v3, %v11672_v6  ;;  %v3968_v35 = vand.u32 4294901760, %v3967_v34  ;;  %v11675_v34 = vand.u32 4294901760, %v9488_v61  ;;  %v11676_v6 = vld [vmem:[#allocation23_spill] sm:$0xff] }
 0x327   :  { %11669 = vst [vmem:[#allocation116_spill] sm:$0xff] %v9502_v2  ;;  %v9516_v31 = vsub.f32 %v3665_v47, %v9502_v2  ;;  %v3667_v55 = vmax.f32 %v3621_v8, 0.0  ;;  %v3623_v16 = vadd.f32 %v3622_v52, %v3366_v1  ;;  %v3372_v20 = vadd.f32 %v3371_v23, %v9087_v9  ;;  %3954 = vmatmul.mubr.f32.gmra.mxu0 %v3953_v29  ;;  %v11678_v8 = vld [vmem:[#allocation25_spill] sm:$0xff] }
 0x328   :  { %4353 = vmatmul.mubr.f32.gmra.mxu1 %v9477_v13  ;;  %v9520_v11 = vand.u32 4294901760, %v3666_v42  ;;  %v3373_v49 = vpop.f32.mrf.mxu0  ;;  %v3962_v60 = vand.u32 4294901760, %v3961_v48  ;;  %5619 = vmatprep.subr.mxu0 %v11674_v44  ;;  %v3982_v47 = vsub.f32 %v9488_v61, %v11675_v34  ;;  %v11679_v23 = vld [vmem:[#allocation37_spill] sm:$0xff]  ;;  %v11680_v13 = vand.u32 4294901760, %v9509_v4 }
 0x329   :  { %5700 = vmatpush3.msra.mxu1 %v11676_v6  ;;  %v9529_v9 = vand.u32 4294901760, %v3667_v55  ;;  %v3668_v29 = vmax.f32 %v3623_v16, 0.0  ;;  %v3629_v1 = vadd.f32 %v3628_v33, %v3372_v20  ;;  %5620 = vmatpush3.msra.mxu0 %v11678_v8  ;;  %v3374_v15 = vadd.f32 %v3373_v49, %v9175_v22  ;;  %v3636_v33 = vpop.f32.mrf.mxu1 }
 0x32a   :  { %11673 = vst [vmem:[#allocation128_spill] sm:$0xff] %v9520_v11  ;;  %5701 = vmatprep.subr.mxu1 %v11679_v23  ;;  %v9534_v48 = vsub.f32 %v3666_v42, %v9520_v11  ;;  %3963 = vmatprep.mubr.f32.mxu0 %v3962_v60  ;;  %v3379_v34 = vpop.f32.mrf.mxu0  ;;  %v3976_v52 = vsub.f32 %v9509_v4, %v11680_v13  ;;  %v3983_v44 = vand.u32 4294901760, %v3982_v47  ;;  %v11682_v23 = vld [vmem:[#allocation27_spill] sm:$0xff]  ;;  %v11683_v13 = vand.u32 4294901760, %v9516_v31  ;;  %v11684_v47 = vld [vmem:[#allocation21_spill] sm:$0xff] }
 0x32b   :  { %11677 = vst [vmem:[#allocation164_spill] sm:$0xff] %v9529_v9  ;;  %4358 = vmatprep.mubr.f32.mxu1 %v9520_v11  ;;  %v9542_v20 = vsub.f32 %v3667_v55, %v9529_v9  ;;  %v9544_v16 = vand.u32 4294901760, %v3668_v29  ;;  %v3669_v8 = vmax.f32 %v3629_v1, 0.0  ;;  %v3380_v42 = vadd.f32 %v3379_v34, %v9105_v58  ;;  %3969 = vmatmul.mubr.f32.gmra.mxu0 %v3968_v35  ;;  %v3638_v1 = vpop.f32.mrf.mxu1 }
 0x32c   :  { %4360 = vmatmul.mubr.f32.gmra.mxu1 %v9502_v2  ;;  %v3631_v22 = vadd.f32 %v3630_v62, %v3374_v15  ;;  %v3381_v49 = vpop.f32.mrf.mxu0  ;;  %v3977_v60 = vand.u32 4294901760, %v3976_v52  ;;  %v10779_v11 = vand.u32 4294901760, %v9534_v48  ;;  %5621 = vmatprep.subr.mxu0 %v11682_v23  ;;  %v3997_v55 = vsub.f32 %v9516_v31, %v11683_v13  ;;  %v11686_v62 = vld [vmem:[#allocation40_spill] sm:$0xff]  ;;  %v11687_v2 = vld [vmem:[#allocation38_spill] sm:$0xff] }
 0x32d   :  { %11681 = vst [vmem:[#allocation119_spill] sm:$0xff] %v9544_v16  ;;  %5702 = vmatpush3.msra.mxu1 %v11684_v47  ;;  %v9556_v58 = vsub.f32 %v3668_v29, %v9544_v16  ;;  %v9558_v35 = vand.u32 4294901760, %v3669_v8  ;;  %v3637_v15 = vadd.f32 %v3636_v33, %v3380_v42  ;;  %4365 = vmatprep.mubr.f32.mxu1 %v9544_v16 }
 0x32e   :  { %5622 = vmatpush3.msra.mxu0 %v11686_v62  ;;  %v3670_v52 = vmax.f32 %v3631_v22, 0.0  ;;  %v3382_v34 = vadd.f32 %v3381_v49, %v9192_v24  ;;  %3978 = vmatprep.mubr.f32.mxu0 %v3977_v60  ;;  %v3991_v13 = vsub.f32 %v9534_v48, %v10779_v11  ;;  %v3998_v49 = vand.u32 4294901760, %v3997_v55  ;;  %v11689_v60 = vld [vmem:[#allocation42_spill] sm:$0xff]  ;;  %v11690_v11 = vld [vmem:[#allocation31_spill] sm:$0xff] }
 0x32f   :  { %11685 = vst [vmem:[#allocation129_spill] sm:$0xff] %v9558_v35  ;;  %5703 = vmatprep.subr.mxu1 %v11687_v2  ;;  %v9568_v29 = vsub.f32 %v3669_v8, %v9558_v35  ;;  %v3671_v23 = vmax.f32 %v3637_v15, 0.0  ;;  %3984 = vmatmul.mubr.f32.gmra.mxu0 %v3983_v44  ;;  %v10784_v33 = vand.u32 4294901760, %v9556_v58  ;;  %v11692_v8 = vand.u32 4294901760, %v9542_v20 }
 0x330   :  { %4367 = vmatmul.mubr.f32.gmra.mxu1 %v9529_v9  ;;  %v9572_v42 = vand.u32 4294901760, %v3670_v52  ;;  %v3639_v24 = vadd.f32 %v3638_v1, %v3382_v34  ;;  %v3992_v22 = vand.u32 4294901760, %v3991_v13  ;;  %5623 = vmatprep.subr.mxu0 %v11689_v60  ;;  %v11693_v9 = vld [vmem:[#allocation150_spill] sm:$0xff]  ;;  %v11694_v1 = vld [vmem:[#allocation33_spill] sm:$0xff] }
 0x331   :  { %5704 = vmatpush3.msra.mxu1 %v11690_v11  ;;  %v9577_v62 = vand.u32 4294901760, %v3671_v23  ;;  %v4006_v44 = vsub.f32 %v9556_v58, %v10784_v33  ;;  %v4012_v15 = vsub.f32 %v9542_v20, %v11692_v8  ;;  %5624 = vmatpush3.msra.mxu0 %v11693_v9  ;;  %v11696_v8 = vld [vmem:[#allocation44_spill] sm:$0xff] }
 0x332   :  { %11688 = vst [vmem:[#allocation163_spill] sm:$0xff] %v9572_v42  ;;  %5705 = vmatprep.subr.mxu1 %v11694_v1  ;;  %v9588_v55 = vsub.f32 %v3670_v52, %v9572_v42  ;;  %v3672_v34 = vmax.f32 %v3639_v24, 0.0  ;;  %3993 = vmatprep.mubr.f32.mxu0 %v3992_v22  ;;  %v11697_v1 = vld [vmem:[#allocation35_spill] sm:$0xff]  ;;  %v11698_v22 = vld [vmem:[#allocation46_spill] sm:$0xff]  ;;  %v11702_v52 = vld [vmem:[#allocation36_spill] sm:$0xff] }
 0x333   :  { %11691 = vst [vmem:[#allocation166_spill] sm:$0xff] %v9577_v62  ;;  %4372 = vmatprep.mubr.f32.mxu1 %v9572_v42  ;;  %v9592_v13 = vsub.f32 %v3671_v23, %v9577_v62  ;;  %3999 = vmatmul.mubr.f32.gmra.mxu0 %v3998_v49  ;;  %v4007_v33 = vand.u32 4294901760, %v4006_v44  ;;  %v4013_v24 = vand.u32 4294901760, %v4012_v15  ;;  %v11699_v23 = vand.u32 4294901760, %v9568_v29  ;;  %v11700_v42 = vld [vmem:[#allocation50_spill] sm:$0xff] }
 0x334   :  { %4374 = vmatmul.mubr.f32.gmra.mxu1 %v9558_v35  ;;  %v9595_v16 = vand.u32 4294901760, %v3672_v34  ;;  %v10791_v9 = vand.u32 4294901760, %v9588_v55  ;;  %5625 = vmatprep.subr.mxu0 %v11697_v1  ;;  %v11703_v1 = vld [vmem:[#allocation39_spill] sm:$0xff] }
 0x335   :  { %5706 = vmatpush3.msra.mxu1 %v11696_v8  ;;  %4008 = vmatprep.mubr.f32.mxu0 %v4007_v33  ;;  %v4027_v49 = vsub.f32 %v9568_v29, %v11699_v23  ;;  %v11701_v33 = vand.u32 4294901760, %v9165_v56 }
 0x336   :  { %11695 = vst [vmem:[#allocation165_spill] sm:$0xff] %v9595_v16  ;;  %5707 = vmatprep.subr.mxu1 %v11698_v22  ;;  %v9606_v44 = vsub.f32 %v3672_v34, %v9595_v16  ;;  %4379 = vmatprep.mubr.f32.mxu1 %v9595_v16  ;;  %v4021_v35 = vsub.f32 %v9588_v55, %v10791_v9  ;;  %v11704_v16 = vand.u32 4294901760, %v9592_v13  ;;  %v11705_v22 = vld [vmem:[#allocation159_spill] sm:$0xff] }
 0x337   :  { %5708 = vmatpush3.msra.mxu1 %v11700_v42  ;;  %4014 = vmatmul.mubr.f32.gmra.mxu0 %v4013_v24  ;;  %v4028_v23 = vand.u32 4294901760, %v4027_v49  ;;  %v11708_v49 = vand.u32 4294901760, %v9196_v18 }
 0x338   :  { %4381 = vmatmul.mubr.f32.gmra.mxu1 %v9577_v62  ;;  %v4022_v15 = vand.u32 4294901760, %v4021_v35  ;;  %5626 = vmatpush3.msra.mxu0 %v11702_v52  ;;  %v4035_v34 = vand.u32 4294901760, %v9606_v44  ;;  %v4042_v9 = vsub.f32 %v9592_v13, %v11704_v16  ;;  %v11707_v35 = vand.u32 4294901760, %v9152_v5 }
 0x339   :  { %4758 = vmatprep.mubr.f32.mxu1 %v11701_v33  ;;  %5627 = vmatprep.subr.mxu0 %v11703_v1  ;;  %v11706_v33 = vld [vmem:[#allocation41_spill] sm:$0xff]  ;;  %v11709_v1 = vld [vmem:[#allocation143_spill] sm:$0xff] }
 0x33a   :  { %5837 = vmatprep.subr.mxu1 %v11705_v22  ;;  %4023 = vmatprep.mubr.f32.mxu0 %v4022_v15  ;;  %v4036_v24 = vsub.f32 %v9606_v44, %v4035_v34  ;;  %v11710_v52 = vand.u32 4294901760, %v11709_v1  ;;  %v4043_v16 = vand.u32 4294901760, %v4042_v9  ;;  %v11711_v22 = vand.u32 4294901760, %v9181_v51  ;;  %v11735_v1 = vld [vmem:[#allocation109_spill] sm:$0xff] }
 0x33b   :  { %5628 = vmatpush3.msra.mxu0 %v11706_v33  ;;  %v11712_v15 = vand.u32 4294901760, %v9235_v28  ;;  %v11715_v9 = vand.u32 4294901760, %v9262_v32 }
 0x33c   :  { %4029 = vmatmul.mubr.f32.gmra.mxu0 %v4028_v23  ;;  %4762 = vmatmul.mubr.f32.vlgmr.msra.gmra.mxu1 %v11707_v35  ;;  %v4037_v62 = vand.u32 4294901760, %v4036_v24  ;;  %v11737_v23 = vld [vmem:[#allocation121_spill] sm:$0xff]  ;;  %v11741_v35 = vld [vmem:[#allocation130_spill] sm:$0xff] }
 0x33d   :  { %4769 = vmatprep.mubr.f32.mxu1 %v11708_v49  ;;  %5757 = vmatprep.subr.mxu0 %v11710_v52  ;;  %v11736_v52 = vand.u32 4294901760, %v11735_v1  ;;  %v11742_v49 = vand.u32 4294901760, %v11741_v35  ;;  %v11774_v1 = vld [vmem:[#allocation28_spill] sm:$0xff] }
 0x33e   :  { %5838 = vmatpush3.msra.mxu1 %v11581_v57  ;;  %4038 = vmatprep.mubr.f32.mxu0 %v4037_v62  ;;  %v11713_v57 = vand.u32 4294901760, %v9219_v7  ;;  %v11734_v62 = vld [vmem:[#allocation120_spill] sm:$0xff] }
 0x33f   :  { %5839 = vmatprep.subr.mxu1 %v11582_v10  ;;  %v11714_v10 = vand.u32 4294901760, %v11594_v27  ;;  %v11721_v27 = vand.u32 4294901760, %v11606_v63  ;;  %v11783_v35 = vld [vmem:[#allocation32_spill] sm:$0xff] }
 0x340   :  { %4044 = vmatmul.mubr.f32.gmra.mxu0 %v4043_v16  ;;  %4773 = vmatmul.mubr.f32.gmra.mxu1 %v11711_v22  ;;  %v11743_v16 = vld [vmem:[#allocation124_spill] sm:$0xff]  ;;  %v11744_v22 = vand.u32 4294901760, %v11635_v39 }
 0x341   :  { %4516 = vmatprep.mubr.f32.mxu0 %v9165_v56  ;;  %4780 = vmatprep.mubr.f32.mxu1 %v11712_v15  ;;  %v11716_v56 = vand.u32 4294901760, %v11597_v17  ;;  %v11725_v17 = vld [vmem:[#allocation96_spill] sm:$0xff]  ;;  %v11745_v15 = vld [vmem:[#allocation127_spill] sm:$0xff] }
 0x342   :  { %5840 = vmatpush3.msra.mxu1 %v11583_v53  ;;  %v11717_v53 = vand.u32 4294901760, %v11601_v43  ;;  %v11728_v43 = vld [vmem:[#allocation106_spill] sm:$0xff] }
 0x343   :  { %5841 = vmatprep.subr.mxu1 %v11585_v14  ;;  %v11720_v14 = vand.u32 4294901760, %v11605_v21  ;;  %v11732_v21 = vld [vmem:[#allocation98_spill] sm:$0xff] }
 0x344   :  { %4519 = vmatmul.mubr.f32.vlgmr.msra.gmra.mxu0 %v9152_v5  ;;  %4784 = vmatmul.mubr.f32.gmra.mxu1 %v11713_v57  ;;  %v11718_v5 = vand.u32 4294901760, %v9239_v38 }
 0x345   :  { %5758 = vmatpush3.msra.mxu0 %v11714_v10  ;;  %4525 = vmatprep.mubr.f32.mxu0 %v9196_v18  ;;  %v11719_v18 = vand.u32 4294901760, %v9287_v26  ;;  %v11749_v10 = vld [vmem:[#allocation126_spill] sm:$0xff] }
 0x346   :  { %4791 = vmatprep.mubr.f32.mxu1 %v11715_v9  ;;  %5759 = vmatprep.subr.mxu0 %v11716_v56  ;;  %v11750_v9 = vand.u32 4294901760, %v11749_v10  ;;  %v11751_v56 = vld [vmem:[#allocation132_spill] sm:$0xff] }
 0x347   :  { %5760 = vmatpush3.msra.mxu0 %v11717_v53  ;;  %5842 = vmatpush3.msra.mxu1 %v11587_v45  ;;  %v11723_v45 = vand.u32 4294901760, %v9327_v41  ;;  %v11752_v53 = vld [vmem:[#allocation131_spill] sm:$0xff]  ;;  %v11796_v10 = vld [vmem:[#allocation40_spill] sm:$0xff] }
 0x348   :  { %4528 = vmatmul.mubr.f32.gmra.mxu0 %v9181_v51  ;;  %4795 = vmatmul.mubr.f32.gmra.mxu1 %v11718_v5  ;;  %v11722_v51 = vand.u32 4294901760, %v9270_v12  ;;  %v11753_v39 = vand.u32 4294901760, %v11752_v53  ;;  %v11754_v5 = vld [vmem:[#allocation7_spill] sm:$0xff]  ;;  %v11808_v53 = vld [vmem:[#allocation36_spill] sm:$0xff] }
 0x349   :  { %4534 = vmatprep.mubr.f32.mxu0 %v9235_v28  ;;  %4802 = vmatprep.mubr.f32.mxu1 %v11719_v18  ;;  %v11724_v28 = vand.u32 4294901760, %v11611_v0  ;;  %v11733_v0 = vand.u32 4294901760, %v11732_v21  ;;  %v11755_v18 = vld [vmem:[#allocation117_spill] sm:$0xff]  ;;  %v11770_v21 = vld [vmem:[#allocation12_spill] sm:$0xff] }
 0x34a   :  { %5761 = vmatprep.subr.mxu0 %v11720_v14  ;;  %5843 = vmatprep.subr.mxu1 %v11589_v25  ;;  %v11726_v25 = vld [vmem:[#allocation102_spill] sm:$0xff]  ;;  %v11756_v14 = vand.u32 4294901760, %v11755_v18 }
 0x34b   :  { %5762 = vmatpush3.msra.mxu0 %v11721_v27  ;;  %5844 = vmatpush3.msra.mxu1 %v11591_v36  ;;  %v11727_v63 = vand.u32 4294901760, %v11726_v25  ;;  %v11758_v27 = vld [vmem:[#allocation133_spill] sm:$0xff]  ;;  %v11763_v25 = vld [vmem:[#allocation24_spill] sm:$0xff] }
 0x34c   :  { %4537 = vmatmul.mubr.f32.gmra.mxu0 %v9219_v7  ;;  %4806 = vmatmul.mubr.f32.gmra.mxu1 %v11722_v51  ;;  %v11729_v7 = vld [vmem:[#allocation105_spill] sm:$0xff]  ;;  %v11759_v51 = vand.u32 4294901760, %v11758_v27  ;;  %v11822_v27 = vld [vmem:[#allocation108_spill] sm:$0xff] }
 0x34d   :  { %4543 = vmatprep.mubr.f32.mxu0 %v9262_v32  ;;  %4813 = vmatprep.mubr.f32.mxu1 %v11723_v45  ;;  %v11730_v36 = vand.u32 4294901760, %v11729_v7  ;;  %v11731_v32 = vand.u32 4294901760, %v9358_v46  ;;  %v11760_v45 = vld [vmem:[#allocation22_spill] sm:$0xff] }
 0x34e   :  { %5763 = vmatprep.subr.mxu0 %v11724_v28  ;;  %5845 = vmatprep.subr.mxu1 %v11725_v17  ;;  %v11761_v28 = vld [vmem:[#allocation11_spill] sm:$0xff] }
 0x34f   :  { %5764 = vmatpush3.msra.mxu0 %v11727_v63  ;;  %5846 = vmatpush3.msra.mxu1 %v11728_v43  ;;  %v11762_v17 = vand.u32 4294901760, %v11761_v28  ;;  %v11764_v63 = vand.u32 4294901760, %v9430_v30  ;;  %v11766_v43 = vld [vmem:[#allocation13_spill] sm:$0xff]  ;;  %v11825_v28 = vld [vmem:[#allocation110_spill] sm:$0xff] }
 0x350   :  { %4546 = vmatmul.mubr.f32.gmra.mxu0 %v9239_v38  ;;  %4817 = vmatmul.mubr.f32.gmra.mxu1 %v11730_v36  ;;  %v11738_v38 = vld [vmem:[#allocation100_spill] sm:$0xff]  ;;  %v11768_v36 = vld [vmem:[#allocation26_spill] sm:$0xff] }
 0x351   :  { %4552 = vmatprep.mubr.f32.mxu0 %v9287_v26  ;;  %4824 = vmatprep.mubr.f32.mxu1 %v11731_v32  ;;  %v11739_v24 = vand.u32 4294901760, %v11738_v38  ;;  %v11740_v26 = vand.u32 4294901760, %v9383_v37  ;;  %v11769_v32 = vand.u32 4294901760, %v11659_v59 }
 0x352   :  { %5765 = vmatprep.subr.mxu0 %v11733_v0  ;;  %5847 = vmatprep.subr.mxu1 %v11734_v62  ;;  %v11771_v0 = vand.u32 4294901760, %v9460_v50  ;;  %v11773_v62 = vand.u32 4294901760, %v11663_v19 }
 0x353   :  { %5766 = vmatpush3.msra.mxu0 %v11736_v52  ;;  %5848 = vmatpush3.msra.mxu1 %v11737_v23  ;;  %v11775_v52 = vld [vmem:[#allocation16_spill] sm:$0xff]  ;;  %v11777_v23 = vld [vmem:[#allocation19_spill] sm:$0xff] }
 0x354   :  { %4555 = vmatmul.mubr.f32.gmra.mxu0 %v9270_v12  ;;  %4828 = vmatmul.mubr.f32.gmra.mxu1 %v11739_v24  ;;  %v11746_v12 = vld [vmem:[#allocation114_spill] sm:$0xff]  ;;  %v11776_v59 = vand.u32 4294901760, %v11775_v52  ;;  %v11839_v52 = vld [vmem:[#allocation164_spill] sm:$0xff] }
 0x355   :  { %4561 = vmatprep.mubr.f32.mxu0 %v9327_v41  ;;  %4835 = vmatprep.mubr.f32.mxu1 %v11740_v26  ;;  %v11747_v57 = vand.u32 4294901760, %v11746_v12  ;;  %v11748_v41 = vand.u32 4294901760, %v9423_v40  ;;  %v11780_v24 = vld [vmem:[#allocation30_spill] sm:$0xff]  ;;  %v11782_v26 = vld [vmem:[#allocation20_spill] sm:$0xff] }
 0x356   :  { %5767 = vmatprep.subr.mxu0 %v11742_v49  ;;  %5849 = vmatprep.subr.mxu1 %v11743_v16  ;;  %v11781_v19 = vand.u32 4294901760, %v11780_v24  ;;  %v11784_v49 = vand.u32 4294901760, %v11783_v35  ;;  %v11787_v16 = vld [vmem:[#allocation149_spill] sm:$0xff] }
 0x357   :  { %5768 = vmatpush3.msra.mxu0 %v11744_v22  ;;  %5850 = vmatpush3.msra.mxu1 %v11745_v15  ;;  %v11788_v22 = vand.u32 4294901760, %v11787_v16  ;;  %v11789_v15 = vld [vmem:[#allocation37_spill] sm:$0xff] }
 0x358   :  { %4564 = vmatmul.mubr.f32.gmra.mxu0 %v11729_v7  ;;  %4839 = vmatmul.mubr.f32.gmra.mxu1 %v11747_v57  ;;  %v11767_v7 = vand.u32 4294901760, %v11766_v43  ;;  %v11830_v43 = vld [vmem:[#allocation122_spill] sm:$0xff] }
 0x359   :  { %4570 = vmatprep.mubr.f32.mxu0 %v9358_v46  ;;  %4846 = vmatprep.mubr.f32.mxu1 %v11748_v41  ;;  %v11757_v46 = vand.u32 4294901760, %v9452_v54 }
 0x35a   :  { %5769 = vmatprep.subr.mxu0 %v11750_v9  ;;  %5851 = vmatprep.subr.mxu1 %v11751_v56  ;;  %v11797_v9 = vand.u32 4294901760, %v11796_v10 }
 0x35b   :  { %5770 = vmatpush3.msra.mxu0 %v11753_v39  ;;  %5852 = vmatpush3.msra.mxu1 %v11754_v5  ;;  %v11809_v39 = vand.u32 4294901760, %v11808_v53 }
 0x35c   :  { %4573 = vmatmul.mubr.f32.gmra.mxu0 %v11738_v38  ;;  %4850 = vmatmul.mubr.f32.gmra.mxu1 %v11756_v14  ;;  %v11778_v38 = vand.u32 4294901760, %v9488_v61  ;;  %v11816_v14 = vld [vmem:[#allocation97_spill] sm:$0xff] }
 0x35d   :  { %4579 = vmatprep.mubr.f32.mxu0 %v9383_v37  ;;  %4857 = vmatprep.mubr.f32.mxu1 %v11757_v46  ;;  %v11765_v37 = vand.u32 4294901760, %v9475_v3  ;;  %v11821_v46 = vld [vmem:[#allocation92_spill] sm:$0xff] }
 0x35e   :  { %5771 = vmatprep.subr.mxu0 %v11759_v51  ;;  %5853 = vmatprep.subr.mxu1 %v11760_v45  ;;  %v11823_v51 = vld [vmem:[#allocation94_spill] sm:$0xff]  ;;  %v11824_v45 = vld [vmem:[#allocation111_spill] sm:$0xff] }
 0x35f   :  { %5772 = vmatpush3.msra.mxu0 %v11762_v17  ;;  %5854 = vmatpush3.msra.mxu1 %v11763_v25  ;;  %v11826_v17 = vld [vmem:[#allocation104_spill] sm:$0xff]  ;;  %v11827_v25 = vld [vmem:[#allocation101_spill] sm:$0xff] }
 0x360   :  { %4582 = vmatmul.mubr.f32.gmra.mxu0 %v11746_v12  ;;  %4861 = vmatmul.mubr.f32.gmra.mxu1 %v11764_v63  ;;  %v11790_v12 = vld [vmem:[#allocation25_spill] sm:$0xff]  ;;  %v11828_v63 = vld [vmem:[#allocation107_spill] sm:$0xff] }
 0x361   :  { %4588 = vmatprep.mubr.f32.mxu0 %v9423_v40  ;;  %4868 = vmatprep.mubr.f32.mxu1 %v11765_v37  ;;  %v11772_v40 = vand.u32 4294901760, %v9509_v4  ;;  %v11791_v57 = vand.u32 4294901760, %v11790_v12  ;;  %v11829_v37 = vld [vmem:[#allocation115_spill] sm:$0xff] }
 0x362   :  { %5773 = vmatprep.subr.mxu0 %v11767_v7  ;;  %5855 = vmatprep.subr.mxu1 %v11768_v36  ;;  %v11831_v7 = vld [vmem:[#allocation118_spill] sm:$0xff]  ;;  %v11832_v36 = vld [vmem:[#allocation123_spill] sm:$0xff] }
 0x363   :  { %5774 = vmatpush3.msra.mxu0 %v11769_v32  ;;  %5856 = vmatpush3.msra.mxu1 %v11770_v21  ;;  %v11833_v32 = vld [vmem:[#allocation112_spill] sm:$0xff]  ;;  %v11834_v21 = vld [vmem:[#allocation125_spill] sm:$0xff] }
 0x364   :  { %4591 = vmatmul.mubr.f32.gmra.mxu0 %v11755_v18  ;;  %4872 = vmatmul.mubr.f32.gmra.mxu1 %v11771_v0  ;;  %v11814_v18 = vand.u32 4294901760, %v11706_v33  ;;  %v11819_v33 = vld [vmem:[#allocation88_spill] sm:$0xff]  ;;  %v11835_v0 = vld [vmem:[#allocation113_spill] sm:$0xff] }
 0x365   :  { %4597 = vmatprep.mubr.f32.mxu0 %v9452_v54  ;;  %4879 = vmatprep.mubr.f32.mxu1 %v11772_v40  ;;  %v11779_v54 = vand.u32 4294901760, %v9534_v48  ;;  %v11836_v40 = vld [vmem:[#allocation128_spill] sm:$0xff] }
 0x366   :  { %5775 = vmatprep.subr.mxu0 %v11773_v62  ;;  %5857 = vmatprep.subr.mxu1 %v11774_v1  ;;  %v11837_v62 = vld [vmem:[#allocation116_spill] sm:$0xff]  ;;  %v11838_v1 = vld [vmem:[#allocation119_spill] sm:$0xff] }
 0x367   :  { %5776 = vmatpush3.msra.mxu0 %v11776_v59  ;;  %5858 = vmatpush3.msra.mxu1 %v11777_v23  ;;  %v11840_v59 = vld [vmem:[#allocation163_spill] sm:$0xff]  ;;  %v11841_v23 = vld [vmem:[#allocation129_spill] sm:$0xff] }
 0x368   :  { %4600 = vmatmul.mubr.f32.gmra.mxu0 %v9430_v30  ;;  %4883 = vmatmul.mubr.f32.gmra.mxu1 %v11778_v38  ;;  %v11785_v30 = vand.u32 4294901760, %v9516_v31  ;;  %v11842_v38 = vld [vmem:[#allocation165_spill] sm:$0xff] }
 0x369   :  { %4606 = vmatprep.mubr.f32.mxu0 %v9475_v3  ;;  %4890 = vmatprep.mubr.f32.mxu1 %v11779_v54  ;;  %v11786_v3 = vand.u32 4294901760, %v9556_v58  ;;  %v11843_v54 = vld [vmem:[#allocation166_spill] sm:$0xff] }
 0x36a   :  { %5777 = vmatprep.subr.mxu0 %v11781_v19  ;;  %5859 = vmatprep.subr.mxu1 %v11782_v26 }
 0x36b   :  { %5778 = vmatpush3.msra.mxu0 %v11784_v49  ;;  %5860 = vmatpush3.msra.mxu1 %v11676_v6  ;;  %v11794_v6 = vld [vmem:[#allocation27_spill] sm:$0xff] }
 0x36c   :  { %4609 = vmatmul.mubr.f32.gmra.mxu0 %v9460_v50  ;;  %4894 = vmatmul.mubr.f32.gmra.mxu1 %v11785_v30  ;;  %v11792_v50 = vand.u32 4294901760, %v9542_v20  ;;  %v11795_v41 = vand.u32 4294901760, %v11794_v6 }
 0x36d   :  { %4615 = vmatprep.mubr.f32.mxu0 %v9509_v4  ;;  %4901 = vmatprep.mubr.f32.mxu1 %v11786_v3  ;;  %v11793_v4 = vand.u32 4294901760, %v9588_v55 }
 0x36e   :  { %5779 = vmatprep.subr.mxu0 %v11788_v22  ;;  %5861 = vmatprep.subr.mxu1 %v11789_v15  ;;  %v9883_v22 = vld [vmem:[%s10199_s6] ss:$0 sm:$0xff] }
 0x36f   :  { %5780 = vmatpush3.msra.mxu0 %v11791_v57  ;;  %5862 = vmatpush3.msra.mxu1 %v11684_v47  ;;  %v11800_v47 = vld [vmem:[#allocation33_spill] sm:$0xff] }
 0x370   :  { %4618 = vmatmul.mubr.f32.gmra.mxu0 %v9488_v61  ;;  %4905 = vmatmul.mubr.f32.gmra.mxu1 %v11792_v50  ;;  %v11798_v61 = vand.u32 4294901760, %v9568_v29 }
 0x371   :  { %4624 = vmatprep.mubr.f32.mxu0 %v9534_v48  ;;  %4912 = vmatprep.mubr.f32.mxu1 %v11793_v4  ;;  %v11799_v48 = vand.u32 4294901760, %v11689_v60  ;;  %v11806_v60 = vld [vmem:[#allocation35_spill] sm:$0xff] }
 0x372   :  { %5781 = vmatprep.subr.mxu0 %v11795_v41  ;;  %5863 = vmatprep.subr.mxu1 %v11687_v2  ;;  %v11801_v2 = vld [vmem:[#allocation150_spill] sm:$0xff] }
 0x373   :  { %5782 = vmatpush3.msra.mxu0 %v11797_v9  ;;  %5864 = vmatpush3.msra.mxu1 %v11690_v11  ;;  %v11802_v56 = vand.u32 4294901760, %v11801_v2  ;;  %v11804_v11 = vld [vmem:[#allocation89_spill] sm:$0xff] }
 0x374   :  { %4627 = vmatmul.mubr.f32.gmra.mxu0 %v9516_v31  ;;  %4916 = vmatmul.mubr.f32.gmra.mxu1 %v11798_v61  ;;  %v11803_v31 = vand.u32 4294901760, %v9592_v13 }
 0x375   :  { %4633 = vmatprep.mubr.f32.mxu0 %v9556_v58  ;;  %4923 = vmatprep.mubr.f32.mxu1 %v4035_v34  ;;  %v11805_v58 = vld [vmem:[#allocation46_spill] sm:$0xff]  ;;  %v11807_v34 = vand.u32 4294901760, %v11806_v60 }
 0x376   :  { %5783 = vmatprep.subr.mxu0 %v11799_v48  ;;  %5865 = vmatprep.subr.mxu1 %v11800_v47 }
 0x377   :  { %5784 = vmatpush3.msra.mxu0 %v11802_v56  ;;  %5866 = vmatpush3.msra.mxu1 %v11696_v8  ;;  %v11811_v8 = vld [vmem:[#allocation91_spill] sm:$0xff] }
 0x378   :  { %4636 = vmatmul.mubr.f32.gmra.mxu0 %v9542_v20  ;;  %4927 = vmatmul.mubr.f32.gmra.mxu1 %v11803_v31  ;;  %v11810_v20 = vld [vmem:[#allocation78_spill] sm:$0xff] }
 0x379   :  { %4642 = vmatprep.mubr.f32.mxu0 %v9588_v55  ;;  %5302 = vmatprep.mubr.f32.mxu1 %v11804_v11  ;;  %v11812_v55 = vld [vmem:[#allocation39_spill] sm:$0xff] }
 0x37a   :  { %5867 = vmatprep.subr.mxu1 %v11805_v58  ;;  %5785 = vmatprep.subr.mxu0 %v11807_v34  ;;  %v11813_v5 = vand.u32 4294901760, %v11812_v55 }
 0x37b   :  { %5868 = vmatpush3.msra.mxu1 %v11700_v42  ;;  %5786 = vmatpush3.msra.mxu0 %v11809_v39  ;;  %v11815_v42 = vld [vmem:[#allocation80_spill] sm:$0xff] }
 0x37c   :  { %4645 = vmatmul.mubr.f32.gmra.mxu0 %v9568_v29  ;;  %5304 = vmatmul.mubr.f32.vlgmr.msra.gmra.mxu1 %v11810_v20  ;;  %v11817_v29 = vld [vmem:[#allocation85_spill] sm:$0xff] }
 0x37d   :  { %4651 = vmatprep.mubr.f32.mxu0 %v9606_v44  ;;  %5309 = vmatprep.mubr.f32.mxu1 %v11811_v8  ;;  %v11818_v44 = vld [vmem:[#allocation99_spill] sm:$0xff] }
 0x37e   :  { %5787 = vmatprep.subr.mxu0 %v11813_v5 }
 0x37f   :  { %5788 = vmatpush3.msra.mxu0 %v11814_v18 }
 0x380   :  { %4654 = vmatmul.mubr.f32.gmra.mxu0 %v9592_v13  ;;  %5311 = vmatmul.mubr.f32.gmra.mxu1 %v11815_v42  ;;  %v11820_v13 = vld [vmem:[#allocation103_spill] sm:$0xff] }
 0x381   :  { %5093 = vmatprep.mubr.f32.mxu0 %v11804_v11  ;;  %5316 = vmatprep.mubr.f32.mxu1 %v11816_v14 }
 0x384   :  { %5095 = vmatmul.mubr.f32.vlgmr.msra.gmra.mxu0 %v11810_v20  ;;  %5318 = vmatmul.mubr.f32.gmra.mxu1 %v11817_v29 }
 0x385   :  { %5100 = vmatprep.mubr.f32.mxu0 %v11811_v8  ;;  %5323 = vmatprep.mubr.f32.mxu1 %v11818_v44 }
 0x388   :  { %5102 = vmatmul.mubr.f32.gmra.mxu0 %v11815_v42  ;;  %5325 = vmatmul.mubr.f32.gmra.mxu1 %v11819_v33 }
 0x389   :  { %5107 = vmatprep.mubr.f32.mxu0 %v11816_v14  ;;  %5330 = vmatprep.mubr.f32.mxu1 %v11820_v13 }
 0x38c   :  { %5109 = vmatmul.mubr.f32.gmra.mxu0 %v11817_v29  ;;  %5332 = vmatmul.mubr.f32.gmra.mxu1 %v11821_v46 }
 0x38d   :  { %5114 = vmatprep.mubr.f32.mxu0 %v11818_v44  ;;  %5337 = vmatprep.mubr.f32.mxu1 %v11822_v27 }
 0x390   :  { %5116 = vmatmul.mubr.f32.gmra.mxu0 %v11819_v33  ;;  %5339 = vmatmul.mubr.f32.gmra.mxu1 %v11823_v51 }
 0x391   :  { %5121 = vmatprep.mubr.f32.mxu0 %v11820_v13  ;;  %5344 = vmatprep.mubr.f32.mxu1 %v11824_v45 }
 0x394   :  { %5123 = vmatmul.mubr.f32.gmra.mxu0 %v11821_v46  ;;  %5346 = vmatmul.mubr.f32.gmra.mxu1 %v11825_v28 }
 0x395   :  { %5128 = vmatprep.mubr.f32.mxu0 %v11822_v27  ;;  %5351 = vmatprep.mubr.f32.mxu1 %v11826_v17 }
 0x398   :  { %5130 = vmatmul.mubr.f32.gmra.mxu0 %v11823_v51  ;;  %5353 = vmatmul.mubr.f32.gmra.mxu1 %v11827_v25 }
 0x399   :  { %5135 = vmatprep.mubr.f32.mxu0 %v11824_v45  ;;  %5358 = vmatprep.mubr.f32.mxu1 %v11828_v63 }
 0x39c   :  { %5137 = vmatmul.mubr.f32.gmra.mxu0 %v11825_v28  ;;  %5360 = vmatmul.mubr.f32.gmra.mxu1 %v11829_v37 }
 0x39d   :  { %5142 = vmatprep.mubr.f32.mxu0 %v11826_v17  ;;  %5365 = vmatprep.mubr.f32.mxu1 %v11830_v43 }
 0x3a0   :  { %5144 = vmatmul.mubr.f32.gmra.mxu0 %v11827_v25  ;;  %5367 = vmatmul.mubr.f32.gmra.mxu1 %v11831_v7 }
 0x3a1   :  { %5149 = vmatprep.mubr.f32.mxu0 %v11828_v63  ;;  %5372 = vmatprep.mubr.f32.mxu1 %v11832_v36 }
 0x3a4   :  { %5151 = vmatmul.mubr.f32.gmra.mxu0 %v11829_v37  ;;  %5374 = vmatmul.mubr.f32.gmra.mxu1 %v11833_v32 }
 0x3a5   :  { %5156 = vmatprep.mubr.f32.mxu0 %v11830_v43  ;;  %5379 = vmatprep.mubr.f32.mxu1 %v11834_v21 }
 0x3a8   :  { %5158 = vmatmul.mubr.f32.gmra.mxu0 %v11831_v7  ;;  %5381 = vmatmul.mubr.f32.gmra.mxu1 %v11835_v0 }
 0x3a9   :  { %5163 = vmatprep.mubr.f32.mxu0 %v11832_v36  ;;  %5386 = vmatprep.mubr.f32.mxu1 %v11836_v40 }
 0x3ac   :  { %5165 = vmatmul.mubr.f32.gmra.mxu0 %v11833_v32  ;;  %5388 = vmatmul.mubr.f32.gmra.mxu1 %v11837_v62 }
 0x3ad   :  { %5170 = vmatprep.mubr.f32.mxu0 %v11834_v21  ;;  %5393 = vmatprep.mubr.f32.mxu1 %v11838_v1 }
 0x3b0   :  { %5172 = vmatmul.mubr.f32.gmra.mxu0 %v11835_v0  ;;  %5395 = vmatmul.mubr.f32.gmra.mxu1 %v11839_v52 }
 0x3b1   :  { %5177 = vmatprep.mubr.f32.mxu0 %v11836_v40  ;;  %5400 = vmatprep.mubr.f32.mxu1 %v11840_v59 }
 0x3b4   :  { %5179 = vmatmul.mubr.f32.gmra.mxu0 %v11837_v62  ;;  %5402 = vmatmul.mubr.f32.gmra.mxu1 %v11841_v23 }
 0x3b5   :  { %5184 = vmatprep.mubr.f32.mxu0 %v11838_v1  ;;  %5407 = vmatprep.mubr.f32.mxu1 %v11842_v38 }
 0x3b8   :  { %5186 = vmatmul.mubr.f32.gmra.mxu0 %v11839_v52  ;;  %5409 = vmatmul.mubr.f32.gmra.mxu1 %v11843_v54  ;;  %v5549_v24 = vpop.f32.mrf.mxu1 }
 0x3b9   :  { %5191 = vmatprep.mubr.f32.mxu0 %v11840_v59 }
 0x3ba   :  { %v5550_v19 = vpop.f32.mrf.mxu1 }
 0x3bb   :  { %v5551_v26 = vadd.f32 %v5550_v19, %v5549_v24 }
 0x3bc   :  { %5193 = vmatmul.mubr.f32.gmra.mxu0 %v11841_v23  ;;  %v5552_v35 = vpop.f32.mrf.mxu1 }
 0x3bd   :  { %5198 = vmatprep.mubr.f32.mxu0 %v11842_v38 }
 0x3be   :  { %v5553_v49 = vpop.f32.mrf.mxu1 }
 0x3bf   :  { %v5554_v30 = vadd.f32 %v5553_v49, %v5552_v35 }
 0x3c0   :  { %5200 = vmatmul.mubr.f32.gmra.mxu0 %v11843_v54 }
 0x3c1   :  { %v5469_v3 = vpop.f32.mrf.mxu0 }
 0x3c2   :  { %v5555_v16 = vpop.f32.mrf.mxu1 }
 0x3c3   :  { %v5470_v15 = vpop.f32.mrf.mxu0 }
 0x3c4   :  { %v5556_v12 = vpop.f32.mrf.mxu1  ;;  %v5471_v57 = vadd.f32 %v5470_v15, %v5469_v3 }
 0x3c5   :  { %v5557_v50 = vadd.f32 %v5556_v12, %v5555_v16  ;;  %v5472_v4 = vpop.f32.mrf.mxu0 }
 0x3c6   :  { %v5558_v6 = vpop.f32.mrf.mxu1  ;;  %v3821_v41 = vadd.f32 %v5471_v57, %v9883_v22 }
 0x3c7   :  { %v5473_v10 = vpop.f32.mrf.mxu0 }
 0x3c8   :  { %v5559_v9 = vpop.f32.mrf.mxu1  ;;  %v5474_v61 = vadd.f32 %v5473_v10, %v5472_v4  ;;  %v9886_v47 = vadd.f32 %v5551_v26, %v3821_v41 }
 0x3c9   :  { %v5560_v48 = vadd.f32 %v5559_v9, %v5558_v6 }
 0x3ca   :  { %v5475_v2 = vpop.f32.mrf.mxu0  ;;  %v5561_v56 = vpop.f32.mrf.mxu1  ;;  %v3836_v31 = vadd.f32 %v5474_v61, %v9883_v22 }
 0x3cc   :  { %v5476_v11 = vpop.f32.mrf.mxu0  ;;  %v5562_v58 = vpop.f32.mrf.mxu1  ;;  %v9889_v53 = vadd.f32 %v5554_v30, %v3836_v31 }
 0x3cd   :  { %v5477_v60 = vadd.f32 %v5476_v11, %v5475_v2  ;;  %v5563_v34 = vadd.f32 %v5562_v58, %v5561_v56 }
 0x3ce   :  { %v5478_v39 = vpop.f32.mrf.mxu0  ;;  %v5564_v20 = vpop.f32.mrf.mxu1 }
 0x3cf   :  { %v3851_v8 = vadd.f32 %v5477_v60, %v9883_v22 }
 0x3d0   :  { %v5479_v55 = vpop.f32.mrf.mxu0  ;;  %v5565_v5 = vpop.f32.mrf.mxu1 }
 0x3d1   :  { %v5480_v18 = vadd.f32 %v5479_v55, %v5478_v39  ;;  %v5566_v42 = vadd.f32 %v5565_v5, %v5564_v20  ;;  %v9892_v14 = vadd.f32 %v5557_v50, %v3851_v8 }
 0x3d2   :  { %v5567_v44 = vpop.f32.mrf.mxu1 }
 0x3d3   :  { %v5481_v29 = vpop.f32.mrf.mxu0  ;;  %v3866_v33 = vadd.f32 %v5480_v18, %v9883_v22 }
 0x3d4   :  { %v5568_v46 = vpop.f32.mrf.mxu1 }
 0x3d5   :  { %v5482_v13 = vpop.f32.mrf.mxu0  ;;  %v5569_v51 = vadd.f32 %v5568_v46, %v5567_v44  ;;  %v9895_v45 = vadd.f32 %v5560_v48, %v3866_v33 }
 0x3d6   :  { %v5483_v27 = vadd.f32 %v5482_v13, %v5481_v29 }
 0x3d7   :  { %v5484_v28 = vpop.f32.mrf.mxu0  ;;  %v5570_v17 = vpop.f32.mrf.mxu1 }
 0x3d8   :  { %v3881_v25 = vadd.f32 %v5483_v27, %v9883_v22 }
 0x3d9   :  { %v5485_v63 = vpop.f32.mrf.mxu0  ;;  %v5571_v37 = vpop.f32.mrf.mxu1 }
 0x3da   :  { %v5486_v43 = vadd.f32 %v5485_v63, %v5484_v28  ;;  %v5572_v7 = vadd.f32 %v5571_v37, %v5570_v17  ;;  %v9898_v36 = vadd.f32 %v5563_v34, %v3881_v25 }
 0x3db   :  { %v5487_v32 = vpop.f32.mrf.mxu0  ;;  %v5573_v21 = vpop.f32.mrf.mxu1 }
 0x3dc   :  { %v3896_v0 = vadd.f32 %v5486_v43, %v9883_v22 }
 0x3dd   :  { %v5488_v40 = vpop.f32.mrf.mxu0  ;;  %v5574_v62 = vpop.f32.mrf.mxu1 }
 0x3de   :  { %v5489_v1 = vadd.f32 %v5488_v40, %v5487_v32  ;;  %v5575_v52 = vadd.f32 %v5574_v62, %v5573_v21  ;;  %v9901_v59 = vadd.f32 %v5566_v42, %v3896_v0 }
 0x3df   :  { %v5490_v23 = vpop.f32.mrf.mxu0  ;;  %v5576_v38 = vpop.f32.mrf.mxu1 }
 0x3e0   :  { %v3911_v54 = vadd.f32 %v5489_v1, %v9883_v22 }
 0x3e1   :  { %v5491_v24 = vpop.f32.mrf.mxu0  ;;  %v5577_v19 = vpop.f32.mrf.mxu1 }
 0x3e2   :  { %v5492_v26 = vadd.f32 %v5491_v24, %v5490_v23  ;;  %v5578_v35 = vadd.f32 %v5577_v19, %v5576_v38  ;;  %v9904_v49 = vadd.f32 %v5569_v51, %v3911_v54 }
 0x3e3   :  { %v5493_v30 = vpop.f32.mrf.mxu0  ;;  %v5579_v3 = vpop.f32.mrf.mxu1 }
 0x3e4   :  { %v3926_v16 = vadd.f32 %v5492_v26, %v9883_v22 }
 0x3e5   :  { %v5494_v15 = vpop.f32.mrf.mxu0  ;;  %v5580_v12 = vpop.f32.mrf.mxu1 }
 0x3e6   :  { %v5495_v57 = vadd.f32 %v5494_v15, %v5493_v30  ;;  %v5581_v50 = vadd.f32 %v5580_v12, %v5579_v3  ;;  %v9907_v4 = vadd.f32 %v5572_v7, %v3926_v16 }
 0x3e7   :  { %v5496_v6 = vpop.f32.mrf.mxu0 }
 0x3e8   :  { %v5582_v41 = vpop.f32.mrf.mxu1  ;;  %v3941_v10 = vadd.f32 %v5495_v57, %v9883_v22 }
 0x3e9   :  { %v5497_v9 = vpop.f32.mrf.mxu0 }
 0x3ea   :  { %v5583_v61 = vpop.f32.mrf.mxu1  ;;  %v5498_v48 = vadd.f32 %v5497_v9, %v5496_v6  ;;  %v9910_v56 = vadd.f32 %v5575_v52, %v3941_v10 }
 0x3eb   :  { %v5584_v2 = vadd.f32 %v5583_v61, %v5582_v41  ;;  %v5499_v31 = vpop.f32.mrf.mxu0 }
 0x3ec   :  { %v5585_v11 = vpop.f32.mrf.mxu1  ;;  %v3956_v58 = vadd.f32 %v5498_v48, %v9883_v22 }
 0x3ed   :  { %v5500_v60 = vpop.f32.mrf.mxu0 }
 0x3ee   :  { %v5586_v34 = vpop.f32.mrf.mxu1  ;;  %v5501_v39 = vadd.f32 %v5500_v60, %v5499_v31  ;;  %v9913_v8 = vadd.f32 %v5578_v35, %v3956_v58 }
 0x3ef   :  { %v5587_v20 = vadd.f32 %v5586_v34, %v5585_v11  ;;  %v5502_v55 = vpop.f32.mrf.mxu0 }
 0x3f0   :  { %11844 = vst [vmem:[#allocation6_spill] sm:$0xff] %v9913_v8  ;;  %v5588_v5 = vpop.f32.mrf.mxu1  ;;  %v3971_v18 = vadd.f32 %v5501_v39, %v9883_v22 }
 0x3f1   :  { %v5503_v42 = vpop.f32.mrf.mxu0 }
 0x3f2   :  { %v5589_v29 = vpop.f32.mrf.mxu1  ;;  %v5504_v44 = vadd.f32 %v5503_v42, %v5502_v55  ;;  %v9916_v13 = vadd.f32 %v5581_v50, %v3971_v18 }
 0x3f3   :  { %v5590_v33 = vadd.f32 %v5589_v29, %v5588_v5  ;;  %v5505_v46 = vpop.f32.mrf.mxu0 }
 0x3f4   :  { %11845 = vst [vmem:[#allocation147_spill] sm:$0xff] %v9916_v13  ;;  %v5591_v27 = vpop.f32.mrf.mxu1  ;;  %v3986_v51 = vadd.f32 %v5504_v44, %v9883_v22 }
 0x3f5   :  { %v5506_v28 = vpop.f32.mrf.mxu0 }
 0x3f6   :  { %v5592_v17 = vpop.f32.mrf.mxu1  ;;  %v5507_v25 = vadd.f32 %v5506_v28, %v5505_v46  ;;  %v9919_v37 = vadd.f32 %v5584_v2, %v3986_v51 }
 0x3f7   :  { %v5593_v63 = vadd.f32 %v5592_v17, %v5591_v27  ;;  %v5508_v43 = vpop.f32.mrf.mxu0 }
 0x3f8   :  { %11846 = vst [vmem:[#allocation55_spill] sm:$0xff] %v9919_v37  ;;  %v5594_v7 = vpop.f32.mrf.mxu1  ;;  %v4001_v32 = vadd.f32 %v5507_v25, %v9883_v22 }
 0x3f9   :  { %v5509_v21 = vpop.f32.mrf.mxu0 }
 0x3fa   :  { %v5595_v0 = vpop.f32.mrf.mxu1  ;;  %v5510_v40 = vadd.f32 %v5509_v21, %v5508_v43  ;;  %v9922_v1 = vadd.f32 %v5587_v20, %v4001_v32 }
 0x3fb   :  { %v5596_v62 = vadd.f32 %v5595_v0, %v5594_v7 }
 0x3fc   :  { %11847 = vst [vmem:[#allocation10_spill] sm:$0xff] %v9922_v1  ;;  %v5511_v52 = vpop.f32.mrf.mxu0  ;;  %v9924_v23 = vpop.f32.mrf.mxu1  ;;  %v4016_v38 = vadd.f32 %v5510_v40, %v9883_v22 }
 0x3fe   :  { %v5512_v54 = vpop.f32.mrf.mxu0  ;;  %v9927_v24 = vpop.f32.mrf.mxu1  ;;  %v9929_v26 = vadd.f32 %v5590_v33, %v4016_v38 }
 0x3ff   :  { %v5513_v19 = vadd.f32 %v5512_v54, %v5511_v52 }
 0x400   :  { %11848 = vst [vmem:[#allocation8_spill] sm:$0xff] %v9929_v26  ;;  %v5514_v35 = vpop.f32.mrf.mxu0  ;;  %v9931_v30 = vpop.f32.mrf.mxu1 }
 0x401   :  { %v4031_v3 = vadd.f32 %v5513_v19, %v9883_v22 }
 0x402   :  { %v5515_v16 = vpop.f32.mrf.mxu0  ;;  %v9934_v15 = vpop.f32.mrf.mxu1 }
 0x403   :  { %v5516_v12 = vadd.f32 %v5515_v16, %v5514_v35  ;;  %v9936_v57 = vadd.f32 %v5593_v63, %v4031_v3 }
 0x404   :  { %v5629_v50 = vpop.f32.mrf.mxu0  ;;  %v9938_v6 = vpop.f32.mrf.mxu1 }
 0x405   :  { %11849 = vst [vmem:[#allocation148_spill] sm:$0xff] %v9936_v57  ;;  %v4046_v41 = vadd.f32 %v5516_v12, %v9883_v22 }
 0x406   :  { %v5630_v10 = vpop.f32.mrf.mxu0  ;;  %v9941_v9 = vpop.f32.mrf.mxu1 }
 0x407   :  { %v9943_v61 = vadd.f32 %v5596_v62, %v4046_v41  ;;  %v5631_v13 = vadd.f32 %v5630_v10, %v5629_v50 }
 0x408   :  { %v5632_v48 = vpop.f32.mrf.mxu0  ;;  %v9945_v2 = vpop.f32.mrf.mxu1 }
 0x409   :  { %11850 = vst [vmem:[#allocation14_spill] sm:$0xff] %v9943_v61 }
 0x40a   :  { %v5633_v31 = vpop.f32.mrf.mxu0  ;;  %v9947_v11 = vpop.f32.mrf.mxu1 }
 0x40c   :  { %v9949_v58 = vpop.f32.mrf.mxu0  ;;  %v9951_v60 = vpop.f32.mrf.mxu1 }
 0x40e   :  { %v9953_v34 = vpop.f32.mrf.mxu0  ;;  %v9955_v39 = vpop.f32.mrf.mxu1 }
 0x40f   :  { %v5637_v50 = vadd.f32 %v9953_v34, %v9949_v58 }
 0x410   :  { %v9957_v22 = vpop.f32.mrf.mxu0  ;;  %v9959_v20 = vpop.f32.mrf.mxu1 }
 0x412   :  { %v9961_v55 = vpop.f32.mrf.mxu0  ;;  %v9963_v5 = vpop.f32.mrf.mxu1 }
 0x414   :  { %v9965_v18 = vpop.f32.mrf.mxu0  ;;  %v9967_v42 = vpop.f32.mrf.mxu1 }
 0x416   :  { %v9969_v29 = vpop.f32.mrf.mxu0  ;;  %v9971_v44 = vpop.f32.mrf.mxu1 }
 0x418   :  { %v9973_v33 = vpop.f32.mrf.mxu0  ;;  %v9975_v46 = vpop.f32.mrf.mxu1 }
 0x41a   :  { %v9977_v27 = vpop.f32.mrf.mxu0  ;;  %v9979_v51 = vpop.f32.mrf.mxu1 }
 0x41c   :  { %v9981_v28 = vpop.f32.mrf.mxu0  ;;  %v9983_v17 = vpop.f32.mrf.mxu1 }
 0x41e   :  { %v9985_v25 = vpop.f32.mrf.mxu0  ;;  %v9987_v63 = vpop.f32.mrf.mxu1 }
 0x420   :  { %v9989_v43 = vpop.f32.mrf.mxu0  ;;  %v9991_v7 = vpop.f32.mrf.mxu1 }
 0x421   :  { %11851 = vst [vmem:[#allocation18_spill] sm:$0xff] %v9991_v7 }
 0x422   :  { %v9993_v32 = vpop.f32.mrf.mxu0  ;;  %v9995_v21 = vpop.f32.mrf.mxu1 }
 0x423   :  { %11852 = vst [vmem:[#allocation9_spill] sm:$0xff] %v9995_v21  ;;  %v5634_v21 = vadd.f32 %v5633_v31, %v5632_v48  ;;  %v5714_v48 = vadd.f32 %v9934_v15, %v9931_v30  ;;  %v5717_v30 = vadd.f32 %v9941_v9, %v9938_v6  ;;  %v5720_v6 = vadd.f32 %v9947_v11, %v9945_v2 }
 0x424   :  { %v9997_v0 = vpop.f32.mrf.mxu0  ;;  %v9999_v40 = vpop.f32.mrf.mxu1  ;;  %v5723_v2 = vadd.f32 %v9955_v39, %v9951_v60 }
 0x425   :  { %11853 = vst [vmem:[#allocation151_spill] sm:$0xff] %v9999_v40 }
 0x426   :  { %v10001_v62 = vpop.f32.mrf.mxu0  ;;  %v10003_v52 = vpop.f32.mrf.mxu1 }
 0x427   :  { %11854 = vst [vmem:[#allocation153_spill] sm:$0xff] %v10003_v52 }
 0x428   :  { %v10005_v38 = vpop.f32.mrf.mxu0  ;;  %v10007_v54 = vpop.f32.mrf.mxu1 }
 0x429   :  { %11855 = vst [vmem:[#allocation134_spill] sm:$0xff] %v10007_v54 }
 0x42a   :  { %v10009_v19 = vpop.f32.mrf.mxu0  ;;  %v10011_v35 = vpop.f32.mrf.mxu1 }
 0x42b   :  { %11856 = vst [vmem:[#allocation135_spill] sm:$0xff] %v10011_v35 }
 0x42c   :  { %v10013_v3 = vpop.f32.mrf.mxu0  ;;  %v10015_v16 = vpop.f32.mrf.mxu1 }
 0x42d   :  { %11857 = vst [vmem:[#allocation152_spill] sm:$0xff] %v10013_v3  ;;  %11858 = vst [vmem:[#allocation155_spill] sm:$0xff] %v10015_v16 }
 0x42e   :  { %v10017_v12 = vpop.f32.mrf.mxu0  ;;  %v10019_v41 = vpop.f32.mrf.mxu1 }
 0x42f   :  { %11859 = vst [vmem:[#allocation136_spill] sm:$0xff] %v10017_v12  ;;  %11860 = vst [vmem:[#allocation137_spill] sm:$0xff] %v10019_v41 }
 0x430   :  { %v10021_v61 = vpop.f32.mrf.mxu0  ;;  %v10023_v57 = vpop.f32.mrf.mxu1 }
 0x431   :  { %11861 = vst [vmem:[#allocation154_spill] sm:$0xff] %v10021_v61  ;;  %11862 = vst [vmem:[#allocation157_spill] sm:$0xff] %v10023_v57 }
 0x432   :  { %v10025_v26 = vpop.f32.mrf.mxu0  ;;  %v10027_v1 = vpop.f32.mrf.mxu1 }
 0x433   :  { %11863 = vst [vmem:[#allocation138_spill] sm:$0xff] %v10025_v26  ;;  %11864 = vst [vmem:[#allocation139_spill] sm:$0xff] %v10027_v1 }
 0x434   :  { %v10029_v54 = vpop.f32.mrf.mxu0  ;;  %v10031_v37 = vpop.f32.mrf.mxu1 }
 0x435   :  { %11865 = vst [vmem:[#allocation156_spill] sm:$0xff] %v10029_v54  ;;  %11866 = vst [vmem:[#allocation140_spill] sm:$0xff] %v10031_v37 }
 0x436   :  { %v10033_v35 = vpop.f32.mrf.mxu0  ;;  %v10035_v52 = vpop.f32.mrf.mxu1 }
 0x437   :  { %11867 = vst [vmem:[#allocation141_spill] sm:$0xff] %v10033_v35  ;;  %11868 = vst [vmem:[#allocation158_spill] sm:$0xff] %v10035_v52 }
 0x438   :  { %v10037_v16 = vpop.f32.mrf.mxu0  ;;  %v10039_v40 = vpop.f32.mrf.mxu1 }
 0x439   :  { %11869 = vst [vmem:[#allocation160_spill] sm:$0xff] %v10037_v16  ;;  %11870 = vst [vmem:[#allocation63_spill] sm:$0xff] %v10039_v40  ;;  %v4521_v40 = vadd.f32 %v5631_v13, %v9886_v47 }
 0x43a   :  { %v10041_v41 = vpop.f32.mrf.mxu0  ;;  %v10043_v61 = vpop.f32.mrf.mxu1 }
 0x43b   :  { %11871 = vst [vmem:[#allocation142_spill] sm:$0xff] %v10041_v41  ;;  %11872 = vst [vmem:[#allocation56_spill] sm:$0xff] %v10043_v61  ;;  %v5711_v61 = vadd.f32 %v9927_v24, %v9924_v23  ;;  %v5640_v24 = vadd.f32 %v9961_v55, %v9957_v22 }
 0x43c   :  { %v10045_v57 = vpop.f32.mrf.mxu0  ;;  %v5869_v26 = vpop.f32.mrf.mxu1 }
 0x43d   :  { %11873 = vst [vmem:[#allocation49_spill] sm:$0xff] %v10045_v57  ;;  %v4530_v57 = vadd.f32 %v5634_v21, %v9889_v53  ;;  %v4764_v10 = vadd.f32 %v5711_v61, %v4521_v40  ;;  %v4539_v53 = vadd.f32 %v5637_v50, %v9892_v14  ;;  %v5643_v14 = vadd.f32 %v9969_v29, %v9965_v18 }
 0x43e   :  { %v10047_v1 = vpop.f32.mrf.mxu0  ;;  %v5870_v54 = vpop.f32.mrf.mxu1  ;;  %v4548_v34 = vadd.f32 %v5640_v24, %v9895_v45  ;;  %v5646_v45 = vadd.f32 %v9977_v27, %v9973_v33  ;;  %v5649_v27 = vadd.f32 %v9985_v25, %v9981_v28 }
 0x43f   :  { %11874 = vst [vmem:[#allocation34_spill] sm:$0xff] %v10047_v1  ;;  %v5871_v47 = vadd.f32 %v5870_v54, %v5869_v26  ;;  %v4775_v12 = vadd.f32 %v5714_v48, %v4530_v57  ;;  %v4786_v55 = vadd.f32 %v5717_v30, %v4539_v53  ;;  %v4557_v18 = vadd.f32 %v5643_v14, %v9898_v36 }
 0x440   :  { %v10049_v37 = vpop.f32.mrf.mxu0  ;;  %v5872_v35 = vpop.f32.mrf.mxu1  ;;  %v4566_v33 = vadd.f32 %v5646_v45, %v9901_v59  ;;  %v5652_v59 = vadd.f32 %v9993_v32, %v9989_v43  ;;  %v4575_v28 = vadd.f32 %v5649_v27, %v9904_v49  ;;  %v5655_v49 = vadd.f32 %v10001_v62, %v9997_v0 }
 0x441   :  { %11875 = vst [vmem:[#allocation29_spill] sm:$0xff] %v10049_v37  ;;  %v5658_v62 = vadd.f32 %v10009_v19, %v10005_v38  ;;  %v11879_v38 = vld [vmem:[#allocation6_spill] sm:$0xff] }
 0x442   :  { %v10051_v52 = vpop.f32.mrf.mxu0  ;;  %v5873_v16 = vpop.f32.mrf.mxu1  ;;  %v4584_v43 = vadd.f32 %v5652_v59, %v9907_v4  ;;  %v4593_v0 = vadd.f32 %v5655_v49, %v9910_v56  ;;  %v11886_v59 = vld [vmem:[#allocation153_spill] sm:$0xff] }
 0x443   :  { %11876 = vst [vmem:[#allocation51_spill] sm:$0xff] %v10051_v52  ;;  %v5874_v15 = vadd.f32 %v5873_v16, %v5872_v35  ;;  %v4602_v19 = vadd.f32 %v5658_v62, %v11879_v38  ;;  %v11894_v62 = vld [vmem:[#allocation10_spill] sm:$0xff] }
 0x444   :  { %v5789_v7 = vpop.f32.mrf.mxu0  ;;  %v5875_v41 = vpop.f32.mrf.mxu1 }
 0x446   :  { %v5790_v8 = vpop.f32.mrf.mxu0  ;;  %v5876_v1 = vpop.f32.mrf.mxu1 }
 0x447   :  { %v5791_v37 = vadd.f32 %v5790_v8, %v5789_v7  ;;  %v5877_v9 = vadd.f32 %v5876_v1, %v5875_v41 }
 0x448   :  { %v5792_v31 = vpop.f32.mrf.mxu0  ;;  %v5878_v52 = vpop.f32.mrf.mxu1 }
 0x449   :  { %v5097_v13 = vadd.f32 %v5791_v37, %v4764_v10  ;;  %v4808_v10 = vadd.f32 %v5723_v2, %v4557_v18 }
 0x44a   :  { %v5793_v3 = vpop.f32.mrf.mxu0  ;;  %v5879_v23 = vpop.f32.mrf.mxu1 }
 0x44b   :  { %v5306_v21 = vadd.f32 %v5871_v47, %v5097_v13  ;;  %v5794_v58 = vadd.f32 %v5793_v3, %v5792_v31  ;;  %v5880_v41 = vadd.f32 %v5879_v23, %v5878_v52  ;;  %v5726_v52 = vadd.f32 %v9963_v5, %v9959_v20 }
 0x44c   :  { %v5795_v61 = vpop.f32.mrf.mxu0  ;;  %v5881_v8 = vpop.f32.mrf.mxu1  ;;  %v5729_v20 = vadd.f32 %v9971_v44, %v9967_v42  ;;  %v5732_v42 = vadd.f32 %v9979_v51, %v9975_v46 }
 0x44d   :  { %5415 = vst.msk [vmem:[%s10200_s7] sm:$0xff] %vm5414_vm1, %v5306_v21  ;;  %v5104_v37 = vadd.f32 %v5794_v58, %v4775_v12  ;;  %v4797_v12 = vadd.f32 %v5720_v6, %v4548_v34  ;;  %v4819_v58 = vadd.f32 %v5726_v52, %v4566_v33 }
 0x44e   :  { %v5796_v26 = vpop.f32.mrf.mxu0  ;;  %v5882_v57 = vpop.f32.mrf.mxu1 }
 0x44f   :  { %v5313_v22 = vadd.f32 %v5874_v15, %v5104_v37  ;;  %v5797_v7 = vadd.f32 %v5796_v26, %v5795_v61  ;;  %v5883_v23 = vadd.f32 %v5882_v57, %v5881_v8  ;;  %v4830_v26 = vadd.f32 %v5729_v20, %v4575_v28  ;;  %v11887_v20 = vld [vmem:[#allocation55_spill] sm:$0xff] }
 0x450   :  { %v5798_v40 = vpop.f32.mrf.mxu0  ;;  %v5884_v54 = vpop.f32.mrf.mxu1 }
 0x451   :  { %5416 = vst.msk [vmem:[%s10200_s7 + $0x8] sm:$0xff] %vm5414_vm1, %v5313_v22  ;;  %v5111_v35 = vadd.f32 %v5797_v7, %v4786_v55  ;;  %v4841_v55 = vadd.f32 %v5732_v42, %v4584_v43  ;;  %v11889_v43 = vld [vmem:[#allocation141_spill] sm:$0xff]  ;;  %v11891_v42 = vld [vmem:[#allocation135_spill] sm:$0xff] }
 0x452   :  { %v5799_v29 = vpop.f32.mrf.mxu0  ;;  %v5885_v3 = vpop.f32.mrf.mxu1 }
 0x453   :  { %v5320_v16 = vadd.f32 %v5877_v9, %v5111_v35  ;;  %v5800_v50 = vadd.f32 %v5799_v29, %v5798_v40  ;;  %v5886_v5 = vadd.f32 %v5885_v3, %v5884_v54  ;;  %v5735_v9 = vadd.f32 %v9987_v63, %v9983_v17  ;;  %v11877_v29 = vld [vmem:[#allocation152_spill] sm:$0xff]  ;;  %v11880_v17 = vld [vmem:[#allocation18_spill] sm:$0xff]  ;;  %v11881_v63 = vld [vmem:[#allocation9_spill] sm:$0xff] }
 0x454   :  { %v5801_v1 = vpop.f32.mrf.mxu0  ;;  %v5887_v11 = vpop.f32.mrf.mxu1  ;;  %v11878_v3 = vld [vmem:[#allocation136_spill] sm:$0xff] }
 0x455   :  { %5417 = vst.msk [vmem:[%s10200_s7 + $0x10] sm:$0xff] %vm5414_vm1, %v5320_v16  ;;  %v5118_v36 = vadd.f32 %v5800_v50, %v4797_v12  ;;  %v5661_v56 = vadd.f32 %v11878_v3, %v11877_v29  ;;  %v4852_v50 = vadd.f32 %v5735_v9, %v4593_v0  ;;  %v11896_v29 = vld [vmem:[#allocation137_spill] sm:$0xff] }
 0x456   :  { %v5802_v48 = vpop.f32.mrf.mxu0  ;;  %v5888_v31 = vpop.f32.mrf.mxu1 }
 0x457   :  { %v5327_v47 = vadd.f32 %v5880_v41, %v5118_v36  ;;  %v5803_v13 = vadd.f32 %v5802_v48, %v5801_v1  ;;  %v5889_v22 = vadd.f32 %v5888_v31, %v5887_v11  ;;  %v5738_v41 = vadd.f32 %v11881_v63, %v11880_v17  ;;  %v11882_v48 = vld [vmem:[#allocation147_spill] sm:$0xff] }
 0x458   :  { %v5804_v60 = vpop.f32.mrf.mxu0  ;;  %v5890_v39 = vpop.f32.mrf.mxu1  ;;  %v4611_v31 = vadd.f32 %v5661_v56, %v11882_v48 }
 0x459   :  { %5418 = vst.msk [vmem:[%s10200_s7 + $0x18] sm:$0xff] %vm5414_vm1, %v5327_v47  ;;  %v5125_v53 = vadd.f32 %v5803_v13, %v4808_v10  ;;  %v11883_v47 = vld [vmem:[#allocation154_spill] sm:$0xff]  ;;  %v4863_v52 = vadd.f32 %v5738_v41, %v4602_v19  ;;  %v11900_v41 = vld [vmem:[#allocation157_spill] sm:$0xff] }
 0x45a   :  { %v5805_v24 = vpop.f32.mrf.mxu0  ;;  %v5891_v21 = vpop.f32.mrf.mxu1  ;;  %v11884_v13 = vld [vmem:[#allocation138_spill] sm:$0xff] }
 0x45b   :  { %v5334_v25 = vadd.f32 %v5883_v23, %v5125_v53  ;;  %v5806_v61 = vadd.f32 %v5805_v24, %v5804_v60  ;;  %v5892_v35 = vadd.f32 %v5891_v21, %v5890_v39  ;;  %v5664_v60 = vadd.f32 %v11884_v13, %v11883_v47  ;;  %v11885_v53 = vld [vmem:[#allocation151_spill] sm:$0xff]  ;;  %v11902_v13 = vld [vmem:[#allocation148_spill] sm:$0xff] }
 0x45c   :  { %v5807_v30 = vpop.f32.mrf.mxu0  ;;  %v5893_v15 = vpop.f32.mrf.mxu1  ;;  %v5741_v24 = vadd.f32 %v11886_v59, %v11885_v53 }
 0x45d   :  { %5419 = vst.msk [vmem:[%s10200_s7 + $0x20] sm:$0xff] %vm5414_vm1, %v5334_v25  ;;  %v5132_v8 = vadd.f32 %v5806_v61, %v4819_v58 }
 0x45e   :  { %v5808_v32 = vpop.f32.mrf.mxu0  ;;  %v5894_v37 = vpop.f32.mrf.mxu1  ;;  %v4874_v61 = vadd.f32 %v5741_v24, %v4611_v31 }
 0x45f   :  { %v5341_v14 = vadd.f32 %v5886_v5, %v5132_v8  ;;  %v5809_v57 = vadd.f32 %v5808_v32, %v5807_v30  ;;  %v5895_v36 = vadd.f32 %v5894_v37, %v5893_v15  ;;  %v4620_v5 = vadd.f32 %v5664_v60, %v11887_v20  ;;  %v11888_v8 = vld [vmem:[#allocation156_spill] sm:$0xff]  ;;  %v11907_v20 = vld [vmem:[#allocation14_spill] sm:$0xff] }
 0x460   :  { %v5810_v44 = vpop.f32.mrf.mxu0  ;;  %v5896_v34 = vpop.f32.mrf.mxu1  ;;  %v5667_v32 = vadd.f32 %v11889_v43, %v11888_v8 }
 0x461   :  { %5420 = vst.msk [vmem:[%s10200_s7 + $0x28] sm:$0xff] %vm5414_vm1, %v5341_v14  ;;  %v5139_v4 = vadd.f32 %v5809_v57, %v4830_v26  ;;  %v11890_v57 = vld [vmem:[#allocation134_spill] sm:$0xff] }
 0x462   :  { %v5811_v7 = vpop.f32.mrf.mxu0  ;;  %v5897_v40 = vpop.f32.mrf.mxu1 }
 0x463   :  { %v5348_v54 = vadd.f32 %v5889_v22, %v5139_v4  ;;  %v5812_v6 = vadd.f32 %v5811_v7, %v5810_v44  ;;  %v5898_v25 = vadd.f32 %v5897_v40, %v5896_v34  ;;  %v5744_v44 = vadd.f32 %v11891_v42, %v11890_v57  ;;  %v11892_v4 = vld [vmem:[#allocation160_spill] sm:$0xff] }
 0x464   :  { %v5813_v46 = vpop.f32.mrf.mxu0  ;;  %v5899_v51 = vpop.f32.mrf.mxu1 }
 0x465   :  { %5421 = vst.msk [vmem:[%s10200_s7 + $0x30] sm:$0xff] %vm5414_vm1, %v5348_v54  ;;  %v5146_v18 = vadd.f32 %v5812_v6, %v4841_v55  ;;  %v11893_v55 = vld [vmem:[#allocation142_spill] sm:$0xff]  ;;  %v4629_v54 = vadd.f32 %v5667_v32, %v11894_v62 }
 0x466   :  { %v5814_v45 = vpop.f32.mrf.mxu0  ;;  %v5900_v16 = vpop.f32.mrf.mxu1  ;;  %v5670_v7 = vadd.f32 %v11893_v55, %v11892_v4 }
 0x467   :  { %v5355_v12 = vadd.f32 %v5892_v35, %v5146_v18  ;;  %v5815_v2 = vadd.f32 %v5814_v45, %v5813_v46  ;;  %v5901_v34 = vadd.f32 %v5900_v16, %v5899_v51  ;;  %v4885_v46 = vadd.f32 %v5744_v44, %v4620_v5  ;;  %v11895_v18 = vld [vmem:[#allocation155_spill] sm:$0xff]  ;;  %v11897_v45 = vld [vmem:[#allocation8_spill] sm:$0xff] }
 0x468   :  { %v5816_v1 = vpop.f32.mrf.mxu0  ;;  %v5902_v11 = vpop.f32.mrf.mxu1  ;;  %v5747_v51 = vadd.f32 %v11896_v29, %v11895_v18  ;;  %v4638_v16 = vadd.f32 %v5670_v7, %v11897_v45 }
 0x469   :  { %5422 = vst.msk [vmem:[%s10200_s7 + $0x38] sm:$0xff] %vm5414_vm1, %v5355_v12  ;;  %v5153_v10 = vadd.f32 %v5815_v2, %v4852_v50  ;;  %v11898_v12 = vld [vmem:[#allocation49_spill] sm:$0xff]  ;;  %v11899_v50 = vld [vmem:[#allocation34_spill] sm:$0xff] }
 0x46a   :  { %v5817_v33 = vpop.f32.mrf.mxu0  ;;  %v5903_v27 = vpop.f32.mrf.mxu1  ;;  %v5673_v2 = vadd.f32 %v11899_v50, %v11898_v12  ;;  %v4896_v17 = vadd.f32 %v5747_v51, %v4629_v54 }
 0x46b   :  { %v5362_v39 = vadd.f32 %v5895_v36, %v5153_v10  ;;  %v5818_v23 = vadd.f32 %v5817_v33, %v5816_v1  ;;  %v5904_v3 = vadd.f32 %v5903_v27, %v5902_v11  ;;  %v11901_v36 = vld [vmem:[#allocation139_spill] sm:$0xff] }
 0x46c   :  { %v5819_v21 = vpop.f32.mrf.mxu0  ;;  %v5905_v28 = vpop.f32.mrf.mxu1  ;;  %v5750_v10 = vadd.f32 %v11901_v36, %v11900_v41  ;;  %v4647_v60 = vadd.f32 %v5673_v2, %v11902_v13 }
 0x46d   :  { %5423 = vst.msk [vmem:[%s10200_s7 + $0x40] sm:$0xff] %vm5414_vm1, %v5362_v39  ;;  %v5160_v58 = vadd.f32 %v5818_v23, %v4863_v52  ;;  %v11903_v39 = vld [vmem:[#allocation29_spill] sm:$0xff]  ;;  %v11904_v52 = vld [vmem:[#allocation51_spill] sm:$0xff] }
 0x46e   :  { %v5820_v30 = vpop.f32.mrf.mxu0  ;;  %v5906_v15 = vpop.f32.mrf.mxu1  ;;  %v4907_v27 = vadd.f32 %v5750_v10, %v4638_v16  ;;  %v5676_v23 = vadd.f32 %v11904_v52, %v11903_v39 }
 0x46f   :  { %v5369_v37 = vadd.f32 %v5898_v25, %v5160_v58  ;;  %v5821_v49 = vadd.f32 %v5820_v30, %v5819_v21  ;;  %v5907_v48 = vadd.f32 %v5906_v15, %v5905_v28  ;;  %v11905_v21 = vld [vmem:[#allocation140_spill] sm:$0xff]  ;;  %v11906_v25 = vld [vmem:[#allocation158_spill] sm:$0xff] }
 0x470   :  { %v5822_v14 = vpop.f32.mrf.mxu0  ;;  %v5908_v26 = vpop.f32.mrf.mxu1  ;;  %v5753_v28 = vadd.f32 %v11906_v25, %v11905_v21  ;;  %v4656_v5 = vadd.f32 %v5676_v23, %v11907_v20 }
 0x471   :  { %5424 = vst.msk [vmem:[%s10200_s7 + $0x48] sm:$0xff] %vm5414_vm1, %v5369_v37  ;;  %v5167_v22 = vadd.f32 %v5821_v49, %v4874_v61  ;;  %v11908_v49 = vld [vmem:[#allocation63_spill] sm:$0xff] }
 0x472   :  { %v5823_v40 = vpop.f32.mrf.mxu0  ;;  %v5909_v0 = vpop.f32.mrf.mxu1  ;;  %v4918_v43 = vadd.f32 %v5753_v28, %v4647_v60 }
 0x473   :  { %v5376_v6 = vadd.f32 %v5901_v34, %v5167_v22  ;;  %v5824_v9 = vadd.f32 %v5823_v40, %v5822_v14  ;;  %v5910_v58 = vadd.f32 %v5909_v0, %v5908_v26  ;;  %v11909_v14 = vld [vmem:[#allocation56_spill] sm:$0xff] }
 0x474   :  { %v5825_v35 = vpop.f32.mrf.mxu0  ;;  %v5911_v38 = vpop.f32.mrf.mxu1  ;;  %v5756_v57 = vadd.f32 %v11909_v14, %v11908_v49 }
 0x475   :  { %5425 = vst.msk [vmem:[%s10200_s7 + $0x50] sm:$0xff] %vm5414_vm1, %v5376_v6  ;;  %v5174_v56 = vadd.f32 %v5824_v9, %v4885_v46 }
 0x476   :  { %v5826_v19 = vpop.f32.mrf.mxu0  ;;  %v5912_v33 = vpop.f32.mrf.mxu1  ;;  %v4929_v4 = vadd.f32 %v5756_v57, %v4656_v5 }
 0x477   :  { %v5383_v1 = vadd.f32 %v5904_v3, %v5174_v56  ;;  %v5827_v63 = vadd.f32 %v5826_v19, %v5825_v35  ;;  %v5913_v42 = vadd.f32 %v5912_v33, %v5911_v38 }
 0x478   :  { %v5828_v11 = vpop.f32.mrf.mxu0  ;;  %v5914_v30 = vpop.f32.mrf.mxu1 }
 0x479   :  { %5426 = vst.msk [vmem:[%s10200_s7 + $0x58] sm:$0xff] %vm5414_vm1, %v5383_v1  ;;  %v5181_v31 = vadd.f32 %v5827_v63, %v4896_v17 }
 0x47a   :  { %v5829_v47 = vpop.f32.mrf.mxu0  ;;  %v5915_v44 = vpop.f32.mrf.mxu1 }
 0x47b   :  { %v5390_v53 = vadd.f32 %v5907_v48, %v5181_v31  ;;  %v5830_v59 = vadd.f32 %v5829_v47, %v5828_v11  ;;  %v5916_v7 = vadd.f32 %v5915_v44, %v5914_v30 }
 0x47c   :  { %v5831_v24 = vpop.f32.mrf.mxu0 }
 0x47d   :  { %5427 = vst.msk [vmem:[%s10200_s7 + $0x60] sm:$0xff] %vm5414_vm1, %v5390_v53  ;;  %v5188_v61 = vadd.f32 %v5830_v59, %v4907_v27 }
 0x47e   :  { %v5832_v15 = vpop.f32.mrf.mxu0 }
 0x47f   :  { %v5397_v8 = vadd.f32 %v5910_v58, %v5188_v61  ;;  %v5833_v32 = vadd.f32 %v5832_v15, %v5831_v24 }
 0x480   :  { %v5834_v37 = vpop.f32.mrf.mxu0 }
 0x481   :  { %5428 = vst.msk [vmem:[%s10200_s7 + $0x68] sm:$0xff] %vm5414_vm1, %v5397_v8  ;;  %v5195_v26 = vadd.f32 %v5833_v32, %v4918_v43 }
 0x482   :  { %v5835_v34 = vpop.f32.mrf.mxu0 }
 0x483   :  { %v5404_v22 = vadd.f32 %v5913_v42, %v5195_v26  ;;  %v5836_v55 = vadd.f32 %v5835_v34, %v5834_v37 }
 0x485   :  { %5429 = vst.msk [vmem:[%s10200_s7 + $0x70] sm:$0xff] %vm5414_vm1, %v5404_v22  ;;  %v5202_v40 = vadd.f32 %v5836_v55, %v4929_v4 }
 0x487   :  { %v5411_v0 = vadd.f32 %v5916_v7, %v5202_v40 }
 0x489   :  { %5430 = vst.msk [vmem:[%s10200_s7 + $0x78] sm:$0xff] %vm5414_vm1, %v5411_v0 }
 0x48a   :  { %5435 = vsyncpa [#allocation3], 1 }

</bundles_post_ra>
